<compile_context>
chip_gen: v6e
topology: v6e:2x2x1
jax: 0.10.0
libtpu: 0.0.40
codegen_flags: <defaults>
</compile_context>

<pallas_src>
import jax
import jax.numpy as jnp
from jax.experimental import pallas as pl
from jax.experimental.pallas import tpu as pltpu

KH, KW = 5, 5        # kernel size (fixed by the module)
STRIDE = 2
PAD = 2
EPS = 1e-5


def _dwconv_bn_relu_kernel(xph_ref, w_ref, gamma_ref, beta_ref, o_ref):
    """Fused depthwise-conv + batchnorm(batch stats) + relu.

    xph_ref  : (N, 2, 2, Hp, Wp, C) polyphase-decomposed padded input
    w_ref    : (KH, KW, C)          depthwise filter taps
    gamma_ref: (1, C)               BN scale
    beta_ref : (1, C)               BN shift
    o_ref    : (N*Ho*Wo, C)         output (flat rows, channels on lanes)
    """
    N, _, _, Hp, Wp, C = xph_ref.shape
    Ho, Wo = Hp - 2, Wp - 2

    # --- depthwise conv: stride-2 conv as 25 unstrided shifted MACs.
    # Outer loop over kw: each of the 5 distinct (q, b) column patterns is a
    # single sublane-shifted slice, reused by all 5 kh taps.  The inner kh
    # offsets only touch the major Hp axis (free vreg selection).
    acc = jnp.zeros((N, Ho, Wo, C), jnp.float32)
    for kw in range(KW):
        q, b = kw % 2, kw // 2
        col = xph_ref[:, :, q, :, b:b + Wo, :]           # (N, 2, Hp, Wo, C)
        for kh in range(KH):
            p, a = kh % 2, kh // 2
            patch = col[:, p, a:a + Ho, :, :]            # (N, Ho, Wo, C)
            acc = acc + patch * w_ref[kh, kw, :]

    # --- BatchNorm2d (training mode: biased batch statistics over N,H,W),
    #     folded into one per-channel scale/shift, then ReLU.
    flat = acc.reshape(N * Ho * Wo, C)                               # majors-only reshape
    mean = jnp.mean(flat, axis=0, keepdims=True)                     # (1, C)
    var = jnp.mean(jnp.square(flat - mean), axis=0, keepdims=True)   # (1, C), two-pass
    scale = jax.lax.rsqrt(var + EPS) * gamma_ref[...]                # (1, C)
    shift = beta_ref[...] - mean * scale                             # (1, C)
    o_ref[...] = jnp.maximum(flat * scale + shift, 0.0)


@jax.jit
def dwconv_bn_relu(x_nchw, w_khkwc, gamma, beta):
    """x_nchw: (N, C, H, W) float32; returns (N, C, Ho, Wo) float32."""
    N, C, H, W = x_nchw.shape
    Ho = (H + 2 * PAD - KH) // STRIDE + 1
    Wo = (W + 2 * PAD - KW) // STRIDE + 1
    Hp, Wp = Ho + 2, Wo + 2   # per-phase extents ((KH-1)//2 == 2 extra rows/cols)

    # One pad (still NCHW), then ONE transpose that does both the layout change
    # (channels-last) and the 2x2 polyphase decomposition:
    #   xph[n, p, q, i, j, c] = x_pad[n, c, 2i+p, 2j+q]
    x_pad = jnp.pad(
        x_nchw,
        ((0, 0), (0, 0),
         (PAD, 2 * Hp - H - PAD),
         (PAD, 2 * Wp - W - PAD)),
    )                                                    # (N, C, 2Hp, 2Wp)
    xph = jnp.transpose(
        x_pad.reshape(N, C, Hp, 2, Wp, 2),               # free (metadata) reshape
        (0, 3, 5, 2, 4, 1),
    )                                                    # (N, 2, 2, Hp, Wp, C)

    vmem = pl.BlockSpec(memory_space=pltpu.MemorySpace.VMEM)
    out_flat = pl.pallas_call(
        _dwconv_bn_relu_kernel,
        out_shape=jax.ShapeDtypeStruct((N * Ho * Wo, C), jnp.float32),
        in_specs=[vmem, vmem, vmem, vmem],
        out_specs=vmem,
        compiler_params=pltpu.CompilerParams(vmem_limit_bytes=32 * 1024 * 1024),
    )(xph, w_khkwc, gamma, beta)

    # Back to PyTorch NCHW layout.
    return jnp.transpose(out_flat.reshape(N, Ho, Wo, C), (0, 3, 1, 2))


def reference(x_nchw, w_khkwc, gamma, beta):
    """Pure-JAX reference matching PyTorch forward semantics."""
    C = x_nchw.shape[1]
    w_oihw = jnp.transpose(w_khkwc, (2, 0, 1))[:, None, :, :]  # (C,1,KH,KW)
    y = jax.lax.conv_general_dilated(
        x_nchw, w_oihw,
        window_strides=(STRIDE, STRIDE),
        padding=((PAD, PAD), (PAD, PAD)),
        feature_group_count=C,
        dimension_numbers=("NCHW", "OIHW", "NCHW"),
    )
    mean = jnp.mean(y, axis=(0, 2, 3), keepdims=True)
    var = jnp.var(y, axis=(0, 2, 3), keepdims=True)
    yn = (y - mean) * jax.lax.rsqrt(var + EPS)
    yn = yn * gamma.reshape(1, -1, 1, 1) + beta.reshape(1, -1, 1, 1)
    return jnp.maximum(yn, 0.0)


if __name__ == "__main__":
    key = jax.random.PRNGKey(0)
    k1, k2, k3, k4 = jax.random.split(key, 4)

    # Channels fixed at 144 by the module; batch/spatial kept small.
    N, C, H, W = 2, 144, 16, 16
    x = jax.random.normal(k1, (N, C, H, W), jnp.float32)

    # Deterministic parameter init (shapes implied by the module __init__):
    #   Conv2d weight (144, 1, 5, 5) -> stored as (5, 5, 144) for the kernel.
    #   BatchNorm2d affine weight/bias (144,) -> stored as (1, 144).
    w = jax.random.normal(k2, (KH, KW, C), jnp.float32) * 0.1
    gamma = 1.0 + 0.1 * jax.random.normal(k3, (1, C), jnp.float32)
    beta = 0.1 * jax.random.normal(k4, (1, C), jnp.float32)

    out = dwconv_bn_relu(x, w, gamma, beta)
    out = jax.block_until_ready(out)

    ref = reference(x, w, gamma, beta)
    err = float(jnp.max(jnp.abs(out - ref)))
    if err > 1e-3:
        raise AssertionError(f"Pallas kernel mismatch vs reference: {err}")

    print("KERNEL_OK")
</pallas_src>

<mosaic_0001>
module attributes {stable_mosaic.version = 11 : i64} {
  func.func @_dwconv_bn_relu_kernel(%arg0: memref<2x2x2x10x10x144xf32, #tpu.memory_space<vmem>>, %arg1: memref<5x5x144xf32, #tpu.memory_space<vmem>>, %arg2: memref<1x144xf32, #tpu.memory_space<vmem>>, %arg3: memref<1x144xf32, #tpu.memory_space<vmem>>, %arg4: memref<128x144xf32, #tpu.memory_space<vmem>>) attributes {dimension_semantics = [], scalar_prefetch = 0 : i64, scratch_operands = 0 : i64, tpu.core_type = #tpu.core_type<tc>} {
    %cst = arith.constant 0.000000e+00 : f32
    %0 = vector.broadcast %cst : f32 to vector<2x8x8x144xf32>
    %c0 = arith.constant 0 : index
    %c0_0 = arith.constant 0 : index
    %c0_1 = arith.constant 0 : index
    %c0_2 = arith.constant 0 : index
    %c0_3 = arith.constant 0 : index
    %c0_4 = arith.constant 0 : index
    %1 = vector.load %arg0[%c0, %c0_0, %c0_1, %c0_2, %c0_3, %c0_4] : memref<2x2x2x10x10x144xf32, #tpu.memory_space<vmem>>, vector<2x2x1x10x8x144xf32>
    %2 = vector.shape_cast %1 : vector<2x2x1x10x8x144xf32> to vector<2x2x10x8x144xf32>
    %3 = vector.extract_strided_slice %2 {offsets = [0, 0, 0, 0, 0], sizes = [2, 1, 8, 8, 144], strides = [1, 1, 1, 1, 1]} : vector<2x2x10x8x144xf32> to vector<2x1x8x8x144xf32>
    %4 = vector.shape_cast %3 : vector<2x1x8x8x144xf32> to vector<2x8x8x144xf32>
    %c0_5 = arith.constant 0 : index
    %c0_6 = arith.constant 0 : index
    %c0_7 = arith.constant 0 : index
    %5 = vector.load %arg1[%c0_5, %c0_6, %c0_7] : memref<5x5x144xf32, #tpu.memory_space<vmem>>, vector<1x1x144xf32>
    %6 = vector.shape_cast %5 : vector<1x1x144xf32> to vector<144xf32>
    %7 = vector.shape_cast %6 : vector<144xf32> to vector<1x1x1x144xf32>
    %8 = vector.broadcast %7 : vector<1x1x1x144xf32> to vector<2x8x8x144xf32>
    %9 = arith.mulf %4, %8 : vector<2x8x8x144xf32>
    %10 = arith.addf %0, %9 : vector<2x8x8x144xf32>
    %11 = vector.extract_strided_slice %2 {offsets = [0, 1, 0, 0, 0], sizes = [2, 1, 8, 8, 144], strides = [1, 1, 1, 1, 1]} : vector<2x2x10x8x144xf32> to vector<2x1x8x8x144xf32>
    %12 = vector.shape_cast %11 : vector<2x1x8x8x144xf32> to vector<2x8x8x144xf32>
    %c1 = arith.constant 1 : index
    %c0_8 = arith.constant 0 : index
    %c0_9 = arith.constant 0 : index
    %13 = vector.load %arg1[%c1, %c0_8, %c0_9] : memref<5x5x144xf32, #tpu.memory_space<vmem>>, vector<1x1x144xf32>
    %14 = vector.shape_cast %13 : vector<1x1x144xf32> to vector<144xf32>
    %15 = vector.shape_cast %14 : vector<144xf32> to vector<1x1x1x144xf32>
    %16 = vector.broadcast %15 : vector<1x1x1x144xf32> to vector<2x8x8x144xf32>
    %17 = arith.mulf %12, %16 : vector<2x8x8x144xf32>
    %18 = arith.addf %10, %17 : vector<2x8x8x144xf32>
    %19 = vector.extract_strided_slice %2 {offsets = [0, 0, 1, 0, 0], sizes = [2, 1, 8, 8, 144], strides = [1, 1, 1, 1, 1]} : vector<2x2x10x8x144xf32> to vector<2x1x8x8x144xf32>
    %20 = vector.shape_cast %19 : vector<2x1x8x8x144xf32> to vector<2x8x8x144xf32>
    %c2 = arith.constant 2 : index
    %c0_10 = arith.constant 0 : index
    %c0_11 = arith.constant 0 : index
    %21 = vector.load %arg1[%c2, %c0_10, %c0_11] : memref<5x5x144xf32, #tpu.memory_space<vmem>>, vector<1x1x144xf32>
    %22 = vector.shape_cast %21 : vector<1x1x144xf32> to vector<144xf32>
    %23 = vector.shape_cast %22 : vector<144xf32> to vector<1x1x1x144xf32>
    %24 = vector.broadcast %23 : vector<1x1x1x144xf32> to vector<2x8x8x144xf32>
    %25 = arith.mulf %20, %24 : vector<2x8x8x144xf32>
    %26 = arith.addf %18, %25 : vector<2x8x8x144xf32>
    %27 = vector.extract_strided_slice %2 {offsets = [0, 1, 1, 0, 0], sizes = [2, 1, 8, 8, 144], strides = [1, 1, 1, 1, 1]} : vector<2x2x10x8x144xf32> to vector<2x1x8x8x144xf32>
    %28 = vector.shape_cast %27 : vector<2x1x8x8x144xf32> to vector<2x8x8x144xf32>
    %c3 = arith.constant 3 : index
    %c0_12 = arith.constant 0 : index
    %c0_13 = arith.constant 0 : index
    %29 = vector.load %arg1[%c3, %c0_12, %c0_13] : memref<5x5x144xf32, #tpu.memory_space<vmem>>, vector<1x1x144xf32>
    %30 = vector.shape_cast %29 : vector<1x1x144xf32> to vector<144xf32>
    %31 = vector.shape_cast %30 : vector<144xf32> to vector<1x1x1x144xf32>
    %32 = vector.broadcast %31 : vector<1x1x1x144xf32> to vector<2x8x8x144xf32>
    %33 = arith.mulf %28, %32 : vector<2x8x8x144xf32>
    %34 = arith.addf %26, %33 : vector<2x8x8x144xf32>
    %35 = vector.extract_strided_slice %2 {offsets = [0, 0, 2, 0, 0], sizes = [2, 1, 8, 8, 144], strides = [1, 1, 1, 1, 1]} : vector<2x2x10x8x144xf32> to vector<2x1x8x8x144xf32>
    %36 = vector.shape_cast %35 : vector<2x1x8x8x144xf32> to vector<2x8x8x144xf32>
    %c4 = arith.constant 4 : index
    %c0_14 = arith.constant 0 : index
    %c0_15 = arith.constant 0 : index
    %37 = vector.load %arg1[%c4, %c0_14, %c0_15] : memref<5x5x144xf32, #tpu.memory_space<vmem>>, vector<1x1x144xf32>
    %38 = vector.shape_cast %37 : vector<1x1x144xf32> to vector<144xf32>
    %39 = vector.shape_cast %38 : vector<144xf32> to vector<1x1x1x144xf32>
    %40 = vector.broadcast %39 : vector<1x1x1x144xf32> to vector<2x8x8x144xf32>
    %41 = arith.mulf %36, %40 : vector<2x8x8x144xf32>
    %42 = arith.addf %34, %41 : vector<2x8x8x144xf32>
    %c0_16 = arith.constant 0 : index
    %c0_17 = arith.constant 0 : index
    %c1_18 = arith.constant 1 : index
    %c0_19 = arith.constant 0 : index
    %c0_20 = arith.constant 0 : index
    %c0_21 = arith.constant 0 : index
    %43 = vector.load %arg0[%c0_16, %c0_17, %c1_18, %c0_19, %c0_20, %c0_21] : memref<2x2x2x10x10x144xf32, #tpu.memory_space<vmem>>, vector<2x2x1x10x8x144xf32>
    %44 = vector.shape_cast %43 : vector<2x2x1x10x8x144xf32> to vector<2x2x10x8x144xf32>
    %45 = vector.extract_strided_slice %44 {offsets = [0, 0, 0, 0, 0], sizes = [2, 1, 8, 8, 144], strides = [1, 1, 1, 1, 1]} : vector<2x2x10x8x144xf32> to vector<2x1x8x8x144xf32>
    %46 = vector.shape_cast %45 : vector<2x1x8x8x144xf32> to vector<2x8x8x144xf32>
    %c0_22 = arith.constant 0 : index
    %c1_23 = arith.constant 1 : index
    %c0_24 = arith.constant 0 : index
    %47 = vector.load %arg1[%c0_22, %c1_23, %c0_24] : memref<5x5x144xf32, #tpu.memory_space<vmem>>, vector<1x1x144xf32>
    %48 = vector.shape_cast %47 : vector<1x1x144xf32> to vector<144xf32>
    %49 = vector.shape_cast %48 : vector<144xf32> to vector<1x1x1x144xf32>
    %50 = vector.broadcast %49 : vector<1x1x1x144xf32> to vector<2x8x8x144xf32>
    %51 = arith.mulf %46, %50 : vector<2x8x8x144xf32>
    %52 = arith.addf %42, %51 : vector<2x8x8x144xf32>
    %53 = vector.extract_strided_slice %44 {offsets = [0, 1, 0, 0, 0], sizes = [2, 1, 8, 8, 144], strides = [1, 1, 1, 1, 1]} : vector<2x2x10x8x144xf32> to vector<2x1x8x8x144xf32>
    %54 = vector.shape_cast %53 : vector<2x1x8x8x144xf32> to vector<2x8x8x144xf32>
    %c1_25 = arith.constant 1 : index
    %c1_26 = arith.constant 1 : index
    %c0_27 = arith.constant 0 : index
    %55 = vector.load %arg1[%c1_25, %c1_26, %c0_27] : memref<5x5x144xf32, #tpu.memory_space<vmem>>, vector<1x1x144xf32>
    %56 = vector.shape_cast %55 : vector<1x1x144xf32> to vector<144xf32>
    %57 = vector.shape_cast %56 : vector<144xf32> to vector<1x1x1x144xf32>
    %58 = vector.broadcast %57 : vector<1x1x1x144xf32> to vector<2x8x8x144xf32>
    %59 = arith.mulf %54, %58 : vector<2x8x8x144xf32>
    %60 = arith.addf %52, %59 : vector<2x8x8x144xf32>
    %61 = vector.extract_strided_slice %44 {offsets = [0, 0, 1, 0, 0], sizes = [2, 1, 8, 8, 144], strides = [1, 1, 1, 1, 1]} : vector<2x2x10x8x144xf32> to vector<2x1x8x8x144xf32>
    %62 = vector.shape_cast %61 : vector<2x1x8x8x144xf32> to vector<2x8x8x144xf32>
    %c2_28 = arith.constant 2 : index
    %c1_29 = arith.constant 1 : index
    %c0_30 = arith.constant 0 : index
    %63 = vector.load %arg1[%c2_28, %c1_29, %c0_30] : memref<5x5x144xf32, #tpu.memory_space<vmem>>, vector<1x1x144xf32>
    %64 = vector.shape_cast %63 : vector<1x1x144xf32> to vector<144xf32>
    %65 = vector.shape_cast %64 : vector<144xf32> to vector<1x1x1x144xf32>
    %66 = vector.broadcast %65 : vector<1x1x1x144xf32> to vector<2x8x8x144xf32>
    %67 = arith.mulf %62, %66 : vector<2x8x8x144xf32>
    %68 = arith.addf %60, %67 : vector<2x8x8x144xf32>
    %69 = vector.extract_strided_slice %44 {offsets = [0, 1, 1, 0, 0], sizes = [2, 1, 8, 8, 144], strides = [1, 1, 1, 1, 1]} : vector<2x2x10x8x144xf32> to vector<2x1x8x8x144xf32>
    %70 = vector.shape_cast %69 : vector<2x1x8x8x144xf32> to vector<2x8x8x144xf32>
    %c3_31 = arith.constant 3 : index
    %c1_32 = arith.constant 1 : index
    %c0_33 = arith.constant 0 : index
    %71 = vector.load %arg1[%c3_31, %c1_32, %c0_33] : memref<5x5x144xf32, #tpu.memory_space<vmem>>, vector<1x1x144xf32>
    %72 = vector.shape_cast %71 : vector<1x1x144xf32> to vector<144xf32>
    %73 = vector.shape_cast %72 : vector<144xf32> to vector<1x1x1x144xf32>
    %74 = vector.broadcast %73 : vector<1x1x1x144xf32> to vector<2x8x8x144xf32>
    %75 = arith.mulf %70, %74 : vector<2x8x8x144xf32>
    %76 = arith.addf %68, %75 : vector<2x8x8x144xf32>
    %77 = vector.extract_strided_slice %44 {offsets = [0, 0, 2, 0, 0], sizes = [2, 1, 8, 8, 144], strides = [1, 1, 1, 1, 1]} : vector<2x2x10x8x144xf32> to vector<2x1x8x8x144xf32>
    %78 = vector.shape_cast %77 : vector<2x1x8x8x144xf32> to vector<2x8x8x144xf32>
    %c4_34 = arith.constant 4 : index
    %c1_35 = arith.constant 1 : index
    %c0_36 = arith.constant 0 : index
    %79 = vector.load %arg1[%c4_34, %c1_35, %c0_36] : memref<5x5x144xf32, #tpu.memory_space<vmem>>, vector<1x1x144xf32>
    %80 = vector.shape_cast %79 : vector<1x1x144xf32> to vector<144xf32>
    %81 = vector.shape_cast %80 : vector<144xf32> to vector<1x1x1x144xf32>
    %82 = vector.broadcast %81 : vector<1x1x1x144xf32> to vector<2x8x8x144xf32>
    %83 = arith.mulf %78, %82 : vector<2x8x8x144xf32>
    %84 = arith.addf %76, %83 : vector<2x8x8x144xf32>
    %c0_37 = arith.constant 0 : index
    %c0_38 = arith.constant 0 : index
    %c0_39 = arith.constant 0 : index
    %c0_40 = arith.constant 0 : index
    %c1_41 = arith.constant 1 : index
    %c0_42 = arith.constant 0 : index
    %85 = vector.load %arg0[%c0_37, %c0_38, %c0_39, %c0_40, %c1_41, %c0_42] : memref<2x2x2x10x10x144xf32, #tpu.memory_space<vmem>>, vector<2x2x1x10x8x144xf32>
    %86 = vector.shape_cast %85 : vector<2x2x1x10x8x144xf32> to vector<2x2x10x8x144xf32>
    %87 = vector.extract_strided_slice %86 {offsets = [0, 0, 0, 0, 0], sizes = [2, 1, 8, 8, 144], strides = [1, 1, 1, 1, 1]} : vector<2x2x10x8x144xf32> to vector<2x1x8x8x144xf32>
    %88 = vector.shape_cast %87 : vector<2x1x8x8x144xf32> to vector<2x8x8x144xf32>
    %c0_43 = arith.constant 0 : index
    %c2_44 = arith.constant 2 : index
    %c0_45 = arith.constant 0 : index
    %89 = vector.load %arg1[%c0_43, %c2_44, %c0_45] : memref<5x5x144xf32, #tpu.memory_space<vmem>>, vector<1x1x144xf32>
    %90 = vector.shape_cast %89 : vector<1x1x144xf32> to vector<144xf32>
    %91 = vector.shape_cast %90 : vector<144xf32> to vector<1x1x1x144xf32>
    %92 = vector.broadcast %91 : vector<1x1x1x144xf32> to vector<2x8x8x144xf32>
    %93 = arith.mulf %88, %92 : vector<2x8x8x144xf32>
    %94 = arith.addf %84, %93 : vector<2x8x8x144xf32>
    %95 = vector.extract_strided_slice %86 {offsets = [0, 1, 0, 0, 0], sizes = [2, 1, 8, 8, 144], strides = [1, 1, 1, 1, 1]} : vector<2x2x10x8x144xf32> to vector<2x1x8x8x144xf32>
    %96 = vector.shape_cast %95 : vector<2x1x8x8x144xf32> to vector<2x8x8x144xf32>
    %c1_46 = arith.constant 1 : index
    %c2_47 = arith.constant 2 : index
    %c0_48 = arith.constant 0 : index
    %97 = vector.load %arg1[%c1_46, %c2_47, %c0_48] : memref<5x5x144xf32, #tpu.memory_space<vmem>>, vector<1x1x144xf32>
    %98 = vector.shape_cast %97 : vector<1x1x144xf32> to vector<144xf32>
    %99 = vector.shape_cast %98 : vector<144xf32> to vector<1x1x1x144xf32>
    %100 = vector.broadcast %99 : vector<1x1x1x144xf32> to vector<2x8x8x144xf32>
    %101 = arith.mulf %96, %100 : vector<2x8x8x144xf32>
    %102 = arith.addf %94, %101 : vector<2x8x8x144xf32>
    %103 = vector.extract_strided_slice %86 {offsets = [0, 0, 1, 0, 0], sizes = [2, 1, 8, 8, 144], strides = [1, 1, 1, 1, 1]} : vector<2x2x10x8x144xf32> to vector<2x1x8x8x144xf32>
    %104 = vector.shape_cast %103 : vector<2x1x8x8x144xf32> to vector<2x8x8x144xf32>
    %c2_49 = arith.constant 2 : index
    %c2_50 = arith.constant 2 : index
    %c0_51 = arith.constant 0 : index
    %105 = vector.load %arg1[%c2_49, %c2_50, %c0_51] : memref<5x5x144xf32, #tpu.memory_space<vmem>>, vector<1x1x144xf32>
    %106 = vector.shape_cast %105 : vector<1x1x144xf32> to vector<144xf32>
    %107 = vector.shape_cast %106 : vector<144xf32> to vector<1x1x1x144xf32>
    %108 = vector.broadcast %107 : vector<1x1x1x144xf32> to vector<2x8x8x144xf32>
    %109 = arith.mulf %104, %108 : vector<2x8x8x144xf32>
    %110 = arith.addf %102, %109 : vector<2x8x8x144xf32>
    %111 = vector.extract_strided_slice %86 {offsets = [0, 1, 1, 0, 0], sizes = [2, 1, 8, 8, 144], strides = [1, 1, 1, 1, 1]} : vector<2x2x10x8x144xf32> to vector<2x1x8x8x144xf32>
    %112 = vector.shape_cast %111 : vector<2x1x8x8x144xf32> to vector<2x8x8x144xf32>
    %c3_52 = arith.constant 3 : index
    %c2_53 = arith.constant 2 : index
    %c0_54 = arith.constant 0 : index
    %113 = vector.load %arg1[%c3_52, %c2_53, %c0_54] : memref<5x5x144xf32, #tpu.memory_space<vmem>>, vector<1x1x144xf32>
    %114 = vector.shape_cast %113 : vector<1x1x144xf32> to vector<144xf32>
    %115 = vector.shape_cast %114 : vector<144xf32> to vector<1x1x1x144xf32>
    %116 = vector.broadcast %115 : vector<1x1x1x144xf32> to vector<2x8x8x144xf32>
    %117 = arith.mulf %112, %116 : vector<2x8x8x144xf32>
    %118 = arith.addf %110, %117 : vector<2x8x8x144xf32>
    %119 = vector.extract_strided_slice %86 {offsets = [0, 0, 2, 0, 0], sizes = [2, 1, 8, 8, 144], strides = [1, 1, 1, 1, 1]} : vector<2x2x10x8x144xf32> to vector<2x1x8x8x144xf32>
    %120 = vector.shape_cast %119 : vector<2x1x8x8x144xf32> to vector<2x8x8x144xf32>
    %c4_55 = arith.constant 4 : index
    %c2_56 = arith.constant 2 : index
    %c0_57 = arith.constant 0 : index
    %121 = vector.load %arg1[%c4_55, %c2_56, %c0_57] : memref<5x5x144xf32, #tpu.memory_space<vmem>>, vector<1x1x144xf32>
    %122 = vector.shape_cast %121 : vector<1x1x144xf32> to vector<144xf32>
    %123 = vector.shape_cast %122 : vector<144xf32> to vector<1x1x1x144xf32>
    %124 = vector.broadcast %123 : vector<1x1x1x144xf32> to vector<2x8x8x144xf32>
    %125 = arith.mulf %120, %124 : vector<2x8x8x144xf32>
    %126 = arith.addf %118, %125 : vector<2x8x8x144xf32>
    %c0_58 = arith.constant 0 : index
    %c0_59 = arith.constant 0 : index
    %c1_60 = arith.constant 1 : index
    %c0_61 = arith.constant 0 : index
    %c1_62 = arith.constant 1 : index
    %c0_63 = arith.constant 0 : index
    %127 = vector.load %arg0[%c0_58, %c0_59, %c1_60, %c0_61, %c1_62, %c0_63] : memref<2x2x2x10x10x144xf32, #tpu.memory_space<vmem>>, vector<2x2x1x10x8x144xf32>
    %128 = vector.shape_cast %127 : vector<2x2x1x10x8x144xf32> to vector<2x2x10x8x144xf32>
    %129 = vector.extract_strided_slice %128 {offsets = [0, 0, 0, 0, 0], sizes = [2, 1, 8, 8, 144], strides = [1, 1, 1, 1, 1]} : vector<2x2x10x8x144xf32> to vector<2x1x8x8x144xf32>
    %130 = vector.shape_cast %129 : vector<2x1x8x8x144xf32> to vector<2x8x8x144xf32>
    %c0_64 = arith.constant 0 : index
    %c3_65 = arith.constant 3 : index
    %c0_66 = arith.constant 0 : index
    %131 = vector.load %arg1[%c0_64, %c3_65, %c0_66] : memref<5x5x144xf32, #tpu.memory_space<vmem>>, vector<1x1x144xf32>
    %132 = vector.shape_cast %131 : vector<1x1x144xf32> to vector<144xf32>
    %133 = vector.shape_cast %132 : vector<144xf32> to vector<1x1x1x144xf32>
    %134 = vector.broadcast %133 : vector<1x1x1x144xf32> to vector<2x8x8x144xf32>
    %135 = arith.mulf %130, %134 : vector<2x8x8x144xf32>
    %136 = arith.addf %126, %135 : vector<2x8x8x144xf32>
    %137 = vector.extract_strided_slice %128 {offsets = [0, 1, 0, 0, 0], sizes = [2, 1, 8, 8, 144], strides = [1, 1, 1, 1, 1]} : vector<2x2x10x8x144xf32> to vector<2x1x8x8x144xf32>
    %138 = vector.shape_cast %137 : vector<2x1x8x8x144xf32> to vector<2x8x8x144xf32>
    %c1_67 = arith.constant 1 : index
    %c3_68 = arith.constant 3 : index
    %c0_69 = arith.constant 0 : index
    %139 = vector.load %arg1[%c1_67, %c3_68, %c0_69] : memref<5x5x144xf32, #tpu.memory_space<vmem>>, vector<1x1x144xf32>
    %140 = vector.shape_cast %139 : vector<1x1x144xf32> to vector<144xf32>
    %141 = vector.shape_cast %140 : vector<144xf32> to vector<1x1x1x144xf32>
    %142 = vector.broadcast %141 : vector<1x1x1x144xf32> to vector<2x8x8x144xf32>
    %143 = arith.mulf %138, %142 : vector<2x8x8x144xf32>
    %144 = arith.addf %136, %143 : vector<2x8x8x144xf32>
    %145 = vector.extract_strided_slice %128 {offsets = [0, 0, 1, 0, 0], sizes = [2, 1, 8, 8, 144], strides = [1, 1, 1, 1, 1]} : vector<2x2x10x8x144xf32> to vector<2x1x8x8x144xf32>
    %146 = vector.shape_cast %145 : vector<2x1x8x8x144xf32> to vector<2x8x8x144xf32>
    %c2_70 = arith.constant 2 : index
    %c3_71 = arith.constant 3 : index
    %c0_72 = arith.constant 0 : index
    %147 = vector.load %arg1[%c2_70, %c3_71, %c0_72] : memref<5x5x144xf32, #tpu.memory_space<vmem>>, vector<1x1x144xf32>
    %148 = vector.shape_cast %147 : vector<1x1x144xf32> to vector<144xf32>
    %149 = vector.shape_cast %148 : vector<144xf32> to vector<1x1x1x144xf32>
    %150 = vector.broadcast %149 : vector<1x1x1x144xf32> to vector<2x8x8x144xf32>
    %151 = arith.mulf %146, %150 : vector<2x8x8x144xf32>
    %152 = arith.addf %144, %151 : vector<2x8x8x144xf32>
    %153 = vector.extract_strided_slice %128 {offsets = [0, 1, 1, 0, 0], sizes = [2, 1, 8, 8, 144], strides = [1, 1, 1, 1, 1]} : vector<2x2x10x8x144xf32> to vector<2x1x8x8x144xf32>
    %154 = vector.shape_cast %153 : vector<2x1x8x8x144xf32> to vector<2x8x8x144xf32>
    %c3_73 = arith.constant 3 : index
    %c3_74 = arith.constant 3 : index
    %c0_75 = arith.constant 0 : index
    %155 = vector.load %arg1[%c3_73, %c3_74, %c0_75] : memref<5x5x144xf32, #tpu.memory_space<vmem>>, vector<1x1x144xf32>
    %156 = vector.shape_cast %155 : vector<1x1x144xf32> to vector<144xf32>
    %157 = vector.shape_cast %156 : vector<144xf32> to vector<1x1x1x144xf32>
    %158 = vector.broadcast %157 : vector<1x1x1x144xf32> to vector<2x8x8x144xf32>
    %159 = arith.mulf %154, %158 : vector<2x8x8x144xf32>
    %160 = arith.addf %152, %159 : vector<2x8x8x144xf32>
    %161 = vector.extract_strided_slice %128 {offsets = [0, 0, 2, 0, 0], sizes = [2, 1, 8, 8, 144], strides = [1, 1, 1, 1, 1]} : vector<2x2x10x8x144xf32> to vector<2x1x8x8x144xf32>
    %162 = vector.shape_cast %161 : vector<2x1x8x8x144xf32> to vector<2x8x8x144xf32>
    %c4_76 = arith.constant 4 : index
    %c3_77 = arith.constant 3 : index
    %c0_78 = arith.constant 0 : index
    %163 = vector.load %arg1[%c4_76, %c3_77, %c0_78] : memref<5x5x144xf32, #tpu.memory_space<vmem>>, vector<1x1x144xf32>
    %164 = vector.shape_cast %163 : vector<1x1x144xf32> to vector<144xf32>
    %165 = vector.shape_cast %164 : vector<144xf32> to vector<1x1x1x144xf32>
    %166 = vector.broadcast %165 : vector<1x1x1x144xf32> to vector<2x8x8x144xf32>
    %167 = arith.mulf %162, %166 : vector<2x8x8x144xf32>
    %168 = arith.addf %160, %167 : vector<2x8x8x144xf32>
    %c0_79 = arith.constant 0 : index
    %c0_80 = arith.constant 0 : index
    %c0_81 = arith.constant 0 : index
    %c0_82 = arith.constant 0 : index
    %c2_83 = arith.constant 2 : index
    %c0_84 = arith.constant 0 : index
    %169 = vector.load %arg0[%c0_79, %c0_80, %c0_81, %c0_82, %c2_83, %c0_84] : memref<2x2x2x10x10x144xf32, #tpu.memory_space<vmem>>, vector<2x2x1x10x8x144xf32>
    %170 = vector.shape_cast %169 : vector<2x2x1x10x8x144xf32> to vector<2x2x10x8x144xf32>
    %171 = vector.extract_strided_slice %170 {offsets = [0, 0, 0, 0, 0], sizes = [2, 1, 8, 8, 144], strides = [1, 1, 1, 1, 1]} : vector<2x2x10x8x144xf32> to vector<2x1x8x8x144xf32>
    %172 = vector.shape_cast %171 : vector<2x1x8x8x144xf32> to vector<2x8x8x144xf32>
    %c0_85 = arith.constant 0 : index
    %c4_86 = arith.constant 4 : index
    %c0_87 = arith.constant 0 : index
    %173 = vector.load %arg1[%c0_85, %c4_86, %c0_87] : memref<5x5x144xf32, #tpu.memory_space<vmem>>, vector<1x1x144xf32>
    %174 = vector.shape_cast %173 : vector<1x1x144xf32> to vector<144xf32>
    %175 = vector.shape_cast %174 : vector<144xf32> to vector<1x1x1x144xf32>
    %176 = vector.broadcast %175 : vector<1x1x1x144xf32> to vector<2x8x8x144xf32>
    %177 = arith.mulf %172, %176 : vector<2x8x8x144xf32>
    %178 = arith.addf %168, %177 : vector<2x8x8x144xf32>
    %179 = vector.extract_strided_slice %170 {offsets = [0, 1, 0, 0, 0], sizes = [2, 1, 8, 8, 144], strides = [1, 1, 1, 1, 1]} : vector<2x2x10x8x144xf32> to vector<2x1x8x8x144xf32>
    %180 = vector.shape_cast %179 : vector<2x1x8x8x144xf32> to vector<2x8x8x144xf32>
    %c1_88 = arith.constant 1 : index
    %c4_89 = arith.constant 4 : index
    %c0_90 = arith.constant 0 : index
    %181 = vector.load %arg1[%c1_88, %c4_89, %c0_90] : memref<5x5x144xf32, #tpu.memory_space<vmem>>, vector<1x1x144xf32>
    %182 = vector.shape_cast %181 : vector<1x1x144xf32> to vector<144xf32>
    %183 = vector.shape_cast %182 : vector<144xf32> to vector<1x1x1x144xf32>
    %184 = vector.broadcast %183 : vector<1x1x1x144xf32> to vector<2x8x8x144xf32>
    %185 = arith.mulf %180, %184 : vector<2x8x8x144xf32>
    %186 = arith.addf %178, %185 : vector<2x8x8x144xf32>
    %187 = vector.extract_strided_slice %170 {offsets = [0, 0, 1, 0, 0], sizes = [2, 1, 8, 8, 144], strides = [1, 1, 1, 1, 1]} : vector<2x2x10x8x144xf32> to vector<2x1x8x8x144xf32>
    %188 = vector.shape_cast %187 : vector<2x1x8x8x144xf32> to vector<2x8x8x144xf32>
    %c2_91 = arith.constant 2 : index
    %c4_92 = arith.constant 4 : index
    %c0_93 = arith.constant 0 : index
    %189 = vector.load %arg1[%c2_91, %c4_92, %c0_93] : memref<5x5x144xf32, #tpu.memory_space<vmem>>, vector<1x1x144xf32>
    %190 = vector.shape_cast %189 : vector<1x1x144xf32> to vector<144xf32>
    %191 = vector.shape_cast %190 : vector<144xf32> to vector<1x1x1x144xf32>
    %192 = vector.broadcast %191 : vector<1x1x1x144xf32> to vector<2x8x8x144xf32>
    %193 = arith.mulf %188, %192 : vector<2x8x8x144xf32>
    %194 = arith.addf %186, %193 : vector<2x8x8x144xf32>
    %195 = vector.extract_strided_slice %170 {offsets = [0, 1, 1, 0, 0], sizes = [2, 1, 8, 8, 144], strides = [1, 1, 1, 1, 1]} : vector<2x2x10x8x144xf32> to vector<2x1x8x8x144xf32>
    %196 = vector.shape_cast %195 : vector<2x1x8x8x144xf32> to vector<2x8x8x144xf32>
    %c3_94 = arith.constant 3 : index
    %c4_95 = arith.constant 4 : index
    %c0_96 = arith.constant 0 : index
    %197 = vector.load %arg1[%c3_94, %c4_95, %c0_96] : memref<5x5x144xf32, #tpu.memory_space<vmem>>, vector<1x1x144xf32>
    %198 = vector.shape_cast %197 : vector<1x1x144xf32> to vector<144xf32>
    %199 = vector.shape_cast %198 : vector<144xf32> to vector<1x1x1x144xf32>
    %200 = vector.broadcast %199 : vector<1x1x1x144xf32> to vector<2x8x8x144xf32>
    %201 = arith.mulf %196, %200 : vector<2x8x8x144xf32>
    %202 = arith.addf %194, %201 : vector<2x8x8x144xf32>
    %203 = vector.extract_strided_slice %170 {offsets = [0, 0, 2, 0, 0], sizes = [2, 1, 8, 8, 144], strides = [1, 1, 1, 1, 1]} : vector<2x2x10x8x144xf32> to vector<2x1x8x8x144xf32>
    %204 = vector.shape_cast %203 : vector<2x1x8x8x144xf32> to vector<2x8x8x144xf32>
    %c4_97 = arith.constant 4 : index
    %c4_98 = arith.constant 4 : index
    %c0_99 = arith.constant 0 : index
    %205 = vector.load %arg1[%c4_97, %c4_98, %c0_99] : memref<5x5x144xf32, #tpu.memory_space<vmem>>, vector<1x1x144xf32>
    %206 = vector.shape_cast %205 : vector<1x1x144xf32> to vector<144xf32>
    %207 = vector.shape_cast %206 : vector<144xf32> to vector<1x1x1x144xf32>
    %208 = vector.broadcast %207 : vector<1x1x1x144xf32> to vector<2x8x8x144xf32>
    %209 = arith.mulf %204, %208 : vector<2x8x8x144xf32>
    %210 = arith.addf %202, %209 : vector<2x8x8x144xf32>
    %211 = vector.shape_cast %210 : vector<2x8x8x144xf32> to vector<128x144xf32>
    %cst_100 = arith.constant dense<0.000000e+00> : vector<144xf32>
    %212 = vector.multi_reduction <add>, %211, %cst_100 [0] : vector<128x144xf32> to vector<144xf32>
    %213 = vector.shape_cast %212 : vector<144xf32> to vector<1x144xf32>
    %cst_101 = arith.constant 1.280000e+02 : f32
    %214 = vector.broadcast %cst_101 : f32 to vector<1x144xf32>
    %215 = arith.divf %213, %214 : vector<1x144xf32>
    %216 = vector.broadcast %215 : vector<1x144xf32> to vector<128x144xf32>
    %217 = arith.subf %211, %216 : vector<128x144xf32>
    %218 = arith.mulf %217, %217 : vector<128x144xf32>
    %cst_102 = arith.constant dense<0.000000e+00> : vector<144xf32>
    %219 = vector.multi_reduction <add>, %218, %cst_102 [0] : vector<128x144xf32> to vector<144xf32>
    %220 = vector.shape_cast %219 : vector<144xf32> to vector<1x144xf32>
    %cst_103 = arith.constant 1.280000e+02 : f32
    %221 = vector.broadcast %cst_103 : f32 to vector<1x144xf32>
    %222 = arith.divf %220, %221 : vector<1x144xf32>
    %cst_104 = arith.constant 9.99999974E-6 : f32
    %223 = vector.broadcast %cst_104 : f32 to vector<1x144xf32>
    %224 = arith.addf %222, %223 : vector<1x144xf32>
    %225 = math.rsqrt %224 : vector<1x144xf32>
    %c0_105 = arith.constant 0 : index
    %c0_106 = arith.constant 0 : index
    %226 = vector.load %arg2[%c0_105, %c0_106] : memref<1x144xf32, #tpu.memory_space<vmem>>, vector<1x144xf32>
    %227 = arith.mulf %225, %226 : vector<1x144xf32>
    %c0_107 = arith.constant 0 : index
    %c0_108 = arith.constant 0 : index
    %228 = vector.load %arg3[%c0_107, %c0_108] : memref<1x144xf32, #tpu.memory_space<vmem>>, vector<1x144xf32>
    %229 = arith.mulf %215, %227 : vector<1x144xf32>
    %230 = arith.subf %228, %229 : vector<1x144xf32>
    %231 = vector.broadcast %227 : vector<1x144xf32> to vector<128x144xf32>
    %232 = arith.mulf %211, %231 : vector<128x144xf32>
    %233 = vector.broadcast %230 : vector<1x144xf32> to vector<128x144xf32>
    %234 = arith.addf %232, %233 : vector<128x144xf32>
    %cst_109 = arith.constant 0.000000e+00 : f32
    %235 = vector.broadcast %cst_109 : f32 to vector<128x144xf32>
    %236 = arith.maximumf %234, %235 : vector<128x144xf32>
    %c0_110 = arith.constant 0 : index
    %c0_111 = arith.constant 0 : index
    %237 = vector.load %arg4[%c0_110, %c0_111] : memref<128x144xf32, #tpu.memory_space<vmem>>, vector<128x144xf32>
    tpu.vector_store %arg4[%c0_110, %c0_111], %236 {strides = array<i32>} : memref<128x144xf32, #tpu.memory_space<vmem>>, vector<128x144xf32>,
    return
  }
}

</mosaic_0001>

<bundles_post_ra>
// kernel: dwconv_bn_relu.1
= control target key start
LH: loop header
LB: loop body
LE: loop exit
PB: predicated region body
PF: predicated region fallthrough
CT: control target
= control target key end

     0   :  { %9 = vsyncpa [#allocation3], 0  ;;  %v96_v0 = vlaneseq  ;;  %vm1233_vm0 = vcmask 1046528   ;;  %vm4548_vm1 = vcmask 1045504   ;;  %vm5934_vm2 = vcmask 130048   ;;  %s18683_s0 = inlined_call_operand.vmem [shape: f32[2,2,2,10,10,144], index: 0, kind: input, shape index: {}]   ;;  %s18684_s1 = inlined_call_operand.vmem [shape: f32[5,5,144], index: 1, kind: input, shape index: {}]   ;;  %s18685_s2 = inlined_call_operand.vmem [shape: f32[1,144], index: 2, kind: input, shape index: {}]   ;;  %s18686_s3 = inlined_call_operand.vmem [shape: f32[1,144], index: 3, kind: input, shape index: {}]   ;;  %s18687_s4 = inlined_call_operand.hbm [shape: f32[128,144], index: 4, kind: output, shape index: {}]  }
   0x1   :  { %v94_v4 = vld [vmem:[%s18684_s1] ss:$8 sm:$0x3]  ;;  %v6318_v14 = vld [vmem:[%s18684_s1 + $0x10] ss:$8 sm:$0x3] }
   0x2   :  { %v6785_v1 = vshrl.u32 %v96_v0, 7  ;;  %v18_v5 = vld [vmem:[%s18683_s0] sm:$0xff]  ;;  %v19_v6 = vld [vmem:[%s18683_s0 + $0x8] sm:$0xff] }
   0x3   :  { %v6805_v7 = vld [vmem:[%s18683_s0 + $0x20] sm:$0xff]  ;;  %v6810_v8 = vld [vmem:[%s18683_s0 + $0x28] sm:$0xff] }
   0x4   :  { %19255 = vst [vmem:[#allocation5_spill] sm:$0xff] %v6785_v1  ;;  %v6788_v2 = vsub.s32 0, %v6785_v1  ;;  %v6791_v3 = vsub.s32 1, %v6785_v1  ;;  %19258 = vst [vmem:[#allocation8_spill] sm:$0xff] %v6805_v7  ;;  %v6815_v9 = vld [vmem:[%s18683_s0 + $0x40] sm:$0xff]  ;;  %v6820_v10 = vld [vmem:[%s18683_s0 + $0x48] sm:$0xff] }
   0x5   :  { %19259 = vst [vmem:[#allocation9_spill] sm:$0xff] %v6810_v8  ;;  %19260 = vst [vmem:[#allocation10_spill] sm:$0xff] %v6815_v9  ;;  %v6825_v11 = vld [vmem:[%s18683_s0 + $0x60] sm:$0xff]  ;;  %v6839_v15 = vld [vmem:[%s18683_s0 + $0x68] sm:$0xff] }
   0x6   :  { %19256 = vst [vmem:[#allocation6_spill] sm:$0xff] %v6788_v2  ;;  %19257 = vst [vmem:[#allocation7_spill] sm:$0xff] %v6791_v3  ;;  %v6828_v12 = vrot.slane %v94_v4, %v6788_v2  ;;  %v6831_v13 = vrot.slane %v94_v4, %v6791_v3  ;;  %v6844_v16 = vld [vmem:[%s18683_s0 + $0x80] sm:$0xff]  ;;  %v6849_v17 = vld [vmem:[%s18683_s0 + $0x88] sm:$0xff]  ;;  %v6885_v25 = vrot.slane %v6318_v14, %v6788_v2 }
   0x7   :  { %19261 = vst [vmem:[#allocation11_spill] sm:$0xff] %v6820_v10  ;;  %19262 = vst [vmem:[#allocation12_spill] sm:$0xff] %v6825_v11  ;;  %v6319_v18 = vld [vmem:[%s18684_s1 + $0x20] ss:$8 sm:$0x3]  ;;  %v6888_v26 = vrot.slane %v6318_v14, %v6791_v3 }
   0x8   :  { %19263 = vst [vmem:[#allocation13_spill] sm:$0xff] %v6839_v15  ;;  %19264 = vst [vmem:[#allocation14_spill] sm:$0xff] %v6844_v16  ;;  %v6857_v19 = vld [vmem:[%s18683_s0 + $0xa0] sm:$0xff]  ;;  %v6862_v20 = vld [vmem:[%s18683_s0 + $0xa8] sm:$0xff]  ;;  %v6891_v27 = vrot.slane %v6319_v18, %v6788_v2  ;;  %v6905_v31 = vmul.f32 %v6828_v12, %v18_v5  ;;  %v6908_v32 = vmul.f32 %v6831_v13, %v19_v6 }
   0x9   :  { %19265 = vst [vmem:[#allocation15_spill] sm:$0xff] %v6849_v17  ;;  %19266 = vst [vmem:[#allocation16_spill] sm:$0xff] %v6857_v19  ;;  %v6867_v21 = vld [vmem:[%s18683_s0 + $0xc0] sm:$0xff]  ;;  %v6872_v22 = vld [vmem:[%s18683_s0 + $0xc8] sm:$0xff]  ;;  %v6912_v33 = vmul.f32 %v6828_v12, %v6805_v7  ;;  %v6915_v34 = vrot.slane %v6319_v18, %v6791_v3  ;;  %v6934_v38 = vmul.f32 %v6831_v13, %v6810_v8 }
   0xa   :  { %19267 = vst [vmem:[#allocation17_spill] sm:$0xff] %v6862_v20  ;;  %19268 = vst [vmem:[#allocation18_spill] sm:$0xff] %v6867_v21  ;;  %v6877_v23 = vld [vmem:[%s18683_s0 + $0xe0] sm:$0xff]  ;;  %v6882_v24 = vld [vmem:[%s18683_s0 + $0xe8] sm:$0xff]  ;;  %v6938_v39 = vmul.f32 %v6828_v12, %v6815_v9  ;;  %v6942_v40 = vmul.f32 %v6831_v13, %v6820_v10  ;;  %v6946_v41 = vmul.f32 %v6828_v12, %v6825_v11 }
   0xb   :  { %19269 = vst [vmem:[#allocation19_spill] sm:$0xff] %v6872_v22  ;;  %19270 = vst [vmem:[#allocation20_spill] sm:$0xff] %v6877_v23  ;;  %v56_v28 = vld [vmem:[%s18683_s0 + $0x500] sm:$0xff]  ;;  %v57_v29 = vld [vmem:[%s18683_s0 + $0x508] sm:$0xff]  ;;  %v6965_v45 = vmul.f32 %v6831_v13, %v6839_v15  ;;  %v6969_v46 = vmul.f32 %v6828_v12, %v6844_v16  ;;  %v6973_v47 = vmul.f32 %v6831_v13, %v6849_v17 }
   0xc   :  { %19271 = vst [vmem:[#allocation21_spill] sm:$0xff] %v6882_v24  ;;  %19272 = vst [vmem:[#allocation22_spill] sm:$0xff] %v6891_v27  ;;  %v6902_v30 = vld [vmem:[%s18683_s0 + $0x520] sm:$0xff]  ;;  %v6920_v35 = vld [vmem:[%s18683_s0 + $0x528] sm:$0xff]  ;;  %v6977_v48 = vmul.f32 %v6828_v12, %v6857_v19  ;;  %v7007_v55 = vmul.f32 %v6831_v13, %v6862_v20  ;;  %v7011_v56 = vmul.f32 %v6828_v12, %v6867_v21 }
   0xd   :  { %19273 = vst [vmem:[#allocation23_spill] sm:$0xff] %v6902_v30  ;;  %19274 = vst [vmem:[#allocation24_spill] sm:$0xff] %v6915_v34  ;;  %v6925_v36 = vld [vmem:[%s18683_s0 + $0x540] sm:$0xff]  ;;  %v6930_v37 = vld [vmem:[%s18683_s0 + $0x548] sm:$0xff]  ;;  %v7015_v57 = vmul.f32 %v6831_v13, %v6872_v22  ;;  %v7019_v58 = vmul.f32 %v6828_v12, %v6877_v23  ;;  %v7058_v5 = vmul.f32 %v6831_v13, %v6882_v24 }
   0xe   :  { %19275 = vst [vmem:[#allocation25_spill] sm:$0xff] %v6920_v35  ;;  %19276 = vst [vmem:[#allocation26_spill] sm:$0xff] %v6925_v36  ;;  %v6951_v42 = vld [vmem:[%s18683_s0 + $0x560] sm:$0xff]  ;;  %v6956_v43 = vld [vmem:[%s18683_s0 + $0x568] sm:$0xff]  ;;  %v7061_v6 = vmul.f32 %v6828_v12, %v56_v28  ;;  %v7064_v14 = vmul.f32 %v6831_v13, %v57_v29  ;;  %v7068_v18 = vmul.f32 %v6828_v12, %v6902_v30 }
   0xf   :  { %19277 = vst [vmem:[#allocation27_spill] sm:$0xff] %v6930_v37  ;;  %19278 = vst [vmem:[#allocation28_spill] sm:$0xff] %v6951_v42  ;;  %v6961_v44 = vld [vmem:[%s18683_s0 + $0x580] sm:$0xff]  ;;  %v39_v50 = vld [vmem:[%s18683_s0 + $0x288] sm:$0xff]  ;;  %v7092_v2 = vmul.f32 %v6831_v13, %v6920_v35  ;;  %v7096_v30 = vmul.f32 %v6828_v12, %v6925_v36  ;;  %v7100_v24 = vmul.f32 %v6831_v13, %v6930_v37 }
  0x10   :  { %19279 = vst [vmem:[#allocation29_spill] sm:$0xff] %v6956_v43  ;;  %19280 = vst [vmem:[#allocation30_spill] sm:$0xff] %v6961_v44  ;;  %v38_v49 = vld [vmem:[%s18683_s0 + $0x280] sm:$0xff]  ;;  %v6993_v52 = vld [vmem:[%s18683_s0 + $0x588] sm:$0xff]  ;;  %v7104_v23 = vmul.f32 %v6828_v12, %v6951_v42  ;;  %v7123_v37 = vmul.f32 %v6831_v13, %v6956_v43  ;;  %v7127_v42 = vmul.f32 %v6828_v12, %v6961_v44 }
  0x11   :  { %v6988_v51 = vld [vmem:[%s18683_s0 + $0x2a0] sm:$0xff]  ;;  %19282 = vst [vmem:[#allocation32_spill] sm:$0xff] %v6993_v52  ;;  %v7003_v54 = vld [vmem:[%s18683_s0 + $0x5a8] sm:$0xff]  ;;  %v7131_v21 = vmul.f32 %v6831_v13, %v6993_v52 }
  0x12   :  { %19281 = vst [vmem:[#allocation31_spill] sm:$0xff] %v6988_v51  ;;  %v6998_v53 = vld [vmem:[%s18683_s0 + $0x5a0] sm:$0xff]  ;;  %19284 = vst [vmem:[#allocation34_spill] sm:$0xff] %v7003_v54  ;;  %v7024_v59 = vld [vmem:[%s18683_s0 + $0x2a8] sm:$0xff]  ;;  %v7154_v52 = vmul.f32 %v6831_v13, %v7003_v54  ;;  %v185_v11 = vmul.f32 %v6885_v25, %v6988_v51 }
  0x13   :  { %19283 = vst [vmem:[#allocation33_spill] sm:$0xff] %v6998_v53  ;;  %19285 = vst [vmem:[#allocation35_spill] sm:$0xff] %v7024_v59  ;;  %v7029_v60 = vld [vmem:[%s18683_s0 + $0x2c0] sm:$0xff]  ;;  %v7034_v61 = vld [vmem:[%s18683_s0 + $0x2c8] sm:$0xff]  ;;  %v7135_v20 = vmul.f32 %v6828_v12, %v6998_v53 }
  0x14   :  { %19286 = vst [vmem:[#allocation36_spill] sm:$0xff] %v7029_v60  ;;  %19287 = vst [vmem:[#allocation37_spill] sm:$0xff] %v7034_v61  ;;  %v7039_v62 = vld [vmem:[%s18683_s0 + $0x2e0] sm:$0xff]  ;;  %v7049_v0 = vld [vmem:[%s18683_s0 + $0x5c8] sm:$0xff]  ;;  %v188_v51 = vmul.f32 %v6888_v26, %v7034_v61 }
  0x15   :  { %19288 = vst [vmem:[#allocation38_spill] sm:$0xff] %v7039_v62  ;;  %v7044_v63 = vld [vmem:[%s18683_s0 + $0x5c0] sm:$0xff]  ;;  %19290 = vst [vmem:[#allocation40_spill] sm:$0xff] %v7049_v0  ;;  %v7073_v1 = vld [vmem:[%s18683_s0 + $0x2e8] sm:$0xff]  ;;  %v7162_v17 = vmul.f32 %v6831_v13, %v7049_v0 }
  0x16   :  { %19289 = vst [vmem:[#allocation39_spill] sm:$0xff] %v7044_v63  ;;  %v7054_v4 = vld [vmem:[%s18683_s0 + $0x5e0] sm:$0xff]  ;;  %19292 = vst [vmem:[#allocation42_spill] sm:$0xff] %v7073_v1  ;;  %v7083_v28 = vld [vmem:[%s18683_s0 + $0x308] sm:$0xff]  ;;  %v7158_v53 = vmul.f32 %v6828_v12, %v7044_v63  ;;  %v190_v61 = vmul.f32 %v6888_v26, %v7073_v1 }
  0x17   :  { %19291 = vst [vmem:[#allocation41_spill] sm:$0xff] %v7054_v4  ;;  %v7078_v3 = vld [vmem:[%s18683_s0 + $0x300] sm:$0xff]  ;;  %19294 = vst [vmem:[#allocation44_spill] sm:$0xff] %v7083_v28  ;;  %v7088_v29 = vld [vmem:[%s18683_s0 + $0x5e8] sm:$0xff]  ;;  %v7166_v16 = vmul.f32 %v6828_v12, %v7054_v4  ;;  %v183_v12 = vmul.f32 %v6885_v25, %v38_v49  ;;  %v184_v4 = vmul.f32 %v6888_v26, %v39_v50 }
  0x18   :  { %19293 = vst [vmem:[#allocation43_spill] sm:$0xff] %v7078_v3  ;;  %19295 = vst [vmem:[#allocation45_spill] sm:$0xff] %v7088_v29  ;;  %v7109_v22 = vld [vmem:[%s18683_s0 + $0x320] sm:$0xff]  ;;  %v7114_v35 = vld [vmem:[%s18683_s0 + $0x328] sm:$0xff]  ;;  %v7181_v0 = vmul.f32 %v6831_v13, %v7088_v29  ;;  %v186_v49 = vmul.f32 %v6888_v26, %v7024_v59  ;;  %v187_v50 = vmul.f32 %v6885_v25, %v7029_v60 }
  0x19   :  { %19296 = vst [vmem:[#allocation46_spill] sm:$0xff] %v7109_v22  ;;  %19297 = vst [vmem:[#allocation47_spill] sm:$0xff] %v7114_v35  ;;  %v7119_v36 = vld [vmem:[%s18683_s0 + $0x340] sm:$0xff]  ;;  %v7140_v19 = vld [vmem:[%s18683_s0 + $0x348] sm:$0xff]  ;;  %v189_v29 = vmul.f32 %v6885_v25, %v7039_v62  ;;  %v191_v62 = vmul.f32 %v6885_v25, %v7078_v3  ;;  %v192_v59 = vmul.f32 %v6888_v26, %v7083_v28 }
  0x1a   :  { %19298 = vst [vmem:[#allocation48_spill] sm:$0xff] %v7119_v36  ;;  %19299 = vst [vmem:[#allocation49_spill] sm:$0xff] %v7123_v37  ;;  %v7145_v43 = vld [vmem:[%s18683_s0 + $0x360] sm:$0xff]  ;;  %v7150_v44 = vld [vmem:[%s18683_s0 + $0x368] sm:$0xff]  ;;  %v193_v27 = vmul.f32 %v6885_v25, %v7109_v22  ;;  %v194_v28 = vmul.f32 %v6888_v26, %v7114_v35  ;;  %v195_v22 = vmul.f32 %v6885_v25, %v7119_v36 }
  0x1b   :  { %19300 = vst [vmem:[#allocation50_spill] sm:$0xff] %v7127_v42  ;;  %19301 = vst [vmem:[#allocation51_spill] sm:$0xff] %v7131_v21  ;;  %v76_v15 = vld [vmem:[%s18683_s0 + $0x780] sm:$0xff]  ;;  %v77_v54 = vld [vmem:[%s18683_s0 + $0x788] sm:$0xff]  ;;  %v196_v1 = vmul.f32 %v6888_v26, %v7140_v19 }
  0x1c   :  { %19302 = vst [vmem:[#allocation52_spill] sm:$0xff] %v7135_v20  ;;  %19303 = vst [vmem:[#allocation53_spill] sm:$0xff] %v7140_v19  ;;  %v7177_v63 = vld [vmem:[%s18683_s0 + $0x7a0] sm:$0xff]  ;;  %v7190_v10 = vld [vmem:[%s18683_s0 + $0x7a8] sm:$0xff]  ;;  %v198_v19 = vmul.f32 %v6888_v26, %v7150_v44  ;;  %v200_v35 = vmul.f32 %v6888_v26, %v77_v54 }
  0x1d   :  { %19304 = vst [vmem:[#allocation54_spill] sm:$0xff] %v7145_v43  ;;  %19305 = vst [vmem:[#allocation55_spill] sm:$0xff] %v7150_v44  ;;  %v7195_v9 = vld [vmem:[%s18683_s0 + $0x7c0] sm:$0xff]  ;;  %v7200_v13 = vld [vmem:[%s18683_s0 + $0x7c8] sm:$0xff]  ;;  %v202_v21 = vmul.f32 %v6888_v26, %v7190_v10 }
  0x1e   :  { %19306 = vst [vmem:[#allocation56_spill] sm:$0xff] %v7154_v52  ;;  %19307 = vst [vmem:[#allocation57_spill] sm:$0xff] %v7158_v53  ;;  %v7213_v34 = vld [vmem:[%s18683_s0 + $0x7e0] sm:$0xff]  ;;  %v7218_v8 = vld [vmem:[%s18683_s0 + $0x7e8] sm:$0xff]  ;;  %v201_v52 = vmul.f32 %v6885_v25, %v7177_v63  ;;  %v203_v42 = vmul.f32 %v6885_v25, %v7195_v9  ;;  %v204_v44 = vmul.f32 %v6888_v26, %v7200_v13 }
  0x1f   :  { %19308 = vst [vmem:[#allocation58_spill] sm:$0xff] %v7162_v17  ;;  %19309 = vst [vmem:[#allocation59_spill] sm:$0xff] %v7166_v16  ;;  %v7223_v60 = vld [vmem:[%s18683_s0 + $0x800] sm:$0xff]  ;;  %v7236_v7 = vld [vmem:[%s18683_s0 + $0x808] sm:$0xff]  ;;  %v197_v16 = vmul.f32 %v6885_v25, %v7145_v43  ;;  %v199_v43 = vmul.f32 %v6885_v25, %v76_v15  ;;  %v205_v15 = vmul.f32 %v6885_v25, %v7213_v34 }
  0x20   :  { %19310 = vst [vmem:[#allocation60_spill] sm:$0xff] %v7177_v63  ;;  %19311 = vst [vmem:[#allocation61_spill] sm:$0xff] %v7181_v0  ;;  %v7241_v0 = vld [vmem:[%s18683_s0 + $0x820] sm:$0xff]  ;;  %v7246_v3 = vld [vmem:[%s18683_s0 + $0x828] sm:$0xff]  ;;  %v206_v54 = vmul.f32 %v6888_v26, %v7218_v8  ;;  %v207_v63 = vmul.f32 %v6885_v25, %v7223_v60  ;;  %v208_v37 = vmul.f32 %v6888_v26, %v7236_v7 }
  0x21   :  { %19312 = vst [vmem:[#allocation62_spill] sm:$0xff] %v7190_v10  ;;  %19313 = vst [vmem:[#allocation63_spill] sm:$0xff] %v7195_v9  ;;  %v7259_v17 = vld [vmem:[%s18683_s0 + $0x840] sm:$0xff]  ;;  %v7264_v53 = vld [vmem:[%s18683_s0 + $0x848] sm:$0xff]  ;;  %v209_v10 = vmul.f32 %v6885_v25, %v7241_v0  ;;  %v210_v9 = vmul.f32 %v6888_v26, %v7246_v3 }
  0x22   :  { %19314 = vst [vmem:[#allocation64_spill] sm:$0xff] %v7200_v13  ;;  %19315 = vst [vmem:[#allocation65_spill] sm:$0xff] %v7213_v34  ;;  %v7269_v36 = vld [vmem:[%s18683_s0 + $0x860] sm:$0xff]  ;;  %v7280_v20 = vld [vmem:[%s18683_s0 + $0x868] sm:$0xff]  ;;  %v211_v13 = vmul.f32 %v6885_v25, %v7259_v17  ;;  %v212_v34 = vmul.f32 %v6888_v26, %v7264_v53 }
  0x23   :  { %19316 = vst [vmem:[#allocation66_spill] sm:$0xff] %v7218_v8  ;;  %19317 = vst [vmem:[#allocation67_spill] sm:$0xff] %v7223_v60  ;;  %v213_v8 = vmul.f32 %v6885_v25, %v7269_v36  ;;  %v214_v60 = vmul.f32 %v6888_v26, %v7280_v20  ;;  %v7324_v25 = vadd.f32 %v188_v51, %v6942_v40 }
  0x24   :  { %19318 = vst [vmem:[#allocation68_spill] sm:$0xff] %v7236_v7  ;;  %19319 = vst [vmem:[#allocation69_spill] sm:$0xff] %v7241_v0  ;;  %v7309_v7 = vadd.f32 %v183_v12, %v6905_v31  ;;  %v7312_v0 = vadd.f32 %v184_v4, %v6908_v32  ;;  %v7327_v26 = vadd.f32 %v189_v29, %v6946_v41  ;;  %v19347_v4 = vld [vmem:[#allocation24_spill] sm:$0xff]  ;;  %v19352_v29 = vld [vmem:[#allocation13_spill] sm:$0xff] }
  0x25   :  { %19320 = vst [vmem:[#allocation70_spill] sm:$0xff] %v7246_v3  ;;  %19321 = vst [vmem:[#allocation71_spill] sm:$0xff] %v7259_v17  ;;  %v7315_v3 = vadd.f32 %v185_v11, %v6912_v33  ;;  %v7318_v17 = vadd.f32 %v186_v49, %v6934_v38  ;;  %v7330_v31 = vadd.f32 %v190_v61, %v6965_v45  ;;  %v19344_v61 = vld [vmem:[#allocation8_spill] sm:$0xff] }
  0x26   :  { %19322 = vst [vmem:[#allocation72_spill] sm:$0xff] %v7264_v53  ;;  %19323 = vst [vmem:[#allocation73_spill] sm:$0xff] %v7269_v36  ;;  %v7321_v53 = vadd.f32 %v187_v50, %v6938_v39  ;;  %v7333_v32 = vadd.f32 %v191_v62, %v6969_v46  ;;  %v7336_v11 = vadd.f32 %v192_v59, %v6973_v47  ;;  %v19354_v50 = vld [vmem:[#allocation15_spill] sm:$0xff]  ;;  %v19369_v36 = vld [vmem:[#allocation30_spill] sm:$0xff] }
  0x27   :  { %19324 = vst [vmem:[#allocation74_spill] sm:$0xff] %v7280_v20  ;;  %v7339_v33 = vadd.f32 %v193_v27, %v6977_v48  ;;  %v7342_v38 = vadd.f32 %v194_v28, %v7007_v55  ;;  %v7345_v39 = vadd.f32 %v195_v22, %v7011_v56  ;;  %v7348_v40 = vadd.f32 %v196_v1, %v7015_v57  ;;  %v19339_v57 = vld [vmem:[#allocation59_spill] sm:$0xff]  ;;  %v19342_v59 = vld [vmem:[#allocation61_spill] sm:$0xff]  ;;  %v19351_v28 = vld [vmem:[#allocation12_spill] sm:$0xff] }
  0x28   :  { %v7351_v41 = vadd.f32 %v197_v16, %v7019_v58  ;;  %v7354_v45 = vadd.f32 %v198_v19, %v7058_v5  ;;  %v7357_v46 = vadd.f32 %v199_v43, %v7061_v6  ;;  %v7360_v27 = vadd.f32 %v200_v35, %v7064_v14  ;;  %v19325_v43 = vld [vmem:[#allocation49_spill] sm:$0xff]  ;;  %v19327_v35 = vld [vmem:[#allocation50_spill] sm:$0xff]  ;;  %v19350_v14 = vld [vmem:[#allocation11_spill] sm:$0xff] }
  0x29   :  { %v7363_v47 = vadd.f32 %v201_v52, %v7068_v18  ;;  %v7366_v22 = vadd.f32 %v202_v21, %v7092_v2  ;;  %v7369_v1 = vadd.f32 %v203_v42, %v7096_v30  ;;  %v7372_v16 = vadd.f32 %v204_v44, %v7100_v24  ;;  %v19329_v52 = vld [vmem:[#allocation51_spill] sm:$0xff]  ;;  %v19331_v2 = vld [vmem:[#allocation52_spill] sm:$0xff]  ;;  %v19335_v24 = vld [vmem:[#allocation57_spill] sm:$0xff] }
  0x2a   :  { %v7375_v19 = vadd.f32 %v205_v15, %v7104_v23  ;;  %v7378_v48 = vadd.f32 %v206_v54, %v19325_v43  ;;  %v7381_v51 = vadd.f32 %v207_v63, %v19327_v35  ;;  %v7384_v55 = vadd.f32 %v208_v37, %v19329_v52  ;;  %v19333_v30 = vld [vmem:[#allocation56_spill] sm:$0xff]  ;;  %v19337_v23 = vld [vmem:[#allocation58_spill] sm:$0xff]  ;;  %v7404_v37 = vld [vmem:[%s18683_s0 + $0x100] sm:$0xff] }
  0x2b   :  { %v7387_v21 = vadd.f32 %v209_v10, %v19331_v2  ;;  %v7390_v42 = vadd.f32 %v210_v9, %v19333_v30  ;;  %v7393_v44 = vadd.f32 %v211_v13, %v19335_v24  ;;  %v7396_v56 = vadd.f32 %v212_v34, %v19337_v23  ;;  %19341 = vst [vmem:[#allocation75_spill] sm:$0xff] %v7404_v37  ;;  %v19345_v9 = vld [vmem:[#allocation22_spill] sm:$0xff]  ;;  %v19346_v63 = vld [vmem:[#allocation9_spill] sm:$0xff]  ;;  %v19355_v54 = vld [vmem:[#allocation16_spill] sm:$0xff] }
  0x2c   :  { %19326 = vst [vmem:[#allocation49_spill] sm:$0xff] %v7378_v48  ;;  %19328 = vst [vmem:[#allocation50_spill] sm:$0xff] %v7381_v51  ;;  %v7399_v58 = vadd.f32 %v213_v8, %v19339_v57  ;;  %v7407_v10 = vadd.f32 %v214_v60, %v19342_v59  ;;  %v260_v62 = vmul.f32 %v19345_v9, %v19344_v61  ;;  %v19348_v6 = vld [vmem:[#allocation10_spill] sm:$0xff]  ;;  %v19356_v35 = vld [vmem:[#allocation17_spill] sm:$0xff] }
  0x2d   :  { %19330 = vst [vmem:[#allocation51_spill] sm:$0xff] %v7384_v55  ;;  %19332 = vst [vmem:[#allocation52_spill] sm:$0xff] %v7387_v21  ;;  %v261_v5 = vmul.f32 %v19347_v4, %v19346_v63  ;;  %v262_v34 = vmul.f32 %v19345_v9, %v19348_v6  ;;  %v7418_v8 = vld [vmem:[%s18683_s0 + $0x108] sm:$0xff]  ;;  %v263_v18 = vmul.f32 %v19347_v4, %v19350_v14  ;;  %v19358_v24 = vld [vmem:[#allocation19_spill] sm:$0xff] }
  0x2e   :  { %19334 = vst [vmem:[#allocation56_spill] sm:$0xff] %v7390_v42  ;;  %19336 = vst [vmem:[#allocation57_spill] sm:$0xff] %v7393_v44  ;;  %v264_v60 = vmul.f32 %v19345_v9, %v19351_v28  ;;  %v265_v12 = vmul.f32 %v19347_v4, %v19352_v29  ;;  %v19353_v13 = vld [vmem:[#allocation14_spill] sm:$0xff]  ;;  %v267_v15 = vmul.f32 %v19347_v4, %v19354_v50  ;;  %v19359_v57 = vld [vmem:[#allocation20_spill] sm:$0xff] }
  0x2f   :  { %19338 = vst [vmem:[#allocation58_spill] sm:$0xff] %v7396_v56  ;;  %19340 = vst [vmem:[#allocation59_spill] sm:$0xff] %v7399_v58  ;;  %v266_v49 = vmul.f32 %v19345_v9, %v19353_v13  ;;  %v268_v43 = vmul.f32 %v19345_v9, %v19355_v54  ;;  %v269_v52 = vmul.f32 %v19347_v4, %v19356_v35  ;;  %v19357_v2 = vld [vmem:[#allocation18_spill] sm:$0xff]  ;;  %v19360_v61 = vld [vmem:[#allocation21_spill] sm:$0xff] }
  0x30   :  { %19343 = vst [vmem:[#allocation61_spill] sm:$0xff] %v7407_v10  ;;  %19349 = vst [vmem:[#allocation8_spill] sm:$0xff] %v7418_v8  ;;  %v270_v30 = vmul.f32 %v19345_v9, %v19357_v2  ;;  %v271_v23 = vmul.f32 %v19347_v4, %v19358_v24  ;;  %v272_v59 = vmul.f32 %v19345_v9, %v19359_v57  ;;  %v7447_v54 = vld [vmem:[%s18683_s0 + $0x600] sm:$0xff]  ;;  %v19362_v35 = vld [vmem:[#allocation23_spill] sm:$0xff] }
  0x31   :  { %v273_v63 = vmul.f32 %v19347_v4, %v19360_v61  ;;  %v274_v50 = vmul.f32 %v19345_v9, %v7404_v37  ;;  %19361 = vst [vmem:[#allocation22_spill] sm:$0xff] %v7447_v54  ;;  %v275_v2 = vmul.f32 %v19347_v4, %v7418_v8  ;;  %v276_v24 = vmul.f32 %v19345_v9, %v19362_v35  ;;  %v19363_v13 = vld [vmem:[#allocation25_spill] sm:$0xff]  ;;  %v19364_v29 = vld [vmem:[#allocation26_spill] sm:$0xff]  ;;  %v19366_v28 = vld [vmem:[#allocation27_spill] sm:$0xff] }
  0x32   :  { %v277_v57 = vmul.f32 %v19347_v4, %v19363_v13  ;;  %v278_v61 = vmul.f32 %v19345_v9, %v19364_v29  ;;  %v7460_v37 = vld [vmem:[%s18683_s0 + $0x608] sm:$0xff]  ;;  %v279_v14 = vmul.f32 %v19347_v4, %v19366_v28  ;;  %v19367_v6 = vld [vmem:[#allocation28_spill] sm:$0xff]  ;;  %v19368_v20 = vld [vmem:[#allocation29_spill] sm:$0xff]  ;;  %v282_v13 = vmul.f32 %v19345_v9, %v19369_v36 }
  0x33   :  { %19365 = vst [vmem:[#allocation9_spill] sm:$0xff] %v7460_v37  ;;  %v280_v8 = vmul.f32 %v19345_v9, %v19367_v6  ;;  %v281_v35 = vmul.f32 %v19347_v4, %v19368_v20  ;;  %v19370_v10 = vld [vmem:[#allocation32_spill] sm:$0xff]  ;;  %v19371_v58 = vld [vmem:[#allocation33_spill] sm:$0xff]  ;;  %v19372_v44 = vld [vmem:[#allocation34_spill] sm:$0xff] }
  0x34   :  { %v283_v29 = vmul.f32 %v19347_v4, %v19370_v10  ;;  %v284_v56 = vmul.f32 %v19345_v9, %v19371_v58  ;;  %v285_v42 = vmul.f32 %v19347_v4, %v19372_v44  ;;  %v19373_v21 = vld [vmem:[#allocation39_spill] sm:$0xff]  ;;  %v19374_v55 = vld [vmem:[#allocation40_spill] sm:$0xff]  ;;  %v19375_v51 = vld [vmem:[#allocation41_spill] sm:$0xff]  ;;  %v290_v10 = vmul.f32 %v19345_v9, %v7447_v54 }
  0x35   :  { %v286_v28 = vmul.f32 %v19345_v9, %v19373_v21  ;;  %v287_v6 = vmul.f32 %v19347_v4, %v19374_v55  ;;  %v288_v20 = vmul.f32 %v19345_v9, %v19375_v51  ;;  %v19376_v48 = vld [vmem:[#allocation45_spill] sm:$0xff]  ;;  %v291_v58 = vmul.f32 %v19347_v4, %v7460_v37  ;;  %v19422_v54 = vld [vmem:[#allocation62_spill] sm:$0xff] }
  0x36   :  { %v289_v36 = vmul.f32 %v19347_v4, %v19376_v48  ;;  %v7489_v44 = vadd.f32 %v260_v62, %v7309_v7  ;;  %v7492_v21 = vadd.f32 %v261_v5, %v7312_v0  ;;  %v7495_v55 = vadd.f32 %v262_v34, %v7315_v3 }
  0x37   :  { %v7498_v51 = vadd.f32 %v263_v18, %v7318_v17  ;;  %v7501_v48 = vadd.f32 %v264_v60, %v7321_v53  ;;  %v7504_v9 = vadd.f32 %v265_v12, %v7324_v25  ;;  %v7507_v4 = vadd.f32 %v266_v49, %v7327_v26  ;;  %v19386_v60 = vld [vmem:[#allocation7_spill] sm:$0xff]  ;;  %v19393_v49 = vld [vmem:[#allocation57_spill] sm:$0xff] }
  0x38   :  { %v7510_v7 = vadd.f32 %v267_v15, %v7330_v31  ;;  %v7513_v0 = vadd.f32 %v268_v43, %v7333_v32  ;;  %v7516_v3 = vadd.f32 %v269_v52, %v7336_v11  ;;  %v7519_v17 = vadd.f32 %v270_v30, %v7339_v33  ;;  %v6320_v32 = vld [vmem:[%s18684_s1 + $0x30] ss:$8 sm:$0x3]  ;;  %v6399_v15 = vld [vmem:[%s18684_s1 + $0x11] ss:$8 sm:$0x3] }
  0x39   :  { %v7522_v53 = vadd.f32 %v271_v23, %v7342_v38  ;;  %v7525_v25 = vadd.f32 %v272_v59, %v7345_v39  ;;  %v7528_v26 = vadd.f32 %v273_v63, %v7348_v40  ;;  %v7531_v31 = vadd.f32 %v274_v50, %v7351_v41  ;;  %v19395_v43 = vld [vmem:[#allocation58_spill] sm:$0xff]  ;;  %v19407_v59 = vld [vmem:[#allocation35_spill] sm:$0xff]  ;;  %v19408_v63 = vld [vmem:[#allocation36_spill] sm:$0xff] }
  0x3a   :  { %v7537_v11 = vadd.f32 %v275_v2, %v7354_v45  ;;  %v7540_v33 = vadd.f32 %v276_v24, %v7357_v46  ;;  %v7543_v38 = vadd.f32 %v277_v57, %v7360_v27  ;;  %v7546_v39 = vadd.f32 %v278_v61, %v7363_v47  ;;  %v19381_v46 = vld [vmem:[#allocation49_spill] sm:$0xff]  ;;  %v19383_v27 = vld [vmem:[#allocation50_spill] sm:$0xff]  ;;  %v19397_v2 = vld [vmem:[#allocation59_spill] sm:$0xff] }
  0x3b   :  { %v7549_v40 = vadd.f32 %v279_v14, %v7366_v22  ;;  %v7552_v41 = vadd.f32 %v280_v8, %v7369_v1  ;;  %v7555_v62 = vadd.f32 %v281_v35, %v7372_v16  ;;  %v7558_v45 = vadd.f32 %v282_v13, %v7375_v19  ;;  %v19385_v47 = vld [vmem:[#allocation6_spill] sm:$0xff]  ;;  %v19387_v19 = vld [vmem:[#allocation51_spill] sm:$0xff]  ;;  %v19389_v14 = vld [vmem:[#allocation52_spill] sm:$0xff] }
  0x3c   :  { %v7561_v5 = vadd.f32 %v283_v29, %v19381_v46  ;;  %v7564_v34 = vadd.f32 %v284_v56, %v19383_v27  ;;  %v330_v18 = vrot.slane %v6320_v32, %v19385_v47  ;;  %v334_v22 = vrot.slane %v6320_v32, %v19386_v60  ;;  %v6321_v1 = vld [vmem:[%s18684_s1 + $0x40] ss:$8 sm:$0x3]  ;;  %v6398_v16 = vld [vmem:[%s18684_s1 + $0x1] ss:$8 sm:$0x3] }
  0x3d   :  { %19377 = vst [vmem:[#allocation24_spill] sm:$0xff] %v7549_v40  ;;  %19378 = vst [vmem:[#allocation23_spill] sm:$0xff] %v7552_v41  ;;  %v7575_v8 = vadd.f32 %v285_v42, %v19387_v19  ;;  %v7578_v29 = vadd.f32 %v286_v28, %v19389_v14  ;;  %v19391_v56 = vld [vmem:[#allocation56_spill] sm:$0xff]  ;;  %v7584_v50 = vadd.f32 %v288_v20, %v19393_v49  ;;  %v19399_v42 = vld [vmem:[#allocation61_spill] sm:$0xff] }
  0x3e   :  { %19379 = vst [vmem:[#allocation25_spill] sm:$0xff] %v7555_v62  ;;  %19380 = vst [vmem:[#allocation76_spill] sm:$0xff] %v7558_v45  ;;  %v7581_v12 = vadd.f32 %v287_v6, %v19391_v56  ;;  %v7590_v52 = vadd.f32 %v289_v36, %v19395_v43  ;;  %v7593_v30 = vadd.f32 %v290_v10, %v19397_v2  ;;  %v19406_v10 = vld [vmem:[#allocation31_spill] sm:$0xff]  ;;  %v55_v32 = vld [vmem:[%s18683_s0 + $0x388] sm:$0xff] }
  0x3f   :  { %19382 = vst [vmem:[#allocation49_spill] sm:$0xff] %v7561_v5  ;;  %19384 = vst [vmem:[#allocation50_spill] sm:$0xff] %v7564_v34  ;;  %v7596_v24 = vadd.f32 %v291_v58, %v19399_v42  ;;  %v7599_v28 = vrot.slane %v6321_v1, %v19385_v47  ;;  %v7602_v6 = vrot.slane %v6321_v1, %v19386_v60  ;;  %v54_v58 = vld [vmem:[%s18683_s0 + $0x380] sm:$0xff]  ;;  %v19411_v1 = vld [vmem:[#allocation38_spill] sm:$0xff] }
  0x40   :  { %19388 = vst [vmem:[#allocation51_spill] sm:$0xff] %v7575_v8  ;;  %19390 = vst [vmem:[#allocation52_spill] sm:$0xff] %v7578_v29  ;;  %v7605_v20 = vrot.slane %v6398_v16, %v19385_v47  ;;  %v7608_v23 = vrot.slane %v6398_v16, %v19386_v60  ;;  %v7611_v36 = vrot.slane %v6399_v15, %v19385_v47  ;;  %v19410_v46 = vld [vmem:[#allocation37_spill] sm:$0xff]  ;;  %v19412_v19 = vld [vmem:[#allocation42_spill] sm:$0xff] }
  0x41   :  { %19392 = vst [vmem:[#allocation56_spill] sm:$0xff] %v7581_v12  ;;  %19394 = vst [vmem:[#allocation57_spill] sm:$0xff] %v7584_v50  ;;  %v337_v57 = vmul.f32 %v330_v18, %v19406_v10  ;;  %v338_v61 = vmul.f32 %v334_v22, %v19407_v59  ;;  %v339_v35 = vmul.f32 %v330_v18, %v19408_v63  ;;  %v19413_v56 = vld [vmem:[#allocation43_spill] sm:$0xff]  ;;  %v19414_v43 = vld [vmem:[#allocation44_spill] sm:$0xff] }
  0x42   :  { %19396 = vst [vmem:[#allocation58_spill] sm:$0xff] %v7590_v52  ;;  %19398 = vst [vmem:[#allocation59_spill] sm:$0xff] %v7593_v30  ;;  %v7620_v13 = vrot.slane %v6399_v15, %v19386_v60  ;;  %v340_v27 = vmul.f32 %v334_v22, %v19410_v46  ;;  %v341_v16 = vmul.f32 %v330_v18, %v19411_v1  ;;  %v19415_v42 = vld [vmem:[#allocation46_spill] sm:$0xff]  ;;  %v19416_v59 = vld [vmem:[#allocation47_spill] sm:$0xff] }
  0x43   :  { %19400 = vst [vmem:[#allocation61_spill] sm:$0xff] %v7596_v24  ;;  %19401 = vst [vmem:[#allocation77_spill] sm:$0xff] %v7599_v28  ;;  %v342_v14 = vmul.f32 %v334_v22, %v19412_v19  ;;  %v343_v49 = vmul.f32 %v330_v18, %v19413_v56  ;;  %v344_v2 = vmul.f32 %v334_v22, %v19414_v43  ;;  %v19417_v15 = vld [vmem:[#allocation48_spill] sm:$0xff]  ;;  %v19418_v47 = vld [vmem:[#allocation53_spill] sm:$0xff] }
  0x44   :  { %19402 = vst [vmem:[#allocation78_spill] sm:$0xff] %v7602_v6  ;;  %19403 = vst [vmem:[#allocation79_spill] sm:$0xff] %v7605_v20  ;;  %v345_v10 = vmul.f32 %v330_v18, %v19415_v42  ;;  %v346_v63 = vmul.f32 %v334_v22, %v19416_v59  ;;  %v347_v60 = vmul.f32 %v330_v18, %v19417_v15  ;;  %v19420_v20 = vld [vmem:[#allocation55_spill] sm:$0xff]  ;;  %v92_v1 = vld [vmem:[%s18683_s0 + $0x880] sm:$0xff] }
  0x45   :  { %19404 = vst [vmem:[#allocation80_spill] sm:$0xff] %v7608_v23  ;;  %19405 = vst [vmem:[#allocation81_spill] sm:$0xff] %v7611_v36  ;;  %v19419_v36 = vld [vmem:[#allocation54_spill] sm:$0xff]  ;;  %v350_v46 = vmul.f32 %v334_v22, %v19420_v20  ;;  %v351_v37 = vmul.f32 %v330_v18, %v54_v58  ;;  %v352_v19 = vmul.f32 %v334_v22, %v55_v32  ;;  %v19421_v56 = vld [vmem:[#allocation60_spill] sm:$0xff] }
  0x46   :  { %19409 = vst [vmem:[#allocation31_spill] sm:$0xff] %v7620_v13  ;;  %v348_v13 = vmul.f32 %v334_v22, %v19418_v47  ;;  %v349_v23 = vmul.f32 %v330_v18, %v19419_v36  ;;  %v353_v43 = vmul.f32 %v330_v18, %v19421_v56  ;;  %v354_v42 = vmul.f32 %v334_v22, %v19422_v54  ;;  %v19423_v6 = vld [vmem:[#allocation63_spill] sm:$0xff]  ;;  %v93_v47 = vld [vmem:[%s18683_s0 + $0x888] sm:$0xff]  ;;  %v19424_v15 = vld [vmem:[#allocation64_spill] sm:$0xff] }
  0x47   :  { %v355_v59 = vmul.f32 %v330_v18, %v19423_v6  ;;  %v356_v36 = vmul.f32 %v334_v22, %v19424_v15  ;;  %v19425_v28 = vld [vmem:[#allocation65_spill] sm:$0xff]  ;;  %v19426_v58 = vld [vmem:[#allocation66_spill] sm:$0xff]  ;;  %v19427_v30 = vld [vmem:[#allocation67_spill] sm:$0xff]  ;;  %v367_v40 = vmul.f32 %v330_v18, %v92_v1 }
  0x48   :  { %v357_v20 = vmul.f32 %v330_v18, %v19425_v28  ;;  %v358_v24 = vmul.f32 %v334_v22, %v19426_v58  ;;  %v359_v52 = vmul.f32 %v330_v18, %v19427_v30  ;;  %v19428_v50 = vld [vmem:[#allocation68_spill] sm:$0xff]  ;;  %v19429_v12 = vld [vmem:[#allocation69_spill] sm:$0xff]  ;;  %v19430_v29 = vld [vmem:[#allocation70_spill] sm:$0xff]  ;;  %v368_v28 = vmul.f32 %v334_v22, %v93_v47 }
  0x49   :  { %v360_v32 = vmul.f32 %v334_v22, %v19428_v50  ;;  %v361_v56 = vmul.f32 %v330_v18, %v19429_v12  ;;  %v362_v54 = vmul.f32 %v334_v22, %v19430_v29  ;;  %v19431_v8 = vld [vmem:[#allocation71_spill] sm:$0xff]  ;;  %v19432_v34 = vld [vmem:[#allocation72_spill] sm:$0xff]  ;;  %v19433_v45 = vld [vmem:[#allocation73_spill] sm:$0xff]  ;;  %v7657_v58 = vadd.f32 %v337_v57, %v7489_v44 }
  0x4a   :  { %v363_v6 = vmul.f32 %v330_v18, %v19431_v8  ;;  %v364_v5 = vmul.f32 %v334_v22, %v19432_v34  ;;  %v365_v62 = vmul.f32 %v330_v18, %v19433_v45  ;;  %v19434_v41 = vld [vmem:[#allocation74_spill] sm:$0xff]  ;;  %v7660_v30 = vadd.f32 %v338_v61, %v7492_v21  ;;  %v19446_v57 = vld [vmem:[#allocation52_spill] sm:$0xff]  ;;  %v19459_v1 = vld [vmem:[#allocation77_spill] sm:$0xff] }
  0x4b   :  { %v366_v15 = vmul.f32 %v334_v22, %v19434_v41  ;;  %v7663_v12 = vadd.f32 %v339_v35, %v7495_v55  ;;  %v7666_v29 = vadd.f32 %v340_v27, %v7498_v51  ;;  %v7669_v34 = vadd.f32 %v341_v16, %v7501_v48  ;;  %v19448_v35 = vld [vmem:[#allocation56_spill] sm:$0xff]  ;;  %v19463_v47 = vld [vmem:[#allocation13_spill] sm:$0xff] }
  0x4c   :  { %v7672_v45 = vadd.f32 %v342_v14, %v7504_v9  ;;  %v7675_v41 = vadd.f32 %v343_v49, %v7507_v4  ;;  %v7678_v44 = vadd.f32 %v344_v2, %v7510_v7  ;;  %v7681_v21 = vadd.f32 %v345_v10, %v7513_v0  ;;  %v19454_v14 = vld [vmem:[#allocation59_spill] sm:$0xff]  ;;  %v36_v2 = vld [vmem:[%s18683_s0 + $0x120] sm:$0xff] }
  0x4d   :  { %v7684_v55 = vadd.f32 %v346_v63, %v7516_v3  ;;  %v7687_v51 = vadd.f32 %v347_v60, %v7519_v17  ;;  %v7690_v48 = vadd.f32 %v348_v13, %v7522_v53  ;;  %v7693_v9 = vadd.f32 %v349_v23, %v7525_v25  ;;  %v19435_v25 = vld [vmem:[#allocation24_spill] sm:$0xff]  ;;  %v19456_v10 = vld [vmem:[#allocation61_spill] sm:$0xff] }
  0x4e   :  { %v7696_v4 = vadd.f32 %v350_v46, %v7528_v26  ;;  %v7699_v7 = vadd.f32 %v351_v37, %v7531_v31  ;;  %v7702_v0 = vadd.f32 %v352_v19, %v7537_v11  ;;  %v7705_v3 = vadd.f32 %v353_v43, %v7540_v33  ;;  %v19436_v26 = vld [vmem:[#allocation23_spill] sm:$0xff]  ;;  %v19437_v37 = vld [vmem:[#allocation25_spill] sm:$0xff]  ;;  %v19438_v11 = vld [vmem:[#allocation76_spill] sm:$0xff] }
  0x4f   :  { %v7708_v17 = vadd.f32 %v354_v42, %v7543_v38  ;;  %v7711_v53 = vadd.f32 %v355_v59, %v7546_v39  ;;  %v7714_v18 = vadd.f32 %v356_v36, %v19435_v25  ;;  %v7717_v60 = vadd.f32 %v357_v20, %v19436_v26  ;;  %v19440_v33 = vld [vmem:[#allocation49_spill] sm:$0xff]  ;;  %v19442_v38 = vld [vmem:[#allocation50_spill] sm:$0xff]  ;;  %v19444_v39 = vld [vmem:[#allocation51_spill] sm:$0xff] }
  0x50   :  { %v7720_v31 = vadd.f32 %v358_v24, %v19437_v37  ;;  %v7723_v22 = vadd.f32 %v359_v52, %v19438_v11  ;;  %v7726_v8 = vadd.f32 %v360_v32, %v19440_v33  ;;  %v7729_v50 = vadd.f32 %v361_v56, %v19442_v38  ;;  %v19450_v24 = vld [vmem:[#allocation57_spill] sm:$0xff]  ;;  %v19452_v52 = vld [vmem:[#allocation58_spill] sm:$0xff]  ;;  %v19460_v19 = vld [vmem:[#allocation11_spill] sm:$0xff] }
  0x51   :  { %v7732_v23 = vadd.f32 %v362_v54, %v19444_v39  ;;  %v7735_v61 = vadd.f32 %v363_v6, %v19446_v57  ;;  %v7738_v13 = vadd.f32 %v364_v5, %v19448_v35  ;;  %v7741_v27 = vadd.f32 %v365_v62, %v19450_v24  ;;  %v19458_v46 = vld [vmem:[#allocation10_spill] sm:$0xff]  ;;  %v19462_v42 = vld [vmem:[#allocation12_spill] sm:$0xff]  ;;  %v19465_v56 = vld [vmem:[#allocation15_spill] sm:$0xff] }
  0x52   :  { %19439 = vst [vmem:[#allocation35_spill] sm:$0xff] %v7723_v22  ;;  %19441 = vst [vmem:[#allocation36_spill] sm:$0xff] %v7726_v8  ;;  %v7744_v16 = vadd.f32 %v366_v15, %v19452_v52  ;;  %v7747_v49 = vadd.f32 %v367_v40, %v19454_v14  ;;  %v7753_v63 = vadd.f32 %v368_v28, %v19456_v10  ;;  %v19461_v43 = vld [vmem:[#allocation78_spill] sm:$0xff]  ;;  %v19466_v6 = vld [vmem:[#allocation16_spill] sm:$0xff] }
  0x53   :  { %19443 = vst [vmem:[#allocation37_spill] sm:$0xff] %v7729_v50  ;;  %19445 = vst [vmem:[#allocation38_spill] sm:$0xff] %v7732_v23  ;;  %v414_v5 = vmul.f32 %v19459_v1, %v19458_v46  ;;  %v415_v62 = vmul.f32 %v19461_v43, %v19460_v19  ;;  %v416_v59 = vmul.f32 %v19459_v1, %v19462_v42  ;;  %v37_v40 = vld [vmem:[%s18683_s0 + $0x128] sm:$0xff]  ;;  %v19467_v28 = vld [vmem:[#allocation17_spill] sm:$0xff] }
  0x54   :  { %19447 = vst [vmem:[#allocation42_spill] sm:$0xff] %v7735_v61  ;;  %19449 = vst [vmem:[#allocation43_spill] sm:$0xff] %v7738_v13  ;;  %v417_v36 = vmul.f32 %v19461_v43, %v19463_v47  ;;  %v19464_v20 = vld [vmem:[#allocation14_spill] sm:$0xff]  ;;  %v419_v54 = vmul.f32 %v19461_v43, %v19465_v56  ;;  %v420_v15 = vmul.f32 %v19459_v1, %v19466_v6  ;;  %v19469_v11 = vld [vmem:[#allocation19_spill] sm:$0xff] }
  0x55   :  { %19451 = vst [vmem:[#allocation44_spill] sm:$0xff] %v7741_v27  ;;  %19453 = vst [vmem:[#allocation46_spill] sm:$0xff] %v7744_v16  ;;  %v418_v32 = vmul.f32 %v19459_v1, %v19464_v20  ;;  %v421_v25 = vmul.f32 %v19461_v43, %v19467_v28  ;;  %v19468_v26 = vld [vmem:[#allocation18_spill] sm:$0xff]  ;;  %v423_v33 = vmul.f32 %v19461_v43, %v19469_v11  ;;  %v19470_v38 = vld [vmem:[#allocation20_spill] sm:$0xff] }
  0x56   :  { %19455 = vst [vmem:[#allocation47_spill] sm:$0xff] %v7747_v49  ;;  %19457 = vst [vmem:[#allocation48_spill] sm:$0xff] %v7753_v63  ;;  %v422_v37 = vmul.f32 %v19459_v1, %v19468_v26  ;;  %v424_v39 = vmul.f32 %v19459_v1, %v19470_v38  ;;  %v19471_v57 = vld [vmem:[#allocation21_spill] sm:$0xff]  ;;  %v19472_v24 = vld [vmem:[#allocation75_spill] sm:$0xff]  ;;  %v428_v46 = vmul.f32 %v19459_v1, %v36_v2 }
  0x57   :  { %v425_v35 = vmul.f32 %v19461_v43, %v19471_v57  ;;  %v426_v52 = vmul.f32 %v19459_v1, %v19472_v24  ;;  %v19473_v14 = vld [vmem:[#allocation8_spill] sm:$0xff]  ;;  %v74_v19 = vld [vmem:[%s18683_s0 + $0x620] sm:$0xff]  ;;  %v429_v42 = vmul.f32 %v19461_v43, %v37_v40  ;;  %v19474_v47 = vld [vmem:[#allocation26_spill] sm:$0xff] }
  0x58   :  { %v427_v10 = vmul.f32 %v19461_v43, %v19473_v14  ;;  %v430_v20 = vmul.f32 %v19459_v1, %v19474_v47  ;;  %v19475_v56 = vld [vmem:[#allocation27_spill] sm:$0xff]  ;;  %v19476_v28 = vld [vmem:[#allocation28_spill] sm:$0xff]  ;;  %v75_v11 = vld [vmem:[%s18683_s0 + $0x628] sm:$0xff] }
  0x59   :  { %v431_v6 = vmul.f32 %v19461_v43, %v19475_v56  ;;  %v432_v26 = vmul.f32 %v19459_v1, %v19476_v28  ;;  %v19477_v2 = vld [vmem:[#allocation29_spill] sm:$0xff]  ;;  %v19478_v57 = vld [vmem:[#allocation30_spill] sm:$0xff]  ;;  %v19479_v40 = vld [vmem:[#allocation32_spill] sm:$0xff]  ;;  %v445_v22 = vmul.f32 %v19461_v43, %v75_v11 }
  0x5a   :  { %v433_v38 = vmul.f32 %v19461_v43, %v19477_v2  ;;  %v434_v24 = vmul.f32 %v19459_v1, %v19478_v57  ;;  %v435_v14 = vmul.f32 %v19461_v43, %v19479_v40  ;;  %v19480_v47 = vld [vmem:[#allocation33_spill] sm:$0xff]  ;;  %v19481_v56 = vld [vmem:[#allocation34_spill] sm:$0xff]  ;;  %v19482_v28 = vld [vmem:[#allocation39_spill] sm:$0xff] }
  0x5b   :  { %v436_v63 = vmul.f32 %v19459_v1, %v19480_v47  ;;  %v437_v49 = vmul.f32 %v19461_v43, %v19481_v56  ;;  %v438_v16 = vmul.f32 %v19459_v1, %v19482_v28  ;;  %v19483_v27 = vld [vmem:[#allocation40_spill] sm:$0xff]  ;;  %v19484_v61 = vld [vmem:[#allocation41_spill] sm:$0xff]  ;;  %v19486_v50 = vld [vmem:[#allocation22_spill] sm:$0xff]  ;;  %v444_v56 = vmul.f32 %v19459_v1, %v74_v19 }
  0x5c   :  { %v439_v13 = vmul.f32 %v19461_v43, %v19483_v27  ;;  %v440_v2 = vmul.f32 %v19459_v1, %v19484_v61  ;;  %v19485_v23 = vld [vmem:[#allocation45_spill] sm:$0xff]  ;;  %v442_v40 = vmul.f32 %v19459_v1, %v19486_v50  ;;  %v7825_v28 = vadd.f32 %v414_v5, %v7657_v58  ;;  %v7895_v5 = vld [vmem:[%s18683_s0 + $0x168] sm:$0xff] }
  0x5d   :  { %v441_v57 = vmul.f32 %v19461_v43, %v19485_v23  ;;  %v19487_v8 = vld [vmem:[#allocation9_spill] sm:$0xff]  ;;  %v7828_v27 = vadd.f32 %v415_v62, %v7660_v30  ;;  %v7831_v61 = vadd.f32 %v416_v59, %v7663_v12  ;;  %v7834_v23 = vadd.f32 %v417_v36, %v7666_v29  ;;  %19489 = vst [vmem:[#allocation54_spill] sm:$0xff] %v7895_v5  ;;  %v19493_v59 = vld [vmem:[#allocation35_spill] sm:$0xff]  ;;  %v19512_v19 = vld [vmem:[#allocation46_spill] sm:$0xff] }
  0x5e   :  { %v443_v47 = vmul.f32 %v19461_v43, %v19487_v8  ;;  %v7837_v50 = vadd.f32 %v418_v32, %v7669_v34  ;;  %v7840_v8 = vadd.f32 %v419_v54, %v7672_v45  ;;  %v7843_v1 = vadd.f32 %v420_v15, %v7675_v41  ;;  %v7900_v43 = vld [vmem:[%s18683_s0 + $0x180] sm:$0xff]  ;;  %v7927_v32 = vld [vmem:[%s18683_s0 + $0x1a8] sm:$0xff] }
  0x5f   :  { %v7846_v58 = vadd.f32 %v421_v25, %v7678_v44  ;;  %v7849_v30 = vadd.f32 %v422_v37, %v7681_v21  ;;  %v7852_v12 = vadd.f32 %v423_v33, %v7684_v55  ;;  %v7855_v29 = vadd.f32 %v424_v39, %v7687_v51  ;;  %v6322_v21 = vld [vmem:[%s18683_s0 + $0x140] sm:$0xff]  ;;  %v6323_v55 = vld [vmem:[%s18683_s0 + $0x148] sm:$0xff]  ;;  %19490 = vst [vmem:[#allocation55_spill] sm:$0xff] %v7900_v43 }
  0x60   :  { %v7858_v34 = vadd.f32 %v425_v35, %v7690_v48  ;;  %v7861_v45 = vadd.f32 %v426_v52, %v7693_v9  ;;  %v7864_v41 = vadd.f32 %v427_v10, %v7696_v4  ;;  %v7867_v44 = vadd.f32 %v428_v46, %v7699_v7  ;;  %v7878_v51 = vld [vmem:[%s18683_s0 + $0x160] sm:$0xff]  ;;  %19494 = vst [vmem:[#allocation63_spill] sm:$0xff] %v7927_v32  ;;  %v19501_v25 = vld [vmem:[#allocation38_spill] sm:$0xff]  ;;  %v19510_v10 = vld [vmem:[#allocation44_spill] sm:$0xff] }
  0x61   :  { %19488 = vst [vmem:[#allocation53_spill] sm:$0xff] %v7878_v51  ;;  %v7881_v48 = vadd.f32 %v429_v42, %v7702_v0  ;;  %v7884_v9 = vadd.f32 %v430_v20, %v7705_v3  ;;  %v7887_v4 = vadd.f32 %v431_v6, %v7708_v17  ;;  %v7890_v7 = vadd.f32 %v432_v26, %v7711_v53  ;;  %v7905_v0 = vld [vmem:[%s18683_s0 + $0x188] sm:$0xff]  ;;  %v7910_v3 = vld [vmem:[%s18683_s0 + $0x1a0] sm:$0xff]  ;;  %v19514_v20 = vld [vmem:[#allocation47_spill] sm:$0xff] }
  0x62   :  { %19491 = vst [vmem:[#allocation60_spill] sm:$0xff] %v7905_v0  ;;  %19492 = vst [vmem:[#allocation62_spill] sm:$0xff] %v7910_v3  ;;  %v7913_v17 = vadd.f32 %v433_v38, %v7714_v18  ;;  %v7916_v53 = vadd.f32 %v434_v24, %v7717_v60  ;;  %v7919_v62 = vadd.f32 %v435_v14, %v7720_v31  ;;  %v7932_v54 = vld [vmem:[%s18683_s0 + $0x1c0] sm:$0xff]  ;;  %v7937_v18 = vld [vmem:[%s18683_s0 + $0x1c8] sm:$0xff] }
  0x63   :  { %v7922_v36 = vadd.f32 %v436_v63, %v19493_v59  ;;  %19495 = vst [vmem:[#allocation64_spill] sm:$0xff] %v7932_v54  ;;  %19496 = vst [vmem:[#allocation65_spill] sm:$0xff] %v7937_v18  ;;  %v19497_v60 = vld [vmem:[#allocation36_spill] sm:$0xff]  ;;  %v19499_v63 = vld [vmem:[#allocation37_spill] sm:$0xff]  ;;  %v7946_v37 = vadd.f32 %v439_v13, %v19501_v25  ;;  %v7970_v46 = vadd.f32 %v442_v40, %v19510_v10 }
  0x64   :  { %v7940_v31 = vadd.f32 %v437_v49, %v19497_v60  ;;  %v7943_v15 = vadd.f32 %v438_v16, %v19499_v63  ;;  %v19503_v33 = vld [vmem:[#allocation42_spill] sm:$0xff]  ;;  %v7954_v35 = vld [vmem:[%s18683_s0 + $0x1e0] sm:$0xff]  ;;  %v19508_v13 = vld [vmem:[#allocation43_spill] sm:$0xff]  ;;  %v7973_v42 = vadd.f32 %v443_v47, %v19512_v19  ;;  %v7976_v6 = vadd.f32 %v444_v56, %v19514_v20 }
  0x65   :  { %19502 = vst [vmem:[#allocation68_spill] sm:$0xff] %v7946_v37  ;;  %v7949_v39 = vadd.f32 %v440_v2, %v19503_v33  ;;  %19505 = vst [vmem:[#allocation70_spill] sm:$0xff] %v7954_v35  ;;  %v7959_v52 = vld [vmem:[%s18683_s0 + $0x1e8] sm:$0xff]  ;;  %v7964_v16 = vld [vmem:[%s18683_s0 + $0x200] sm:$0xff]  ;;  %v7967_v49 = vadd.f32 %v441_v57, %v19508_v13 }
  0x66   :  { %19498 = vst [vmem:[#allocation66_spill] sm:$0xff] %v7940_v31  ;;  %19500 = vst [vmem:[#allocation67_spill] sm:$0xff] %v7943_v15  ;;  %v7981_v26 = vld [vmem:[%s18683_s0 + $0x208] sm:$0xff]  ;;  %v7986_v11 = vld [vmem:[%s18683_s0 + $0x220] sm:$0xff] }
  0x67   :  { %19504 = vst [vmem:[#allocation69_spill] sm:$0xff] %v7949_v39  ;;  %19506 = vst [vmem:[#allocation71_spill] sm:$0xff] %v7959_v52  ;;  %v7991_v38 = vld [vmem:[%s18683_s0 + $0x228] sm:$0xff]  ;;  %v19519_v24 = vld [vmem:[#allocation48_spill] sm:$0xff] }
  0x68   :  { %19507 = vst [vmem:[#allocation72_spill] sm:$0xff] %v7964_v16  ;;  %19509 = vst [vmem:[#allocation73_spill] sm:$0xff] %v7967_v49  ;;  %v7994_v14 = vadd.f32 %v445_v22, %v19519_v24  ;;  %v6360_v2 = vld [vmem:[%s18683_s0 + $0x640] sm:$0xff]  ;;  %v6361_v57 = vld [vmem:[%s18683_s0 + $0x648] sm:$0xff] }
  0x69   :  { %19511 = vst [vmem:[#allocation74_spill] sm:$0xff] %v7970_v46  ;;  %19513 = vst [vmem:[#allocation24_spill] sm:$0xff] %v7973_v42  ;;  %v8005_v40 = vld [vmem:[%s18683_s0 + $0x660] sm:$0xff]  ;;  %v19522_v47 = vld [vmem:[#allocation79_spill] sm:$0xff] }
  0x6a   :  { %19515 = vst [vmem:[#allocation23_spill] sm:$0xff] %v7976_v6  ;;  %19516 = vst [vmem:[#allocation25_spill] sm:$0xff] %v7981_v26  ;;  %v568_v56 = vmul.f32 %v6322_v21, %v19522_v47  ;;  %v19523_v59 = vld [vmem:[#allocation80_spill] sm:$0xff]  ;;  %v570_v22 = vmul.f32 %v7878_v51, %v19522_v47  ;;  %v8014_v63 = vld [vmem:[%s18683_s0 + $0x668] sm:$0xff]  ;;  %v574_v10 = vmul.f32 %v7910_v3, %v19522_v47 }
  0x6b   :  { %19517 = vst [vmem:[#allocation76_spill] sm:$0xff] %v7986_v11  ;;  %19518 = vst [vmem:[#allocation49_spill] sm:$0xff] %v7991_v38  ;;  %v569_v60 = vmul.f32 %v6323_v55, %v19523_v59  ;;  %v8019_v25 = vld [vmem:[%s18683_s0 + $0x680] sm:$0xff]  ;;  %v8024_v33 = vld [vmem:[%s18683_s0 + $0x688] sm:$0xff]  ;;  %v571_v21 = vmul.f32 %v7895_v5, %v19523_v59  ;;  %v572_v55 = vmul.f32 %v7900_v43, %v19522_v47 }
  0x6c   :  { %19520 = vst [vmem:[#allocation50_spill] sm:$0xff] %v7994_v14  ;;  %19521 = vst [vmem:[#allocation51_spill] sm:$0xff] %v8005_v40  ;;  %v573_v13 = vmul.f32 %v7905_v0, %v19523_v59  ;;  %v8037_v19 = vld [vmem:[%s18683_s0 + $0x6a0] sm:$0xff]  ;;  %v8042_v20 = vld [vmem:[%s18683_s0 + $0x6a8] sm:$0xff]  ;;  %v575_v0 = vmul.f32 %v7927_v32, %v19523_v59  ;;  %v576_v3 = vmul.f32 %v7932_v54, %v19522_v47 }
  0x6d   :  { %19524 = vst [vmem:[#allocation52_spill] sm:$0xff] %v8014_v63  ;;  %19525 = vst [vmem:[#allocation56_spill] sm:$0xff] %v8019_v25  ;;  %v8047_v24 = vld [vmem:[%s18683_s0 + $0x6c0] sm:$0xff]  ;;  %v577_v43 = vmul.f32 %v7937_v18, %v19523_v59  ;;  %v578_v5 = vmul.f32 %v7954_v35, %v19522_v47  ;;  %v8060_v51 = vld [vmem:[%s18683_s0 + $0x6c8] sm:$0xff]  ;;  %v579_v18 = vmul.f32 %v7959_v52, %v19523_v59 }
  0x6e   :  { %19526 = vst [vmem:[#allocation57_spill] sm:$0xff] %v8024_v33  ;;  %19527 = vst [vmem:[#allocation58_spill] sm:$0xff] %v8037_v19  ;;  %v8065_v14 = vld [vmem:[%s18683_s0 + $0x6e0] sm:$0xff]  ;;  %v8070_v54 = vld [vmem:[%s18683_s0 + $0x6e8] sm:$0xff]  ;;  %v580_v35 = vmul.f32 %v7964_v16, %v19522_v47  ;;  %v581_v32 = vmul.f32 %v7981_v26, %v19523_v59  ;;  %v582_v6 = vmul.f32 %v7986_v11, %v19522_v47 }
  0x6f   :  { %19528 = vst [vmem:[#allocation59_spill] sm:$0xff] %v8042_v20  ;;  %19529 = vst [vmem:[#allocation61_spill] sm:$0xff] %v8047_v24  ;;  %v8083_v42 = vld [vmem:[%s18683_s0 + $0x700] sm:$0xff]  ;;  %v8088_v46 = vld [vmem:[%s18683_s0 + $0x708] sm:$0xff]  ;;  %v583_v26 = vmul.f32 %v7991_v38, %v19523_v59  ;;  %v584_v11 = vmul.f32 %v6360_v2, %v19522_v47  ;;  %v585_v52 = vmul.f32 %v6361_v57, %v19523_v59 }
  0x70   :  { %19530 = vst [vmem:[#allocation10_spill] sm:$0xff] %v8060_v51  ;;  %19531 = vst [vmem:[#allocation77_spill] sm:$0xff] %v8065_v14  ;;  %v8093_v16 = vld [vmem:[%s18683_s0 + $0x720] sm:$0xff]  ;;  %v586_v49 = vmul.f32 %v8005_v40, %v19522_v47  ;;  %v8104_v39 = vld [vmem:[%s18683_s0 + $0x728] sm:$0xff]  ;;  %v587_v37 = vmul.f32 %v8014_v63, %v19523_v59  ;;  %v588_v15 = vmul.f32 %v8019_v25, %v19522_v47 }
  0x71   :  { %19532 = vst [vmem:[#allocation11_spill] sm:$0xff] %v8070_v54  ;;  %19533 = vst [vmem:[#allocation78_spill] sm:$0xff] %v8083_v42  ;;  %v589_v38 = vmul.f32 %v8024_v33, %v19523_v59  ;;  %v590_v2 = vmul.f32 %v8037_v19, %v19522_v47  ;;  %v591_v57 = vmul.f32 %v8042_v20, %v19523_v59 }
  0x72   :  { %19534 = vst [vmem:[#allocation12_spill] sm:$0xff] %v8088_v46  ;;  %19535 = vst [vmem:[#allocation13_spill] sm:$0xff] %v8093_v16  ;;  %v592_v40 = vmul.f32 %v8047_v24, %v19522_v47  ;;  %v593_v31 = vmul.f32 %v8060_v51, %v19523_v59  ;;  %v594_v63 = vmul.f32 %v8065_v14, %v19522_v47 }
  0x73   :  { %19536 = vst [vmem:[#allocation14_spill] sm:$0xff] %v8104_v39  ;;  %v595_v25 = vmul.f32 %v8070_v54, %v19523_v59  ;;  %v596_v33 = vmul.f32 %v8083_v42, %v19522_v47  ;;  %v597_v19 = vmul.f32 %v8088_v46, %v19523_v59  ;;  %v598_v20 = vmul.f32 %v8093_v16, %v19522_v47  ;;  %v8368_v16 = vld [vmem:[%s18683_s0 + $0x948] sm:$0xff] }
  0x74   :  { %v599_v24 = vmul.f32 %v8104_v39, %v19523_v59  ;;  %v8133_v51 = vadd.f32 %v568_v56, %v7825_v28  ;;  %v8136_v14 = vadd.f32 %v569_v60, %v7828_v27  ;;  %v8139_v54 = vadd.f32 %v570_v22, %v7831_v61  ;;  %v8282_v56 = vld [vmem:[%s18683_s0 + $0x4a0] sm:$0xff]  ;;  %v19561_v22 = vld [vmem:[#allocation74_spill] sm:$0xff]  ;;  %19578 = vst [vmem:[#allocation46_spill] sm:$0xff] %v8368_v16 }
  0x75   :  { %v8142_v42 = vadd.f32 %v571_v21, %v7834_v23  ;;  %v8145_v46 = vadd.f32 %v572_v55, %v7837_v50  ;;  %v8148_v47 = vadd.f32 %v573_v13, %v7840_v8  ;;  %v8151_v59 = vadd.f32 %v574_v10, %v7843_v1  ;;  %v6342_v50 = vld [vmem:[%s18683_s0 + $0x3c0] sm:$0xff]  ;;  %v6343_v8 = vld [vmem:[%s18683_s0 + $0x3c8] sm:$0xff]  ;;  %19557 = vst [vmem:[#allocation34_spill] sm:$0xff] %v8282_v56  ;;  %v19563_v21 = vld [vmem:[#allocation24_spill] sm:$0xff] }
  0x76   :  { %v8154_v28 = vadd.f32 %v575_v0, %v7846_v58  ;;  %v8157_v27 = vadd.f32 %v576_v3, %v7849_v30  ;;  %v8160_v61 = vadd.f32 %v577_v43, %v7852_v12  ;;  %v8163_v23 = vadd.f32 %v578_v5, %v7855_v29  ;;  %v8174_v1 = vld [vmem:[%s18683_s0 + $0x3e0] sm:$0xff]  ;;  %v8191_v5 = vld [vmem:[%s18683_s0 + $0x3e8] sm:$0xff]  ;;  %v19565_v13 = vld [vmem:[#allocation23_spill] sm:$0xff] }
  0x77   :  { %19537 = vst [vmem:[#allocation15_spill] sm:$0xff] %v8174_v1  ;;  %v8177_v58 = vadd.f32 %v579_v18, %v7858_v34  ;;  %v8180_v30 = vadd.f32 %v580_v35, %v7861_v45  ;;  %v8183_v12 = vadd.f32 %v581_v32, %v7864_v41  ;;  %v8186_v29 = vadd.f32 %v582_v6, %v7867_v44  ;;  %v8196_v43 = vld [vmem:[%s18683_s0 + $0x400] sm:$0xff]  ;;  %v8201_v34 = vld [vmem:[%s18683_s0 + $0x408] sm:$0xff] }
  0x78   :  { %19538 = vst [vmem:[#allocation16_spill] sm:$0xff] %v8191_v5  ;;  %19539 = vst [vmem:[#allocation17_spill] sm:$0xff] %v8196_v43  ;;  %v8206_v45 = vld [vmem:[%s18683_s0 + $0x420] sm:$0xff]  ;;  %v8209_v41 = vadd.f32 %v583_v26, %v7881_v48  ;;  %v8212_v44 = vadd.f32 %v584_v11, %v7884_v9  ;;  %v8215_v0 = vadd.f32 %v585_v52, %v7887_v4  ;;  %v8223_v32 = vld [vmem:[%s18683_s0 + $0x428] sm:$0xff] }
  0x79   :  { %19540 = vst [vmem:[#allocation18_spill] sm:$0xff] %v8201_v34  ;;  %19541 = vst [vmem:[#allocation19_spill] sm:$0xff] %v8206_v45  ;;  %v8218_v3 = vadd.f32 %v586_v49, %v7890_v7  ;;  %v8228_v18 = vld [vmem:[%s18683_s0 + $0x440] sm:$0xff]  ;;  %v8233_v48 = vld [vmem:[%s18683_s0 + $0x448] sm:$0xff]  ;;  %v8236_v9 = vadd.f32 %v587_v37, %v7913_v17  ;;  %v8239_v4 = vadd.f32 %v588_v15, %v7916_v53 }
  0x7a   :  { %19542 = vst [vmem:[#allocation20_spill] sm:$0xff] %v8223_v32  ;;  %19543 = vst [vmem:[#allocation21_spill] sm:$0xff] %v8228_v18  ;;  %v8242_v7 = vadd.f32 %v589_v38, %v7919_v62  ;;  %v8245_v35 = vadd.f32 %v590_v2, %v7922_v36  ;;  %v8250_v52 = vld [vmem:[%s18683_s0 + $0x460] sm:$0xff]  ;;  %v8255_v49 = vld [vmem:[%s18683_s0 + $0x468] sm:$0xff]  ;;  %v8296_v55 = vadd.f32 %v597_v19, %v19563_v21 }
  0x7b   :  { %19544 = vst [vmem:[#allocation75_spill] sm:$0xff] %v8233_v48  ;;  %19545 = vst [vmem:[#allocation8_spill] sm:$0xff] %v8250_v52  ;;  %v8260_v17 = vld [vmem:[%s18683_s0 + $0x480] sm:$0xff]  ;;  %v19548_v53 = vld [vmem:[#allocation66_spill] sm:$0xff]  ;;  %v8299_v10 = vadd.f32 %v598_v20, %v19565_v13 }
  0x7c   :  { %19546 = vst [vmem:[#allocation26_spill] sm:$0xff] %v8255_v49  ;;  %19547 = vst [vmem:[#allocation27_spill] sm:$0xff] %v8260_v17  ;;  %v8263_v62 = vadd.f32 %v591_v57, %v19548_v53  ;;  %v19550_v36 = vld [vmem:[#allocation67_spill] sm:$0xff]  ;;  %v19552_v37 = vld [vmem:[#allocation68_spill] sm:$0xff] }
  0x7d   :  { %v8266_v15 = vadd.f32 %v592_v40, %v19550_v36  ;;  %v8269_v6 = vadd.f32 %v593_v31, %v19552_v37  ;;  %v19554_v26 = vld [vmem:[#allocation69_spill] sm:$0xff]  ;;  %v8277_v38 = vld [vmem:[%s18683_s0 + $0x488] sm:$0xff]  ;;  %19564 = vst [vmem:[#allocation45_spill] sm:$0xff] %v8296_v55  ;;  %19566 = vst [vmem:[#allocation22_spill] sm:$0xff] %v8299_v10 }
  0x7e   :  { %19549 = vst [vmem:[#allocation28_spill] sm:$0xff] %v8263_v62  ;;  %v8272_v11 = vadd.f32 %v594_v63, %v19554_v26  ;;  %19556 = vst [vmem:[#allocation33_spill] sm:$0xff] %v8277_v38  ;;  %v8287_v40 = vld [vmem:[%s18683_s0 + $0x4a8] sm:$0xff]  ;;  %v19559_v31 = vld [vmem:[#allocation73_spill] sm:$0xff]  ;;  %v8293_v63 = vadd.f32 %v596_v33, %v19561_v22 }
  0x7f   :  { %19551 = vst [vmem:[#allocation29_spill] sm:$0xff] %v8266_v15  ;;  %19553 = vst [vmem:[#allocation30_spill] sm:$0xff] %v8269_v6  ;;  %v8290_v60 = vadd.f32 %v595_v25, %v19559_v31  ;;  %v6380_v2 = vld [vmem:[%s18683_s0 + $0x8c0] sm:$0xff]  ;;  %v6381_v57 = vld [vmem:[%s18683_s0 + $0x8c8] sm:$0xff] }
  0x80   :  { %19555 = vst [vmem:[#allocation32_spill] sm:$0xff] %v8272_v11  ;;  %19558 = vst [vmem:[#allocation39_spill] sm:$0xff] %v8287_v40  ;;  %v8310_v25 = vld [vmem:[%s18683_s0 + $0x8e0] sm:$0xff]  ;;  %v19568_v33 = vld [vmem:[#allocation50_spill] sm:$0xff] }
  0x81   :  { %19560 = vst [vmem:[#allocation40_spill] sm:$0xff] %v8290_v60  ;;  %19562 = vst [vmem:[#allocation41_spill] sm:$0xff] %v8293_v63  ;;  %v8313_v53 = vadd.f32 %v599_v24, %v19568_v33  ;;  %v19570_v19 = vld [vmem:[#allocation81_spill] sm:$0xff]  ;;  %v19571_v20 = vld [vmem:[#allocation31_spill] sm:$0xff] }
  0x82   :  { %19567 = vst [vmem:[#allocation9_spill] sm:$0xff] %v8310_v25  ;;  %v645_v36 = vmul.f32 %v6342_v50, %v19570_v19  ;;  %v646_v37 = vmul.f32 %v6343_v8, %v19571_v20  ;;  %v647_v26 = vmul.f32 %v8174_v1, %v19570_v19  ;;  %v8322_v31 = vld [vmem:[%s18683_s0 + $0x8e8] sm:$0xff]  ;;  %v8327_v22 = vld [vmem:[%s18683_s0 + $0x900] sm:$0xff]  ;;  %v648_v50 = vmul.f32 %v8191_v5, %v19571_v20 }
  0x83   :  { %19569 = vst [vmem:[#allocation35_spill] sm:$0xff] %v8313_v53  ;;  %19572 = vst [vmem:[#allocation36_spill] sm:$0xff] %v8322_v31  ;;  %v8332_v24 = vld [vmem:[%s18683_s0 + $0x908] sm:$0xff]  ;;  %v649_v8 = vmul.f32 %v8196_v43, %v19570_v19  ;;  %v650_v21 = vmul.f32 %v8201_v34, %v19571_v20  ;;  %v651_v13 = vmul.f32 %v8206_v45, %v19570_v19  ;;  %v8345_v33 = vld [vmem:[%s18683_s0 + $0x920] sm:$0xff] }
  0x84   :  { %19573 = vst [vmem:[#allocation37_spill] sm:$0xff] %v8327_v22  ;;  %19574 = vst [vmem:[#allocation38_spill] sm:$0xff] %v8332_v24  ;;  %v8350_v1 = vld [vmem:[%s18683_s0 + $0x928] sm:$0xff]  ;;  %v8355_v43 = vld [vmem:[%s18683_s0 + $0x940] sm:$0xff]  ;;  %v652_v34 = vmul.f32 %v8223_v32, %v19571_v20  ;;  %v653_v45 = vmul.f32 %v8228_v18, %v19570_v19  ;;  %v654_v5 = vmul.f32 %v8233_v48, %v19571_v20 }
  0x85   :  { %19575 = vst [vmem:[#allocation42_spill] sm:$0xff] %v8345_v33  ;;  %19576 = vst [vmem:[#allocation43_spill] sm:$0xff] %v8350_v1  ;;  %v655_v39 = vmul.f32 %v8250_v52, %v19570_v19  ;;  %v8373_v53 = vld [vmem:[%s18683_s0 + $0x960] sm:$0xff]  ;;  %v8378_v18 = vld [vmem:[%s18683_s0 + $0x968] sm:$0xff]  ;;  %v656_v48 = vmul.f32 %v8255_v49, %v19571_v20  ;;  %v657_v52 = vmul.f32 %v8260_v17, %v19570_v19 }
  0x86   :  { %19577 = vst [vmem:[#allocation44_spill] sm:$0xff] %v8355_v43  ;;  %19579 = vst [vmem:[#allocation47_spill] sm:$0xff] %v8373_v53  ;;  %v658_v32 = vmul.f32 %v8277_v38, %v19571_v20  ;;  %v659_v10 = vmul.f32 %v8282_v56, %v19570_v19  ;;  %v8391_v55 = vld [vmem:[%s18683_s0 + $0x980] sm:$0xff]  ;;  %v8396_v63 = vld [vmem:[%s18683_s0 + $0x988] sm:$0xff]  ;;  %v660_v38 = vmul.f32 %v8287_v40, %v19571_v20 }
  0x87   :  { %19580 = vst [vmem:[#allocation48_spill] sm:$0xff] %v8378_v18  ;;  %19581 = vst [vmem:[#allocation79_spill] sm:$0xff] %v8391_v55  ;;  %v8401_v17 = vld [vmem:[%s18683_s0 + $0x9a0] sm:$0xff]  ;;  %v661_v56 = vmul.f32 %v6380_v2, %v19570_v19  ;;  %v662_v49 = vmul.f32 %v6381_v57, %v19571_v20  ;;  %v663_v60 = vmul.f32 %v8310_v25, %v19570_v19  ;;  %v8412_v11 = vld [vmem:[%s18683_s0 + $0x9a8] sm:$0xff] }
  0x88   :  { %19582 = vst [vmem:[#allocation80_spill] sm:$0xff] %v8396_v63  ;;  %19583 = vst [vmem:[#allocation66_spill] sm:$0xff] %v8401_v17  ;;  %v664_v6 = vmul.f32 %v8322_v31, %v19571_v20  ;;  %v665_v15 = vmul.f32 %v8327_v22, %v19570_v19  ;;  %v666_v40 = vmul.f32 %v8332_v24, %v19571_v20 }
  0x89   :  { %19584 = vst [vmem:[#allocation67_spill] sm:$0xff] %v8412_v11  ;;  %v667_v2 = vmul.f32 %v8345_v33, %v19570_v19  ;;  %v668_v57 = vmul.f32 %v8350_v1, %v19571_v20  ;;  %v669_v25 = vmul.f32 %v8355_v43, %v19570_v19  ;;  %v670_v62 = vmul.f32 %v8368_v16, %v19571_v20 }
  0x8a   :  { %v671_v31 = vmul.f32 %v8373_v53, %v19570_v19  ;;  %v672_v22 = vmul.f32 %v8378_v18, %v19571_v20  ;;  %v673_v24 = vmul.f32 %v8391_v55, %v19570_v19  ;;  %v674_v33 = vmul.f32 %v8396_v63, %v19571_v20 }
  0x8b   :  { %v675_v1 = vmul.f32 %v8401_v17, %v19570_v19  ;;  %v676_v43 = vmul.f32 %v8412_v11, %v19571_v20  ;;  %v8441_v16 = vadd.f32 %v645_v36, %v8133_v51  ;;  %v8444_v53 = vadd.f32 %v646_v37, %v8136_v14 }
  0x8c   :  { %v8447_v18 = vadd.f32 %v647_v26, %v8139_v54  ;;  %v8450_v55 = vadd.f32 %v648_v50, %v8142_v42  ;;  %v8453_v63 = vadd.f32 %v649_v8, %v8145_v46  ;;  %v8456_v19 = vadd.f32 %v650_v21, %v8148_v47  ;;  %v19615_v21 = vld [vmem:[#allocation54_spill] sm:$0xff] }
  0x8d   :  { %v8459_v20 = vadd.f32 %v651_v13, %v8151_v59  ;;  %v8462_v51 = vadd.f32 %v652_v34, %v8154_v28  ;;  %v8465_v14 = vadd.f32 %v653_v45, %v8157_v27  ;;  %v8468_v54 = vadd.f32 %v654_v5, %v8160_v61  ;;  %v6400_v27 = vld [vmem:[%s18684_s1 + $0x21] ss:$8 sm:$0x3]  ;;  %v19588_v34 = vld [vmem:[#allocation28_spill] sm:$0xff] }
  0x8e   :  { %v8471_v42 = vadd.f32 %v655_v39, %v8163_v23  ;;  %v8474_v46 = vadd.f32 %v656_v48, %v8177_v58  ;;  %v8477_v47 = vadd.f32 %v657_v52, %v8180_v30  ;;  %v8480_v59 = vadd.f32 %v658_v32, %v8183_v12  ;;  %v19593_v32 = vld [vmem:[#allocation7_spill] sm:$0xff]  ;;  %v19596_v52 = vld [vmem:[#allocation32_spill] sm:$0xff] }
  0x8f   :  { %v8483_v28 = vadd.f32 %v659_v10, %v8186_v29  ;;  %v8489_v61 = vadd.f32 %v660_v38, %v8209_v41  ;;  %v8492_v39 = vadd.f32 %v661_v56, %v8212_v44  ;;  %v8495_v23 = vadd.f32 %v662_v49, %v8215_v0  ;;  %v19590_v41 = vld [vmem:[#allocation29_spill] sm:$0xff]  ;;  %v19592_v0 = vld [vmem:[#allocation6_spill] sm:$0xff] }
  0x90   :  { %v8498_v58 = vadd.f32 %v663_v60, %v8218_v3  ;;  %v8501_v30 = vadd.f32 %v664_v6, %v8236_v9  ;;  %v8504_v12 = vadd.f32 %v665_v15, %v8239_v4  ;;  %v8507_v29 = vadd.f32 %v666_v40, %v8242_v7  ;;  %v6401_v9 = vld [vmem:[%s18684_s1 + $0x31] ss:$8 sm:$0x3]  ;;  %v6402_v4 = vld [vmem:[%s18684_s1 + $0x41] ss:$8 sm:$0x3] }
  0x91   :  { %v8510_v5 = vadd.f32 %v667_v2, %v8245_v35  ;;  %v8513_v45 = vadd.f32 %v668_v57, %v19588_v34  ;;  %v8516_v44 = vadd.f32 %v669_v25, %v19590_v41  ;;  %v715_v3 = vrot.slane %v6400_v27, %v19592_v0  ;;  %v19594_v7 = vld [vmem:[#allocation30_spill] sm:$0xff]  ;;  %v19598_v15 = vld [vmem:[#allocation40_spill] sm:$0xff]  ;;  %v19600_v38 = vld [vmem:[#allocation41_spill] sm:$0xff] }
  0x92   :  { %19585 = vst [vmem:[#allocation68_spill] sm:$0xff] %v8504_v12  ;;  %19586 = vst [vmem:[#allocation69_spill] sm:$0xff] %v8507_v29  ;;  %v719_v48 = vrot.slane %v6400_v27, %v19593_v32  ;;  %v8527_v35 = vadd.f32 %v670_v62, %v19594_v7  ;;  %v8530_v49 = vadd.f32 %v671_v31, %v19596_v52  ;;  %v6403_v40 = vld [vmem:[%s18684_s1 + $0x2] ss:$8 sm:$0x3]  ;;  %v19606_v62 = vld [vmem:[#allocation35_spill] sm:$0xff] }
  0x93   :  { %19587 = vst [vmem:[#allocation73_spill] sm:$0xff] %v8510_v5  ;;  %19589 = vst [vmem:[#allocation74_spill] sm:$0xff] %v8513_v45  ;;  %v8533_v6 = vadd.f32 %v672_v22, %v19598_v15  ;;  %v8536_v56 = vadd.f32 %v673_v24, %v19600_v38  ;;  %v19602_v60 = vld [vmem:[#allocation45_spill] sm:$0xff]  ;;  %v19604_v25 = vld [vmem:[#allocation22_spill] sm:$0xff]  ;;  %v8548_v37 = vadd.f32 %v676_v43, %v19606_v62 }
  0x94   :  { %19591 = vst [vmem:[#allocation24_spill] sm:$0xff] %v8516_v44  ;;  %19595 = vst [vmem:[#allocation23_spill] sm:$0xff] %v8527_v35  ;;  %v8542_v10 = vadd.f32 %v674_v33, %v19602_v60  ;;  %v8545_v36 = vadd.f32 %v675_v1, %v19604_v25  ;;  %v8551_v26 = vrot.slane %v6401_v9, %v19592_v0  ;;  %v8568_v1 = vld [vmem:[%s18683_s0 + $0x240] sm:$0xff]  ;;  %v19616_v33 = vld [vmem:[#allocation55_spill] sm:$0xff] }
  0x95   :  { %19597 = vst [vmem:[#allocation50_spill] sm:$0xff] %v8530_v49  ;;  %19599 = vst [vmem:[#allocation81_spill] sm:$0xff] %v8533_v6  ;;  %v8554_v31 = vrot.slane %v6401_v9, %v19593_v32  ;;  %v8557_v22 = vrot.slane %v6402_v4, %v19592_v0  ;;  %v8560_v24 = vrot.slane %v6402_v4, %v19593_v32  ;;  %v19614_v43 = vld [vmem:[#allocation53_spill] sm:$0xff]  ;;  %v8579_v27 = vld [vmem:[%s18683_s0 + $0x248] sm:$0xff] }
  0x96   :  { %19601 = vst [vmem:[#allocation31_spill] sm:$0xff] %v8536_v56  ;;  %19603 = vst [vmem:[#allocation28_spill] sm:$0xff] %v8542_v10  ;;  %v8563_v50 = vrot.slane %v6403_v40, %v19592_v0  ;;  %v722_v8 = vmul.f32 %v19614_v43, %v715_v3  ;;  %v723_v13 = vmul.f32 %v19615_v21, %v719_v48  ;;  %v19619_v34 = vld [vmem:[#allocation60_spill] sm:$0xff]  ;;  %v19620_v9 = vld [vmem:[#allocation62_spill] sm:$0xff] }
  0x97   :  { %19605 = vst [vmem:[#allocation29_spill] sm:$0xff] %v8545_v36  ;;  %19607 = vst [vmem:[#allocation30_spill] sm:$0xff] %v8548_v37  ;;  %v724_v2 = vmul.f32 %v19616_v33, %v715_v3  ;;  %v8574_v57 = vrot.slane %v6403_v40, %v19593_v32  ;;  %v725_v41 = vmul.f32 %v19619_v34, %v719_v48  ;;  %v19621_v7 = vld [vmem:[#allocation63_spill] sm:$0xff]  ;;  %v19622_v15 = vld [vmem:[#allocation64_spill] sm:$0xff] }
  0x98   :  { %19608 = vst [vmem:[#allocation32_spill] sm:$0xff] %v8551_v26  ;;  %19609 = vst [vmem:[#allocation40_spill] sm:$0xff] %v8554_v31  ;;  %v726_v4 = vmul.f32 %v19620_v9, %v715_v3  ;;  %v727_v52 = vmul.f32 %v19621_v7, %v719_v48  ;;  %v728_v38 = vmul.f32 %v19622_v15, %v715_v3  ;;  %v19623_v60 = vld [vmem:[#allocation65_spill] sm:$0xff]  ;;  %v19624_v62 = vld [vmem:[#allocation70_spill] sm:$0xff] }
  0x99   :  { %19610 = vst [vmem:[#allocation41_spill] sm:$0xff] %v8557_v22  ;;  %19611 = vst [vmem:[#allocation45_spill] sm:$0xff] %v8560_v24  ;;  %v729_v25 = vmul.f32 %v19623_v60, %v719_v48  ;;  %v730_v43 = vmul.f32 %v19624_v62, %v715_v3  ;;  %v19625_v21 = vld [vmem:[#allocation71_spill] sm:$0xff]  ;;  %v19626_v32 = vld [vmem:[#allocation72_spill] sm:$0xff]  ;;  %v736_v9 = vmul.f32 %v8568_v1, %v715_v3 }
  0x9a   :  { %19612 = vst [vmem:[#allocation22_spill] sm:$0xff] %v8563_v50  ;;  %19613 = vst [vmem:[#allocation35_spill] sm:$0xff] %v8568_v1  ;;  %v731_v40 = vmul.f32 %v19625_v21, %v719_v48  ;;  %v732_v0 = vmul.f32 %v19626_v32, %v715_v3  ;;  %v19628_v24 = vld [vmem:[#allocation76_spill] sm:$0xff]  ;;  %v19629_v22 = vld [vmem:[#allocation49_spill] sm:$0xff]  ;;  %v737_v60 = vmul.f32 %v8579_v27, %v719_v48 }
  0x9b   :  { %19617 = vst [vmem:[#allocation53_spill] sm:$0xff] %v8574_v57  ;;  %19618 = vst [vmem:[#allocation54_spill] sm:$0xff] %v8579_v27  ;;  %v19627_v57 = vld [vmem:[#allocation25_spill] sm:$0xff]  ;;  %v734_v33 = vmul.f32 %v19628_v24, %v715_v3  ;;  %v735_v34 = vmul.f32 %v19629_v22, %v719_v48  ;;  %v19631_v62 = vld [vmem:[#allocation51_spill] sm:$0xff] }
  0x9c   :  { %v733_v50 = vmul.f32 %v19627_v57, %v719_v48  ;;  %v8596_v15 = vld [vmem:[%s18683_s0 + $0x740] sm:$0xff]  ;;  %v738_v7 = vmul.f32 %v19631_v62, %v715_v3  ;;  %v19632_v21 = vld [vmem:[#allocation52_spill] sm:$0xff]  ;;  %v8605_v24 = vld [vmem:[%s18683_s0 + $0x748] sm:$0xff] }
  0x9d   :  { %19630 = vst [vmem:[#allocation82_spill] sm:$0xff] %v8596_v15  ;;  %v739_v11 = vmul.f32 %v19632_v21, %v719_v48  ;;  %v19633_v32 = vld [vmem:[#allocation56_spill] sm:$0xff]  ;;  %19634 = vst [vmem:[#allocation51_spill] sm:$0xff] %v8605_v24  ;;  %v19635_v22 = vld [vmem:[#allocation57_spill] sm:$0xff] }
  0x9e   :  { %v740_v17 = vmul.f32 %v19633_v32, %v715_v3  ;;  %v741_v1 = vmul.f32 %v19635_v22, %v719_v48  ;;  %v19636_v57 = vld [vmem:[#allocation58_spill] sm:$0xff]  ;;  %v19637_v26 = vld [vmem:[#allocation59_spill] sm:$0xff]  ;;  %v19638_v36 = vld [vmem:[#allocation61_spill] sm:$0xff] }
  0x9f   :  { %v742_v31 = vmul.f32 %v19636_v57, %v715_v3  ;;  %v743_v37 = vmul.f32 %v19637_v26, %v719_v48  ;;  %v744_v10 = vmul.f32 %v19638_v36, %v715_v3  ;;  %v19639_v27 = vld [vmem:[#allocation10_spill] sm:$0xff]  ;;  %v19640_v62 = vld [vmem:[#allocation77_spill] sm:$0xff]  ;;  %v19641_v21 = vld [vmem:[#allocation11_spill] sm:$0xff]  ;;  %v752_v57 = vmul.f32 %v8596_v15, %v715_v3 }
  0xa0   :  { %v745_v56 = vmul.f32 %v19639_v27, %v719_v48  ;;  %v746_v6 = vmul.f32 %v19640_v62, %v715_v3  ;;  %v747_v49 = vmul.f32 %v19641_v21, %v719_v48  ;;  %v19642_v32 = vld [vmem:[#allocation78_spill] sm:$0xff]  ;;  %v19643_v44 = vld [vmem:[#allocation12_spill] sm:$0xff]  ;;  %v19644_v5 = vld [vmem:[#allocation13_spill] sm:$0xff]  ;;  %v753_v26 = vmul.f32 %v8605_v24, %v719_v48 }
  0xa1   :  { %v748_v35 = vmul.f32 %v19642_v32, %v715_v3  ;;  %v749_v45 = vmul.f32 %v19643_v44, %v719_v48  ;;  %v750_v29 = vmul.f32 %v19644_v5, %v715_v3  ;;  %v19645_v12 = vld [vmem:[#allocation14_spill] sm:$0xff]  ;;  %v8621_v36 = vadd.f32 %v722_v8, %v8441_v16 }
  0xa2   :  { %v751_v22 = vmul.f32 %v19645_v12, %v719_v48  ;;  %v8624_v27 = vadd.f32 %v723_v13, %v8444_v53  ;;  %v8627_v21 = vadd.f32 %v724_v2, %v8447_v18  ;;  %v8630_v32 = vadd.f32 %v725_v41, %v8450_v55  ;;  %v19688_v15 = vld [vmem:[#allocation42_spill] sm:$0xff] }
  0xa3   :  { %v8633_v5 = vadd.f32 %v726_v4, %v8453_v63  ;;  %v8636_v12 = vadd.f32 %v727_v52, %v8456_v19  ;;  %v8639_v3 = vadd.f32 %v728_v38, %v8459_v20  ;;  %v8642_v16 = vadd.f32 %v729_v25, %v8462_v51  ;;  %v19670_v4 = vld [vmem:[#allocation40_spill] sm:$0xff]  ;;  %v19672_v52 = vld [vmem:[#allocation17_spill] sm:$0xff]  ;;  %v19673_v38 = vld [vmem:[#allocation18_spill] sm:$0xff] }
  0xa4   :  { %v8645_v53 = vadd.f32 %v730_v43, %v8465_v14  ;;  %v8648_v18 = vadd.f32 %v731_v40, %v8468_v54  ;;  %v8651_v55 = vadd.f32 %v732_v0, %v8471_v42  ;;  %v8654_v63 = vadd.f32 %v733_v50, %v8474_v46  ;;  %v19674_v25 = vld [vmem:[#allocation19_spill] sm:$0xff]  ;;  %v19675_v43 = vld [vmem:[#allocation20_spill] sm:$0xff] }
  0xa5   :  { %v8657_v19 = vadd.f32 %v734_v33, %v8477_v47  ;;  %v8660_v20 = vadd.f32 %v735_v34, %v8480_v59  ;;  %v8663_v51 = vadd.f32 %v736_v9, %v8483_v28  ;;  %v8666_v14 = vadd.f32 %v737_v60, %v8489_v61  ;;  %v19646_v59 = vld [vmem:[#allocation68_spill] sm:$0xff]  ;;  %v19647_v28 = vld [vmem:[#allocation69_spill] sm:$0xff]  ;;  %v19669_v9 = vld [vmem:[#allocation15_spill] sm:$0xff] }
  0xa6   :  { %v8669_v54 = vadd.f32 %v738_v7, %v8492_v39  ;;  %v8672_v42 = vadd.f32 %v739_v11, %v8495_v23  ;;  %v8675_v46 = vadd.f32 %v740_v17, %v8498_v58  ;;  %v8678_v47 = vadd.f32 %v741_v1, %v8501_v30  ;;  %v19648_v61 = vld [vmem:[#allocation73_spill] sm:$0xff]  ;;  %v19650_v39 = vld [vmem:[#allocation74_spill] sm:$0xff]  ;;  %v19652_v11 = vld [vmem:[#allocation24_spill] sm:$0xff] }
  0xa7   :  { %v8681_v0 = vadd.f32 %v742_v31, %v19646_v59  ;;  %v8684_v48 = vadd.f32 %v743_v37, %v19647_v28  ;;  %v8687_v50 = vadd.f32 %v744_v10, %v19648_v61  ;;  %v8690_v8 = vadd.f32 %v745_v56, %v19650_v39  ;;  %v19654_v17 = vld [vmem:[#allocation23_spill] sm:$0xff]  ;;  %v19656_v30 = vld [vmem:[#allocation50_spill] sm:$0xff]  ;;  %v19658_v31 = vld [vmem:[#allocation81_spill] sm:$0xff] }
  0xa8   :  { %v8693_v23 = vadd.f32 %v746_v6, %v19652_v11  ;;  %v8696_v58 = vadd.f32 %v747_v49, %v19654_v17  ;;  %v8699_v1 = vadd.f32 %v748_v35, %v19656_v30  ;;  %v8702_v13 = vadd.f32 %v749_v45, %v19658_v31  ;;  %v19660_v37 = vld [vmem:[#allocation31_spill] sm:$0xff]  ;;  %v19662_v10 = vld [vmem:[#allocation28_spill] sm:$0xff]  ;;  %v19664_v56 = vld [vmem:[#allocation29_spill] sm:$0xff] }
  0xa9   :  { %19649 = vst [vmem:[#allocation52_spill] sm:$0xff] %v8687_v50  ;;  %19651 = vst [vmem:[#allocation68_spill] sm:$0xff] %v8690_v8  ;;  %v8705_v33 = vadd.f32 %v750_v29, %v19660_v37  ;;  %v8708_v2 = vadd.f32 %v751_v22, %v19662_v10  ;;  %v8711_v34 = vadd.f32 %v752_v57, %v19664_v56  ;;  %v6358_v49 = vld [vmem:[%s18683_s0 + $0x4c0] sm:$0xff]  ;;  %v19666_v6 = vld [vmem:[#allocation30_spill] sm:$0xff] }
  0xaa   :  { %19653 = vst [vmem:[#allocation69_spill] sm:$0xff] %v8693_v23  ;;  %19655 = vst [vmem:[#allocation73_spill] sm:$0xff] %v8696_v58  ;;  %v8717_v41 = vadd.f32 %v753_v26, %v19666_v6  ;;  %v19668_v35 = vld [vmem:[#allocation32_spill] sm:$0xff]  ;;  %v6359_v57 = vld [vmem:[%s18683_s0 + $0x4c8] sm:$0xff]  ;;  %v802_v60 = vmul.f32 %v19673_v38, %v19670_v4  ;;  %v804_v40 = vmul.f32 %v19675_v43, %v19670_v4 }
  0xab   :  { %19657 = vst [vmem:[#allocation74_spill] sm:$0xff] %v8699_v1  ;;  %19659 = vst [vmem:[#allocation24_spill] sm:$0xff] %v8702_v13  ;;  %v799_v45 = vmul.f32 %v19669_v9, %v19668_v35  ;;  %v19671_v7 = vld [vmem:[#allocation16_spill] sm:$0xff]  ;;  %v801_v22 = vmul.f32 %v19672_v52, %v19668_v35  ;;  %v803_v26 = vmul.f32 %v19674_v25, %v19668_v35  ;;  %v19676_v59 = vld [vmem:[#allocation21_spill] sm:$0xff] }
  0xac   :  { %19661 = vst [vmem:[#allocation23_spill] sm:$0xff] %v8705_v33  ;;  %19663 = vst [vmem:[#allocation50_spill] sm:$0xff] %v8708_v2  ;;  %v800_v29 = vmul.f32 %v19671_v7, %v19670_v4  ;;  %v805_v28 = vmul.f32 %v19676_v59, %v19668_v35  ;;  %v19677_v61 = vld [vmem:[#allocation75_spill] sm:$0xff]  ;;  %v19678_v11 = vld [vmem:[#allocation8_spill] sm:$0xff]  ;;  %v813_v25 = vmul.f32 %v6358_v49, %v19668_v35 }
  0xad   :  { %19665 = vst [vmem:[#allocation81_spill] sm:$0xff] %v8711_v34  ;;  %19667 = vst [vmem:[#allocation31_spill] sm:$0xff] %v8717_v41  ;;  %v806_v39 = vmul.f32 %v19677_v61, %v19670_v4  ;;  %v807_v17 = vmul.f32 %v19678_v11, %v19668_v35  ;;  %v19679_v30 = vld [vmem:[#allocation26_spill] sm:$0xff]  ;;  %v19680_v37 = vld [vmem:[#allocation27_spill] sm:$0xff]  ;;  %v814_v59 = vmul.f32 %v6359_v57, %v19670_v4 }
  0xae   :  { %v808_v31 = vmul.f32 %v19679_v30, %v19670_v4  ;;  %v809_v10 = vmul.f32 %v19680_v37, %v19668_v35  ;;  %v19681_v56 = vld [vmem:[#allocation33_spill] sm:$0xff]  ;;  %v19682_v9 = vld [vmem:[#allocation34_spill] sm:$0xff]  ;;  %v19683_v52 = vld [vmem:[#allocation39_spill] sm:$0xff]  ;;  %v819_v44 = vmul.f32 %v19688_v15, %v19668_v35 }
  0xaf   :  { %v810_v6 = vmul.f32 %v19681_v56, %v19670_v4  ;;  %v811_v7 = vmul.f32 %v19682_v9, %v19668_v35  ;;  %v812_v38 = vmul.f32 %v19683_v52, %v19670_v4  ;;  %v6396_v43 = vld [vmem:[%s18683_s0 + $0x9c0] sm:$0xff]  ;;  %v19685_v30 = vld [vmem:[#allocation36_spill] sm:$0xff]  ;;  %v6397_v52 = vld [vmem:[%s18683_s0 + $0x9c8] sm:$0xff] }
  0xb0   :  { %v19684_v61 = vld [vmem:[#allocation9_spill] sm:$0xff]  ;;  %v816_v37 = vmul.f32 %v19685_v30, %v19670_v4  ;;  %v19687_v49 = vld [vmem:[#allocation38_spill] sm:$0xff]  ;;  %v19689_v57 = vld [vmem:[#allocation43_spill] sm:$0xff]  ;;  %v830_v50 = vmul.f32 %v6397_v52, %v19670_v4 }
  0xb1   :  { %v815_v11 = vmul.f32 %v19684_v61, %v19668_v35  ;;  %v19686_v56 = vld [vmem:[#allocation37_spill] sm:$0xff]  ;;  %v818_v24 = vmul.f32 %v19687_v49, %v19670_v4  ;;  %v820_v62 = vmul.f32 %v19689_v57, %v19670_v4  ;;  %v19690_v61 = vld [vmem:[#allocation44_spill] sm:$0xff]  ;;  %v19691_v30 = vld [vmem:[#allocation46_spill] sm:$0xff] }
  0xb2   :  { %v817_v9 = vmul.f32 %v19686_v56, %v19668_v35  ;;  %v821_v41 = vmul.f32 %v19690_v61, %v19668_v35  ;;  %v822_v34 = vmul.f32 %v19691_v30, %v19670_v4  ;;  %v19692_v56 = vld [vmem:[#allocation47_spill] sm:$0xff]  ;;  %v19693_v33 = vld [vmem:[#allocation48_spill] sm:$0xff]  ;;  %v19696_v57 = vld [vmem:[#allocation66_spill] sm:$0xff]  ;;  %v829_v30 = vmul.f32 %v6396_v43, %v19668_v35 }
  0xb3   :  { %v823_v2 = vmul.f32 %v19692_v56, %v19668_v35  ;;  %v824_v13 = vmul.f32 %v19693_v33, %v19670_v4  ;;  %v19694_v49 = vld [vmem:[#allocation79_spill] sm:$0xff]  ;;  %v19695_v15 = vld [vmem:[#allocation80_spill] sm:$0xff]  ;;  %v827_v23 = vmul.f32 %v19696_v57, %v19668_v35  ;;  %v8789_v56 = vadd.f32 %v799_v45, %v8621_v36 }
  0xb4   :  { %v825_v1 = vmul.f32 %v19694_v49, %v19668_v35  ;;  %v826_v58 = vmul.f32 %v19695_v15, %v19670_v4  ;;  %v19697_v61 = vld [vmem:[#allocation67_spill] sm:$0xff]  ;;  %v8792_v33 = vadd.f32 %v800_v29, %v8624_v27  ;;  %v8795_v49 = vadd.f32 %v801_v22, %v8627_v21  ;;  %v19728_v52 = vld [vmem:[#allocation72_spill] sm:$0xff] }
  0xb5   :  { %v828_v8 = vmul.f32 %v19697_v61, %v19670_v4  ;;  %v8798_v15 = vadd.f32 %v802_v60, %v8630_v32  ;;  %v8801_v57 = vadd.f32 %v803_v26, %v8633_v5  ;;  %v8804_v61 = vadd.f32 %v804_v40, %v8636_v12 }
  0xb6   :  { %v8807_v35 = vadd.f32 %v805_v28, %v8639_v3  ;;  %v8810_v36 = vadd.f32 %v806_v39, %v8642_v16  ;;  %v8813_v27 = vadd.f32 %v807_v17, %v8645_v53  ;;  %v8816_v21 = vadd.f32 %v808_v31, %v8648_v18  ;;  %v19719_v28 = vld [vmem:[#allocation55_spill] sm:$0xff]  ;;  %v19720_v39 = vld [vmem:[#allocation45_spill] sm:$0xff]  ;;  %v19721_v17 = vld [vmem:[#allocation60_spill] sm:$0xff] }
  0xb7   :  { %v8819_v32 = vadd.f32 %v809_v10, %v8651_v55  ;;  %v8822_v5 = vadd.f32 %v810_v6, %v8654_v63  ;;  %v8825_v12 = vadd.f32 %v811_v7, %v8657_v19  ;;  %v8828_v3 = vadd.f32 %v812_v38, %v8660_v20  ;;  %v19722_v31 = vld [vmem:[#allocation62_spill] sm:$0xff]  ;;  %v19723_v6 = vld [vmem:[#allocation63_spill] sm:$0xff]  ;;  %v19724_v38 = vld [vmem:[#allocation64_spill] sm:$0xff] }
  0xb8   :  { %v8831_v16 = vadd.f32 %v813_v25, %v8663_v51  ;;  %v8834_v53 = vadd.f32 %v814_v59, %v8666_v14  ;;  %v8837_v18 = vadd.f32 %v815_v11, %v8669_v54  ;;  %v8840_v55 = vadd.f32 %v816_v37, %v8672_v42  ;;  %v19698_v14 = vld [vmem:[#allocation52_spill] sm:$0xff]  ;;  %v19702_v42 = vld [vmem:[#allocation69_spill] sm:$0xff]  ;;  %v6341_v10 = vld [vmem:[%s18683_s0 + $0x268] sm:$0xff] }
  0xb9   :  { %v8843_v63 = vadd.f32 %v817_v9, %v8675_v46  ;;  %v8846_v19 = vadd.f32 %v818_v24, %v8678_v47  ;;  %v8849_v20 = vadd.f32 %v819_v44, %v8681_v0  ;;  %v8852_v51 = vadd.f32 %v820_v62, %v8684_v48  ;;  %v19700_v54 = vld [vmem:[#allocation68_spill] sm:$0xff]  ;;  %v19704_v46 = vld [vmem:[#allocation73_spill] sm:$0xff]  ;;  %v19706_v24 = vld [vmem:[#allocation74_spill] sm:$0xff] }
  0xba   :  { %v8855_v45 = vadd.f32 %v821_v41, %v19698_v14  ;;  %v8858_v4 = vadd.f32 %v822_v34, %v19700_v54  ;;  %v8861_v29 = vadd.f32 %v823_v2, %v19702_v42  ;;  %v8864_v22 = vadd.f32 %v824_v13, %v19704_v46  ;;  %v19708_v44 = vld [vmem:[#allocation24_spill] sm:$0xff]  ;;  %v19710_v62 = vld [vmem:[#allocation23_spill] sm:$0xff]  ;;  %v19712_v41 = vld [vmem:[#allocation50_spill] sm:$0xff] }
  0xbb   :  { %v8867_v47 = vadd.f32 %v825_v1, %v19706_v24  ;;  %v8870_v0 = vadd.f32 %v826_v58, %v19708_v44  ;;  %v8873_v48 = vadd.f32 %v827_v23, %v19710_v62  ;;  %v8876_v60 = vadd.f32 %v828_v8, %v19712_v41  ;;  %v19714_v34 = vld [vmem:[#allocation81_spill] sm:$0xff]  ;;  %v19716_v2 = vld [vmem:[#allocation31_spill] sm:$0xff]  ;;  %v19726_v59 = vld [vmem:[#allocation70_spill] sm:$0xff] }
  0xbc   :  { %19699 = vst [vmem:[#allocation28_spill] sm:$0xff] %v8855_v45  ;;  %19701 = vst [vmem:[#allocation29_spill] sm:$0xff] %v8858_v4  ;;  %v8879_v26 = vadd.f32 %v829_v30, %v19714_v34  ;;  %v6340_v13 = vld [vmem:[%s18683_s0 + $0x260] sm:$0xff]  ;;  %v8885_v40 = vadd.f32 %v830_v50, %v19716_v2  ;;  %v877_v23 = vmul.f32 %v19721_v17, %v19720_v39  ;;  %v19727_v37 = vld [vmem:[#allocation71_spill] sm:$0xff] }
  0xbd   :  { %19703 = vst [vmem:[#allocation30_spill] sm:$0xff] %v8861_v29  ;;  %19705 = vst [vmem:[#allocation32_spill] sm:$0xff] %v8864_v22  ;;  %v19718_v1 = vld [vmem:[#allocation41_spill] sm:$0xff]  ;;  %v879_v7 = vmul.f32 %v19723_v6, %v19720_v39  ;;  %v883_v9 = vmul.f32 %v19727_v37, %v19720_v39  ;;  %v19730_v42 = vld [vmem:[#allocation76_spill] sm:$0xff] }
  0xbe   :  { %19707 = vst [vmem:[#allocation15_spill] sm:$0xff] %v8867_v47  ;;  %19709 = vst [vmem:[#allocation40_spill] sm:$0xff] %v8870_v0  ;;  %v876_v58 = vmul.f32 %v19719_v28, %v19718_v1  ;;  %v878_v8 = vmul.f32 %v19722_v31, %v19718_v1  ;;  %v880_v50 = vmul.f32 %v19724_v38, %v19718_v1  ;;  %v19725_v25 = vld [vmem:[#allocation65_spill] sm:$0xff]  ;;  %v19732_v62 = vld [vmem:[#allocation35_spill] sm:$0xff] }
  0xbf   :  { %19711 = vst [vmem:[#allocation16_spill] sm:$0xff] %v8873_v48  ;;  %19713 = vst [vmem:[#allocation17_spill] sm:$0xff] %v8876_v60  ;;  %v881_v43 = vmul.f32 %v19725_v25, %v19720_v39  ;;  %v882_v11 = vmul.f32 %v19726_v59, %v19718_v1  ;;  %v884_v30 = vmul.f32 %v19728_v52, %v19718_v1  ;;  %v19729_v14 = vld [vmem:[#allocation25_spill] sm:$0xff]  ;;  %v19733_v34 = vld [vmem:[#allocation54_spill] sm:$0xff] }
  0xc0   :  { %19715 = vst [vmem:[#allocation18_spill] sm:$0xff] %v8879_v26  ;;  %19717 = vst [vmem:[#allocation19_spill] sm:$0xff] %v8885_v40  ;;  %v885_v54 = vmul.f32 %v19729_v14, %v19720_v39  ;;  %v886_v46 = vmul.f32 %v19730_v42, %v19718_v1  ;;  %v19731_v24 = vld [vmem:[#allocation49_spill] sm:$0xff]  ;;  %v888_v41 = vmul.f32 %v19732_v62, %v19718_v1  ;;  %v19734_v6 = vld [vmem:[#allocation56_spill] sm:$0xff] }
  0xc1   :  { %v887_v44 = vmul.f32 %v19731_v24, %v19720_v39  ;;  %v889_v2 = vmul.f32 %v19733_v34, %v19720_v39  ;;  %v890_v28 = vmul.f32 %v6340_v13, %v19718_v1  ;;  %v6378_v17 = vld [vmem:[%s18683_s0 + $0x760] sm:$0xff]  ;;  %v891_v31 = vmul.f32 %v6341_v10, %v19720_v39  ;;  %v19736_v37 = vld [vmem:[#allocation58_spill] sm:$0xff]  ;;  %v19737_v13 = vld [vmem:[#allocation59_spill] sm:$0xff] }
  0xc2   :  { %v892_v38 = vmul.f32 %v19734_v6, %v19718_v1  ;;  %v19735_v25 = vld [vmem:[#allocation57_spill] sm:$0xff]  ;;  %v894_v52 = vmul.f32 %v19736_v37, %v19718_v1  ;;  %v6379_v14 = vld [vmem:[%s18683_s0 + $0x768] sm:$0xff]  ;;  %v895_v42 = vmul.f32 %v19737_v13, %v19720_v39  ;;  %v19743_v48 = vld [vmem:[#allocation12_spill] sm:$0xff] }
  0xc3   :  { %v893_v59 = vmul.f32 %v19735_v25, %v19720_v39  ;;  %v19738_v24 = vld [vmem:[#allocation61_spill] sm:$0xff]  ;;  %v19739_v10 = vld [vmem:[#allocation10_spill] sm:$0xff]  ;;  %v19741_v25 = vld [vmem:[#allocation11_spill] sm:$0xff]  ;;  %v901_v0 = vmul.f32 %v19743_v48, %v19720_v39  ;;  %v907_v45 = vmul.f32 %v6379_v14, %v19720_v39  ;;  %v8960_v48 = vadd.f32 %v877_v23, %v8792_v33 }
  0xc4   :  { %v896_v62 = vmul.f32 %v19738_v24, %v19718_v1  ;;  %v897_v34 = vmul.f32 %v19739_v10, %v19720_v39  ;;  %v19740_v6 = vld [vmem:[#allocation77_spill] sm:$0xff]  ;;  %v899_v26 = vmul.f32 %v19741_v25, %v19720_v39  ;;  %v19742_v37 = vld [vmem:[#allocation78_spill] sm:$0xff]  ;;  %v906_v25 = vmul.f32 %v6378_v17, %v19718_v1  ;;  %v955_v14 = vld [vmem:[%s18683_s0 + $0x78] sm:$0x1] }
  0xc5   :  { %v898_v40 = vmul.f32 %v19740_v6, %v19718_v1  ;;  %v900_v60 = vmul.f32 %v19742_v37, %v19718_v1  ;;  %v19744_v13 = vld [vmem:[#allocation13_spill] sm:$0xff]  ;;  %v19745_v24 = vld [vmem:[#allocation14_spill] sm:$0xff]  ;;  %v19747_v6 = vld [vmem:[#allocation51_spill] sm:$0xff]  ;;  %v8957_v37 = vadd.f32 %v876_v58, %v8789_v56  ;;  %19749 = vst [vmem:[#allocation21_spill] sm:$0xff] %v8960_v48  ;;  %v8978_v56 = vadd.f32 %v883_v9, %v8810_v36 }
  0xc6   :  { %v902_v47 = vmul.f32 %v19744_v13, %v19718_v1  ;;  %v903_v22 = vmul.f32 %v19745_v24, %v19720_v39  ;;  %v19746_v10 = vld [vmem:[#allocation82_spill] sm:$0xff]  ;;  %v905_v4 = vmul.f32 %v19747_v6, %v19720_v39  ;;  %v8963_v13 = vadd.f32 %v878_v8, %v8795_v49  ;;  %v943_v58 = vld [vmem:[%s18683_s0 + $0x18] sm:$0x1]  ;;  %v944_v39 = vld [vmem:[%s18683_s0 + $0x20] sm:$0xfe] }
  0xc7   :  { %v904_v29 = vmul.f32 %v19746_v10, %v19718_v1  ;;  %19748 = vst [vmem:[#allocation20_spill] sm:$0xff] %v8957_v37  ;;  %v8966_v24 = vadd.f32 %v879_v7, %v8798_v15  ;;  %v8969_v10 = vadd.f32 %v880_v50, %v8801_v57  ;;  %v8972_v6 = vadd.f32 %v881_v43, %v8804_v61  ;;  %v19770_v8 = vld [vmem:[#allocation28_spill] sm:$0xff]  ;;  %v948_v43 = vld [vmem:[%s18683_s0 + $0x40] sm:$0xfe] }
  0xc8   :  { %19750 = vst [vmem:[#allocation75_spill] sm:$0xff] %v8963_v13  ;;  %v8975_v1 = vadd.f32 %v882_v11, %v8807_v35  ;;  %19755 = vst [vmem:[#allocation34_spill] sm:$0xff] %v8978_v56  ;;  %v8981_v33 = vadd.f32 %v884_v30, %v8813_v27  ;;  %v8984_v49 = vadd.f32 %v885_v54, %v8816_v21  ;;  %v940_v27 = vld [vmem:[%s18683_s0] sm:$0xfe]  ;;  %v941_v21 = vld [vmem:[%s18683_s0 + $0x8] sm:$0xfe] }
  0xc9   :  { %19751 = vst [vmem:[#allocation8_spill] sm:$0xff] %v8966_v24  ;;  %19752 = vst [vmem:[#allocation26_spill] sm:$0xff] %v8969_v10  ;;  %v8987_v15 = vadd.f32 %v886_v46, %v8819_v32  ;;  %v8990_v57 = vadd.f32 %v887_v44, %v8822_v5  ;;  %v8993_v61 = vadd.f32 %v888_v41, %v8825_v12  ;;  %v942_v32 = vld [vmem:[%s18683_s0 + $0x10] sm:$0x1]  ;;  %v947_v50 = vld [vmem:[%s18683_s0 + $0x38] sm:$0x1] }
  0xca   :  { %19753 = vst [vmem:[#allocation27_spill] sm:$0xff] %v8972_v6  ;;  %19754 = vst [vmem:[#allocation33_spill] sm:$0xff] %v8975_v1  ;;  %v8996_v35 = vadd.f32 %v889_v2, %v8828_v3  ;;  %v8999_v36 = vadd.f32 %v890_v28, %v8831_v16  ;;  %v9011_v5 = vadd.f32 %v891_v31, %v8834_v53  ;;  %v945_v53 = vld [vmem:[%s18683_s0 + $0x28] sm:$0xfe]  ;;  %v19776_v30 = vld [vmem:[#allocation32_spill] sm:$0xff] }
  0xcb   :  { %19756 = vst [vmem:[#allocation39_spill] sm:$0xff] %v8981_v33  ;;  %19757 = vst [vmem:[#allocation9_spill] sm:$0xff] %v8984_v49  ;;  %v9014_v12 = vadd.f32 %v892_v38, %v8837_v18  ;;  %v9017_v3 = vadd.f32 %v893_v59, %v8840_v55  ;;  %v9020_v16 = vadd.f32 %v894_v52, %v8843_v63  ;;  %v946_v18 = vld [vmem:[%s18683_s0 + $0x30] sm:$0x1]  ;;  %v951_v41 = vld [vmem:[%s18683_s0 + $0x58] sm:$0x1] }
  0xcc   :  { %19758 = vst [vmem:[#allocation36_spill] sm:$0xff] %v8987_v15  ;;  %19759 = vst [vmem:[#allocation37_spill] sm:$0xff] %v8990_v57  ;;  %v9035_v55 = vadd.f32 %v895_v42, %v8846_v19  ;;  %v9038_v63 = vadd.f32 %v896_v62, %v8849_v20  ;;  %v9041_v23 = vadd.f32 %v897_v34, %v8852_v51  ;;  %v949_v19 = vld [vmem:[%s18683_s0 + $0x48] sm:$0xfe]  ;;  %v950_v20 = vld [vmem:[%s18683_s0 + $0x50] sm:$0x1] }
  0xcd   :  { %19760 = vst [vmem:[#allocation38_spill] sm:$0xff] %v8993_v61  ;;  %19761 = vst [vmem:[#allocation42_spill] sm:$0xff] %v8996_v35  ;;  %v9044_v7 = vadd.f32 %v898_v40, %v19770_v8  ;;  %v19772_v51 = vld [vmem:[#allocation29_spill] sm:$0xff]  ;;  %v19774_v40 = vld [vmem:[#allocation30_spill] sm:$0xff]  ;;  %v9065_v54 = vadd.f32 %v901_v0, %v19776_v30 }
  0xce   :  { %19762 = vst [vmem:[#allocation43_spill] sm:$0xff] %v8999_v36  ;;  %19763 = vst [vmem:[#allocation44_spill] sm:$0xff] %v9011_v5  ;;  %v9059_v11 = vadd.f32 %v899_v26, %v19772_v51  ;;  %v9062_v9 = vadd.f32 %v900_v60, %v19774_v40  ;;  %v19778_v46 = vld [vmem:[#allocation15_spill] sm:$0xff]  ;;  %v952_v2 = vld [vmem:[%s18683_s0 + $0x60] sm:$0xfe] }
  0xcf   :  { %19764 = vst [vmem:[#allocation46_spill] sm:$0xff] %v9014_v12  ;;  %19765 = vst [vmem:[#allocation47_spill] sm:$0xff] %v9017_v3  ;;  %v9068_v44 = vadd.f32 %v902_v47, %v19778_v46  ;;  %v953_v26 = vld [vmem:[%s18683_s0 + $0x68] sm:$0xfe]  ;;  %v954_v0 = vld [vmem:[%s18683_s0 + $0x70] sm:$0x1] }
  0xd0   :  { %19766 = vst [vmem:[#allocation48_spill] sm:$0xff] %v9020_v16  ;;  %19767 = vst [vmem:[#allocation79_spill] sm:$0xff] %v9035_v55  ;;  %v19780_v60 = vld [vmem:[#allocation40_spill] sm:$0xff]  ;;  %v19784_v31 = vld [vmem:[#allocation17_spill] sm:$0xff] }
  0xd1   :  { %19768 = vst [vmem:[#allocation80_spill] sm:$0xff] %v9038_v63  ;;  %19769 = vst [vmem:[#allocation66_spill] sm:$0xff] %v9041_v23  ;;  %v9083_v28 = vadd.f32 %v903_v22, %v19780_v60  ;;  %v19782_v47 = vld [vmem:[#allocation16_spill] sm:$0xff]  ;;  %v9089_v38 = vadd.f32 %v905_v4, %v19784_v31  ;;  %v19786_v59 = vld [vmem:[#allocation18_spill] sm:$0xff] }
  0xd2   :  { %19771 = vst [vmem:[#allocation67_spill] sm:$0xff] %v9044_v7  ;;  %19773 = vst [vmem:[#allocation52_spill] sm:$0xff] %v9059_v11  ;;  %v9086_v17 = vadd.f32 %v904_v29, %v19782_v47  ;;  %v9092_v52 = vadd.f32 %v906_v25, %v19786_v59  ;;  %v956_v42 = vld [vmem:[%s18683_s0 + $0x80] sm:$0xfe]  ;;  %v957_v22 = vld [vmem:[%s18683_s0 + $0x88] sm:$0xfe] }
  0xd3   :  { %19775 = vst [vmem:[#allocation68_spill] sm:$0xff] %v9062_v9  ;;  %19777 = vst [vmem:[#allocation69_spill] sm:$0xff] %v9065_v54  ;;  %v958_v4 = vld [vmem:[%s18683_s0 + $0x90] sm:$0x1]  ;;  %v959_v34 = vld [vmem:[%s18683_s0 + $0x98] sm:$0x1] }
  0xd4   :  { %19779 = vst [vmem:[#allocation73_spill] sm:$0xff] %v9068_v44  ;;  %19781 = vst [vmem:[#allocation74_spill] sm:$0xff] %v9083_v28  ;;  %v19788_v29 = vld [vmem:[#allocation19_spill] sm:$0xff]  ;;  %v960_v25 = vld [vmem:[%s18683_s0 + $0xa0] sm:$0xfe] }
  0xd5   :  { %19783 = vst [vmem:[#allocation24_spill] sm:$0xff] %v9086_v17  ;;  %19785 = vst [vmem:[#allocation23_spill] sm:$0xff] %v9089_v38  ;;  %v9107_v62 = vadd.f32 %v907_v45, %v19788_v29  ;;  %v961_v8 = vld [vmem:[%s18683_s0 + $0xa8] sm:$0xfe]  ;;  %v962_v51 = vld [vmem:[%s18683_s0 + $0xb0] sm:$0x1] }
  0xd6   :  { %19787 = vst [vmem:[#allocation50_spill] sm:$0xff] %v9092_v52  ;;  %v19790_v40 = vld [vmem:[#allocation22_spill] sm:$0xff]  ;;  %v19791_v45 = vld [vmem:[#allocation53_spill] sm:$0xff]  ;;  %v963_v47 = vld [vmem:[%s18683_s0 + $0xb8] sm:$0x1] }
  0xd7   :  { %19789 = vst [vmem:[#allocation81_spill] sm:$0xff] %v9107_v62  ;;  %v9122_v30 = vmul.f32 %v19790_v40, %v940_v27  ;;  %v9125_v46 = vmul.f32 %v19791_v45, %v941_v21  ;;  %v9128_v60 = vmul.f32 %v19790_v40, %v942_v32  ;;  %v964_v31 = vld [vmem:[%s18683_s0 + $0xc0] sm:$0xfe]  ;;  %v965_v59 = vld [vmem:[%s18683_s0 + $0xc8] sm:$0xfe]  ;;  %v9143_v21 = vmul.f32 %v19791_v45, %v943_v58 }
  0xd8   :  { %v966_v27 = vld [vmem:[%s18683_s0 + $0xd0] sm:$0x1]  ;;  %v9146_v32 = vmul.f32 %v19790_v40, %v944_v39  ;;  %v9149_v29 = vmul.f32 %v19791_v45, %v945_v53  ;;  %v9152_v62 = vmul.f32 %v19790_v40, %v946_v18  ;;  %v967_v52 = vld [vmem:[%s18683_s0 + $0xd8] sm:$0x1]  ;;  %v968_v38 = vld [vmem:[%s18683_s0 + $0xe0] sm:$0xfe]  ;;  %v9167_v53 = vmul.f32 %v19791_v45, %v947_v50 }
  0xd9   :  { %v969_v58 = vld [vmem:[%s18683_s0 + $0xe8] sm:$0xfe]  ;;  %v970_v39 = vld [vmem:[%s18683_s0 + $0xf0] sm:$0x1]  ;;  %v9170_v18 = vmul.f32 %v19790_v40, %v948_v43  ;;  %v9173_v17 = vmul.f32 %v19791_v45, %v949_v19  ;;  %v9176_v28 = vmul.f32 %v19790_v40, %v950_v20  ;;  %v9181_v44 = vld [vmem:[%s18683_s0 + $0xf8] sm:$0x1]  ;;  %v9190_v43 = vmul.f32 %v19791_v45, %v951_v41 }
  0xda   :  { %19792 = vst [vmem:[#allocation31_spill] sm:$0xff] %v9181_v44  ;;  %v1016_v54 = vld [vmem:[%s18683_s0 + $0x500] sm:$0xfe]  ;;  %v1017_v50 = vld [vmem:[%s18683_s0 + $0x508] sm:$0xfe]  ;;  %v9193_v19 = vmul.f32 %v19790_v40, %v952_v2  ;;  %v9196_v20 = vmul.f32 %v19791_v45, %v953_v26  ;;  %v9199_v9 = vmul.f32 %v19790_v40, %v954_v0  ;;  %v9213_v2 = vmul.f32 %v19791_v45, %v955_v14 }
  0xdb   :  { %v1018_v11 = vld [vmem:[%s18683_s0 + $0x510] sm:$0x1]  ;;  %v1019_v7 = vld [vmem:[%s18683_s0 + $0x518] sm:$0x1]  ;;  %v9210_v41 = vld [vmem:[%s18683_s0 + $0x520] sm:$0xfe]  ;;  %v9216_v26 = vmul.f32 %v19790_v40, %v956_v42  ;;  %v9219_v0 = vmul.f32 %v19791_v45, %v957_v22  ;;  %v9222_v23 = vmul.f32 %v19790_v40, %v958_v4  ;;  %v9240_v42 = vmul.f32 %v19791_v45, %v959_v34 }
  0xdc   :  { %19793 = vst [vmem:[#allocation41_spill] sm:$0xff] %v9210_v41  ;;  %v9227_v63 = vld [vmem:[%s18683_s0 + $0x528] sm:$0xfe]  ;;  %v9232_v55 = vld [vmem:[%s18683_s0 + $0x530] sm:$0x1]  ;;  %v9243_v22 = vmul.f32 %v19790_v40, %v960_v25  ;;  %v9246_v4 = vmul.f32 %v19791_v45, %v961_v8  ;;  %v9249_v16 = vmul.f32 %v19790_v40, %v962_v51  ;;  %v9267_v25 = vmul.f32 %v19791_v45, %v963_v47 }
  0xdd   :  { %19794 = vst [vmem:[#allocation55_spill] sm:$0xff] %v9227_v63  ;;  %19795 = vst [vmem:[#allocation45_spill] sm:$0xff] %v9232_v55  ;;  %v9237_v14 = vld [vmem:[%s18683_s0 + $0x538] sm:$0x1]  ;;  %v9254_v3 = vld [vmem:[%s18683_s0 + $0x540] sm:$0xfe]  ;;  %v9270_v8 = vmul.f32 %v19790_v40, %v964_v31  ;;  %v9273_v51 = vmul.f32 %v19791_v45, %v965_v59  ;;  %v9276_v5 = vmul.f32 %v19790_v40, %v966_v27 }
  0xde   :  { %19796 = vst [vmem:[#allocation60_spill] sm:$0xff] %v9237_v14  ;;  %19797 = vst [vmem:[#allocation62_spill] sm:$0xff] %v9254_v3  ;;  %v9259_v12 = vld [vmem:[%s18683_s0 + $0x548] sm:$0xfe]  ;;  %v9264_v34 = vld [vmem:[%s18683_s0 + $0x550] sm:$0x1]  ;;  %v9294_v31 = vmul.f32 %v19791_v45, %v967_v52  ;;  %v9297_v59 = vmul.f32 %v19790_v40, %v968_v38  ;;  %v9300_v27 = vmul.f32 %v19791_v45, %v969_v58 }
  0xdf   :  { %19798 = vst [vmem:[#allocation63_spill] sm:$0xff] %v9259_v12  ;;  %19799 = vst [vmem:[#allocation64_spill] sm:$0xff] %v9264_v34  ;;  %v9281_v36 = vld [vmem:[%s18683_s0 + $0x558] sm:$0x1]  ;;  %v9286_v35 = vld [vmem:[%s18683_s0 + $0x560] sm:$0xfe]  ;;  %v9303_v61 = vmul.f32 %v19790_v40, %v970_v39  ;;  %v9322_v52 = vmul.f32 %v19791_v45, %v9181_v44  ;;  %v9325_v58 = vmul.f32 %v19790_v40, %v1016_v54 }
  0xe0   :  { %19800 = vst [vmem:[#allocation65_spill] sm:$0xff] %v9281_v36  ;;  %19801 = vst [vmem:[#allocation70_spill] sm:$0xff] %v9286_v35  ;;  %v9291_v47 = vld [vmem:[%s18683_s0 + $0x568] sm:$0xfe]  ;;  %v9308_v57 = vld [vmem:[%s18683_s0 + $0x570] sm:$0x1]  ;;  %v9328_v39 = vmul.f32 %v19791_v45, %v1017_v50  ;;  %v9331_v49 = vmul.f32 %v19790_v40, %v1018_v11  ;;  %v9349_v50 = vmul.f32 %v19791_v45, %v1019_v7 }
  0xe1   :  { %19802 = vst [vmem:[#allocation71_spill] sm:$0xff] %v9291_v47  ;;  %19803 = vst [vmem:[#allocation72_spill] sm:$0xff] %v9308_v57  ;;  %v9313_v15 = vld [vmem:[%s18683_s0 + $0x578] sm:$0x1]  ;;  %v9318_v38 = vld [vmem:[%s18683_s0 + $0x580] sm:$0xfe]  ;;  %v9353_v11 = vmul.f32 %v19790_v40, %v9210_v41  ;;  %v9357_v44 = vmul.f32 %v19791_v45, %v9227_v63  ;;  %v9361_v1 = vmul.f32 %v19790_v40, %v9232_v55 }
  0xe2   :  { %19804 = vst [vmem:[#allocation25_spill] sm:$0xff] %v9313_v15  ;;  %19805 = vst [vmem:[#allocation76_spill] sm:$0xff] %v9318_v38  ;;  %v9336_v33 = vld [vmem:[%s18683_s0 + $0x588] sm:$0xfe]  ;;  %v9341_v56 = vld [vmem:[%s18683_s0 + $0x590] sm:$0x1]  ;;  %v9380_v63 = vmul.f32 %v19791_v45, %v9237_v14  ;;  %v9384_v55 = vmul.f32 %v19790_v40, %v9254_v3  ;;  %v9388_v10 = vmul.f32 %v19791_v45, %v9259_v12 }
  0xe3   :  { %19806 = vst [vmem:[#allocation49_spill] sm:$0xff] %v9336_v33  ;;  %19807 = vst [vmem:[#allocation35_spill] sm:$0xff] %v9341_v56  ;;  %v9346_v54 = vld [vmem:[%s18683_s0 + $0x598] sm:$0x1]  ;;  %v9366_v6 = vld [vmem:[%s18683_s0 + $0x5a0] sm:$0xfe]  ;;  %v9392_v24 = vmul.f32 %v19790_v40, %v9264_v34  ;;  %v9401_v14 = vmul.f32 %v19791_v45, %v9281_v36  ;;  %v9405_v3 = vmul.f32 %v19790_v40, %v9286_v35 }
  0xe4   :  { %19808 = vst [vmem:[#allocation54_spill] sm:$0xff] %v9346_v54  ;;  %19809 = vst [vmem:[#allocation56_spill] sm:$0xff] %v9366_v6  ;;  %v9371_v7 = vld [vmem:[%s18683_s0 + $0x5a8] sm:$0xfe]  ;;  %v9376_v41 = vld [vmem:[%s18683_s0 + $0x5b0] sm:$0x1]  ;;  %v9409_v12 = vmul.f32 %v19791_v45, %v9291_v47  ;;  %v9413_v34 = vmul.f32 %v19790_v40, %v9308_v57  ;;  %v9427_v35 = vmul.f32 %v19791_v45, %v9313_v15 }
  0xe5   :  { %19810 = vst [vmem:[#allocation57_spill] sm:$0xff] %v9371_v7  ;;  %19811 = vst [vmem:[#allocation58_spill] sm:$0xff] %v9376_v41  ;;  %v9397_v13 = vld [vmem:[%s18683_s0 + $0x5b8] sm:$0x1]  ;;  %v9418_v48 = vld [vmem:[%s18683_s0 + $0x5c0] sm:$0xfe]  ;;  %v9431_v47 = vmul.f32 %v19790_v40, %v9318_v38  ;;  %v9435_v57 = vmul.f32 %v19791_v45, %v9336_v33  ;;  %v9439_v37 = vmul.f32 %v19790_v40, %v9341_v56 }
  0xe6   :  { %19812 = vst [vmem:[#allocation59_spill] sm:$0xff] %v9397_v13  ;;  %19813 = vst [vmem:[#allocation61_spill] sm:$0xff] %v9409_v12  ;;  %v9423_v36 = vld [vmem:[%s18683_s0 + $0x5c8] sm:$0xfe]  ;;  %v9444_v12 = vld [vmem:[%s18683_s0 + $0x5d0] sm:$0x1]  ;;  %v9458_v33 = vmul.f32 %v19791_v45, %v9346_v54  ;;  %v9462_v56 = vmul.f32 %v19790_v40, %v9366_v6  ;;  %v9479_v54 = vmul.f32 %v19791_v45, %v9397_v13 }
  0xe7   :  { %19814 = vst [vmem:[#allocation10_spill] sm:$0xff] %v9418_v48  ;;  %19815 = vst [vmem:[#allocation77_spill] sm:$0xff] %v9423_v36  ;;  %v9449_v15 = vld [vmem:[%s18683_s0 + $0x5d8] sm:$0x1]  ;;  %v9454_v38 = vld [vmem:[%s18683_s0 + $0x5e0] sm:$0xfe] }
  0xe8   :  { %19816 = vst [vmem:[#allocation11_spill] sm:$0xff] %v9427_v35  ;;  %19817 = vst [vmem:[#allocation78_spill] sm:$0xff] %v9431_v47  ;;  %v9475_v47 = vld [vmem:[%s18683_s0 + $0x5e8] sm:$0xfe]  ;;  %v1234_v6 = vrot.slane %v9122_v30, 1  ;;  %v1243_v30 = vrot.slane %v9149_v29, 1  ;;  %v9513_v29 = vmul.f32 %v19790_v40, %v9444_v12 }
  0xe9   :  { %19818 = vst [vmem:[#allocation12_spill] sm:$0xff] %v9435_v57  ;;  %19819 = vst [vmem:[#allocation13_spill] sm:$0xff] %v9439_v37  ;;  %v9466_v57 = vmul.f32 %v19791_v45, %v9371_v7  ;;  %v9470_v37 = vmul.f32 %v19790_v40, %v9376_v41  ;;  %v9486_v7 = vld [vmem:[%s18683_s0 + $0x5f0] sm:$0x1]  ;;  %v1237_v41 = vrot.slane %v9125_v46, 1  ;;  %v1247_v35 = vrot.slane %v9176_v28, 1 }
  0xea   :  { %19820 = vst [vmem:[#allocation14_spill] sm:$0xff] %v9444_v12  ;;  %19821 = vst [vmem:[#allocation82_spill] sm:$0xff] %v9449_v15  ;;  %v9495_v13 = vld [vmem:[%s18683_s0 + $0x5f8] sm:$0x1]  ;;  %v9503_v46 = vmul.f32 %v19790_v40, %v9418_v48  ;;  %v9521_v28 = vmul.f32 %v19790_v40, %v9454_v38  ;;  %v9828_v48 = vld [vmem:[%s18683_s0 + $0x308] sm:$0xfe] }
  0xeb   :  { %19822 = vst [vmem:[#allocation51_spill] sm:$0xff] %v9454_v38  ;;  %19823 = vst [vmem:[#allocation28_spill] sm:$0xff] %v9458_v33  ;;  %v1241_v33 = vrot.slane %v9152_v62, 1  ;;  %v9507_v62 = vmul.f32 %v19791_v45, %v9423_v36 }
  0xec   :  { %19824 = vst [vmem:[#allocation29_spill] sm:$0xff] %v9462_v56  ;;  %19825 = vst [vmem:[#allocation30_spill] sm:$0xff] %v9466_v57  ;;  %v1235_v56 = vrot.slane %v9128_v60, 1  ;;  %v1238_v57 = vrot.slane %v9143_v21, 1  ;;  %v1244_v60 = vrot.slane %v9167_v53, 1  ;;  %v1249_v21 = vrot.slane %v9173_v17, 1 }
  0xed   :  { %19826 = vst [vmem:[#allocation32_spill] sm:$0xff] %v9470_v37  ;;  %19827 = vst [vmem:[#allocation15_spill] sm:$0xff] %v9475_v47  ;;  %v1240_v37 = vrot.slane %v9146_v32, 1  ;;  %v1250_v32 = vrot.slane %v9190_v43, 1  ;;  %v9517_v53 = vmul.f32 %v19791_v45, %v9449_v15  ;;  %v9529_v17 = vmul.f32 %v19790_v40, %v9486_v7 }
  0xee   :  { %19828 = vst [vmem:[#allocation40_spill] sm:$0xff] %v9479_v54  ;;  %19829 = vst [vmem:[#allocation16_spill] sm:$0xff] %v9486_v7  ;;  %v1246_v54 = vrot.slane %v9170_v18, 1  ;;  %v9525_v18 = vmul.f32 %v19791_v45, %v9475_v47  ;;  %v9533_v43 = vmul.f32 %v19791_v45, %v9495_v13  ;;  %v9536_v12 = vsel %vm1233_vm0, %v1234_v6, %v1235_v56  ;;  %v9823_v7 = vld [vmem:[%s18683_s0 + $0x300] sm:$0xfe] }
  0xef   :  { %19830 = vst [vmem:[#allocation17_spill] sm:$0xff] %v9495_v13  ;;  %v9539_v15 = vsel %vm1233_vm0, %v1237_v41, %v1238_v57  ;;  %v9542_v38 = vsel %vm1233_vm0, %v1240_v37, %v1241_v33  ;;  %v9545_v47 = vsel %vm1233_vm0, %v1243_v30, %v1244_v60  ;;  %v1252_v40 = vrot.slane %v9193_v19, 1 }
  0xf0   :  { %v9548_v36 = vsel %vm1233_vm0, %v1246_v54, %v1247_v35  ;;  %v9552_v45 = vsel %vm1233_vm0, %v1249_v21, %v1250_v32  ;;  %v1253_v6 = vrot.slane %v9199_v9, 1  ;;  %v1255_v56 = vrot.slane %v9196_v20, 1 }
  0xf1   :  { %v1256_v57 = vrot.slane %v9213_v2, 1  ;;  %v1258_v37 = vrot.slane %v9216_v26, 1  ;;  %v1259_v33 = vrot.slane %v9222_v23, 1  ;;  %v1261_v41 = vrot.slane %v9219_v0, 1 }
  0xf2   :  { %v1262_v35 = vrot.slane %v9240_v42, 1  ;;  %v1264_v54 = vrot.slane %v9243_v22, 1  ;;  %v1265_v19 = vrot.slane %v9249_v16, 1  ;;  %v1267_v30 = vrot.slane %v9246_v4, 1 }
  0xf3   :  { %v1268_v9 = vrot.slane %v9267_v25, 1  ;;  %v1270_v20 = vrot.slane %v9270_v8, 1  ;;  %v1271_v2 = vrot.slane %v9276_v5, 1  ;;  %v1273_v26 = vrot.slane %v9273_v51, 1 }
  0xf4   :  { %v1274_v23 = vrot.slane %v9294_v31, 1  ;;  %v1276_v0 = vrot.slane %v9297_v59, 1  ;;  %v1277_v42 = vrot.slane %v9303_v61, 1  ;;  %v1279_v22 = vrot.slane %v9300_v27, 1 }
  0xf5   :  { %v1280_v16 = vrot.slane %v9322_v52, 1  ;;  %v1282_v4 = vrot.slane %v9325_v58, 1  ;;  %v1283_v25 = vrot.slane %v9331_v49, 1  ;;  %v1285_v8 = vrot.slane %v9328_v39, 1 }
  0xf6   :  { %v1286_v5 = vrot.slane %v9349_v50, 1  ;;  %v1254_v51 = vsel %vm1233_vm0, %v1252_v40, %v1253_v6  ;;  %v1257_v31 = vsel %vm1233_vm0, %v1255_v56, %v1256_v57  ;;  %v1260_v59 = vsel %vm1233_vm0, %v1258_v37, %v1259_v33 }
  0xf7   :  { %v1263_v61 = vsel %vm1233_vm0, %v1261_v41, %v1262_v35  ;;  %v1266_v27 = vsel %vm1233_vm0, %v1264_v54, %v1265_v19  ;;  %v1269_v52 = vsel %vm1233_vm0, %v1267_v30, %v1268_v9  ;;  %v1272_v58 = vsel %vm1233_vm0, %v1270_v20, %v1271_v2  ;;  %v19831_v35 = vld [vmem:[#allocation61_spill] sm:$0xff]  ;;  %v19832_v19 = vld [vmem:[#allocation11_spill] sm:$0xff]  ;;  %v19833_v9 = vld [vmem:[#allocation78_spill] sm:$0xff] }
  0xf8   :  { %v1275_v49 = vsel %vm1233_vm0, %v1273_v26, %v1274_v23  ;;  %v1278_v39 = vsel %vm1233_vm0, %v1276_v0, %v1277_v42  ;;  %v1281_v50 = vsel %vm1233_vm0, %v1279_v22, %v1280_v16  ;;  %v1288_v60 = vrot.slane %v9353_v11, 1  ;;  %v19834_v20 = vld [vmem:[#allocation13_spill] sm:$0xff]  ;;  %v19835_v2 = vld [vmem:[#allocation12_spill] sm:$0xff]  ;;  %v19839_v42 = vld [vmem:[#allocation30_spill] sm:$0xff] }
  0xf9   :  { %v1289_v21 = vrot.slane %v9361_v1, 1  ;;  %v1284_v32 = vsel %vm1233_vm0, %v1282_v4, %v1283_v25  ;;  %v1287_v40 = vsel %vm1233_vm0, %v1285_v8, %v1286_v5  ;;  %v1291_v6 = vrot.slane %v9357_v44, 1  ;;  %v19836_v26 = vld [vmem:[#allocation28_spill] sm:$0xff]  ;;  %v19837_v23 = vld [vmem:[#allocation29_spill] sm:$0xff] }
  0xfa   :  { %v1292_v56 = vrot.slane %v9380_v63, 1  ;;  %v1294_v57 = vrot.slane %v9384_v55, 1  ;;  %v1295_v37 = vrot.slane %v9392_v24, 1  ;;  %v1297_v33 = vrot.slane %v9388_v10, 1  ;;  %v19838_v0 = vld [vmem:[#allocation32_spill] sm:$0xff] }
  0xfb   :  { %v1298_v41 = vrot.slane %v9401_v14, 1  ;;  %v1300_v11 = vrot.slane %v9405_v3, 1  ;;  %v1301_v1 = vrot.slane %v9413_v34, 1  ;;  %v1303_v54 = vrot.slane %v19831_v35, 1  ;;  %v19840_v22 = vld [vmem:[#allocation40_spill] sm:$0xff] }
  0xfc   :  { %v1304_v30 = vrot.slane %v19832_v19, 1  ;;  %v1306_v44 = vrot.slane %v19833_v9, 1  ;;  %v1307_v63 = vrot.slane %v19834_v20, 1  ;;  %v1309_v55 = vrot.slane %v19835_v2, 1 }
  0xfd   :  { %v1310_v24 = vrot.slane %v19836_v26, 1  ;;  %v1312_v10 = vrot.slane %v19837_v23, 1  ;;  %v1313_v14 = vrot.slane %v19838_v0, 1  ;;  %v1315_v3 = vrot.slane %v19839_v42, 1  ;;  %v19857_v23 = vld [vmem:[#allocation39_spill] sm:$0xff]  ;;  %v19859_v0 = vld [vmem:[#allocation9_spill] sm:$0xff] }
  0xfe   :  { %v1316_v34 = vrot.slane %v19840_v22, 1  ;;  %v1318_v16 = vrot.slane %v9503_v46, 1  ;;  %v1319_v4 = vrot.slane %v9513_v29, 1  ;;  %v1321_v25 = vrot.slane %v9507_v62, 1 }
  0xff   :  { %v1322_v8 = vrot.slane %v9517_v53, 1  ;;  %v1290_v5 = vsel %vm1233_vm0, %v1288_v60, %v1289_v21  ;;  %v1293_v35 = vsel %vm1233_vm0, %v1291_v6, %v1292_v56  ;;  %v1324_v19 = vrot.slane %v9521_v28, 1 }
 0x100   :  { %v1325_v9 = vrot.slane %v9529_v17, 1  ;;  %v1296_v20 = vsel %vm1233_vm0, %v1294_v57, %v1295_v37  ;;  %v1299_v2 = vsel %vm1233_vm0, %v1297_v33, %v1298_v41  ;;  %v1327_v46 = vrot.slane %v9525_v18, 1  ;;  %v19841_v57 = vld [vmem:[#allocation20_spill] sm:$0xff]  ;;  %v19843_v37 = vld [vmem:[#allocation21_spill] sm:$0xff]  ;;  %v19845_v41 = vld [vmem:[#allocation75_spill] sm:$0xff] }
 0x101   :  { %v1328_v29 = vrot.slane %v9533_v43, 1  ;;  %v1302_v62 = vsel %vm1233_vm0, %v1300_v11, %v1301_v1  ;;  %v1305_v53 = vsel %vm1233_vm0, %v1303_v54, %v1304_v30  ;;  %v1308_v60 = vsel %vm1233_vm0, %v1306_v44, %v1307_v63  ;;  %v19847_v54 = vld [vmem:[#allocation8_spill] sm:$0xff]  ;;  %v19849_v44 = vld [vmem:[#allocation26_spill] sm:$0xff] }
 0x102   :  { %v1311_v21 = vsel %vm1233_vm0, %v1309_v55, %v1310_v24  ;;  %v1314_v28 = vsel %vm1233_vm0, %v1312_v10, %v1313_v14  ;;  %v1317_v17 = vsel %vm1233_vm0, %v1315_v3, %v1316_v34  ;;  %v1320_v6 = vsel %vm1233_vm0, %v1318_v16, %v1319_v4  ;;  %v19855_v24 = vld [vmem:[#allocation34_spill] sm:$0xff]  ;;  %v19861_v14 = vld [vmem:[#allocation36_spill] sm:$0xff] }
 0x103   :  { %v1323_v56 = vsel %vm1233_vm0, %v1321_v25, %v1322_v8  ;;  %v1326_v18 = vsel %vm1233_vm0, %v1324_v19, %v1325_v9  ;;  %v9632_v43 = vadd.f32 %v9536_v12, %v19841_v57  ;;  %v9636_v33 = vadd.f32 %v9539_v15, %v19843_v37  ;;  %v19851_v12 = vld [vmem:[#allocation27_spill] sm:$0xff]  ;;  %v19853_v15 = vld [vmem:[#allocation33_spill] sm:$0xff]  ;;  %v19883_v57 = vld [vmem:[#allocation66_spill] sm:$0xff] }
 0x104   :  { %v9640_v11 = vadd.f32 %v9542_v38, %v19845_v41  ;;  %v1329_v1 = vsel %vm1233_vm0, %v1327_v46, %v1328_v29  ;;  %v9645_v30 = vadd.f32 %v9545_v47, %v19847_v54  ;;  %v9649_v63 = vadd.f32 %v9548_v36, %v19849_v44  ;;  %v19863_v36 = vld [vmem:[#allocation37_spill] sm:$0xff]  ;;  %v19881_v46 = vld [vmem:[#allocation80_spill] sm:$0xff]  ;;  %v9726_v54 = vld [vmem:[%s18683_s0 + $0x2a8] sm:$0xfe] }
 0x105   :  { %19842 = vst [vmem:[#allocation18_spill] sm:$0xff] %v9632_v43  ;;  %19844 = vst [vmem:[#allocation19_spill] sm:$0xff] %v9636_v33  ;;  %v9653_v55 = vadd.f32 %v9552_v45, %v19851_v12  ;;  %v9656_v26 = vadd.f32 %v1254_v51, %v19853_v15  ;;  %v9659_v38 = vadd.f32 %v1257_v31, %v19855_v24  ;;  %v19865_v45 = vld [vmem:[#allocation38_spill] sm:$0xff]  ;;  %v6404_v31 = vld [vmem:[%s18684_s1 + $0x12] ss:$8 sm:$0x3] }
 0x106   :  { %19846 = vst [vmem:[#allocation22_spill] sm:$0xff] %v9640_v11  ;;  %19848 = vst [vmem:[#allocation53_spill] sm:$0xff] %v9645_v30  ;;  %v9662_v10 = vadd.f32 %v1260_v59, %v19857_v23  ;;  %v9665_v47 = vadd.f32 %v1263_v61, %v19859_v0  ;;  %v9668_v42 = vadd.f32 %v1266_v27, %v19861_v14  ;;  %v19867_v51 = vld [vmem:[#allocation42_spill] sm:$0xff]  ;;  %v19869_v59 = vld [vmem:[#allocation43_spill] sm:$0xff] }
 0x107   :  { %19850 = vst [vmem:[#allocation61_spill] sm:$0xff] %v9649_v63  ;;  %19852 = vst [vmem:[#allocation11_spill] sm:$0xff] %v9653_v55  ;;  %v9671_v3 = vadd.f32 %v1269_v52, %v19863_v36  ;;  %v9674_v22 = vadd.f32 %v1272_v58, %v19865_v45  ;;  %v9677_v34 = vadd.f32 %v1275_v49, %v19867_v51  ;;  %v19871_v61 = vld [vmem:[#allocation44_spill] sm:$0xff]  ;;  %v19873_v27 = vld [vmem:[#allocation46_spill] sm:$0xff] }
 0x108   :  { %19854 = vst [vmem:[#allocation78_spill] sm:$0xff] %v9656_v26  ;;  %19856 = vst [vmem:[#allocation13_spill] sm:$0xff] %v9659_v38  ;;  %v9683_v16 = vadd.f32 %v1278_v39, %v19869_v59  ;;  %v9686_v4 = vadd.f32 %v1281_v50, %v19871_v61  ;;  %v9689_v25 = vadd.f32 %v1284_v32, %v19873_v27  ;;  %v19875_v52 = vld [vmem:[#allocation47_spill] sm:$0xff]  ;;  %v980_v58 = vld [vmem:[%s18683_s0 + $0x280] sm:$0xfe] }
 0x109   :  { %19858 = vst [vmem:[#allocation12_spill] sm:$0xff] %v9662_v10  ;;  %19860 = vst [vmem:[#allocation28_spill] sm:$0xff] %v9665_v47  ;;  %v9692_v8 = vadd.f32 %v1287_v40, %v19875_v52  ;;  %v981_v49 = vld [vmem:[%s18683_s0 + $0x288] sm:$0xfe]  ;;  %v982_v39 = vld [vmem:[%s18683_s0 + $0x290] sm:$0x1]  ;;  %v9713_v29 = vadd.f32 %v1296_v20, %v19881_v46  ;;  %v9716_v37 = vadd.f32 %v1299_v2, %v19883_v57 }
 0x10a   :  { %19862 = vst [vmem:[#allocation29_spill] sm:$0xff] %v9668_v42  ;;  %19864 = vst [vmem:[#allocation32_spill] sm:$0xff] %v9671_v3  ;;  %v983_v50 = vld [vmem:[%s18683_s0 + $0x298] sm:$0x1]  ;;  %v19879_v40 = vld [vmem:[#allocation79_spill] sm:$0xff] }
 0x10b   :  { %19866 = vst [vmem:[#allocation30_spill] sm:$0xff] %v9674_v22  ;;  %19868 = vst [vmem:[#allocation40_spill] sm:$0xff] %v9677_v34  ;;  %v19877_v32 = vld [vmem:[#allocation48_spill] sm:$0xff]  ;;  %v9710_v9 = vadd.f32 %v1293_v35, %v19879_v40  ;;  %v9721_v41 = vld [vmem:[%s18683_s0 + $0x2a0] sm:$0xfe] }
 0x10c   :  { %19870 = vst [vmem:[#allocation20_spill] sm:$0xff] %v9683_v16  ;;  %19872 = vst [vmem:[#allocation21_spill] sm:$0xff] %v9686_v4  ;;  %v9707_v19 = vadd.f32 %v1290_v5, %v19877_v32  ;;  %v9731_v5 = vld [vmem:[%s18683_s0 + $0x2b0] sm:$0x1]  ;;  %v9736_v35 = vld [vmem:[%s18683_s0 + $0x2b8] sm:$0x1] }
 0x10d   :  { %19874 = vst [vmem:[#allocation75_spill] sm:$0xff] %v9689_v25  ;;  %19876 = vst [vmem:[#allocation8_spill] sm:$0xff] %v9692_v8  ;;  %v19889_v20 = vld [vmem:[#allocation67_spill] sm:$0xff]  ;;  %v19891_v44 = vld [vmem:[#allocation52_spill] sm:$0xff] }
 0x10e   :  { %19878 = vst [vmem:[#allocation26_spill] sm:$0xff] %v9707_v19  ;;  %19880 = vst [vmem:[#allocation27_spill] sm:$0xff] %v9710_v9  ;;  %v9739_v2 = vadd.f32 %v1302_v62, %v19889_v20  ;;  %v9742_v12 = vadd.f32 %v1305_v53, %v19891_v44  ;;  %v19893_v15 = vld [vmem:[#allocation6_spill] sm:$0xff]  ;;  %v19894_v23 = vld [vmem:[#allocation7_spill] sm:$0xff] }
 0x10f   :  { %19882 = vst [vmem:[#allocation33_spill] sm:$0xff] %v9713_v29  ;;  %19884 = vst [vmem:[#allocation34_spill] sm:$0xff] %v9716_v37  ;;  %v9745_v24 = vrot.slane %v6404_v31, %v19893_v15  ;;  %v9748_v0 = vrot.slane %v6404_v31, %v19894_v23  ;;  %v6405_v14 = vld [vmem:[%s18684_s1 + $0x22] ss:$8 sm:$0x3]  ;;  %v19899_v31 = vld [vmem:[#allocation68_spill] sm:$0xff] }
 0x110   :  { %19885 = vst [vmem:[#allocation39_spill] sm:$0xff] %v9721_v41  ;;  %19886 = vst [vmem:[#allocation9_spill] sm:$0xff] %v9726_v54  ;;  %v6406_v36 = vld [vmem:[%s18684_s1 + $0x32] ss:$8 sm:$0x3]  ;;  %v9777_v59 = vadd.f32 %v1308_v60, %v19899_v31  ;;  %v19901_v61 = vld [vmem:[#allocation69_spill] sm:$0xff] }
 0x111   :  { %19887 = vst [vmem:[#allocation36_spill] sm:$0xff] %v9731_v5  ;;  %19888 = vst [vmem:[#allocation37_spill] sm:$0xff] %v9736_v35  ;;  %v9759_v62 = vld [vmem:[%s18683_s0 + $0x2c0] sm:$0xfe]  ;;  %v9764_v53 = vld [vmem:[%s18683_s0 + $0x2c8] sm:$0xfe]  ;;  %v9780_v27 = vadd.f32 %v1311_v21, %v19901_v61 }
 0x112   :  { %19890 = vst [vmem:[#allocation38_spill] sm:$0xff] %v9739_v2  ;;  %19892 = vst [vmem:[#allocation42_spill] sm:$0xff] %v9742_v12  ;;  %v9769_v45 = vld [vmem:[%s18683_s0 + $0x2d0] sm:$0x1]  ;;  %v9774_v51 = vld [vmem:[%s18683_s0 + $0x2d8] sm:$0x1] }
 0x113   :  { %19895 = vst [vmem:[#allocation43_spill] sm:$0xff] %v9759_v62  ;;  %19896 = vst [vmem:[#allocation44_spill] sm:$0xff] %v9764_v53  ;;  %v19903_v52 = vld [vmem:[#allocation73_spill] sm:$0xff]  ;;  %v19905_v40 = vld [vmem:[#allocation74_spill] sm:$0xff] }
 0x114   :  { %19897 = vst [vmem:[#allocation46_spill] sm:$0xff] %v9769_v45  ;;  %19898 = vst [vmem:[#allocation47_spill] sm:$0xff] %v9774_v51  ;;  %v9783_v32 = vadd.f32 %v1314_v28, %v19903_v52  ;;  %v9786_v46 = vadd.f32 %v1317_v17, %v19905_v40  ;;  %v9791_v57 = vld [vmem:[%s18683_s0 + $0x2e0] sm:$0xfe]  ;;  %v9796_v20 = vld [vmem:[%s18683_s0 + $0x2e8] sm:$0xfe] }
 0x115   :  { %19900 = vst [vmem:[#allocation48_spill] sm:$0xff] %v9777_v59  ;;  %19902 = vst [vmem:[#allocation79_spill] sm:$0xff] %v9780_v27  ;;  %v9801_v60 = vld [vmem:[%s18683_s0 + $0x2f0] sm:$0x1]  ;;  %v9806_v21 = vld [vmem:[%s18683_s0 + $0x2f8] sm:$0x1]  ;;  %v9974_v59 = vmul.f32 %v9748_v0, %v9796_v20 }
 0x116   :  { %19904 = vst [vmem:[#allocation80_spill] sm:$0xff] %v9783_v32  ;;  %19906 = vst [vmem:[#allocation66_spill] sm:$0xff] %v9786_v46  ;;  %v19911_v28 = vld [vmem:[#allocation24_spill] sm:$0xff]  ;;  %v19913_v44 = vld [vmem:[#allocation23_spill] sm:$0xff]  ;;  %v9950_v46 = vmul.f32 %v9745_v24, %v9769_v45  ;;  %v9954_v32 = vmul.f32 %v9748_v0, %v9774_v51  ;;  %v9970_v51 = vmul.f32 %v9745_v24, %v9791_v57 }
 0x117   :  { %19907 = vst [vmem:[#allocation67_spill] sm:$0xff] %v9791_v57  ;;  %19908 = vst [vmem:[#allocation52_spill] sm:$0xff] %v9796_v20  ;;  %v9809_v17 = vadd.f32 %v1320_v6, %v19911_v28  ;;  %v9812_v31 = vadd.f32 %v1323_v56, %v19913_v44  ;;  %v19915_v61 = vld [vmem:[#allocation50_spill] sm:$0xff]  ;;  %v19917_v40 = vld [vmem:[#allocation81_spill] sm:$0xff]  ;;  %v9847_v28 = vrot.slane %v6406_v36, %v19893_v15 }
 0x118   :  { %19909 = vst [vmem:[#allocation68_spill] sm:$0xff] %v9801_v60  ;;  %19910 = vst [vmem:[#allocation69_spill] sm:$0xff] %v9806_v21  ;;  %v9815_v52 = vadd.f32 %v1326_v18, %v19915_v61  ;;  %v9818_v13 = vadd.f32 %v1329_v1, %v19917_v40  ;;  %v9833_v6 = vld [vmem:[%s18683_s0 + $0x310] sm:$0x1]  ;;  %v9838_v56 = vld [vmem:[%s18683_s0 + $0x318] sm:$0x1]  ;;  %v9841_v18 = vrot.slane %v6405_v14, %v19893_v15 }
 0x119   :  { %19912 = vst [vmem:[#allocation73_spill] sm:$0xff] %v9809_v17  ;;  %19914 = vst [vmem:[#allocation74_spill] sm:$0xff] %v9812_v31  ;;  %v9844_v1 = vrot.slane %v6405_v14, %v19894_v23  ;;  %v9850_v44 = vrot.slane %v6406_v36, %v19894_v23  ;;  %v9855_v61 = vld [vmem:[%s18683_s0 + $0x320] sm:$0xfe]  ;;  %v9860_v40 = vld [vmem:[%s18683_s0 + $0x328] sm:$0xfe]  ;;  %v9873_v23 = vmul.f32 %v9745_v24, %v980_v58 }
 0x11a   :  { %19916 = vst [vmem:[#allocation24_spill] sm:$0xff] %v9815_v52  ;;  %19918 = vst [vmem:[#allocation23_spill] sm:$0xff] %v9818_v13  ;;  %v9865_v14 = vld [vmem:[%s18683_s0 + $0x330] sm:$0x1]  ;;  %v9870_v36 = vld [vmem:[%s18683_s0 + $0x338] sm:$0x1]  ;;  %v9876_v15 = vmul.f32 %v9748_v0, %v981_v49  ;;  %v9914_v13 = vmul.f32 %v9745_v24, %v9731_v5  ;;  %v9918_v52 = vmul.f32 %v9748_v0, %v9736_v35 }
 0x11b   :  { %19919 = vst [vmem:[#allocation50_spill] sm:$0xff] %v9823_v7  ;;  %19920 = vst [vmem:[#allocation81_spill] sm:$0xff] %v9828_v48  ;;  %v9897_v58 = vld [vmem:[%s18683_s0 + $0x350] sm:$0x1]  ;;  %v9902_v49 = vld [vmem:[%s18683_s0 + $0x358] sm:$0x1]  ;;  %v9942_v5 = vmul.f32 %v9745_v24, %v9759_v62  ;;  %v9946_v17 = vmul.f32 %v9748_v0, %v9764_v53  ;;  %v9978_v12 = vmul.f32 %v9745_v24, %v9801_v60 }
 0x11c   :  { %19921 = vst [vmem:[#allocation83_spill] sm:$0xff] %v9833_v6  ;;  %19922 = vst [vmem:[#allocation84_spill] sm:$0xff] %v9838_v56  ;;  %v9923_v31 = vld [vmem:[%s18683_s0 + $0x360] sm:$0xfe]  ;;  %v9938_v35 = vld [vmem:[%s18683_s0 + $0x378] sm:$0x1]  ;;  %v9982_v2 = vmul.f32 %v9748_v0, %v9806_v21  ;;  %v10001_v60 = vmul.f32 %v9745_v24, %v9823_v7  ;;  %v10005_v21 = vmul.f32 %v9748_v0, %v9828_v48 }
 0x11d   :  { %19923 = vst [vmem:[#allocation85_spill] sm:$0xff] %v9841_v18  ;;  %19924 = vst [vmem:[#allocation86_spill] sm:$0xff] %v9844_v1  ;;  %v9887_v1 = vld [vmem:[%s18683_s0 + $0x340] sm:$0xfe]  ;;  %v9892_v18 = vld [vmem:[%s18683_s0 + $0x348] sm:$0xfe]  ;;  %v10009_v29 = vmul.f32 %v9745_v24, %v9833_v6  ;;  %v10013_v9 = vmul.f32 %v9748_v0, %v9838_v56  ;;  %v10032_v6 = vmul.f32 %v9745_v24, %v9855_v61 }
 0x11e   :  { %19925 = vst [vmem:[#allocation87_spill] sm:$0xff] %v9847_v28  ;;  %19926 = vst [vmem:[#allocation88_spill] sm:$0xff] %v9850_v44  ;;  %v9879_v44 = vmul.f32 %v9745_v24, %v982_v39  ;;  %v9882_v28 = vmul.f32 %v9748_v0, %v983_v50  ;;  %v9906_v39 = vmul.f32 %v9745_v24, %v9721_v41  ;;  %v9928_v41 = vld [vmem:[%s18683_s0 + $0x368] sm:$0xfe]  ;;  %v1056_v27 = vld [vmem:[%s18683_s0 + $0x780] sm:$0xfe] }
 0x11f   :  { %19927 = vst [vmem:[#allocation89_spill] sm:$0xff] %v9855_v61  ;;  %19928 = vst [vmem:[#allocation90_spill] sm:$0xff] %v9860_v40  ;;  %v9910_v50 = vmul.f32 %v9748_v0, %v9726_v54  ;;  %v9933_v54 = vld [vmem:[%s18683_s0 + $0x370] sm:$0x1]  ;;  %v1057_v62 = vld [vmem:[%s18683_s0 + $0x788] sm:$0xfe]  ;;  %v10036_v56 = vmul.f32 %v9748_v0, %v9860_v40  ;;  %v10040_v8 = vmul.f32 %v9745_v24, %v9865_v14 }
 0x120   :  { %19929 = vst [vmem:[#allocation91_spill] sm:$0xff] %v9865_v14  ;;  %19930 = vst [vmem:[#allocation92_spill] sm:$0xff] %v9870_v36  ;;  %v1058_v53 = vld [vmem:[%s18683_s0 + $0x790] sm:$0x1]  ;;  %v1059_v45 = vld [vmem:[%s18683_s0 + $0x798] sm:$0x1]  ;;  %v10044_v25 = vmul.f32 %v9748_v0, %v9870_v36  ;;  %v10063_v14 = vmul.f32 %v9745_v24, %v9887_v1  ;;  %v10067_v36 = vmul.f32 %v9748_v0, %v9892_v18 }
 0x121   :  { %19931 = vst [vmem:[#allocation93_spill] sm:$0xff] %v9887_v1  ;;  %19932 = vst [vmem:[#allocation94_spill] sm:$0xff] %v9892_v18  ;;  %v9987_v37 = vld [vmem:[%s18683_s0 + $0x7a0] sm:$0xfe]  ;;  %v9992_v57 = vld [vmem:[%s18683_s0 + $0x7a8] sm:$0xfe]  ;;  %v10071_v16 = vmul.f32 %v9745_v24, %v9897_v58  ;;  %v10075_v34 = vmul.f32 %v9748_v0, %v9902_v49  ;;  %v10102_v3 = vmul.f32 %v9745_v24, %v9933_v54 }
 0x122   :  { %19933 = vst [vmem:[#allocation95_spill] sm:$0xff] %v9897_v58  ;;  %19934 = vst [vmem:[#allocation96_spill] sm:$0xff] %v9902_v49  ;;  %v9997_v20 = vld [vmem:[%s18683_s0 + $0x7b0] sm:$0x1]  ;;  %v10018_v19 = vld [vmem:[%s18683_s0 + $0x7b8] sm:$0x1]  ;;  %v10094_v58 = vmul.f32 %v9745_v24, %v9923_v31  ;;  %v10098_v49 = vmul.f32 %v9748_v0, %v9928_v41  ;;  %v10106_v42 = vmul.f32 %v9748_v0, %v9938_v35 }
 0x123   :  { %19935 = vst [vmem:[#allocation97_spill] sm:$0xff] %v9923_v31  ;;  %19936 = vst [vmem:[#allocation98_spill] sm:$0xff] %v9928_v41  ;;  %v10023_v7 = vld [vmem:[%s18683_s0 + $0x7c0] sm:$0xfe]  ;;  %v10028_v48 = vld [vmem:[%s18683_s0 + $0x7c8] sm:$0xfe]  ;;  %v10130_v10 = vmul.f32 %v9745_v24, %v1058_v53  ;;  %v10133_v38 = vmul.f32 %v9748_v0, %v1059_v45  ;;  %v10152_v53 = vmul.f32 %v9745_v24, %v9987_v37 }
 0x124   :  { %19937 = vst [vmem:[#allocation99_spill] sm:$0xff] %v9933_v54  ;;  %19938 = vst [vmem:[#allocation100_spill] sm:$0xff] %v9938_v35  ;;  %v10049_v4 = vld [vmem:[%s18683_s0 + $0x7d0] sm:$0x1]  ;;  %v10054_v61 = vld [vmem:[%s18683_s0 + $0x7d8] sm:$0x1]  ;;  %v10124_v54 = vmul.f32 %v9745_v24, %v1056_v27  ;;  %v10127_v35 = vmul.f32 %v9748_v0, %v1057_v62  ;;  %v10156_v45 = vmul.f32 %v9748_v0, %v9992_v57 }
 0x125   :  { %19939 = vst [vmem:[#allocation101_spill] sm:$0xff] %v9987_v37  ;;  %19940 = vst [vmem:[#allocation102_spill] sm:$0xff] %v9992_v57  ;;  %v10059_v40 = vld [vmem:[%s18683_s0 + $0x7e0] sm:$0xfe]  ;;  %v10080_v22 = vld [vmem:[%s18683_s0 + $0x7e8] sm:$0xfe]  ;;  %v10160_v27 = vmul.f32 %v9745_v24, %v9997_v20  ;;  %v10164_v63 = vmul.f32 %v9748_v0, %v10018_v19  ;;  %v10191_v11 = vmul.f32 %v9745_v24, %v10049_v4 }
 0x126   :  { %19941 = vst [vmem:[#allocation103_spill] sm:$0xff] %v9997_v20  ;;  %19942 = vst [vmem:[#allocation104_spill] sm:$0xff] %v10018_v19  ;;  %v10085_v1 = vld [vmem:[%s18683_s0 + $0x7f0] sm:$0x1]  ;;  %v10090_v18 = vld [vmem:[%s18683_s0 + $0x7f8] sm:$0x1]  ;;  %v10183_v20 = vmul.f32 %v9745_v24, %v10023_v7  ;;  %v10187_v19 = vmul.f32 %v9748_v0, %v10028_v48  ;;  %v10195_v33 = vmul.f32 %v9748_v0, %v10054_v61 }
 0x127   :  { %19943 = vst [vmem:[#allocation105_spill] sm:$0xff] %v10023_v7  ;;  %19944 = vst [vmem:[#allocation106_spill] sm:$0xff] %v10028_v48  ;;  %v10111_v47 = vld [vmem:[%s18683_s0 + $0x800] sm:$0xfe]  ;;  %v10116_v31 = vld [vmem:[%s18683_s0 + $0x808] sm:$0xfe] }
 0x128   :  { %19945 = vst [vmem:[#allocation107_spill] sm:$0xff] %v10049_v4  ;;  %19946 = vst [vmem:[#allocation108_spill] sm:$0xff] %v10054_v61  ;;  %v10121_v41 = vld [vmem:[%s18683_s0 + $0x810] sm:$0x1]  ;;  %v10138_v26 = vld [vmem:[%s18683_s0 + $0x818] sm:$0x1]  ;;  %v10214_v4 = vmul.f32 %v9745_v24, %v10059_v40  ;;  %v10218_v61 = vmul.f32 %v9748_v0, %v10080_v22 }
 0x129   :  { %19947 = vst [vmem:[#allocation109_spill] sm:$0xff] %v10059_v40  ;;  %19948 = vst [vmem:[#allocation110_spill] sm:$0xff] %v10080_v22  ;;  %v10143_v55 = vld [vmem:[%s18683_s0 + $0x820] sm:$0xfe]  ;;  %v10148_v62 = vld [vmem:[%s18683_s0 + $0x828] sm:$0xfe]  ;;  %v10234_v40 = vmul.f32 %v9748_v0, %v10116_v31  ;;  %v10238_v22 = vmul.f32 %v9745_v24, %v10121_v41 }
 0x12a   :  { %19949 = vst [vmem:[#allocation111_spill] sm:$0xff] %v10085_v1  ;;  %19950 = vst [vmem:[#allocation112_spill] sm:$0xff] %v10090_v18  ;;  %v10169_v30 = vld [vmem:[%s18683_s0 + $0x830] sm:$0x1]  ;;  %v10174_v37 = vld [vmem:[%s18683_s0 + $0x838] sm:$0x1] }
 0x12b   :  { %19951 = vst [vmem:[#allocation113_spill] sm:$0xff] %v10111_v47  ;;  %19952 = vst [vmem:[#allocation114_spill] sm:$0xff] %v10116_v31  ;;  %v10179_v57 = vld [vmem:[%s18683_s0 + $0x840] sm:$0xfe]  ;;  %v10200_v43 = vld [vmem:[%s18683_s0 + $0x848] sm:$0xfe]  ;;  %v10254_v31 = vmul.f32 %v9745_v24, %v10169_v30 }
 0x12c   :  { %19953 = vst [vmem:[#allocation115_spill] sm:$0xff] %v10121_v41  ;;  %19954 = vst [vmem:[#allocation116_spill] sm:$0xff] %v10138_v26  ;;  %v10205_v7 = vld [vmem:[%s18683_s0 + $0x850] sm:$0x1]  ;;  %v10210_v48 = vld [vmem:[%s18683_s0 + $0x858] sm:$0x1]  ;;  %v10258_v41 = vmul.f32 %v9748_v0, %v10174_v37 }
 0x12d   :  { %19955 = vst [vmem:[#allocation117_spill] sm:$0xff] %v10143_v55  ;;  %19956 = vst [vmem:[#allocation118_spill] sm:$0xff] %v10148_v62 }
 0x12e   :  { %19957 = vst [vmem:[#allocation119_spill] sm:$0xff] %v10169_v30  ;;  %19958 = vst [vmem:[#allocation120_spill] sm:$0xff] %v10174_v37  ;;  %v10276_v30 = vmul.f32 %v9748_v0, %v10200_v43  ;;  %v10280_v37 = vmul.f32 %v9745_v24, %v10205_v7 }
 0x12f   :  { %19959 = vst [vmem:[#allocation121_spill] sm:$0xff] %v10179_v57  ;;  %19960 = vst [vmem:[#allocation122_spill] sm:$0xff] %v10187_v19  ;;  %v10226_v19 = vmul.f32 %v9748_v0, %v10090_v18  ;;  %v10246_v18 = vmul.f32 %v9745_v24, %v10143_v55  ;;  %v10268_v55 = vld [vmem:[%s18683_s0 + $0x868] sm:$0xfe] }
 0x130   :  { %19961 = vst [vmem:[#allocation123_spill] sm:$0xff] %v10191_v11  ;;  %19962 = vst [vmem:[#allocation124_spill] sm:$0xff] %v10195_v33  ;;  %v10222_v33 = vmul.f32 %v9745_v24, %v10085_v1  ;;  %v10230_v11 = vmul.f32 %v9745_v24, %v10111_v47  ;;  %v10242_v1 = vmul.f32 %v9748_v0, %v10138_v26  ;;  %v10263_v26 = vld [vmem:[%s18683_s0 + $0x860] sm:$0xfe] }
 0x131   :  { %19963 = vst [vmem:[#allocation125_spill] sm:$0xff] %v10200_v43  ;;  %19964 = vst [vmem:[#allocation126_spill] sm:$0xff] %v10205_v7  ;;  %v10250_v47 = vmul.f32 %v9748_v0, %v10148_v62  ;;  %v10272_v62 = vmul.f32 %v9745_v24, %v10179_v57  ;;  %v1535_v57 = vrot.slane %v9873_v23, 1  ;;  %v1538_v43 = vrot.slane %v9876_v15, 1  ;;  %v10298_v7 = vld [vmem:[%s18683_s0 + $0x878] sm:$0x1] }
 0x132   :  { %19965 = vst [vmem:[#allocation127_spill] sm:$0xff] %v10210_v48  ;;  %19966 = vst [vmem:[#allocation128_spill] sm:$0xff] %v10246_v18  ;;  %v1547_v23 = vrot.slane %v9942_v5, 1  ;;  %v1550_v15 = vrot.slane %v9946_v17, 1  ;;  %v10310_v18 = vmul.f32 %v9745_v24, %v10263_v26  ;;  %v1557_v17 = vrot.slane %v9982_v2, 1 }
 0x133   :  { %19967 = vst [vmem:[#allocation129_spill] sm:$0xff] %v10250_v47  ;;  %19968 = vst [vmem:[#allocation130_spill] sm:$0xff] %v10254_v31  ;;  %v10289_v47 = vld [vmem:[%s18683_s0 + $0x870] sm:$0x1]  ;;  %v1545_v31 = vrot.slane %v9918_v52, 1  ;;  %v1554_v52 = vrot.slane %v9978_v12, 1 }
 0x134   :  { %19969 = vst [vmem:[#allocation131_spill] sm:$0xff] %v10258_v41  ;;  %19970 = vst [vmem:[#allocation132_spill] sm:$0xff] %v10263_v26  ;;  %v10284_v41 = vmul.f32 %v9748_v0, %v10210_v48  ;;  %v1541_v48 = vrot.slane %v9906_v39, 1  ;;  %v10314_v39 = vmul.f32 %v9748_v0, %v10268_v55  ;;  %v10320_v5 = vmul.f32 %v9745_v24, %v10289_v47 }
 0x135   :  { %19971 = vst [vmem:[#allocation133_spill] sm:$0xff] %v10268_v55  ;;  %19972 = vst [vmem:[#allocation134_spill] sm:$0xff] %v10272_v62  ;;  %v1536_v62 = vrot.slane %v9879_v44, 1  ;;  %v1548_v44 = vrot.slane %v9950_v46, 1  ;;  %v10324_v46 = vmul.f32 %v9748_v0, %v10298_v7  ;;  %v1559_v2 = vrot.slane %v10001_v60, 1 }
 0x136   :  { %19973 = vst [vmem:[#allocation135_spill] sm:$0xff] %v10276_v30  ;;  %19974 = vst [vmem:[#allocation136_spill] sm:$0xff] %v10280_v37  ;;  %v1539_v30 = vrot.slane %v9882_v28, 1  ;;  %v1544_v37 = vrot.slane %v9910_v50, 1  ;;  %v1551_v28 = vrot.slane %v9954_v32, 1  ;;  %v1556_v32 = vrot.slane %v9974_v59, 1 }
 0x137   :  { %19975 = vst [vmem:[#allocation137_spill] sm:$0xff] %v10284_v41  ;;  %19976 = vst [vmem:[#allocation138_spill] sm:$0xff] %v10289_v47  ;;  %v1542_v41 = vrot.slane %v9914_v13, 1  ;;  %v1553_v13 = vrot.slane %v9970_v51, 1  ;;  %v10329_v50 = vsel %vm1233_vm0, %v1535_v57, %v1536_v62  ;;  %v10341_v51 = vsel %vm1233_vm0, %v1547_v23, %v1548_v44 }
 0x138   :  { %19977 = vst [vmem:[#allocation139_spill] sm:$0xff] %v10298_v7  ;;  %v10332_v55 = vsel %vm1233_vm0, %v1538_v43, %v1539_v30  ;;  %v10338_v24 = vsel %vm1233_vm0, %v1544_v37, %v1545_v31  ;;  %v10344_v0 = vsel %vm1233_vm0, %v1550_v15, %v1551_v28  ;;  %v1560_v59 = vrot.slane %v10009_v29, 1 }
 0x139   :  { %v10335_v12 = vsel %vm1233_vm0, %v1541_v48, %v1542_v41  ;;  %v10349_v57 = vsel %vm1233_vm0, %v1553_v13, %v1554_v52  ;;  %v1562_v43 = vrot.slane %v10005_v21, 1  ;;  %v1563_v48 = vrot.slane %v10013_v9, 1  ;;  %v19978_v52 = vld [vmem:[#allocation123_spill] sm:$0xff] }
 0x13a   :  { %v1565_v30 = vrot.slane %v10032_v6, 1  ;;  %v10355_v37 = vsel %vm1233_vm0, %v1556_v32, %v1557_v17  ;;  %v1566_v41 = vrot.slane %v10040_v8, 1  ;;  %v1568_v31 = vrot.slane %v10036_v56, 1  ;;  %v19979_v17 = vld [vmem:[#allocation122_spill] sm:$0xff] }
 0x13b   :  { %v1569_v60 = vrot.slane %v10044_v25, 1  ;;  %v1571_v29 = vrot.slane %v10063_v14, 1  ;;  %v1572_v62 = vrot.slane %v10071_v16, 1  ;;  %v1574_v23 = vrot.slane %v10067_v36, 1 }
 0x13c   :  { %v1575_v21 = vrot.slane %v10075_v34, 1  ;;  %v1577_v9 = vrot.slane %v10094_v58, 1  ;;  %v1578_v6 = vrot.slane %v10102_v3, 1  ;;  %v1580_v44 = vrot.slane %v10098_v49, 1 }
 0x13d   :  { %v1581_v8 = vrot.slane %v10106_v42, 1  ;;  %v1583_v56 = vrot.slane %v10124_v54, 1  ;;  %v1584_v25 = vrot.slane %v10130_v10, 1  ;;  %v1586_v14 = vrot.slane %v10127_v35, 1 }
 0x13e   :  { %v1587_v16 = vrot.slane %v10133_v38, 1  ;;  %v1561_v36 = vsel %vm1233_vm0, %v1559_v2, %v1560_v59  ;;  %v1564_v34 = vsel %vm1233_vm0, %v1562_v43, %v1563_v48  ;;  %v1589_v58 = vrot.slane %v10152_v53, 1  ;;  %v19980_v2 = vld [vmem:[#allocation124_spill] sm:$0xff] }
 0x13f   :  { %v1590_v3 = vrot.slane %v10160_v27, 1  ;;  %v1567_v49 = vsel %vm1233_vm0, %v1565_v30, %v1566_v41  ;;  %v1570_v42 = vsel %vm1233_vm0, %v1568_v31, %v1569_v60  ;;  %v1592_v54 = vrot.slane %v10156_v45, 1 }
 0x140   :  { %v1593_v10 = vrot.slane %v10164_v63, 1  ;;  %v1573_v35 = vsel %vm1233_vm0, %v1571_v29, %v1572_v62  ;;  %v1576_v38 = vsel %vm1233_vm0, %v1574_v23, %v1575_v21  ;;  %v1579_v15 = vsel %vm1233_vm0, %v1577_v9, %v1578_v6  ;;  %v19981_v23 = vld [vmem:[#allocation128_spill] sm:$0xff]  ;;  %v19982_v9 = vld [vmem:[#allocation130_spill] sm:$0xff]  ;;  %v19983_v6 = vld [vmem:[#allocation129_spill] sm:$0xff] }
 0x141   :  { %v1582_v28 = vsel %vm1233_vm0, %v1580_v44, %v1581_v8  ;;  %v1585_v53 = vsel %vm1233_vm0, %v1583_v56, %v1584_v25  ;;  %v1588_v27 = vsel %vm1233_vm0, %v1586_v14, %v1587_v16  ;;  %v1595_v13 = vrot.slane %v10183_v20, 1  ;;  %v19984_v8 = vld [vmem:[#allocation131_spill] sm:$0xff]  ;;  %v19985_v56 = vld [vmem:[#allocation134_spill] sm:$0xff]  ;;  %v19986_v25 = vld [vmem:[#allocation136_spill] sm:$0xff] }
 0x142   :  { %v1596_v32 = vrot.slane %v19978_v52, 1  ;;  %v1591_v45 = vsel %vm1233_vm0, %v1589_v58, %v1590_v3  ;;  %v1598_v63 = vrot.slane %v19979_v17, 1  ;;  %v1599_v59 = vrot.slane %v19980_v2, 1  ;;  %v19987_v14 = vld [vmem:[#allocation135_spill] sm:$0xff]  ;;  %v19988_v16 = vld [vmem:[#allocation137_spill] sm:$0xff] }
 0x143   :  { %v1601_v43 = vrot.slane %v10214_v4, 1  ;;  %v1594_v48 = vsel %vm1233_vm0, %v1592_v54, %v1593_v10  ;;  %v1602_v30 = vrot.slane %v10222_v33, 1  ;;  %v1604_v41 = vrot.slane %v10218_v61, 1 }
 0x144   :  { %v1605_v31 = vrot.slane %v10226_v19, 1  ;;  %v1607_v20 = vrot.slane %v10230_v11, 1  ;;  %v1608_v60 = vrot.slane %v10238_v22, 1  ;;  %v1610_v29 = vrot.slane %v10234_v40, 1 }
 0x145   :  { %v1611_v62 = vrot.slane %v10242_v1, 1  ;;  %v1613_v21 = vrot.slane %v19981_v23, 1  ;;  %v1614_v4 = vrot.slane %v19982_v9, 1  ;;  %v1616_v44 = vrot.slane %v19983_v6, 1 }
 0x146   :  { %v1617_v33 = vrot.slane %v19984_v8, 1  ;;  %v1619_v61 = vrot.slane %v19985_v56, 1  ;;  %v1620_v19 = vrot.slane %v19986_v25, 1  ;;  %v1622_v11 = vrot.slane %v19987_v14, 1  ;;  %v20009_v8 = vld [vmem:[#allocation29_spill] sm:$0xff]  ;;  %v20011_v56 = vld [vmem:[#allocation32_spill] sm:$0xff] }
 0x147   :  { %v1623_v22 = vrot.slane %v19988_v16, 1  ;;  %v1597_v40 = vsel %vm1233_vm0, %v1595_v13, %v1596_v32  ;;  %v1600_v1 = vsel %vm1233_vm0, %v1598_v63, %v1599_v59  ;;  %v1625_v58 = vrot.slane %v10310_v18, 1  ;;  %v19989_v63 = vld [vmem:[#allocation18_spill] sm:$0xff] }
 0x148   :  { %v1626_v3 = vrot.slane %v10320_v5, 1  ;;  %v1603_v54 = vsel %vm1233_vm0, %v1601_v43, %v1602_v30  ;;  %v1606_v10 = vsel %vm1233_vm0, %v1604_v41, %v1605_v31  ;;  %v1628_v52 = vrot.slane %v10314_v39, 1  ;;  %v19991_v43 = vld [vmem:[#allocation19_spill] sm:$0xff]  ;;  %v19993_v30 = vld [vmem:[#allocation22_spill] sm:$0xff]  ;;  %v19995_v31 = vld [vmem:[#allocation53_spill] sm:$0xff] }
 0x149   :  { %v1629_v17 = vrot.slane %v10324_v46, 1  ;;  %v1609_v2 = vsel %vm1233_vm0, %v1607_v20, %v1608_v60  ;;  %v1612_v23 = vsel %vm1233_vm0, %v1610_v29, %v1611_v62  ;;  %v1615_v13 = vsel %vm1233_vm0, %v1613_v21, %v1614_v4  ;;  %v19997_v60 = vld [vmem:[#allocation61_spill] sm:$0xff]  ;;  %v19999_v62 = vld [vmem:[#allocation11_spill] sm:$0xff]  ;;  %v20001_v21 = vld [vmem:[#allocation78_spill] sm:$0xff] }
 0x14a   :  { %v1618_v32 = vsel %vm1233_vm0, %v1616_v44, %v1617_v33  ;;  %v1621_v18 = vsel %vm1233_vm0, %v1619_v61, %v1620_v19  ;;  %v1624_v5 = vsel %vm1233_vm0, %v1622_v11, %v1623_v22  ;;  %v10424_v59 = vadd.f32 %v10329_v50, %v19989_v63  ;;  %v20007_v44 = vld [vmem:[#allocation28_spill] sm:$0xff]  ;;  %v20013_v61 = vld [vmem:[#allocation30_spill] sm:$0xff] }
 0x14b   :  { %v10428_v39 = vadd.f32 %v10332_v55, %v19991_v43  ;;  %v1627_v46 = vsel %vm1233_vm0, %v1625_v58, %v1626_v3  ;;  %v10433_v41 = vadd.f32 %v10335_v12, %v19993_v30  ;;  %v10437_v20 = vadd.f32 %v10338_v24, %v19995_v31  ;;  %v20003_v12 = vld [vmem:[#allocation13_spill] sm:$0xff]  ;;  %v20005_v24 = vld [vmem:[#allocation12_spill] sm:$0xff] }
 0x14c   :  { %19990 = vst [vmem:[#allocation123_spill] sm:$0xff] %v10424_v59  ;;  %v10441_v29 = vadd.f32 %v10341_v51, %v19997_v60  ;;  %v1630_v50 = vsel %vm1233_vm0, %v1628_v52, %v1629_v17  ;;  %v10446_v55 = vadd.f32 %v10344_v0, %v19999_v62  ;;  %v10450_v9 = vadd.f32 %v10349_v57, %v20001_v21  ;;  %v20015_v57 = vld [vmem:[#allocation40_spill] sm:$0xff] }
 0x14d   :  { %19992 = vst [vmem:[#allocation122_spill] sm:$0xff] %v10428_v39  ;;  %19994 = vst [vmem:[#allocation124_spill] sm:$0xff] %v10433_v41  ;;  %v10454_v4 = vadd.f32 %v10355_v37, %v20003_v12  ;;  %v10457_v6 = vadd.f32 %v1561_v36, %v20005_v24  ;;  %v10460_v51 = vadd.f32 %v1564_v34, %v20007_v44  ;;  %v20017_v37 = vld [vmem:[#allocation20_spill] sm:$0xff]  ;;  %v20019_v36 = vld [vmem:[#allocation21_spill] sm:$0xff] }
 0x14e   :  { %19996 = vst [vmem:[#allocation128_spill] sm:$0xff] %v10437_v20  ;;  %19998 = vst [vmem:[#allocation130_spill] sm:$0xff] %v10441_v29  ;;  %v10463_v33 = vadd.f32 %v1567_v49, %v20009_v8  ;;  %v10466_v0 = vadd.f32 %v1570_v42, %v20011_v56  ;;  %v10469_v25 = vadd.f32 %v1573_v35, %v20013_v61  ;;  %v20021_v34 = vld [vmem:[#allocation75_spill] sm:$0xff]  ;;  %v20023_v49 = vld [vmem:[#allocation8_spill] sm:$0xff] }
 0x14f   :  { %20000 = vst [vmem:[#allocation129_spill] sm:$0xff] %v10446_v55  ;;  %20002 = vst [vmem:[#allocation131_spill] sm:$0xff] %v10450_v9  ;;  %v10472_v19 = vadd.f32 %v1576_v38, %v20015_v57  ;;  %v10475_v14 = vadd.f32 %v1579_v15, %v20017_v37  ;;  %v10478_v11 = vadd.f32 %v1582_v28, %v20019_v36  ;;  %v20025_v42 = vld [vmem:[#allocation26_spill] sm:$0xff]  ;;  %v20027_v35 = vld [vmem:[#allocation27_spill] sm:$0xff] }
 0x150   :  { %20004 = vst [vmem:[#allocation134_spill] sm:$0xff] %v10454_v4  ;;  %20006 = vst [vmem:[#allocation136_spill] sm:$0xff] %v10457_v6  ;;  %v10481_v16 = vadd.f32 %v1585_v53, %v20021_v34  ;;  %v10484_v22 = vadd.f32 %v1588_v27, %v20023_v49  ;;  %v10487_v58 = vadd.f32 %v1591_v45, %v20025_v42  ;;  %v20029_v38 = vld [vmem:[#allocation33_spill] sm:$0xff]  ;;  %v20031_v15 = vld [vmem:[#allocation34_spill] sm:$0xff] }
 0x151   :  { %20008 = vst [vmem:[#allocation135_spill] sm:$0xff] %v10460_v51  ;;  %20010 = vst [vmem:[#allocation137_spill] sm:$0xff] %v10463_v33  ;;  %v10490_v3 = vadd.f32 %v1594_v48, %v20027_v35  ;;  %v10493_v52 = vadd.f32 %v1597_v40, %v20029_v38  ;;  %v10496_v17 = vadd.f32 %v1600_v1, %v20031_v15  ;;  %v20033_v28 = vld [vmem:[#allocation38_spill] sm:$0xff]  ;;  %v20037_v27 = vld [vmem:[#allocation48_spill] sm:$0xff] }
 0x152   :  { %20012 = vst [vmem:[#allocation18_spill] sm:$0xff] %v10466_v0  ;;  %20014 = vst [vmem:[#allocation19_spill] sm:$0xff] %v10469_v25  ;;  %v10499_v63 = vadd.f32 %v1603_v54, %v20033_v28  ;;  %v20035_v53 = vld [vmem:[#allocation42_spill] sm:$0xff]  ;;  %v10505_v30 = vadd.f32 %v1609_v2, %v20037_v27  ;;  %v20039_v45 = vld [vmem:[#allocation79_spill] sm:$0xff] }
 0x153   :  { %20016 = vst [vmem:[#allocation22_spill] sm:$0xff] %v10472_v19  ;;  %20018 = vst [vmem:[#allocation53_spill] sm:$0xff] %v10475_v14  ;;  %v10502_v43 = vadd.f32 %v1606_v10, %v20035_v53  ;;  %v10508_v31 = vadd.f32 %v1612_v23, %v20039_v45  ;;  %v20041_v48 = vld [vmem:[#allocation80_spill] sm:$0xff]  ;;  %v20043_v40 = vld [vmem:[#allocation66_spill] sm:$0xff] }
 0x154   :  { %20020 = vst [vmem:[#allocation61_spill] sm:$0xff] %v10478_v11  ;;  %20022 = vst [vmem:[#allocation11_spill] sm:$0xff] %v10481_v16  ;;  %v10511_v60 = vadd.f32 %v1615_v13, %v20041_v48  ;;  %v10514_v62 = vadd.f32 %v1618_v32, %v20043_v40  ;;  %v20045_v1 = vld [vmem:[#allocation73_spill] sm:$0xff]  ;;  %v20047_v54 = vld [vmem:[#allocation74_spill] sm:$0xff] }
 0x155   :  { %20024 = vst [vmem:[#allocation78_spill] sm:$0xff] %v10484_v22  ;;  %20026 = vst [vmem:[#allocation13_spill] sm:$0xff] %v10487_v58  ;;  %v10517_v21 = vadd.f32 %v1621_v18, %v20045_v1  ;;  %v10520_v12 = vadd.f32 %v1624_v5, %v20047_v54  ;;  %v20049_v10 = vld [vmem:[#allocation24_spill] sm:$0xff]  ;;  %v20051_v2 = vld [vmem:[#allocation23_spill] sm:$0xff] }
 0x156   :  { %20028 = vst [vmem:[#allocation12_spill] sm:$0xff] %v10490_v3  ;;  %20030 = vst [vmem:[#allocation28_spill] sm:$0xff] %v10493_v52  ;;  %v10523_v24 = vadd.f32 %v1627_v46, %v20049_v10  ;;  %v10526_v44 = vadd.f32 %v1630_v50, %v20051_v2  ;;  %v6578_v23 = vld [vmem:[%s18683_s0 + $0x20] sm:$0xfe]  ;;  %v6579_v32 = vld [vmem:[%s18683_s0 + $0x28] sm:$0xfe] }
 0x157   :  { %20032 = vst [vmem:[#allocation29_spill] sm:$0xff] %v10496_v17  ;;  %20034 = vst [vmem:[#allocation32_spill] sm:$0xff] %v10499_v63  ;;  %v20053_v13 = vld [vmem:[#allocation85_spill] sm:$0xff]  ;;  %v20054_v18 = vld [vmem:[#allocation86_spill] sm:$0xff] }
 0x158   :  { %20036 = vst [vmem:[#allocation30_spill] sm:$0xff] %v10502_v43  ;;  %20038 = vst [vmem:[#allocation40_spill] sm:$0xff] %v10505_v30  ;;  %v10532_v8 = vmul.f32 %v6578_v23, %v20053_v13  ;;  %v10538_v5 = vmul.f32 %v6579_v32, %v20054_v18  ;;  %v6580_v46 = vld [vmem:[%s18683_s0 + $0x30] sm:$0x1]  ;;  %v6581_v56 = vld [vmem:[%s18683_s0 + $0x38] sm:$0x1] }
 0x159   :  { %20040 = vst [vmem:[#allocation20_spill] sm:$0xff] %v10508_v31  ;;  %20042 = vst [vmem:[#allocation21_spill] sm:$0xff] %v10511_v60  ;;  %v10544_v50 = vmul.f32 %v6580_v46, %v20053_v13  ;;  %v10550_v61 = vmul.f32 %v6581_v56, %v20054_v18  ;;  %v10555_v57 = vld [vmem:[%s18683_s0 + $0x40] sm:$0xfe]  ;;  %v10564_v36 = vld [vmem:[%s18683_s0 + $0x48] sm:$0xfe] }
 0x15a   :  { %20044 = vst [vmem:[#allocation75_spill] sm:$0xff] %v10514_v62  ;;  %20046 = vst [vmem:[#allocation8_spill] sm:$0xff] %v10517_v21  ;;  %v10559_v37 = vmul.f32 %v10555_v57, %v20053_v13  ;;  %v10568_v34 = vmul.f32 %v10564_v36, %v20054_v18  ;;  %v10573_v49 = vld [vmem:[%s18683_s0 + $0x50] sm:$0x1]  ;;  %v10582_v35 = vld [vmem:[%s18683_s0 + $0x58] sm:$0x1] }
 0x15b   :  { %20048 = vst [vmem:[#allocation26_spill] sm:$0xff] %v10520_v12  ;;  %20050 = vst [vmem:[#allocation27_spill] sm:$0xff] %v10523_v24  ;;  %v10577_v42 = vmul.f32 %v10573_v49, %v20053_v13  ;;  %v10586_v38 = vmul.f32 %v10582_v35, %v20054_v18  ;;  %v10591_v15 = vld [vmem:[%s18683_s0 + $0x60] sm:$0xfe]  ;;  %v10600_v53 = vld [vmem:[%s18683_s0 + $0x68] sm:$0xfe] }
 0x15c   :  { %20052 = vst [vmem:[#allocation33_spill] sm:$0xff] %v10526_v44  ;;  %20055 = vst [vmem:[#allocation34_spill] sm:$0xff] %v10555_v57  ;;  %v10595_v28 = vmul.f32 %v10591_v15, %v20053_v13  ;;  %v10604_v27 = vmul.f32 %v10600_v53, %v20054_v18  ;;  %v10609_v45 = vld [vmem:[%s18683_s0 + $0x70] sm:$0x1]  ;;  %v10618_v40 = vld [vmem:[%s18683_s0 + $0x78] sm:$0x1] }
 0x15d   :  { %20056 = vst [vmem:[#allocation38_spill] sm:$0xff] %v10564_v36  ;;  %20057 = vst [vmem:[#allocation42_spill] sm:$0xff] %v10573_v49  ;;  %v10613_v48 = vmul.f32 %v10609_v45, %v20053_v13  ;;  %v10622_v1 = vmul.f32 %v10618_v40, %v20054_v18  ;;  %v10627_v54 = vld [vmem:[%s18683_s0 + $0x100] sm:$0xfe]  ;;  %v10641_v23 = vld [vmem:[%s18683_s0 + $0x88] sm:$0xfe] }
 0x15e   :  { %20058 = vst [vmem:[#allocation48_spill] sm:$0xff] %v10582_v35  ;;  %20059 = vst [vmem:[#allocation79_spill] sm:$0xff] %v10591_v15  ;;  %v10632_v10 = vld [vmem:[%s18683_s0 + $0x80] sm:$0xfe]  ;;  %v10645_v32 = vmul.f32 %v10641_v23, %v20054_v18  ;;  %v10650_v46 = vld [vmem:[%s18683_s0 + $0x90] sm:$0x1]  ;;  %v10785_v60 = vmul.f32 %v20053_v13, %v10627_v54 }
 0x15f   :  { %20060 = vst [vmem:[#allocation80_spill] sm:$0xff] %v10600_v53  ;;  %20061 = vst [vmem:[#allocation66_spill] sm:$0xff] %v10609_v45  ;;  %v10636_v2 = vmul.f32 %v10632_v10, %v20053_v13  ;;  %v10654_v56 = vmul.f32 %v10650_v46, %v20053_v13  ;;  %v10673_v45 = vld [vmem:[%s18683_s0 + $0x110] sm:$0x1]  ;;  %v10692_v15 = vld [vmem:[%s18683_s0 + $0xa8] sm:$0xfe] }
 0x160   :  { %20062 = vst [vmem:[#allocation73_spill] sm:$0xff] %v10618_v40  ;;  %20063 = vst [vmem:[#allocation74_spill] sm:$0xff] %v10627_v54  ;;  %v10696_v35 = vmul.f32 %v10692_v15, %v20054_v18  ;;  %v10701_v49 = vld [vmem:[%s18683_s0 + $0xb0] sm:$0x1]  ;;  %v10793_v31 = vmul.f32 %v20053_v13, %v10673_v45  ;;  %v20083_v30 = vld [vmem:[#allocation41_spill] sm:$0xff] }
 0x161   :  { %20064 = vst [vmem:[#allocation24_spill] sm:$0xff] %v10632_v10  ;;  %20065 = vst [vmem:[#allocation23_spill] sm:$0xff] %v10641_v23  ;;  %v10659_v10 = vld [vmem:[%s18683_s0 + $0x98] sm:$0x1]  ;;  %v10668_v23 = vld [vmem:[%s18683_s0 + $0x108] sm:$0xfe]  ;;  %v10705_v36 = vmul.f32 %v10701_v49, %v20053_v13 }
 0x162   :  { %20066 = vst [vmem:[#allocation85_spill] sm:$0xff] %v10650_v46  ;;  %20067 = vst [vmem:[#allocation86_spill] sm:$0xff] %v10659_v10  ;;  %v10663_v40 = vmul.f32 %v10659_v10, %v20054_v18  ;;  %v10678_v46 = vld [vmem:[%s18683_s0 + $0x118] sm:$0x1]  ;;  %v10683_v10 = vld [vmem:[%s18683_s0 + $0xa0] sm:$0xfe] }
 0x163   :  { %20068 = vst [vmem:[#allocation140_spill] sm:$0xff] %v10668_v23  ;;  %20069 = vst [vmem:[#allocation141_spill] sm:$0xff] %v10673_v45  ;;  %v10687_v53 = vmul.f32 %v10683_v10, %v20053_v13  ;;  %v20084_v43 = vld [vmem:[#allocation55_spill] sm:$0xff]  ;;  %v20085_v63 = vld [vmem:[#allocation45_spill] sm:$0xff] }
 0x164   :  { %20070 = vst [vmem:[#allocation142_spill] sm:$0xff] %v10678_v46  ;;  %20071 = vst [vmem:[#allocation143_spill] sm:$0xff] %v10683_v10  ;;  %v10710_v10 = vld [vmem:[%s18683_s0 + $0xb8] sm:$0x1]  ;;  %v10805_v54 = vmul.f32 %v20054_v18, %v20084_v43  ;;  %v20087_v52 = vld [vmem:[#allocation62_spill] sm:$0xff] }
 0x165   :  { %20072 = vst [vmem:[#allocation144_spill] sm:$0xff] %v10692_v15  ;;  %20073 = vst [vmem:[#allocation145_spill] sm:$0xff] %v10701_v49  ;;  %v10714_v57 = vmul.f32 %v10710_v10, %v20054_v18  ;;  %v10719_v15 = vld [vmem:[%s18683_s0 + $0xc0] sm:$0xfe]  ;;  %v10728_v49 = vld [vmem:[%s18683_s0 + $0xc8] sm:$0xfe] }
 0x166   :  { %20074 = vst [vmem:[#allocation146_spill] sm:$0xff] %v10710_v10  ;;  %20075 = vst [vmem:[#allocation147_spill] sm:$0xff] %v10719_v15  ;;  %v10723_v7 = vmul.f32 %v10719_v15, %v20053_v13  ;;  %v10732_v47 = vmul.f32 %v10728_v49, %v20054_v18  ;;  %v10737_v10 = vld [vmem:[%s18683_s0 + $0xd0] sm:$0x1]  ;;  %v10746_v15 = vld [vmem:[%s18683_s0 + $0xd8] sm:$0x1] }
 0x167   :  { %20076 = vst [vmem:[#allocation148_spill] sm:$0xff] %v10728_v49  ;;  %20077 = vst [vmem:[#allocation149_spill] sm:$0xff] %v10737_v10  ;;  %v10741_v26 = vmul.f32 %v10737_v10, %v20053_v13  ;;  %v10750_v44 = vmul.f32 %v10746_v15, %v20054_v18  ;;  %v10755_v49 = vld [vmem:[%s18683_s0 + $0xe0] sm:$0xfe]  ;;  %v10764_v10 = vld [vmem:[%s18683_s0 + $0xe8] sm:$0xfe] }
 0x168   :  { %20078 = vst [vmem:[#allocation150_spill] sm:$0xff] %v10746_v15  ;;  %20079 = vst [vmem:[#allocation151_spill] sm:$0xff] %v10755_v49  ;;  %v10759_v24 = vmul.f32 %v10755_v49, %v20053_v13  ;;  %v10768_v12 = vmul.f32 %v10764_v10, %v20054_v18  ;;  %v10773_v15 = vld [vmem:[%s18683_s0 + $0xf0] sm:$0x1]  ;;  %v20086_v17 = vld [vmem:[#allocation60_spill] sm:$0xff] }
 0x169   :  { %20080 = vst [vmem:[#allocation152_spill] sm:$0xff] %v10764_v10  ;;  %20081 = vst [vmem:[#allocation153_spill] sm:$0xff] %v10773_v15  ;;  %v10777_v21 = vmul.f32 %v10773_v15, %v20053_v13  ;;  %v20082_v49 = vld [vmem:[#allocation31_spill] sm:$0xff]  ;;  %v10789_v10 = vmul.f32 %v20054_v18, %v10668_v23  ;;  %v10797_v15 = vmul.f32 %v20054_v18, %v10678_v46  ;;  %v20089_v58 = vld [vmem:[#allocation64_spill] sm:$0xff] }
 0x16a   :  { %v10781_v62 = vmul.f32 %v20054_v18, %v20082_v49  ;;  %v10801_v49 = vmul.f32 %v20053_v13, %v20083_v30  ;;  %v10809_v23 = vmul.f32 %v20053_v13, %v20085_v63  ;;  %v10813_v45 = vmul.f32 %v20054_v18, %v20086_v17  ;;  %v20088_v3 = vld [vmem:[#allocation63_spill] sm:$0xff]  ;;  %v20090_v22 = vld [vmem:[#allocation65_spill] sm:$0xff]  ;;  %v20091_v16 = vld [vmem:[#allocation70_spill] sm:$0xff] }
 0x16b   :  { %v10817_v46 = vmul.f32 %v20053_v13, %v20087_v52  ;;  %v10821_v30 = vmul.f32 %v20054_v18, %v20088_v3  ;;  %v10825_v43 = vmul.f32 %v20053_v13, %v20089_v58  ;;  %v10829_v63 = vmul.f32 %v20054_v18, %v20090_v22  ;;  %v20092_v11 = vld [vmem:[#allocation71_spill] sm:$0xff]  ;;  %v20093_v14 = vld [vmem:[#allocation72_spill] sm:$0xff]  ;;  %v20094_v19 = vld [vmem:[#allocation25_spill] sm:$0xff] }
 0x16c   :  { %v10833_v17 = vmul.f32 %v20053_v13, %v20091_v16  ;;  %v10837_v52 = vmul.f32 %v20054_v18, %v20092_v11  ;;  %v10841_v3 = vmul.f32 %v20053_v13, %v20093_v14  ;;  %v10845_v58 = vmul.f32 %v20054_v18, %v20094_v19  ;;  %v20095_v25 = vld [vmem:[#allocation76_spill] sm:$0xff]  ;;  %v20096_v0 = vld [vmem:[#allocation49_spill] sm:$0xff]  ;;  %v20097_v33 = vld [vmem:[#allocation35_spill] sm:$0xff] }
 0x16d   :  { %v10849_v22 = vmul.f32 %v20053_v13, %v20095_v25  ;;  %v10853_v16 = vmul.f32 %v20054_v18, %v20096_v0  ;;  %v10857_v11 = vmul.f32 %v20053_v13, %v20097_v33  ;;  %v20098_v51 = vld [vmem:[#allocation54_spill] sm:$0xff]  ;;  %v20099_v6 = vld [vmem:[#allocation56_spill] sm:$0xff]  ;;  %v20100_v4 = vld [vmem:[#allocation57_spill] sm:$0xff] }
 0x16e   :  { %v10861_v14 = vmul.f32 %v20054_v18, %v20098_v51  ;;  %v10865_v19 = vmul.f32 %v20053_v13, %v20099_v6  ;;  %v10869_v25 = vmul.f32 %v20054_v18, %v20100_v4  ;;  %v20102_v9 = vld [vmem:[#allocation58_spill] sm:$0xff]  ;;  %v20104_v55 = vld [vmem:[#allocation59_spill] sm:$0xff]  ;;  %v20108_v20 = vld [vmem:[#allocation77_spill] sm:$0xff] }
 0x16f   :  { %v10873_v0 = vmul.f32 %v20053_v13, %v20102_v9  ;;  %v10877_v33 = vmul.f32 %v20054_v18, %v20104_v55  ;;  %v20106_v29 = vld [vmem:[#allocation10_spill] sm:$0xff]  ;;  %v10885_v6 = vmul.f32 %v20054_v18, %v20108_v20  ;;  %v10898_v55 = vld [vmem:[%s18683_s0 + $0x600] sm:$0xfe]  ;;  %v20116_v20 = vld [vmem:[#allocation51_spill] sm:$0xff] }
 0x170   :  { %20101 = vst [vmem:[#allocation31_spill] sm:$0xff] %v10869_v25  ;;  %v10881_v51 = vmul.f32 %v20053_v13, %v20106_v29  ;;  %v20110_v41 = vld [vmem:[#allocation14_spill] sm:$0xff]  ;;  %20114 = vst [vmem:[#allocation64_spill] sm:$0xff] %v10898_v55  ;;  %v10907_v59 = vmul.f32 %v20053_v13, %v20116_v20  ;;  %v1836_v20 = vrot.slane %v10532_v8, 1  ;;  %v1846_v25 = vrot.slane %v10586_v38, 1 }
 0x171   :  { %20103 = vst [vmem:[#allocation41_spill] sm:$0xff] %v10873_v0  ;;  %20105 = vst [vmem:[#allocation55_spill] sm:$0xff] %v10877_v33  ;;  %v10889_v4 = vmul.f32 %v20053_v13, %v20110_v41  ;;  %v20112_v39 = vld [vmem:[#allocation82_spill] sm:$0xff]  ;;  %v20118_v41 = vld [vmem:[#allocation15_spill] sm:$0xff]  ;;  %v1848_v8 = vrot.slane %v10595_v28, 1  ;;  %v10945_v0 = vmul.f32 %v20053_v13, %v10898_v55 }
 0x172   :  { %20107 = vst [vmem:[#allocation45_spill] sm:$0xff] %v10881_v51  ;;  %20109 = vst [vmem:[#allocation60_spill] sm:$0xff] %v10885_v6  ;;  %v10893_v9 = vmul.f32 %v20054_v18, %v20112_v39  ;;  %v10903_v29 = vld [vmem:[%s18683_s0 + $0x608] sm:$0xfe]  ;;  %v10911_v6 = vmul.f32 %v20054_v18, %v20118_v41  ;;  %v20120_v39 = vld [vmem:[#allocation16_spill] sm:$0xff]  ;;  %v1839_v41 = vrot.slane %v10538_v5, 1 }
 0x173   :  { %20111 = vst [vmem:[#allocation62_spill] sm:$0xff] %v10889_v4  ;;  %20115 = vst [vmem:[#allocation65_spill] sm:$0xff] %v10903_v29  ;;  %v20122_v4 = vld [vmem:[#allocation17_spill] sm:$0xff]  ;;  %v10924_v33 = vld [vmem:[%s18683_s0 + $0x610] sm:$0x1]  ;;  %v1851_v5 = vrot.slane %v10604_v27, 1 }
 0x174   :  { %20113 = vst [vmem:[#allocation63_spill] sm:$0xff] %v10893_v9  ;;  %20117 = vst [vmem:[#allocation70_spill] sm:$0xff] %v10907_v59  ;;  %v10915_v9 = vmul.f32 %v20053_v13, %v20120_v39  ;;  %v10919_v51 = vmul.f32 %v20054_v18, %v20122_v4  ;;  %v1837_v59 = vrot.slane %v10544_v50, 1  ;;  %v10933_v39 = vld [vmem:[%s18683_s0 + $0x618] sm:$0x1]  ;;  %v1842_v4 = vrot.slane %v10559_v37, 1 }
 0x175   :  { %20119 = vst [vmem:[#allocation71_spill] sm:$0xff] %v10911_v6  ;;  %20124 = vst [vmem:[#allocation76_spill] sm:$0xff] %v10924_v33  ;;  %v1840_v6 = vrot.slane %v10550_v61, 1  ;;  %v1849_v50 = vrot.slane %v10613_v48, 1  ;;  %v1852_v61 = vrot.slane %v10622_v1, 1  ;;  %v10949_v37 = vmul.f32 %v20054_v18, %v10903_v29 }
 0x176   :  { %20121 = vst [vmem:[#allocation72_spill] sm:$0xff] %v10915_v9  ;;  %20123 = vst [vmem:[#allocation25_spill] sm:$0xff] %v10919_v51  ;;  %v1843_v51 = vrot.slane %v10577_v42, 1  ;;  %v1845_v9 = vrot.slane %v10568_v34, 1  ;;  %v1854_v34 = vrot.slane %v10636_v2, 1  ;;  %v1855_v42 = vrot.slane %v10654_v56, 1 }
 0x177   :  { %20125 = vst [vmem:[#allocation49_spill] sm:$0xff] %v10933_v39  ;;  %v10955_v38 = vmul.f32 %v20053_v13, %v10924_v33  ;;  %v10959_v28 = vmul.f32 %v20054_v18, %v10933_v39  ;;  %v1857_v27 = vrot.slane %v10645_v32, 1  ;;  %v1858_v48 = vrot.slane %v10663_v40, 1  ;;  %v20223_v33 = vld [vmem:[#allocation93_spill] sm:$0xff] }
 0x178   :  { %v10964_v1 = vsel %vm1233_vm0, %v1836_v20, %v1837_v59  ;;  %v10967_v29 = vsel %vm1233_vm0, %v1839_v41, %v1840_v6  ;;  %v10970_v2 = vsel %vm1233_vm0, %v1842_v4, %v1843_v51  ;;  %v10973_v13 = vsel %vm1233_vm0, %v1845_v9, %v1846_v25 }
 0x179   :  { %v10976_v56 = vsel %vm1233_vm0, %v1848_v8, %v1849_v50  ;;  %v10979_v18 = vsel %vm1233_vm0, %v1851_v5, %v1852_v61  ;;  %v1860_v40 = vrot.slane %v10687_v53, 1  ;;  %v1861_v59 = vrot.slane %v10705_v36, 1 }
 0x17a   :  { %v10984_v32 = vsel %vm1233_vm0, %v1854_v34, %v1855_v42  ;;  %v1863_v6 = vrot.slane %v10696_v35, 1  ;;  %v1864_v51 = vrot.slane %v10714_v57, 1  ;;  %v1866_v25 = vrot.slane %v10723_v7, 1 }
 0x17b   :  { %v10990_v9 = vsel %vm1233_vm0, %v1857_v27, %v1858_v48  ;;  %v1867_v20 = vrot.slane %v10741_v26, 1  ;;  %v1869_v41 = vrot.slane %v10732_v47, 1  ;;  %v1870_v53 = vrot.slane %v10750_v44, 1 }
 0x17c   :  { %v1872_v36 = vrot.slane %v10759_v24, 1  ;;  %v1873_v4 = vrot.slane %v10777_v21, 1  ;;  %v1875_v8 = vrot.slane %v10768_v12, 1  ;;  %v1876_v35 = vrot.slane %v10781_v62, 1 }
 0x17d   :  { %v1878_v57 = vrot.slane %v10785_v60, 1  ;;  %v1879_v7 = vrot.slane %v10793_v31, 1  ;;  %v1881_v50 = vrot.slane %v10789_v10, 1  ;;  %v1882_v26 = vrot.slane %v10797_v15, 1 }
 0x17e   :  { %v1884_v47 = vrot.slane %v10801_v49, 1  ;;  %v1885_v44 = vrot.slane %v10809_v23, 1  ;;  %v1887_v24 = vrot.slane %v10805_v54, 1  ;;  %v1888_v21 = vrot.slane %v10813_v45, 1 }
 0x17f   :  { %v1862_v12 = vsel %vm1233_vm0, %v1860_v40, %v1861_v59  ;;  %v1865_v62 = vsel %vm1233_vm0, %v1863_v6, %v1864_v51  ;;  %v1890_v60 = vrot.slane %v10817_v46, 1  ;;  %v1891_v31 = vrot.slane %v10825_v43, 1 }
 0x180   :  { %v1868_v10 = vsel %vm1233_vm0, %v1866_v25, %v1867_v20  ;;  %v1871_v15 = vsel %vm1233_vm0, %v1869_v41, %v1870_v53  ;;  %v1893_v49 = vrot.slane %v10821_v30, 1  ;;  %v1894_v23 = vrot.slane %v10829_v63, 1  ;;  %v20126_v25 = vld [vmem:[#allocation41_spill] sm:$0xff]  ;;  %v20127_v20 = vld [vmem:[#allocation31_spill] sm:$0xff] }
 0x181   :  { %v1874_v54 = vsel %vm1233_vm0, %v1872_v36, %v1873_v4  ;;  %v1877_v45 = vsel %vm1233_vm0, %v1875_v8, %v1876_v35  ;;  %v1880_v5 = vsel %vm1233_vm0, %v1878_v57, %v1879_v7  ;;  %v1883_v61 = vsel %vm1233_vm0, %v1881_v50, %v1882_v26  ;;  %v20128_v53 = vld [vmem:[#allocation55_spill] sm:$0xff]  ;;  %v20129_v36 = vld [vmem:[#allocation45_spill] sm:$0xff]  ;;  %v20130_v4 = vld [vmem:[#allocation62_spill] sm:$0xff] }
 0x182   :  { %v1886_v46 = vsel %vm1233_vm0, %v1884_v47, %v1885_v44  ;;  %v1889_v43 = vsel %vm1233_vm0, %v1887_v24, %v1888_v21  ;;  %v1896_v34 = vrot.slane %v10833_v17, 1  ;;  %v1897_v42 = vrot.slane %v10841_v3, 1  ;;  %v20131_v8 = vld [vmem:[#allocation60_spill] sm:$0xff]  ;;  %v20132_v57 = vld [vmem:[#allocation63_spill] sm:$0xff]  ;;  %v20133_v7 = vld [vmem:[#allocation70_spill] sm:$0xff] }
 0x183   :  { %v1892_v30 = vsel %vm1233_vm0, %v1890_v60, %v1891_v31  ;;  %v1899_v63 = vrot.slane %v10837_v52, 1  ;;  %v1900_v27 = vrot.slane %v10845_v58, 1  ;;  %v1902_v48 = vrot.slane %v10849_v22, 1  ;;  %v20134_v50 = vld [vmem:[#allocation72_spill] sm:$0xff]  ;;  %v20135_v26 = vld [vmem:[#allocation71_spill] sm:$0xff]  ;;  %v20136_v47 = vld [vmem:[#allocation25_spill] sm:$0xff] }
 0x184   :  { %v1895_v40 = vsel %vm1233_vm0, %v1893_v49, %v1894_v23  ;;  %v1903_v59 = vrot.slane %v10857_v11, 1  ;;  %v1905_v6 = vrot.slane %v10853_v16, 1  ;;  %v1906_v51 = vrot.slane %v10861_v14, 1 }
 0x185   :  { %v1908_v17 = vrot.slane %v10865_v19, 1  ;;  %v1909_v3 = vrot.slane %v20126_v25, 1  ;;  %v1911_v41 = vrot.slane %v20127_v20, 1  ;;  %v1912_v52 = vrot.slane %v20128_v53, 1 }
 0x186   :  { %v1914_v58 = vrot.slane %v20129_v36, 1  ;;  %v1915_v22 = vrot.slane %v20130_v4, 1  ;;  %v1917_v35 = vrot.slane %v20131_v8, 1  ;;  %v1918_v11 = vrot.slane %v20132_v57, 1  ;;  %v20157_v57 = vld [vmem:[#allocation137_spill] sm:$0xff] }
 0x187   :  { %v1920_v16 = vrot.slane %v20133_v7, 1  ;;  %v1921_v14 = vrot.slane %v20134_v50, 1  ;;  %v1923_v19 = vrot.slane %v20135_v26, 1  ;;  %v1924_v44 = vrot.slane %v20136_v47, 1  ;;  %v20159_v7 = vld [vmem:[#allocation18_spill] sm:$0xff] }
 0x188   :  { %v1898_v24 = vsel %vm1233_vm0, %v1896_v34, %v1897_v42  ;;  %v1901_v21 = vsel %vm1233_vm0, %v1899_v63, %v1900_v27  ;;  %v1926_v60 = vrot.slane %v10945_v0, 1  ;;  %v1927_v31 = vrot.slane %v10955_v38, 1  ;;  %v20137_v63 = vld [vmem:[#allocation123_spill] sm:$0xff] }
 0x189   :  { %v1904_v49 = vsel %vm1233_vm0, %v1902_v48, %v1903_v59  ;;  %v1907_v23 = vsel %vm1233_vm0, %v1905_v6, %v1906_v51  ;;  %v1929_v25 = vrot.slane %v10949_v37, 1  ;;  %v1930_v20 = vrot.slane %v10959_v28, 1  ;;  %v20139_v48 = vld [vmem:[#allocation122_spill] sm:$0xff]  ;;  %v20141_v59 = vld [vmem:[#allocation124_spill] sm:$0xff] }
 0x18a   :  { %v1910_v53 = vsel %vm1233_vm0, %v1908_v17, %v1909_v3  ;;  %v1913_v36 = vsel %vm1233_vm0, %v1911_v41, %v1912_v52  ;;  %v1916_v34 = vsel %vm1233_vm0, %v1914_v58, %v1915_v22  ;;  %v1919_v42 = vsel %vm1233_vm0, %v1917_v35, %v1918_v11  ;;  %v20143_v51 = vld [vmem:[#allocation128_spill] sm:$0xff]  ;;  %v20145_v3 = vld [vmem:[#allocation130_spill] sm:$0xff]  ;;  %v20147_v52 = vld [vmem:[#allocation129_spill] sm:$0xff] }
 0x18b   :  { %v1922_v0 = vsel %vm1233_vm0, %v1920_v16, %v1921_v14  ;;  %v1925_v38 = vsel %vm1233_vm0, %v1923_v19, %v1924_v44  ;;  %v11059_v27 = vadd.f32 %v10964_v1, %v20137_v63  ;;  %v11063_v37 = vadd.f32 %v10967_v29, %v20139_v48  ;;  %v20149_v58 = vld [vmem:[#allocation131_spill] sm:$0xff] }
 0x18c   :  { %v1928_v28 = vsel %vm1233_vm0, %v1926_v60, %v1927_v31  ;;  %v11068_v6 = vadd.f32 %v10970_v2, %v20141_v59  ;;  %v11072_v17 = vadd.f32 %v10973_v13, %v20143_v51  ;;  %v11076_v41 = vadd.f32 %v10976_v56, %v20145_v3  ;;  %v20151_v2 = vld [vmem:[#allocation134_spill] sm:$0xff]  ;;  %v20153_v13 = vld [vmem:[#allocation136_spill] sm:$0xff]  ;;  %v20155_v35 = vld [vmem:[#allocation135_spill] sm:$0xff] }
 0x18d   :  { %20138 = vst [vmem:[#allocation35_spill] sm:$0xff] %v11059_v27  ;;  %20140 = vst [vmem:[#allocation54_spill] sm:$0xff] %v11063_v37  ;;  %v1931_v1 = vsel %vm1233_vm0, %v1929_v25, %v1930_v20  ;;  %v11081_v29 = vadd.f32 %v10979_v18, %v20147_v52  ;;  %v11085_v4 = vadd.f32 %v10984_v32, %v20149_v58  ;;  %v20161_v16 = vld [vmem:[#allocation19_spill] sm:$0xff]  ;;  %v20163_v32 = vld [vmem:[#allocation22_spill] sm:$0xff] }
 0x18e   :  { %20142 = vst [vmem:[#allocation56_spill] sm:$0xff] %v11068_v6  ;;  %20144 = vst [vmem:[#allocation57_spill] sm:$0xff] %v11072_v17  ;;  %v11089_v22 = vadd.f32 %v10990_v9, %v20151_v2  ;;  %v11092_v8 = vadd.f32 %v1862_v12, %v20153_v13  ;;  %v11095_v56 = vadd.f32 %v1865_v62, %v20155_v35  ;;  %v20165_v9 = vld [vmem:[#allocation53_spill] sm:$0xff]  ;;  %v20169_v62 = vld [vmem:[#allocation11_spill] sm:$0xff] }
 0x18f   :  { %20146 = vst [vmem:[#allocation58_spill] sm:$0xff] %v11076_v41  ;;  %20148 = vst [vmem:[#allocation59_spill] sm:$0xff] %v11081_v29  ;;  %v11098_v11 = vadd.f32 %v1868_v10, %v20157_v57  ;;  %v11101_v18 = vadd.f32 %v1871_v15, %v20159_v7  ;;  %v11104_v50 = vadd.f32 %v1874_v54, %v20161_v16  ;;  %v20167_v12 = vld [vmem:[#allocation61_spill] sm:$0xff]  ;;  %v20171_v10 = vld [vmem:[#allocation78_spill] sm:$0xff] }
 0x190   :  { %20150 = vst [vmem:[#allocation10_spill] sm:$0xff] %v11085_v4  ;;  %20152 = vst [vmem:[#allocation77_spill] sm:$0xff] %v11089_v22  ;;  %v11107_v14 = vadd.f32 %v1877_v45, %v20163_v32  ;;  %v11110_v26 = vadd.f32 %v1880_v5, %v20165_v9  ;;  %v11113_v19 = vadd.f32 %v1883_v61, %v20167_v12  ;;  %v20173_v15 = vld [vmem:[#allocation13_spill] sm:$0xff]  ;;  %v20175_v54 = vld [vmem:[#allocation12_spill] sm:$0xff] }
 0x191   :  { %20154 = vst [vmem:[#allocation14_spill] sm:$0xff] %v11092_v8  ;;  %20156 = vst [vmem:[#allocation82_spill] sm:$0xff] %v11095_v56  ;;  %v11116_v47 = vadd.f32 %v1886_v46, %v20169_v62  ;;  %v11119_v44 = vadd.f32 %v1889_v43, %v20171_v10  ;;  %v11122_v60 = vadd.f32 %v1892_v30, %v20173_v15  ;;  %v20177_v45 = vld [vmem:[#allocation28_spill] sm:$0xff]  ;;  %v20179_v5 = vld [vmem:[#allocation29_spill] sm:$0xff] }
 0x192   :  { %20158 = vst [vmem:[#allocation51_spill] sm:$0xff] %v11098_v11  ;;  %20160 = vst [vmem:[#allocation15_spill] sm:$0xff] %v11101_v18  ;;  %v11125_v31 = vadd.f32 %v1895_v40, %v20175_v54  ;;  %v11128_v25 = vadd.f32 %v1898_v24, %v20177_v45  ;;  %v11131_v20 = vadd.f32 %v1901_v21, %v20179_v5  ;;  %v20181_v61 = vld [vmem:[#allocation32_spill] sm:$0xff]  ;;  %v20183_v46 = vld [vmem:[#allocation30_spill] sm:$0xff] }
 0x193   :  { %20162 = vst [vmem:[#allocation16_spill] sm:$0xff] %v11104_v50  ;;  %20164 = vst [vmem:[#allocation17_spill] sm:$0xff] %v11107_v14  ;;  %v11134_v63 = vadd.f32 %v1904_v49, %v20181_v61  ;;  %v11137_v48 = vadd.f32 %v1907_v23, %v20183_v46  ;;  %v20185_v43 = vld [vmem:[#allocation40_spill] sm:$0xff]  ;;  %v20189_v40 = vld [vmem:[#allocation21_spill] sm:$0xff] }
 0x194   :  { %20166 = vst [vmem:[#allocation41_spill] sm:$0xff] %v11110_v26  ;;  %20168 = vst [vmem:[#allocation31_spill] sm:$0xff] %v11113_v19  ;;  %v11140_v59 = vadd.f32 %v1910_v53, %v20185_v43  ;;  %v20187_v30 = vld [vmem:[#allocation20_spill] sm:$0xff]  ;;  %v11146_v3 = vadd.f32 %v1916_v34, %v20189_v40  ;;  %v20191_v24 = vld [vmem:[#allocation75_spill] sm:$0xff] }
 0x195   :  { %20170 = vst [vmem:[#allocation55_spill] sm:$0xff] %v11116_v47  ;;  %20172 = vst [vmem:[#allocation45_spill] sm:$0xff] %v11119_v44  ;;  %v11143_v51 = vadd.f32 %v1913_v36, %v20187_v30  ;;  %v11149_v52 = vadd.f32 %v1919_v42, %v20191_v24  ;;  %v20193_v21 = vld [vmem:[#allocation8_spill] sm:$0xff]  ;;  %v20195_v49 = vld [vmem:[#allocation26_spill] sm:$0xff] }
 0x196   :  { %20174 = vst [vmem:[#allocation62_spill] sm:$0xff] %v11122_v60  ;;  %20176 = vst [vmem:[#allocation60_spill] sm:$0xff] %v11125_v31  ;;  %v11152_v58 = vadd.f32 %v1922_v0, %v20193_v21  ;;  %v11155_v2 = vadd.f32 %v1925_v38, %v20195_v49  ;;  %v20197_v23 = vld [vmem:[#allocation27_spill] sm:$0xff]  ;;  %v20199_v53 = vld [vmem:[#allocation33_spill] sm:$0xff] }
 0x197   :  { %20178 = vst [vmem:[#allocation63_spill] sm:$0xff] %v11128_v25  ;;  %20180 = vst [vmem:[#allocation70_spill] sm:$0xff] %v11131_v20  ;;  %v11158_v13 = vadd.f32 %v1928_v28, %v20197_v23  ;;  %v11161_v35 = vadd.f32 %v1931_v1, %v20199_v53  ;;  %v20201_v36 = vld [vmem:[#allocation39_spill] sm:$0xff]  ;;  %v20203_v34 = vld [vmem:[#allocation9_spill] sm:$0xff] }
 0x198   :  { %20182 = vst [vmem:[#allocation72_spill] sm:$0xff] %v11134_v63  ;;  %20184 = vst [vmem:[#allocation71_spill] sm:$0xff] %v11137_v48  ;;  %v20202_v57 = vld [vmem:[#allocation87_spill] sm:$0xff]  ;;  %v20204_v16 = vld [vmem:[#allocation88_spill] sm:$0xff] }
 0x199   :  { %20186 = vst [vmem:[#allocation25_spill] sm:$0xff] %v11140_v59  ;;  %20188 = vst [vmem:[#allocation123_spill] sm:$0xff] %v11143_v51  ;;  %v11165_v7 = vmul.f32 %v20202_v57, %v20201_v36  ;;  %v11169_v42 = vmul.f32 %v20204_v16, %v20203_v34  ;;  %v20205_v32 = vld [vmem:[#allocation36_spill] sm:$0xff]  ;;  %v20206_v38 = vld [vmem:[#allocation37_spill] sm:$0xff]  ;;  %v11257_v55 = vmul.f32 %v20202_v57, %v20223_v33 }
 0x19a   :  { %20190 = vst [vmem:[#allocation122_spill] sm:$0xff] %v11146_v3  ;;  %20192 = vst [vmem:[#allocation124_spill] sm:$0xff] %v11149_v52  ;;  %v11173_v0 = vmul.f32 %v20202_v57, %v20205_v32  ;;  %v11177_v9 = vmul.f32 %v20204_v16, %v20206_v38  ;;  %v20207_v28 = vld [vmem:[#allocation43_spill] sm:$0xff]  ;;  %v20208_v12 = vld [vmem:[#allocation44_spill] sm:$0xff] }
 0x19b   :  { %20194 = vst [vmem:[#allocation128_spill] sm:$0xff] %v11152_v58  ;;  %20196 = vst [vmem:[#allocation130_spill] sm:$0xff] %v11155_v2  ;;  %v11181_v1 = vmul.f32 %v20202_v57, %v20207_v28  ;;  %v11185_v62 = vmul.f32 %v20204_v16, %v20208_v12  ;;  %v20209_v10 = vld [vmem:[#allocation46_spill] sm:$0xff]  ;;  %v20210_v54 = vld [vmem:[#allocation47_spill] sm:$0xff] }
 0x19c   :  { %20198 = vst [vmem:[#allocation129_spill] sm:$0xff] %v11158_v13  ;;  %20200 = vst [vmem:[#allocation131_spill] sm:$0xff] %v11161_v35  ;;  %v11189_v15 = vmul.f32 %v20202_v57, %v20209_v10  ;;  %v11193_v45 = vmul.f32 %v20204_v16, %v20210_v54  ;;  %v20211_v5 = vld [vmem:[#allocation67_spill] sm:$0xff]  ;;  %v20212_v46 = vld [vmem:[#allocation52_spill] sm:$0xff] }
 0x19d   :  { %v11197_v61 = vmul.f32 %v20202_v57, %v20211_v5  ;;  %v11201_v43 = vmul.f32 %v20204_v16, %v20212_v46  ;;  %v20213_v30 = vld [vmem:[#allocation68_spill] sm:$0xff]  ;;  %v20214_v24 = vld [vmem:[#allocation69_spill] sm:$0xff]  ;;  %v20215_v23 = vld [vmem:[#allocation50_spill] sm:$0xff] }
 0x19e   :  { %v11205_v40 = vmul.f32 %v20202_v57, %v20213_v30  ;;  %v11209_v21 = vmul.f32 %v20204_v16, %v20214_v24  ;;  %v1012_v49 = vld [vmem:[%s18683_s0 + $0x380] sm:$0xfe]  ;;  %v11216_v53 = vmul.f32 %v20202_v57, %v20215_v23  ;;  %v20217_v32 = vld [vmem:[#allocation83_spill] sm:$0xff]  ;;  %v20218_v28 = vld [vmem:[#allocation84_spill] sm:$0xff] }
 0x19f   :  { %v20216_v36 = vld [vmem:[#allocation81_spill] sm:$0xff]  ;;  %v11224_v38 = vmul.f32 %v20202_v57, %v20217_v32  ;;  %v11228_v12 = vmul.f32 %v20204_v16, %v20218_v28  ;;  %v1013_v10 = vld [vmem:[%s18683_s0 + $0x388] sm:$0xfe]  ;;  %v1014_v54 = vld [vmem:[%s18683_s0 + $0x390] sm:$0x1]  ;;  %v11288_v59 = vmul.f32 %v20202_v57, %v1012_v49 }
 0x1a0   :  { %v11220_v34 = vmul.f32 %v20204_v16, %v20216_v36  ;;  %v1015_v5 = vld [vmem:[%s18683_s0 + $0x398] sm:$0x1]  ;;  %v20219_v46 = vld [vmem:[#allocation89_spill] sm:$0xff]  ;;  %v20220_v24 = vld [vmem:[#allocation90_spill] sm:$0xff] }
 0x1a1   :  { %v11241_v30 = vmul.f32 %v20202_v57, %v20219_v46  ;;  %v11245_v23 = vmul.f32 %v20204_v16, %v20220_v24  ;;  %v20221_v36 = vld [vmem:[#allocation91_spill] sm:$0xff]  ;;  %v20222_v28 = vld [vmem:[#allocation92_spill] sm:$0xff]  ;;  %v20224_v35 = vld [vmem:[#allocation94_spill] sm:$0xff] }
 0x1a2   :  { %v11249_v32 = vmul.f32 %v20202_v57, %v20221_v36  ;;  %v11253_v39 = vmul.f32 %v20204_v16, %v20222_v28  ;;  %v11261_v46 = vmul.f32 %v20204_v16, %v20224_v35  ;;  %v20225_v13 = vld [vmem:[#allocation95_spill] sm:$0xff]  ;;  %v20226_v2 = vld [vmem:[#allocation96_spill] sm:$0xff]  ;;  %v20227_v58 = vld [vmem:[#allocation97_spill] sm:$0xff] }
 0x1a3   :  { %v11265_v24 = vmul.f32 %v20202_v57, %v20225_v13  ;;  %v11269_v36 = vmul.f32 %v20204_v16, %v20226_v2  ;;  %v11273_v28 = vmul.f32 %v20202_v57, %v20227_v58  ;;  %v20228_v52 = vld [vmem:[#allocation98_spill] sm:$0xff]  ;;  %v20229_v3 = vld [vmem:[#allocation99_spill] sm:$0xff]  ;;  %v20230_v51 = vld [vmem:[#allocation100_spill] sm:$0xff]  ;;  %v11291_v2 = vmul.f32 %v20204_v16, %v1013_v10 }
 0x1a4   :  { %v11277_v33 = vmul.f32 %v20204_v16, %v20228_v52  ;;  %v11281_v35 = vmul.f32 %v20202_v57, %v20229_v3  ;;  %v11285_v13 = vmul.f32 %v20204_v16, %v20230_v51  ;;  %v11294_v58 = vmul.f32 %v20202_v57, %v1014_v54  ;;  %v20231_v48 = vld [vmem:[#allocation101_spill] sm:$0xff]  ;;  %v20232_v63 = vld [vmem:[#allocation102_spill] sm:$0xff]  ;;  %v20233_v20 = vld [vmem:[#allocation103_spill] sm:$0xff] }
 0x1a5   :  { %v11297_v52 = vmul.f32 %v20204_v16, %v1015_v5  ;;  %v11301_v3 = vmul.f32 %v20202_v57, %v20231_v48  ;;  %v11305_v51 = vmul.f32 %v20204_v16, %v20232_v63  ;;  %v11309_v49 = vmul.f32 %v20202_v57, %v20233_v20  ;;  %v20234_v10 = vld [vmem:[#allocation104_spill] sm:$0xff]  ;;  %v20235_v54 = vld [vmem:[#allocation105_spill] sm:$0xff]  ;;  %v20236_v31 = vld [vmem:[#allocation106_spill] sm:$0xff] }
 0x1a6   :  { %v11313_v25 = vmul.f32 %v20204_v16, %v20234_v10  ;;  %v11317_v5 = vmul.f32 %v20202_v57, %v20235_v54  ;;  %v11321_v48 = vmul.f32 %v20204_v16, %v20236_v31  ;;  %v20237_v60 = vld [vmem:[#allocation107_spill] sm:$0xff]  ;;  %v20238_v44 = vld [vmem:[#allocation108_spill] sm:$0xff]  ;;  %v20239_v47 = vld [vmem:[#allocation109_spill] sm:$0xff] }
 0x1a7   :  { %v11325_v63 = vmul.f32 %v20202_v57, %v20237_v60  ;;  %v11329_v20 = vmul.f32 %v20204_v16, %v20238_v44  ;;  %v11333_v10 = vmul.f32 %v20202_v57, %v20239_v47  ;;  %v20240_v19 = vld [vmem:[#allocation110_spill] sm:$0xff]  ;;  %v20241_v26 = vld [vmem:[#allocation111_spill] sm:$0xff]  ;;  %v20242_v14 = vld [vmem:[#allocation112_spill] sm:$0xff] }
 0x1a8   :  { %v11337_v54 = vmul.f32 %v20204_v16, %v20240_v19  ;;  %v11341_v31 = vmul.f32 %v20202_v57, %v20241_v26  ;;  %v11345_v60 = vmul.f32 %v20204_v16, %v20242_v14  ;;  %v20243_v50 = vld [vmem:[#allocation113_spill] sm:$0xff]  ;;  %v20244_v18 = vld [vmem:[#allocation114_spill] sm:$0xff]  ;;  %v20245_v11 = vld [vmem:[#allocation115_spill] sm:$0xff] }
 0x1a9   :  { %v11349_v44 = vmul.f32 %v20202_v57, %v20243_v50  ;;  %v11353_v47 = vmul.f32 %v20204_v16, %v20244_v18  ;;  %v11357_v19 = vmul.f32 %v20202_v57, %v20245_v11  ;;  %v20246_v56 = vld [vmem:[#allocation116_spill] sm:$0xff]  ;;  %v20247_v8 = vld [vmem:[#allocation117_spill] sm:$0xff]  ;;  %v20249_v22 = vld [vmem:[#allocation118_spill] sm:$0xff] }
 0x1aa   :  { %v11361_v26 = vmul.f32 %v20204_v16, %v20246_v56  ;;  %v11365_v14 = vmul.f32 %v20202_v57, %v20247_v8  ;;  %v11369_v50 = vmul.f32 %v20204_v16, %v20249_v22  ;;  %v20251_v4 = vld [vmem:[#allocation119_spill] sm:$0xff]  ;;  %v20253_v29 = vld [vmem:[#allocation120_spill] sm:$0xff]  ;;  %v20255_v41 = vld [vmem:[#allocation121_spill] sm:$0xff] }
 0x1ab   :  { %v11373_v18 = vmul.f32 %v20202_v57, %v20251_v4  ;;  %v11377_v11 = vmul.f32 %v20204_v16, %v20253_v29  ;;  %v11381_v56 = vmul.f32 %v20202_v57, %v20255_v41  ;;  %v20257_v17 = vld [vmem:[#allocation125_spill] sm:$0xff]  ;;  %v20259_v6 = vld [vmem:[#allocation126_spill] sm:$0xff]  ;;  %v20261_v37 = vld [vmem:[#allocation127_spill] sm:$0xff] }
 0x1ac   :  { %20248 = vst [vmem:[#allocation134_spill] sm:$0xff] %v11365_v14  ;;  %20250 = vst [vmem:[#allocation136_spill] sm:$0xff] %v11369_v50  ;;  %v11385_v8 = vmul.f32 %v20204_v16, %v20257_v17  ;;  %v11389_v22 = vmul.f32 %v20202_v57, %v20259_v6  ;;  %v11393_v4 = vmul.f32 %v20204_v16, %v20261_v37  ;;  %v1088_v29 = vld [vmem:[%s18683_s0 + $0x880] sm:$0xfe]  ;;  %v1089_v41 = vld [vmem:[%s18683_s0 + $0x888] sm:$0xfe] }
 0x1ad   :  { %20252 = vst [vmem:[#allocation135_spill] sm:$0xff] %v11373_v18  ;;  %20254 = vst [vmem:[#allocation137_spill] sm:$0xff] %v11377_v11  ;;  %v20263_v27 = vld [vmem:[#allocation132_spill] sm:$0xff]  ;;  %v1090_v11 = vld [vmem:[%s18683_s0 + $0x890] sm:$0x1]  ;;  %v2137_v50 = vrot.slane %v11165_v7, 1  ;;  %v11436_v18 = vmul.f32 %v20202_v57, %v1088_v29  ;;  %v11439_v14 = vmul.f32 %v20204_v16, %v1089_v41 }
 0x1ae   :  { %20256 = vst [vmem:[#allocation18_spill] sm:$0xff] %v11381_v56  ;;  %20258 = vst [vmem:[#allocation19_spill] sm:$0xff] %v11385_v8  ;;  %v11403_v17 = vmul.f32 %v20202_v57, %v20263_v27  ;;  %v20265_v8 = vld [vmem:[#allocation133_spill] sm:$0xff]  ;;  %v2138_v27 = vrot.slane %v11173_v0, 1  ;;  %v2149_v7 = vrot.slane %v11197_v61, 1  ;;  %v2150_v0 = vrot.slane %v11205_v40, 1 }
 0x1af   :  { %20260 = vst [vmem:[#allocation22_spill] sm:$0xff] %v11389_v22  ;;  %20262 = vst [vmem:[#allocation53_spill] sm:$0xff] %v11393_v4  ;;  %v11407_v6 = vmul.f32 %v20204_v16, %v20265_v8  ;;  %v20267_v22 = vld [vmem:[#allocation138_spill] sm:$0xff]  ;;  %v20269_v4 = vld [vmem:[#allocation139_spill] sm:$0xff]  ;;  %v2141_v8 = vrot.slane %v11177_v9, 1  ;;  %v2153_v9 = vrot.slane %v11209_v21, 1 }
 0x1b0   :  { %20264 = vst [vmem:[#allocation61_spill] sm:$0xff] %v11403_v17  ;;  %v11411_v37 = vmul.f32 %v20202_v57, %v20267_v22  ;;  %v11415_v56 = vmul.f32 %v20204_v16, %v20269_v4  ;;  %v2140_v17 = vrot.slane %v11169_v42, 1  ;;  %v1091_v22 = vld [vmem:[%s18683_s0 + $0x898] sm:$0x1]  ;;  %v2144_v4 = vrot.slane %v11189_v15, 1 }
 0x1b1   :  { %20266 = vst [vmem:[#allocation11_spill] sm:$0xff] %v11407_v6  ;;  %v2143_v6 = vrot.slane %v11181_v1, 1  ;;  %v2152_v42 = vrot.slane %v11201_v43, 1  ;;  %v2155_v1 = vrot.slane %v11216_v53, 1  ;;  %v11444_v15 = vmul.f32 %v20202_v57, %v1090_v11 }
 0x1b2   :  { %20268 = vst [vmem:[#allocation78_spill] sm:$0xff] %v11411_v37  ;;  %20270 = vst [vmem:[#allocation13_spill] sm:$0xff] %v11415_v56  ;;  %v2146_v56 = vrot.slane %v11185_v62, 1  ;;  %v2147_v37 = vrot.slane %v11193_v45, 1  ;;  %v2156_v62 = vrot.slane %v11224_v38, 1  ;;  %v11447_v45 = vmul.f32 %v20204_v16, %v1091_v22 }
 0x1b3   :  { %v2158_v61 = vrot.slane %v11220_v34, 1  ;;  %v2159_v43 = vrot.slane %v11228_v12, 1  ;;  %v11452_v40 = vsel %vm1233_vm0, %v2137_v50, %v2138_v27  ;;  %v11455_v21 = vsel %vm1233_vm0, %v2140_v17, %v2141_v8 }
 0x1b4   :  { %v11458_v53 = vsel %vm1233_vm0, %v2143_v6, %v2144_v4  ;;  %v11461_v38 = vsel %vm1233_vm0, %v2146_v56, %v2147_v37  ;;  %v11464_v57 = vsel %vm1233_vm0, %v2149_v7, %v2150_v0  ;;  %v11467_v16 = vsel %vm1233_vm0, %v2152_v42, %v2153_v9 }
 0x1b5   :  { %v2161_v34 = vrot.slane %v11241_v30, 1  ;;  %v2162_v12 = vrot.slane %v11249_v32, 1  ;;  %v11472_v50 = vsel %vm1233_vm0, %v2155_v1, %v2156_v62  ;;  %v2164_v11 = vrot.slane %v11245_v23, 1 }
 0x1b6   :  { %v2165_v29 = vrot.slane %v11253_v39, 1  ;;  %v2167_v56 = vrot.slane %v11257_v55, 1  ;;  %v11478_v41 = vsel %vm1233_vm0, %v2158_v61, %v2159_v43  ;;  %v2168_v17 = vrot.slane %v11265_v24, 1 }
 0x1b7   :  { %v2170_v6 = vrot.slane %v11261_v46, 1  ;;  %v2171_v30 = vrot.slane %v11269_v36, 1  ;;  %v2173_v32 = vrot.slane %v11273_v28, 1  ;;  %v2174_v37 = vrot.slane %v11281_v35, 1 }
 0x1b8   :  { %v2176_v27 = vrot.slane %v11277_v33, 1  ;;  %v2177_v23 = vrot.slane %v11285_v13, 1  ;;  %v2179_v39 = vrot.slane %v11288_v59, 1  ;;  %v2180_v55 = vrot.slane %v11294_v58, 1 }
 0x1b9   :  { %v2182_v8 = vrot.slane %v11291_v2, 1  ;;  %v2183_v24 = vrot.slane %v11297_v52, 1  ;;  %v2185_v46 = vrot.slane %v11301_v3, 1  ;;  %v2186_v36 = vrot.slane %v11309_v49, 1 }
 0x1ba   :  { %v2188_v28 = vrot.slane %v11305_v51, 1  ;;  %v2189_v35 = vrot.slane %v11313_v25, 1  ;;  %v2163_v33 = vsel %vm1233_vm0, %v2161_v34, %v2162_v12  ;;  %v2166_v13 = vsel %vm1233_vm0, %v2164_v11, %v2165_v29  ;;  %v20271_v34 = vld [vmem:[#allocation134_spill] sm:$0xff]  ;;  %v20272_v12 = vld [vmem:[#allocation135_spill] sm:$0xff]  ;;  %v20273_v11 = vld [vmem:[#allocation136_spill] sm:$0xff] }
 0x1bb   :  { %v2191_v59 = vrot.slane %v11317_v5, 1  ;;  %v2192_v58 = vrot.slane %v11325_v63, 1  ;;  %v2169_v2 = vsel %vm1233_vm0, %v2167_v56, %v2168_v17  ;;  %v2172_v52 = vsel %vm1233_vm0, %v2170_v6, %v2171_v30  ;;  %v20274_v56 = vld [vmem:[#allocation137_spill] sm:$0xff]  ;;  %v20275_v17 = vld [vmem:[#allocation18_spill] sm:$0xff]  ;;  %v20277_v30 = vld [vmem:[#allocation19_spill] sm:$0xff] }
 0x1bc   :  { %v2194_v3 = vrot.slane %v11321_v48, 1  ;;  %v2195_v49 = vrot.slane %v11329_v20, 1  ;;  %v2175_v51 = vsel %vm1233_vm0, %v2173_v32, %v2174_v37  ;;  %v2178_v25 = vsel %vm1233_vm0, %v2176_v27, %v2177_v23  ;;  %v20276_v6 = vld [vmem:[#allocation22_spill] sm:$0xff]  ;;  %v20278_v37 = vld [vmem:[#allocation53_spill] sm:$0xff] }
 0x1bd   :  { %v2181_v22 = vsel %vm1233_vm0, %v2179_v39, %v2180_v55  ;;  %v2184_v4 = vsel %vm1233_vm0, %v2182_v8, %v2183_v24  ;;  %v2187_v5 = vsel %vm1233_vm0, %v2185_v46, %v2186_v36  ;;  %v2190_v63 = vsel %vm1233_vm0, %v2188_v28, %v2189_v35  ;;  %v20279_v27 = vld [vmem:[#allocation61_spill] sm:$0xff]  ;;  %v20280_v23 = vld [vmem:[#allocation78_spill] sm:$0xff]  ;;  %v20281_v39 = vld [vmem:[#allocation11_spill] sm:$0xff] }
 0x1be   :  { %v2197_v7 = vrot.slane %v11333_v10, 1  ;;  %v2198_v0 = vrot.slane %v11341_v31, 1  ;;  %v2193_v48 = vsel %vm1233_vm0, %v2191_v59, %v2192_v58  ;;  %v2200_v20 = vrot.slane %v11337_v54, 1  ;;  %v20282_v8 = vld [vmem:[#allocation13_spill] sm:$0xff] }
 0x1bf   :  { %v2201_v42 = vrot.slane %v11345_v60, 1  ;;  %v2203_v9 = vrot.slane %v11349_v44, 1  ;;  %v2196_v1 = vsel %vm1233_vm0, %v2194_v3, %v2195_v49  ;;  %v2204_v62 = vrot.slane %v11357_v19, 1 }
 0x1c0   :  { %v2206_v61 = vrot.slane %v11353_v47, 1  ;;  %v2207_v43 = vrot.slane %v11361_v26, 1  ;;  %v2209_v10 = vrot.slane %v20271_v34, 1  ;;  %v2210_v31 = vrot.slane %v20272_v12, 1 }
 0x1c1   :  { %v2212_v29 = vrot.slane %v20273_v11, 1  ;;  %v2213_v54 = vrot.slane %v20274_v56, 1  ;;  %v2215_v60 = vrot.slane %v20275_v17, 1  ;;  %v2216_v44 = vrot.slane %v20276_v6, 1  ;;  %v20295_v56 = vld [vmem:[#allocation10_spill] sm:$0xff] }
 0x1c2   :  { %v2218_v32 = vrot.slane %v20277_v30, 1  ;;  %v2219_v19 = vrot.slane %v20278_v37, 1  ;;  %v2221_v47 = vrot.slane %v20279_v27, 1  ;;  %v2222_v26 = vrot.slane %v20280_v23, 1  ;;  %v20301_v6 = vld [vmem:[#allocation82_spill] sm:$0xff]  ;;  %v20307_v37 = vld [vmem:[#allocation16_spill] sm:$0xff] }
 0x1c3   :  { %v2224_v55 = vrot.slane %v20281_v39, 1  ;;  %v2225_v24 = vrot.slane %v20282_v8, 1  ;;  %v2199_v46 = vsel %vm1233_vm0, %v2197_v7, %v2198_v0  ;;  %v2202_v36 = vsel %vm1233_vm0, %v2200_v20, %v2201_v42  ;;  %v20283_v20 = vld [vmem:[#allocation35_spill] sm:$0xff] }
 0x1c4   :  { %v2227_v28 = vrot.slane %v11436_v18, 1  ;;  %v2228_v35 = vrot.slane %v11444_v15, 1  ;;  %v2205_v59 = vsel %vm1233_vm0, %v2203_v9, %v2204_v62  ;;  %v2208_v58 = vsel %vm1233_vm0, %v2206_v61, %v2207_v43  ;;  %v20285_v9 = vld [vmem:[#allocation54_spill] sm:$0xff]  ;;  %v20287_v62 = vld [vmem:[#allocation56_spill] sm:$0xff]  ;;  %v20289_v43 = vld [vmem:[#allocation57_spill] sm:$0xff] }
 0x1c5   :  { %v2230_v3 = vrot.slane %v11439_v14, 1  ;;  %v2231_v49 = vrot.slane %v11447_v45, 1  ;;  %v2211_v34 = vsel %vm1233_vm0, %v2209_v10, %v2210_v31  ;;  %v2214_v12 = vsel %vm1233_vm0, %v2212_v29, %v2213_v54  ;;  %v20291_v31 = vld [vmem:[#allocation58_spill] sm:$0xff]  ;;  %v20293_v29 = vld [vmem:[#allocation59_spill] sm:$0xff] }
 0x1c6   :  { %v2217_v7 = vsel %vm1233_vm0, %v2215_v60, %v2216_v44  ;;  %v2220_v0 = vsel %vm1233_vm0, %v2218_v32, %v2219_v19  ;;  %v2223_v18 = vsel %vm1233_vm0, %v2221_v47, %v2222_v26  ;;  %v2226_v15 = vsel %vm1233_vm0, %v2224_v55, %v2225_v24  ;;  %v20303_v44 = vld [vmem:[#allocation51_spill] sm:$0xff]  ;;  %v20319_v55 = vld [vmem:[#allocation62_spill] sm:$0xff] }
 0x1c7   :  { %v11547_v42 = vadd.f32 %v11452_v40, %v20283_v20  ;;  %v11551_v14 = vadd.f32 %v11455_v21, %v20285_v9  ;;  %v2229_v45 = vsel %vm1233_vm0, %v2227_v28, %v2228_v35  ;;  %v11556_v61 = vadd.f32 %v11458_v53, %v20287_v62  ;;  %v20297_v53 = vld [vmem:[#allocation77_spill] sm:$0xff]  ;;  %v20305_v32 = vld [vmem:[#allocation15_spill] sm:$0xff] }
 0x1c8   :  { %v11560_v10 = vadd.f32 %v11461_v38, %v20289_v43  ;;  %v11564_v11 = vadd.f32 %v11464_v57, %v20291_v31  ;;  %v2232_v40 = vsel %vm1233_vm0, %v2230_v3, %v2231_v49  ;;  %v11569_v21 = vadd.f32 %v11467_v16, %v20293_v29  ;;  %v20299_v38 = vld [vmem:[#allocation14_spill] sm:$0xff]  ;;  %v6561_v31 = vld [vmem:[%s18684_s1 + $0x13] ss:$8 sm:$0x3] }
 0x1c9   :  { %20284 = vst [vmem:[#allocation12_spill] sm:$0xff] %v11547_v42  ;;  %20286 = vst [vmem:[#allocation28_spill] sm:$0xff] %v11551_v14  ;;  %v11573_v54 = vadd.f32 %v11472_v50, %v20295_v56  ;;  %v11577_v17 = vadd.f32 %v11478_v41, %v20297_v53  ;;  %v11580_v60 = vadd.f32 %v2163_v33, %v20299_v38  ;;  %v6407_v50 = vld [vmem:[%s18684_s1 + $0x42] ss:$8 sm:$0x3]  ;;  %v20339_v53 = vld [vmem:[#allocation124_spill] sm:$0xff] }
 0x1ca   :  { %20288 = vst [vmem:[#allocation29_spill] sm:$0xff] %v11556_v61  ;;  %20290 = vst [vmem:[#allocation32_spill] sm:$0xff] %v11560_v10  ;;  %v11583_v57 = vadd.f32 %v2166_v13, %v20301_v6  ;;  %v11586_v30 = vadd.f32 %v2169_v2, %v20303_v44  ;;  %v11589_v16 = vadd.f32 %v2172_v52, %v20305_v32  ;;  %v20309_v41 = vld [vmem:[#allocation17_spill] sm:$0xff]  ;;  %v20313_v13 = vld [vmem:[#allocation31_spill] sm:$0xff] }
 0x1cb   :  { %20292 = vst [vmem:[#allocation30_spill] sm:$0xff] %v11564_v11  ;;  %20294 = vst [vmem:[#allocation40_spill] sm:$0xff] %v11569_v21  ;;  %v11595_v19 = vadd.f32 %v2175_v51, %v20307_v37  ;;  %v11598_v27 = vadd.f32 %v2178_v25, %v20309_v41  ;;  %v20311_v33 = vld [vmem:[#allocation41_spill] sm:$0xff]  ;;  %v11604_v23 = vadd.f32 %v2184_v4, %v20313_v13  ;;  %v20315_v2 = vld [vmem:[#allocation55_spill] sm:$0xff] }
 0x1cc   :  { %20296 = vst [vmem:[#allocation20_spill] sm:$0xff] %v11573_v54  ;;  %20298 = vst [vmem:[#allocation21_spill] sm:$0xff] %v11577_v17  ;;  %v11601_v47 = vadd.f32 %v2181_v22, %v20311_v33  ;;  %v11607_v26 = vadd.f32 %v2187_v5, %v20315_v2  ;;  %v20317_v52 = vld [vmem:[#allocation45_spill] sm:$0xff]  ;;  %v11613_v8 = vadd.f32 %v2193_v48, %v20319_v55  ;;  %v20321_v51 = vld [vmem:[#allocation60_spill] sm:$0xff] }
 0x1cd   :  { %20300 = vst [vmem:[#allocation75_spill] sm:$0xff] %v11580_v60  ;;  %20302 = vst [vmem:[#allocation8_spill] sm:$0xff] %v11583_v57  ;;  %v11610_v39 = vadd.f32 %v2190_v63, %v20317_v52  ;;  %v11616_v24 = vadd.f32 %v2196_v1, %v20321_v51  ;;  %v20323_v25 = vld [vmem:[#allocation63_spill] sm:$0xff]  ;;  %v20325_v22 = vld [vmem:[#allocation70_spill] sm:$0xff]  ;;  %v11652_v38 = vadd.f32 %v2220_v0, %v20339_v53 }
 0x1ce   :  { %20304 = vst [vmem:[#allocation26_spill] sm:$0xff] %v11586_v30  ;;  %20306 = vst [vmem:[#allocation27_spill] sm:$0xff] %v11589_v16  ;;  %v11619_v28 = vadd.f32 %v2199_v46, %v20323_v25  ;;  %v11622_v35 = vadd.f32 %v2202_v36, %v20325_v22  ;;  %v20327_v4 = vld [vmem:[#allocation6_spill] sm:$0xff]  ;;  %v20328_v5 = vld [vmem:[#allocation7_spill] sm:$0xff] }
 0x1cf   :  { %20308 = vst [vmem:[#allocation33_spill] sm:$0xff] %v11595_v19  ;;  %20310 = vst [vmem:[#allocation39_spill] sm:$0xff] %v11598_v27  ;;  %v11625_v3 = vrot.slane %v6407_v50, %v20327_v4  ;;  %v11628_v49 = vrot.slane %v6407_v50, %v20328_v5  ;;  %v6560_v63 = vld [vmem:[%s18684_s1 + $0x3] ss:$8 sm:$0x3]  ;;  %v20329_v48 = vld [vmem:[#allocation72_spill] sm:$0xff] }
 0x1d0   :  { %20312 = vst [vmem:[#allocation87_spill] sm:$0xff] %v11601_v47  ;;  %20314 = vst [vmem:[#allocation9_spill] sm:$0xff] %v11604_v23  ;;  %v11634_v20 = vadd.f32 %v2205_v59, %v20329_v48  ;;  %v20331_v1 = vld [vmem:[#allocation71_spill] sm:$0xff]  ;;  %v20333_v46 = vld [vmem:[#allocation25_spill] sm:$0xff]  ;;  %v11667_v37 = vrot.slane %v6560_v63, %v20327_v4 }
 0x1d1   :  { %20316 = vst [vmem:[#allocation88_spill] sm:$0xff] %v11607_v26  ;;  %20318 = vst [vmem:[#allocation36_spill] sm:$0xff] %v11610_v39  ;;  %v11637_v9 = vadd.f32 %v2208_v58, %v20331_v1  ;;  %v11640_v62 = vadd.f32 %v2211_v34, %v20333_v46  ;;  %v20335_v36 = vld [vmem:[#allocation123_spill] sm:$0xff]  ;;  %v20337_v29 = vld [vmem:[#allocation122_spill] sm:$0xff] }
 0x1d2   :  { %20320 = vst [vmem:[#allocation37_spill] sm:$0xff] %v11613_v8  ;;  %20322 = vst [vmem:[#allocation43_spill] sm:$0xff] %v11616_v24  ;;  %v11643_v43 = vadd.f32 %v2214_v12, %v20335_v36  ;;  %v11649_v56 = vadd.f32 %v2217_v7, %v20337_v29  ;;  %v20341_v59 = vld [vmem:[#allocation128_spill] sm:$0xff]  ;;  %v20343_v58 = vld [vmem:[#allocation130_spill] sm:$0xff]  ;;  %v11670_v7 = vrot.slane %v6560_v63, %v20328_v5 }
 0x1d3   :  { %20324 = vst [vmem:[#allocation44_spill] sm:$0xff] %v11619_v28  ;;  %20326 = vst [vmem:[#allocation46_spill] sm:$0xff] %v11622_v35  ;;  %v11655_v6 = vadd.f32 %v2223_v18, %v20341_v59  ;;  %v11658_v44 = vadd.f32 %v2226_v15, %v20343_v58  ;;  %v20345_v34 = vld [vmem:[#allocation129_spill] sm:$0xff]  ;;  %v20347_v12 = vld [vmem:[#allocation131_spill] sm:$0xff] }
 0x1d4   :  { %20330 = vst [vmem:[#allocation47_spill] sm:$0xff] %v11634_v20  ;;  %20332 = vst [vmem:[#allocation67_spill] sm:$0xff] %v11637_v9  ;;  %v11661_v32 = vadd.f32 %v2229_v45, %v20345_v34  ;;  %v11664_v50 = vadd.f32 %v2232_v40, %v20347_v12  ;;  %v20351_v0 = vld [vmem:[#allocation34_spill] sm:$0xff]  ;;  %v11681_v45 = vrot.slane %v6561_v31, %v20327_v4  ;;  %v20356_v2 = vld [vmem:[#allocation48_spill] sm:$0xff] }
 0x1d5   :  { %20334 = vst [vmem:[#allocation52_spill] sm:$0xff] %v11640_v62  ;;  %20336 = vst [vmem:[#allocation68_spill] sm:$0xff] %v11643_v43  ;;  %v11674_v41 = vmul.f32 %v20351_v0, %v11625_v3  ;;  %v20352_v18 = vld [vmem:[#allocation38_spill] sm:$0xff]  ;;  %v11684_v40 = vrot.slane %v6561_v31, %v20328_v5  ;;  %v11692_v52 = vmul.f32 %v20356_v2, %v11628_v49  ;;  %v20357_v55 = vld [vmem:[#allocation79_spill] sm:$0xff] }
 0x1d6   :  { %20338 = vst [vmem:[#allocation69_spill] sm:$0xff] %v11649_v56  ;;  %20340 = vst [vmem:[#allocation50_spill] sm:$0xff] %v11652_v38  ;;  %v11678_v15 = vmul.f32 %v20352_v18, %v11628_v49  ;;  %v20355_v33 = vld [vmem:[#allocation42_spill] sm:$0xff]  ;;  %v11696_v51 = vmul.f32 %v20357_v55, %v11625_v3  ;;  %v20358_v25 = vld [vmem:[#allocation80_spill] sm:$0xff] }
 0x1d7   :  { %20342 = vst [vmem:[#allocation81_spill] sm:$0xff] %v11655_v6  ;;  %20344 = vst [vmem:[#allocation83_spill] sm:$0xff] %v11658_v44  ;;  %v11688_v13 = vmul.f32 %v20355_v33, %v11625_v3  ;;  %v11700_v22 = vmul.f32 %v20358_v25, %v11628_v49  ;;  %v20359_v63 = vld [vmem:[#allocation66_spill] sm:$0xff]  ;;  %v20360_v1 = vld [vmem:[#allocation73_spill] sm:$0xff] }
 0x1d8   :  { %20346 = vst [vmem:[#allocation84_spill] sm:$0xff] %v11661_v32  ;;  %20348 = vst [vmem:[#allocation89_spill] sm:$0xff] %v11664_v50  ;;  %v11704_v48 = vmul.f32 %v20359_v63, %v11625_v3  ;;  %v11708_v46 = vmul.f32 %v20360_v1, %v11628_v49  ;;  %v20361_v36 = vld [vmem:[#allocation24_spill] sm:$0xff]  ;;  %v20362_v29 = vld [vmem:[#allocation23_spill] sm:$0xff]  ;;  %v2441_v42 = vrot.slane %v11678_v15, 1 }
 0x1d9   :  { %20349 = vst [vmem:[#allocation90_spill] sm:$0xff] %v11667_v37  ;;  %20350 = vst [vmem:[#allocation91_spill] sm:$0xff] %v11670_v7  ;;  %v11712_v31 = vmul.f32 %v20361_v36, %v11625_v3  ;;  %v11716_v53 = vmul.f32 %v20362_v29, %v11628_v49  ;;  %v20363_v59 = vld [vmem:[#allocation85_spill] sm:$0xff]  ;;  %v20364_v34 = vld [vmem:[#allocation86_spill] sm:$0xff]  ;;  %v2439_v14 = vrot.slane %v11688_v13, 1 }
 0x1da   :  { %20353 = vst [vmem:[#allocation92_spill] sm:$0xff] %v11681_v45  ;;  %20354 = vst [vmem:[#allocation93_spill] sm:$0xff] %v11684_v40  ;;  %v11720_v58 = vmul.f32 %v20363_v59, %v11625_v3  ;;  %v11724_v12 = vmul.f32 %v20364_v34, %v11628_v49  ;;  %v20365_v0 = vld [vmem:[#allocation143_spill] sm:$0xff]  ;;  %v20366_v33 = vld [vmem:[#allocation144_spill] sm:$0xff] }
 0x1db   :  { %v11728_v18 = vmul.f32 %v20365_v0, %v11625_v3  ;;  %v11732_v2 = vmul.f32 %v20366_v33, %v11628_v49  ;;  %v976_v55 = vld [vmem:[%s18683_s0 + $0x120] sm:$0xfe]  ;;  %v977_v25 = vld [vmem:[%s18683_s0 + $0x128] sm:$0xfe]  ;;  %v20369_v59 = vld [vmem:[#allocation147_spill] sm:$0xff] }
 0x1dc   :  { %v20367_v63 = vld [vmem:[#allocation145_spill] sm:$0xff]  ;;  %v20368_v36 = vld [vmem:[#allocation146_spill] sm:$0xff]  ;;  %v11750_v34 = vmul.f32 %v20369_v59, %v11625_v3  ;;  %v20370_v0 = vld [vmem:[#allocation148_spill] sm:$0xff]  ;;  %v11805_v62 = vmul.f32 %v11625_v3, %v976_v55 }
 0x1dd   :  { %v11742_v1 = vmul.f32 %v20367_v63, %v11625_v3  ;;  %v11746_v29 = vmul.f32 %v20368_v36, %v11628_v49  ;;  %v11754_v33 = vmul.f32 %v20370_v0, %v11628_v49  ;;  %v978_v5 = vld [vmem:[%s18683_s0 + $0x130] sm:$0x1]  ;;  %v979_v63 = vld [vmem:[%s18683_s0 + $0x138] sm:$0x1]  ;;  %v20371_v4 = vld [vmem:[#allocation149_spill] sm:$0xff] }
 0x1de   :  { %v11764_v36 = vmul.f32 %v20371_v4, %v11625_v3  ;;  %v20372_v40 = vld [vmem:[#allocation150_spill] sm:$0xff]  ;;  %v20373_v45 = vld [vmem:[#allocation151_spill] sm:$0xff]  ;;  %v20374_v7 = vld [vmem:[#allocation152_spill] sm:$0xff] }
 0x1df   :  { %v11768_v59 = vmul.f32 %v20372_v40, %v11628_v49  ;;  %v11772_v0 = vmul.f32 %v20373_v45, %v11625_v3  ;;  %v11776_v37 = vmul.f32 %v20374_v7, %v11628_v49  ;;  %v20375_v50 = vld [vmem:[#allocation153_spill] sm:$0xff]  ;;  %v6605_v4 = vld [vmem:[%s18683_s0 + $0xf8] sm:$0x1]  ;;  %v20376_v40 = vld [vmem:[#allocation74_spill] sm:$0xff] }
 0x1e0   :  { %v11780_v32 = vmul.f32 %v20375_v50, %v11625_v3  ;;  %v11786_v44 = vmul.f32 %v6605_v4, %v11628_v49  ;;  %v11790_v6 = vmul.f32 %v11625_v3, %v20376_v40  ;;  %v20377_v45 = vld [vmem:[#allocation140_spill] sm:$0xff]  ;;  %v20378_v7 = vld [vmem:[#allocation141_spill] sm:$0xff]  ;;  %v20379_v50 = vld [vmem:[#allocation142_spill] sm:$0xff]  ;;  %v11808_v4 = vmul.f32 %v11628_v49, %v977_v25 }
 0x1e1   :  { %v11794_v38 = vmul.f32 %v11628_v49, %v20377_v45  ;;  %v11798_v56 = vmul.f32 %v11625_v3, %v20378_v7  ;;  %v11802_v43 = vmul.f32 %v11628_v49, %v20379_v50  ;;  %v11811_v40 = vmul.f32 %v11625_v3, %v978_v5  ;;  %v6606_v7 = vld [vmem:[%s18683_s0 + $0x540] sm:$0xfe]  ;;  %v6607_v55 = vld [vmem:[%s18683_s0 + $0x548] sm:$0xfe]  ;;  %v6608_v5 = vld [vmem:[%s18683_s0 + $0x550] sm:$0x1] }
 0x1e2   :  { %v11814_v45 = vmul.f32 %v11628_v49, %v979_v63  ;;  %v11820_v9 = vmul.f32 %v6606_v7, %v11625_v3  ;;  %v11826_v25 = vmul.f32 %v6607_v55, %v11628_v49  ;;  %v11832_v63 = vmul.f32 %v6608_v5, %v11625_v3  ;;  %v6609_v50 = vld [vmem:[%s18683_s0 + $0x558] sm:$0x1]  ;;  %v6610_v20 = vld [vmem:[%s18683_s0 + $0x560] sm:$0xfe]  ;;  %v6611_v35 = vld [vmem:[%s18683_s0 + $0x568] sm:$0xfe] }
 0x1e3   :  { %v11838_v7 = vmul.f32 %v6609_v50, %v11628_v49  ;;  %v11844_v55 = vmul.f32 %v6610_v20, %v11625_v3  ;;  %v11850_v5 = vmul.f32 %v6611_v35, %v11628_v49  ;;  %v6612_v28 = vld [vmem:[%s18683_s0 + $0x570] sm:$0x1]  ;;  %v6613_v24 = vld [vmem:[%s18683_s0 + $0x578] sm:$0x1]  ;;  %v6614_v8 = vld [vmem:[%s18683_s0 + $0x580] sm:$0xfe] }
 0x1e4   :  { %v11856_v50 = vmul.f32 %v6612_v28, %v11625_v3  ;;  %v11862_v20 = vmul.f32 %v6613_v24, %v11628_v49  ;;  %v11868_v35 = vmul.f32 %v6614_v8, %v11625_v3  ;;  %v6615_v39 = vld [vmem:[%s18683_s0 + $0x588] sm:$0xfe]  ;;  %v6616_v26 = vld [vmem:[%s18683_s0 + $0x590] sm:$0x1]  ;;  %v6617_v23 = vld [vmem:[%s18683_s0 + $0x598] sm:$0x1] }
 0x1e5   :  { %v11874_v28 = vmul.f32 %v6615_v39, %v11628_v49  ;;  %v11880_v24 = vmul.f32 %v6616_v26, %v11625_v3  ;;  %v11886_v8 = vmul.f32 %v6617_v23, %v11628_v49  ;;  %v6618_v47 = vld [vmem:[%s18683_s0 + $0x5a0] sm:$0xfe]  ;;  %v6619_v27 = vld [vmem:[%s18683_s0 + $0x5a8] sm:$0xfe]  ;;  %v6620_v19 = vld [vmem:[%s18683_s0 + $0x5b0] sm:$0x1] }
 0x1e6   :  { %v11892_v39 = vmul.f32 %v6618_v47, %v11625_v3  ;;  %v11898_v26 = vmul.f32 %v6619_v27, %v11628_v49  ;;  %v11904_v23 = vmul.f32 %v6620_v19, %v11625_v3  ;;  %v6621_v16 = vld [vmem:[%s18683_s0 + $0x5b8] sm:$0x1]  ;;  %v6622_v30 = vld [vmem:[%s18683_s0 + $0x5c0] sm:$0xfe]  ;;  %v6623_v57 = vld [vmem:[%s18683_s0 + $0x5c8] sm:$0xfe] }
 0x1e7   :  { %v11910_v47 = vmul.f32 %v6621_v16, %v11628_v49  ;;  %v11916_v27 = vmul.f32 %v6622_v30, %v11625_v3  ;;  %v11922_v19 = vmul.f32 %v6623_v57, %v11628_v49  ;;  %v1052_v60 = vld [vmem:[%s18683_s0 + $0x620] sm:$0xfe]  ;;  %v1053_v16 = vld [vmem:[%s18683_s0 + $0x628] sm:$0xfe]  ;;  %v6624_v30 = vld [vmem:[%s18683_s0 + $0x5d0] sm:$0x1] }
 0x1e8   :  { %v11934_v17 = vmul.f32 %v6624_v30, %v11625_v3  ;;  %v6625_v57 = vld [vmem:[%s18683_s0 + $0x5d8] sm:$0x1]  ;;  %v6626_v21 = vld [vmem:[%s18683_s0 + $0x5e0] sm:$0xfe]  ;;  %v6627_v10 = vld [vmem:[%s18683_s0 + $0x5e8] sm:$0xfe] }
 0x1e9   :  { %20380 = vst [vmem:[#allocation94_spill] sm:$0xff] %v11910_v47  ;;  %20381 = vst [vmem:[#allocation95_spill] sm:$0xff] %v11916_v27  ;;  %v11940_v54 = vmul.f32 %v6625_v57, %v11628_v49  ;;  %v11946_v11 = vmul.f32 %v6626_v21, %v11625_v3  ;;  %v11952_v30 = vmul.f32 %v6627_v10, %v11628_v49  ;;  %v1054_v61 = vld [vmem:[%s18683_s0 + $0x630] sm:$0x1]  ;;  %v2438_v57 = vrot.slane %v11674_v41, 1 }
 0x1ea   :  { %20382 = vst [vmem:[#allocation96_spill] sm:$0xff] %v11922_v19  ;;  %20383 = vst [vmem:[#allocation97_spill] sm:$0xff] %v11934_v17  ;;  %v2442_v21 = vrot.slane %v11692_v52, 1  ;;  %v2445_v10 = vrot.slane %v11704_v48, 1  ;;  %v2448_v19 = vrot.slane %v11708_v46, 1  ;;  %v20391_v17 = vld [vmem:[#allocation76_spill] sm:$0xff]  ;;  %v11997_v47 = vmul.f32 %v11625_v3, %v1052_v60 }
 0x1eb   :  { %20384 = vst [vmem:[#allocation98_spill] sm:$0xff] %v11940_v54  ;;  %20385 = vst [vmem:[#allocation99_spill] sm:$0xff] %v11946_v11  ;;  %v1055_v11 = vld [vmem:[%s18683_s0 + $0x638] sm:$0x1]  ;;  %v2444_v54 = vrot.slane %v11696_v51, 1  ;;  %v11990_v27 = vmul.f32 %v11625_v3, %v20391_v17 }
 0x1ec   :  { %20386 = vst [vmem:[#allocation100_spill] sm:$0xff] %v11952_v30  ;;  %v2447_v30 = vrot.slane %v11700_v22, 1  ;;  %v6628_v41 = vld [vmem:[%s18683_s0 + $0x5f0] sm:$0x1]  ;;  %v6629_v13 = vld [vmem:[%s18683_s0 + $0x5f8] sm:$0x1]  ;;  %v12012_v17 = vsel %vm1233_vm0, %v2441_v42, %v2442_v21 }
 0x1ed   :  { %v11972_v15 = vmul.f32 %v6628_v41, %v11625_v3  ;;  %v11978_v52 = vmul.f32 %v6629_v13, %v11628_v49  ;;  %v20388_v51 = vld [vmem:[#allocation64_spill] sm:$0xff]  ;;  %v20389_v22 = vld [vmem:[#allocation65_spill] sm:$0xff]  ;;  %v12000_v13 = vmul.f32 %v11628_v49, %v1053_v16  ;;  %v2450_v16 = vrot.slane %v11712_v31, 1 }
 0x1ee   :  { %v11982_v48 = vmul.f32 %v11625_v3, %v20388_v51  ;;  %v11986_v46 = vmul.f32 %v11628_v49, %v20389_v22  ;;  %v20392_v41 = vld [vmem:[#allocation49_spill] sm:$0xff]  ;;  %v12003_v51 = vmul.f32 %v11625_v3, %v1054_v61  ;;  %v12006_v22 = vmul.f32 %v11628_v49, %v1055_v11 }
 0x1ef   :  { %20387 = vst [vmem:[#allocation101_spill] sm:$0xff] %v11972_v15  ;;  %v11994_v15 = vmul.f32 %v11628_v49, %v20392_v41  ;;  %v12015_v41 = vsel %vm1233_vm0, %v2444_v54, %v2445_v10  ;;  %v12018_v60 = vsel %vm1233_vm0, %v2447_v30, %v2448_v19  ;;  %v2451_v61 = vrot.slane %v11720_v58, 1 }
 0x1f0   :  { %20390 = vst [vmem:[#allocation102_spill] sm:$0xff] %v11986_v46  ;;  %v12009_v46 = vsel %vm1233_vm0, %v2438_v57, %v2439_v14  ;;  %v2453_v3 = vrot.slane %v11716_v53, 1  ;;  %v2454_v11 = vrot.slane %v11724_v12, 1  ;;  %v2456_v14 = vrot.slane %v11728_v18, 1 }
 0x1f1   :  { %v2457_v49 = vrot.slane %v11742_v1, 1  ;;  %v2459_v42 = vrot.slane %v11732_v2, 1  ;;  %v2460_v54 = vrot.slane %v11746_v29, 1  ;;  %v2462_v57 = vrot.slane %v11750_v34, 1 }
 0x1f2   :  { %v2463_v19 = vrot.slane %v11764_v36, 1  ;;  %v2465_v31 = vrot.slane %v11754_v33, 1  ;;  %v2466_v58 = vrot.slane %v11768_v59, 1  ;;  %v2468_v53 = vrot.slane %v11772_v0, 1 }
 0x1f3   :  { %v2469_v12 = vrot.slane %v11780_v32, 1  ;;  %v2471_v18 = vrot.slane %v11776_v37, 1  ;;  %v2472_v1 = vrot.slane %v11786_v44, 1  ;;  %v2474_v2 = vrot.slane %v11790_v6, 1 }
 0x1f4   :  { %v2475_v29 = vrot.slane %v11798_v56, 1  ;;  %v2477_v34 = vrot.slane %v11794_v38, 1  ;;  %v2478_v36 = vrot.slane %v11802_v43, 1  ;;  %v2480_v33 = vrot.slane %v11805_v62, 1 }
 0x1f5   :  { %v2481_v59 = vrot.slane %v11811_v40, 1  ;;  %v2483_v0 = vrot.slane %v11808_v4, 1  ;;  %v2484_v32 = vrot.slane %v11814_v45, 1  ;;  %v2486_v37 = vrot.slane %v11820_v9, 1 }
 0x1f6   :  { %v2487_v44 = vrot.slane %v11832_v63, 1  ;;  %v2452_v6 = vsel %vm1233_vm0, %v2450_v16, %v2451_v61  ;;  %v2455_v56 = vsel %vm1233_vm0, %v2453_v3, %v2454_v11  ;;  %v2489_v38 = vrot.slane %v11826_v25, 1 }
 0x1f7   :  { %v2490_v43 = vrot.slane %v11838_v7, 1  ;;  %v2458_v62 = vsel %vm1233_vm0, %v2456_v14, %v2457_v49  ;;  %v2461_v40 = vsel %vm1233_vm0, %v2459_v42, %v2460_v54  ;;  %v2464_v4 = vsel %vm1233_vm0, %v2462_v57, %v2463_v19 }
 0x1f8   :  { %v2467_v45 = vsel %vm1233_vm0, %v2465_v31, %v2466_v58  ;;  %v2470_v9 = vsel %vm1233_vm0, %v2468_v53, %v2469_v12  ;;  %v2473_v63 = vsel %vm1233_vm0, %v2471_v18, %v2472_v1  ;;  %v2476_v30 = vsel %vm1233_vm0, %v2474_v2, %v2475_v29  ;;  %v20393_v58 = vld [vmem:[#allocation94_spill] sm:$0xff]  ;;  %v20394_v53 = vld [vmem:[#allocation95_spill] sm:$0xff]  ;;  %v20395_v12 = vld [vmem:[#allocation97_spill] sm:$0xff] }
 0x1f9   :  { %v2479_v21 = vsel %vm1233_vm0, %v2477_v34, %v2478_v36  ;;  %v2482_v25 = vsel %vm1233_vm0, %v2480_v33, %v2481_v59  ;;  %v2485_v7 = vsel %vm1233_vm0, %v2483_v0, %v2484_v32  ;;  %v2488_v10 = vsel %vm1233_vm0, %v2486_v37, %v2487_v44  ;;  %v20396_v18 = vld [vmem:[#allocation96_spill] sm:$0xff]  ;;  %v20397_v1 = vld [vmem:[#allocation98_spill] sm:$0xff]  ;;  %v20398_v2 = vld [vmem:[#allocation99_spill] sm:$0xff] }
 0x1fa   :  { %v2492_v16 = vrot.slane %v11844_v55, 1  ;;  %v2491_v61 = vsel %vm1233_vm0, %v2489_v38, %v2490_v43  ;;  %v2493_v3 = vrot.slane %v11856_v50, 1  ;;  %v2495_v11 = vrot.slane %v11850_v5, 1  ;;  %v20399_v29 = vld [vmem:[#allocation101_spill] sm:$0xff]  ;;  %v20400_v34 = vld [vmem:[#allocation100_spill] sm:$0xff]  ;;  %v20401_v33 = vld [vmem:[#allocation102_spill] sm:$0xff] }
 0x1fb   :  { %v2496_v14 = vrot.slane %v11862_v20, 1  ;;  %v2498_v49 = vrot.slane %v11868_v35, 1  ;;  %v2499_v42 = vrot.slane %v11880_v24, 1  ;;  %v2501_v54 = vrot.slane %v11874_v28, 1 }
 0x1fc   :  { %v2502_v57 = vrot.slane %v11886_v8, 1  ;;  %v2504_v19 = vrot.slane %v11892_v39, 1  ;;  %v2505_v55 = vrot.slane %v11904_v23, 1  ;;  %v2507_v31 = vrot.slane %v11898_v26, 1 }
 0x1fd   :  { %v2508_v50 = vrot.slane %v20393_v58, 1  ;;  %v2510_v5 = vrot.slane %v20394_v53, 1  ;;  %v2511_v20 = vrot.slane %v20395_v12, 1  ;;  %v2513_v35 = vrot.slane %v20396_v18, 1  ;;  %v20410_v53 = vld [vmem:[#allocation30_spill] sm:$0xff]  ;;  %v20412_v12 = vld [vmem:[#allocation40_spill] sm:$0xff] }
 0x1fe   :  { %v2514_v24 = vrot.slane %v20397_v1, 1  ;;  %v2516_v28 = vrot.slane %v20398_v2, 1  ;;  %v2517_v8 = vrot.slane %v20399_v29, 1  ;;  %v2519_v39 = vrot.slane %v20400_v34, 1 }
 0x1ff   :  { %v2520_v23 = vrot.slane %v11978_v52, 1  ;;  %v2522_v26 = vrot.slane %v11982_v48, 1  ;;  %v2523_v36 = vrot.slane %v11990_v27, 1  ;;  %v2525_v59 = vrot.slane %v20401_v33, 1 }
 0x200   :  { %v2526_v0 = vrot.slane %v11994_v15, 1  ;;  %v2494_v32 = vsel %vm1233_vm0, %v2492_v16, %v2493_v3  ;;  %v2497_v37 = vsel %vm1233_vm0, %v2495_v11, %v2496_v14  ;;  %v2528_v44 = vrot.slane %v11997_v47, 1 }
 0x201   :  { %v2529_v38 = vrot.slane %v12003_v51, 1  ;;  %v2500_v43 = vsel %vm1233_vm0, %v2498_v49, %v2499_v42  ;;  %v2503_v52 = vsel %vm1233_vm0, %v2501_v54, %v2502_v57  ;;  %v2531_v48 = vrot.slane %v12000_v13, 1  ;;  %v20402_v49 = vld [vmem:[#allocation12_spill] sm:$0xff]  ;;  %v20406_v57 = vld [vmem:[#allocation29_spill] sm:$0xff] }
 0x202   :  { %v2532_v27 = vrot.slane %v12006_v22, 1  ;;  %v2506_v58 = vsel %vm1233_vm0, %v2504_v19, %v2505_v55  ;;  %v2509_v15 = vsel %vm1233_vm0, %v2507_v31, %v2508_v50  ;;  %v2512_v16 = vsel %vm1233_vm0, %v2510_v5, %v2511_v20  ;;  %v20404_v42 = vld [vmem:[#allocation28_spill] sm:$0xff] }
 0x203   :  { %v2515_v3 = vsel %vm1233_vm0, %v2513_v35, %v2514_v24  ;;  %v2518_v47 = vsel %vm1233_vm0, %v2516_v28, %v2517_v8  ;;  %v2521_v51 = vsel %vm1233_vm0, %v2519_v39, %v2520_v23  ;;  %v2524_v11 = vsel %vm1233_vm0, %v2522_v26, %v2523_v36  ;;  %v20408_v31 = vld [vmem:[#allocation32_spill] sm:$0xff] }
 0x204   :  { %v2527_v14 = vsel %vm1233_vm0, %v2525_v59, %v2526_v0  ;;  %v2530_v13 = vsel %vm1233_vm0, %v2528_v44, %v2529_v38  ;;  %v12105_v22 = vadd.f32 %v12009_v46, %v20402_v49  ;;  %v12109_v54 = vadd.f32 %v12012_v17, %v20404_v42  ;;  %v20414_v20 = vld [vmem:[#allocation20_spill] sm:$0xff]  ;;  %v20416_v17 = vld [vmem:[#allocation21_spill] sm:$0xff]  ;;  %v20440_v59 = vld [vmem:[#allocation43_spill] sm:$0xff] }
 0x205   :  { %v12113_v19 = vadd.f32 %v12015_v41, %v20406_v57  ;;  %v2533_v55 = vsel %vm1233_vm0, %v2531_v48, %v2532_v27  ;;  %v12118_v50 = vadd.f32 %v12018_v60, %v20408_v31  ;;  %v12121_v5 = vadd.f32 %v2452_v6, %v20410_v53  ;;  %v20418_v41 = vld [vmem:[#allocation75_spill] sm:$0xff]  ;;  %v20420_v24 = vld [vmem:[#allocation8_spill] sm:$0xff]  ;;  %v20422_v60 = vld [vmem:[#allocation26_spill] sm:$0xff] }
 0x206   :  { %20403 = vst [vmem:[#allocation103_spill] sm:$0xff] %v12105_v22  ;;  %20405 = vst [vmem:[#allocation104_spill] sm:$0xff] %v12109_v54  ;;  %v12124_v46 = vadd.f32 %v2455_v56, %v20412_v12  ;;  %v12127_v18 = vadd.f32 %v2458_v62, %v20414_v20  ;;  %v12130_v35 = vadd.f32 %v2461_v40, %v20416_v17  ;;  %v20424_v6 = vld [vmem:[#allocation27_spill] sm:$0xff]  ;;  %v20426_v56 = vld [vmem:[#allocation33_spill] sm:$0xff] }
 0x207   :  { %20407 = vst [vmem:[#allocation105_spill] sm:$0xff] %v12113_v19  ;;  %20409 = vst [vmem:[#allocation106_spill] sm:$0xff] %v12118_v50  ;;  %v12133_v1 = vadd.f32 %v2464_v4, %v20418_v41  ;;  %v12136_v2 = vadd.f32 %v2467_v45, %v20420_v24  ;;  %v12139_v28 = vadd.f32 %v2470_v9, %v20422_v60  ;;  %v20428_v62 = vld [vmem:[#allocation39_spill] sm:$0xff]  ;;  %v6409_v40 = vld [vmem:[%s18683_s0 + $0x148] sm:$0xfe] }
 0x208   :  { %20411 = vst [vmem:[#allocation107_spill] sm:$0xff] %v12121_v5  ;;  %20413 = vst [vmem:[#allocation108_spill] sm:$0xff] %v12124_v46  ;;  %v12142_v29 = vadd.f32 %v2473_v63, %v20424_v6  ;;  %v12145_v8 = vadd.f32 %v2476_v30, %v20426_v56  ;;  %v12148_v34 = vadd.f32 %v2479_v21, %v20428_v62  ;;  %v20430_v4 = vld [vmem:[#allocation87_spill] sm:$0xff]  ;;  %v20432_v45 = vld [vmem:[#allocation9_spill] sm:$0xff] }
 0x209   :  { %20415 = vst [vmem:[#allocation109_spill] sm:$0xff] %v12127_v18  ;;  %20417 = vst [vmem:[#allocation110_spill] sm:$0xff] %v12130_v35  ;;  %v12154_v39 = vadd.f32 %v2482_v25, %v20430_v4  ;;  %v12157_v23 = vadd.f32 %v2485_v7, %v20432_v45  ;;  %v20434_v9 = vld [vmem:[#allocation88_spill] sm:$0xff]  ;;  %v6408_v30 = vld [vmem:[%s18683_s0 + $0x140] sm:$0xfe]  ;;  %v12184_v0 = vadd.f32 %v2497_v37, %v20440_v59 }
 0x20a   :  { %20419 = vst [vmem:[#allocation111_spill] sm:$0xff] %v12133_v1  ;;  %20421 = vst [vmem:[#allocation112_spill] sm:$0xff] %v12136_v2  ;;  %v12160_v26 = vadd.f32 %v2488_v10, %v20434_v9  ;;  %v20436_v63 = vld [vmem:[#allocation36_spill] sm:$0xff]  ;;  %v6410_v21 = vld [vmem:[%s18683_s0 + $0x150] sm:$0x1] }
 0x20b   :  { %20423 = vst [vmem:[#allocation113_spill] sm:$0xff] %v12139_v28  ;;  %20425 = vst [vmem:[#allocation114_spill] sm:$0xff] %v12142_v29  ;;  %v12163_v36 = vadd.f32 %v2491_v61, %v20436_v63  ;;  %v6411_v25 = vld [vmem:[%s18683_s0 + $0x158] sm:$0x1]  ;;  %v6412_v7 = vld [vmem:[%s18683_s0 + $0x160] sm:$0xfe] }
 0x20c   :  { %20427 = vst [vmem:[#allocation115_spill] sm:$0xff] %v12145_v8  ;;  %20429 = vst [vmem:[#allocation116_spill] sm:$0xff] %v12148_v34  ;;  %v6413_v10 = vld [vmem:[%s18683_s0 + $0x168] sm:$0xfe]  ;;  %v20438_v61 = vld [vmem:[#allocation37_spill] sm:$0xff] }
 0x20d   :  { %20431 = vst [vmem:[#allocation117_spill] sm:$0xff] %v12154_v39  ;;  %20433 = vst [vmem:[#allocation118_spill] sm:$0xff] %v12157_v23  ;;  %v12181_v33 = vadd.f32 %v2494_v32, %v20438_v61  ;;  %v20442_v44 = vld [vmem:[#allocation44_spill] sm:$0xff]  ;;  %v20444_v48 = vld [vmem:[#allocation46_spill] sm:$0xff] }
 0x20e   :  { %20435 = vst [vmem:[#allocation119_spill] sm:$0xff] %v12160_v26  ;;  %20437 = vst [vmem:[#allocation120_spill] sm:$0xff] %v12163_v36  ;;  %v12187_v38 = vadd.f32 %v2500_v43, %v20442_v44  ;;  %v12190_v27 = vadd.f32 %v2503_v52, %v20444_v48  ;;  %v6414_v49 = vld [vmem:[%s18683_s0 + $0x170] sm:$0x1]  ;;  %v6415_v42 = vld [vmem:[%s18683_s0 + $0x178] sm:$0x1] }
 0x20f   :  { %20439 = vst [vmem:[#allocation121_spill] sm:$0xff] %v12181_v33  ;;  %20441 = vst [vmem:[#allocation125_spill] sm:$0xff] %v12184_v0  ;;  %v6416_v32 = vld [vmem:[%s18683_s0 + $0x180] sm:$0xfe]  ;;  %v6417_v37 = vld [vmem:[%s18683_s0 + $0x188] sm:$0xfe] }
 0x210   :  { %20443 = vst [vmem:[#allocation126_spill] sm:$0xff] %v12187_v38  ;;  %20445 = vst [vmem:[#allocation127_spill] sm:$0xff] %v12190_v27  ;;  %v20446_v43 = vld [vmem:[#allocation47_spill] sm:$0xff]  ;;  %v20450_v53 = vld [vmem:[#allocation52_spill] sm:$0xff] }
 0x211   :  { %v12205_v57 = vadd.f32 %v2506_v58, %v20446_v43  ;;  %v20448_v52 = vld [vmem:[#allocation67_spill] sm:$0xff]  ;;  %v12211_v12 = vadd.f32 %v2512_v16, %v20450_v53  ;;  %v20452_v20 = vld [vmem:[#allocation68_spill] sm:$0xff]  ;;  %v6420_v58 = vld [vmem:[%s18683_s0 + $0x1a0] sm:$0xfe] }
 0x212   :  { %v12208_v31 = vadd.f32 %v2509_v15, %v20448_v52  ;;  %v12214_v17 = vadd.f32 %v2515_v3, %v20452_v20  ;;  %v6418_v41 = vld [vmem:[%s18683_s0 + $0x190] sm:$0x1]  ;;  %v6419_v24 = vld [vmem:[%s18683_s0 + $0x198] sm:$0x1]  ;;  %v6421_v15 = vld [vmem:[%s18683_s0 + $0x1a8] sm:$0xfe] }
 0x213   :  { %20447 = vst [vmem:[#allocation132_spill] sm:$0xff] %v12205_v57  ;;  %20451 = vst [vmem:[#allocation138_spill] sm:$0xff] %v12211_v12  ;;  %v20454_v16 = vld [vmem:[#allocation69_spill] sm:$0xff]  ;;  %v20456_v3 = vld [vmem:[#allocation50_spill] sm:$0xff] }
 0x214   :  { %20449 = vst [vmem:[#allocation133_spill] sm:$0xff] %v12208_v31  ;;  %20453 = vst [vmem:[#allocation139_spill] sm:$0xff] %v12214_v17  ;;  %v12229_v60 = vadd.f32 %v2518_v47, %v20454_v16  ;;  %v12232_v6 = vadd.f32 %v2521_v51, %v20456_v3  ;;  %v20458_v56 = vld [vmem:[#allocation81_spill] sm:$0xff]  ;;  %v20460_v4 = vld [vmem:[#allocation83_spill] sm:$0xff] }
 0x215   :  { %v12235_v62 = vadd.f32 %v2524_v11, %v20458_v56  ;;  %v12238_v45 = vadd.f32 %v2527_v14, %v20460_v4  ;;  %v6422_v9 = vld [vmem:[%s18683_s0 + $0x1b0] sm:$0x1]  ;;  %v6423_v63 = vld [vmem:[%s18683_s0 + $0x1b8] sm:$0x1]  ;;  %v6424_v47 = vld [vmem:[%s18683_s0 + $0x1c0] sm:$0xfe] }
 0x216   :  { %20455 = vst [vmem:[#allocation134_spill] sm:$0xff] %v12229_v60  ;;  %20457 = vst [vmem:[#allocation135_spill] sm:$0xff] %v12232_v6  ;;  %v6425_v51 = vld [vmem:[%s18683_s0 + $0x1c8] sm:$0xfe]  ;;  %v20462_v11 = vld [vmem:[#allocation84_spill] sm:$0xff] }
 0x217   :  { %20459 = vst [vmem:[#allocation136_spill] sm:$0xff] %v12235_v62  ;;  %20461 = vst [vmem:[#allocation137_spill] sm:$0xff] %v12238_v45  ;;  %v12253_v61 = vadd.f32 %v2530_v13, %v20462_v11  ;;  %v20464_v14 = vld [vmem:[#allocation89_spill] sm:$0xff]  ;;  %v6426_v44 = vld [vmem:[%s18683_s0 + $0x1d0] sm:$0x1] }
 0x218   :  { %v12256_v59 = vadd.f32 %v2533_v55, %v20464_v14  ;;  %v6427_v48 = vld [vmem:[%s18683_s0 + $0x1d8] sm:$0x1]  ;;  %v6428_v43 = vld [vmem:[%s18683_s0 + $0x1e0] sm:$0xfe]  ;;  %v6429_v13 = vld [vmem:[%s18683_s0 + $0x1e8] sm:$0xfe] }
 0x219   :  { %20463 = vst [vmem:[#allocation18_spill] sm:$0xff] %v12253_v61  ;;  %v20466_v52 = vld [vmem:[#allocation90_spill] sm:$0xff]  ;;  %v20467_v55 = vld [vmem:[#allocation91_spill] sm:$0xff]  ;;  %v6431_v3 = vld [vmem:[%s18683_s0 + $0x1f8] sm:$0x1] }
 0x21a   :  { %20465 = vst [vmem:[#allocation22_spill] sm:$0xff] %v12256_v59  ;;  %v12271_v53 = vmul.f32 %v6408_v30, %v20466_v52  ;;  %v12274_v20 = vmul.f32 %v6409_v40, %v20467_v55  ;;  %v6430_v16 = vld [vmem:[%s18683_s0 + $0x1f0] sm:$0x1]  ;;  %v6432_v56 = vld [vmem:[%s18683_s0 + $0x200] sm:$0xfe]  ;;  %v12289_v4 = vmul.f32 %v6410_v21, %v20466_v52  ;;  %v12292_v40 = vmul.f32 %v6411_v25, %v20467_v55 }
 0x21b   :  { %v6433_v30 = vld [vmem:[%s18683_s0 + $0x208] sm:$0xfe]  ;;  %v12295_v11 = vmul.f32 %v6412_v7, %v20466_v52  ;;  %v12298_v14 = vmul.f32 %v6413_v10, %v20467_v55  ;;  %v6434_v59 = vld [vmem:[%s18683_s0 + $0x210] sm:$0x1]  ;;  %v6435_v61 = vld [vmem:[%s18683_s0 + $0x218] sm:$0x1]  ;;  %v12313_v7 = vmul.f32 %v6414_v49, %v20466_v52  ;;  %v12316_v10 = vmul.f32 %v6415_v42, %v20467_v55 }
 0x21c   :  { %v6436_v21 = vld [vmem:[%s18683_s0 + $0x220] sm:$0xfe]  ;;  %v6437_v25 = vld [vmem:[%s18683_s0 + $0x228] sm:$0xfe]  ;;  %v12319_v45 = vmul.f32 %v6416_v32, %v20466_v52  ;;  %v12322_v62 = vmul.f32 %v6417_v37, %v20467_v55  ;;  %v12327_v6 = vld [vmem:[%s18683_s0 + $0x230] sm:$0x1]  ;;  %v12338_v42 = vmul.f32 %v6418_v41, %v20466_v52  ;;  %v12341_v32 = vmul.f32 %v6419_v24, %v20467_v55 }
 0x21d   :  { %20468 = vst [vmem:[#allocation19_spill] sm:$0xff] %v12327_v6  ;;  %v12332_v60 = vld [vmem:[%s18683_s0 + $0x238] sm:$0x1]  ;;  %v6484_v49 = vld [vmem:[%s18683_s0 + $0x640] sm:$0xfe]  ;;  %v12344_v37 = vmul.f32 %v6420_v58, %v20466_v52  ;;  %v12347_v17 = vmul.f32 %v6421_v15, %v20467_v55  ;;  %v12359_v24 = vmul.f32 %v6422_v9, %v20466_v52  ;;  %v12362_v58 = vmul.f32 %v6423_v63, %v20467_v55 }
 0x21e   :  { %20469 = vst [vmem:[#allocation53_spill] sm:$0xff] %v12332_v60  ;;  %v6485_v12 = vld [vmem:[%s18683_s0 + $0x648] sm:$0xfe]  ;;  %v6486_v31 = vld [vmem:[%s18683_s0 + $0x650] sm:$0x1]  ;;  %v12365_v15 = vmul.f32 %v6424_v47, %v20466_v52  ;;  %v12368_v57 = vmul.f32 %v6425_v51, %v20467_v55  ;;  %v12386_v63 = vmul.f32 %v6426_v44, %v20466_v52  ;;  %v12389_v47 = vmul.f32 %v6427_v48, %v20467_v55 }
 0x21f   :  { %v6487_v41 = vld [vmem:[%s18683_s0 + $0x658] sm:$0x1]  ;;  %v12373_v27 = vld [vmem:[%s18683_s0 + $0x660] sm:$0xfe]  ;;  %v12378_v38 = vld [vmem:[%s18683_s0 + $0x668] sm:$0xfe]  ;;  %v12392_v51 = vmul.f32 %v6428_v43, %v20466_v52  ;;  %v12395_v0 = vmul.f32 %v6429_v13, %v20467_v55  ;;  %v12413_v48 = vmul.f32 %v6430_v16, %v20466_v52  ;;  %v12416_v43 = vmul.f32 %v6431_v3, %v20467_v55 }
 0x220   :  { %20470 = vst [vmem:[#allocation61_spill] sm:$0xff] %v12373_v27  ;;  %20471 = vst [vmem:[#allocation78_spill] sm:$0xff] %v12378_v38  ;;  %v12383_v9 = vld [vmem:[%s18683_s0 + $0x670] sm:$0x1]  ;;  %v12400_v33 = vld [vmem:[%s18683_s0 + $0x678] sm:$0x1]  ;;  %v12419_v13 = vmul.f32 %v6432_v56, %v20466_v52  ;;  %v12422_v26 = vmul.f32 %v6433_v30, %v20467_v55  ;;  %v12440_v3 = vmul.f32 %v6434_v59, %v20466_v52 }
 0x221   :  { %20472 = vst [vmem:[#allocation11_spill] sm:$0xff] %v12383_v9  ;;  %20473 = vst [vmem:[#allocation13_spill] sm:$0xff] %v12400_v33  ;;  %v12405_v36 = vld [vmem:[%s18683_s0 + $0x680] sm:$0xfe]  ;;  %v12410_v44 = vld [vmem:[%s18683_s0 + $0x688] sm:$0xfe]  ;;  %v12443_v56 = vmul.f32 %v6435_v61, %v20467_v55  ;;  %v12446_v30 = vmul.f32 %v6436_v21, %v20466_v52  ;;  %v12449_v34 = vmul.f32 %v6437_v25, %v20467_v55 }
 0x222   :  { %20474 = vst [vmem:[#allocation35_spill] sm:$0xff] %v12405_v36  ;;  %20475 = vst [vmem:[#allocation54_spill] sm:$0xff] %v12410_v44  ;;  %v12427_v23 = vld [vmem:[%s18683_s0 + $0x690] sm:$0x1]  ;;  %v12432_v39 = vld [vmem:[%s18683_s0 + $0x698] sm:$0x1]  ;;  %v12468_v59 = vmul.f32 %v12327_v6, %v20466_v52  ;;  %v12472_v21 = vmul.f32 %v12332_v60, %v20467_v55  ;;  %v12475_v25 = vmul.f32 %v6484_v49, %v20466_v52 }
 0x223   :  { %20476 = vst [vmem:[#allocation56_spill] sm:$0xff] %v12427_v23  ;;  %20477 = vst [vmem:[#allocation57_spill] sm:$0xff] %v12432_v39  ;;  %v12437_v16 = vld [vmem:[%s18683_s0 + $0x6a0] sm:$0xfe]  ;;  %v12454_v8 = vld [vmem:[%s18683_s0 + $0x6a8] sm:$0xfe]  ;;  %v12478_v28 = vmul.f32 %v6485_v12, %v20467_v55  ;;  %v12496_v49 = vmul.f32 %v6486_v31, %v20466_v52  ;;  %v12499_v12 = vmul.f32 %v6487_v41, %v20467_v55 }
 0x224   :  { %20478 = vst [vmem:[#allocation58_spill] sm:$0xff] %v12437_v16  ;;  %20479 = vst [vmem:[#allocation59_spill] sm:$0xff] %v12454_v8  ;;  %v12459_v29 = vld [vmem:[%s18683_s0 + $0x6b0] sm:$0x1]  ;;  %v12464_v61 = vld [vmem:[%s18683_s0 + $0x6b8] sm:$0x1]  ;;  %v12503_v1 = vmul.f32 %v12373_v27, %v20466_v52  ;;  %v12507_v35 = vmul.f32 %v12378_v38, %v20467_v55  ;;  %v12526_v27 = vmul.f32 %v12383_v9, %v20466_v52 }
 0x225   :  { %20480 = vst [vmem:[#allocation10_spill] sm:$0xff] %v12459_v29  ;;  %20481 = vst [vmem:[#allocation77_spill] sm:$0xff] %v12464_v61  ;;  %v12483_v2 = vld [vmem:[%s18683_s0 + $0x6c0] sm:$0xfe]  ;;  %v12488_v6 = vld [vmem:[%s18683_s0 + $0x6c8] sm:$0xfe]  ;;  %v12530_v38 = vmul.f32 %v12400_v33, %v20467_v55  ;;  %v12534_v46 = vmul.f32 %v12405_v36, %v20466_v52  ;;  %v12538_v5 = vmul.f32 %v12410_v44, %v20467_v55 }
 0x226   :  { %20482 = vst [vmem:[#allocation14_spill] sm:$0xff] %v12483_v2  ;;  %20483 = vst [vmem:[#allocation82_spill] sm:$0xff] %v12488_v6  ;;  %v12493_v60 = vld [vmem:[%s18683_s0 + $0x6d0] sm:$0x1]  ;;  %v12512_v18 = vld [vmem:[%s18683_s0 + $0x6d8] sm:$0x1]  ;;  %v12552_v33 = vmul.f32 %v12427_v23, %v20466_v52  ;;  %v12556_v36 = vmul.f32 %v12432_v39, %v20467_v55  ;;  %v12560_v44 = vmul.f32 %v12437_v16, %v20466_v52 }
 0x227   :  { %20484 = vst [vmem:[#allocation51_spill] sm:$0xff] %v12493_v60  ;;  %20485 = vst [vmem:[#allocation15_spill] sm:$0xff] %v12512_v18  ;;  %v12517_v31 = vld [vmem:[%s18683_s0 + $0x6e0] sm:$0xfe]  ;;  %v12522_v41 = vld [vmem:[%s18683_s0 + $0x6e8] sm:$0xfe]  ;;  %v12564_v19 = vmul.f32 %v12454_v8, %v20467_v55  ;;  %v12583_v16 = vmul.f32 %v12459_v29, %v20466_v52  ;;  %v12587_v8 = vmul.f32 %v12464_v61, %v20467_v55 }
 0x228   :  { %20486 = vst [vmem:[#allocation16_spill] sm:$0xff] %v12517_v31  ;;  %20487 = vst [vmem:[#allocation17_spill] sm:$0xff] %v12522_v41  ;;  %v12543_v50 = vld [vmem:[%s18683_s0 + $0x6f0] sm:$0x1]  ;;  %v12548_v9 = vld [vmem:[%s18683_s0 + $0x6f8] sm:$0x1]  ;;  %v12591_v22 = vmul.f32 %v12483_v2, %v20466_v52  ;;  %v12614_v2 = vmul.f32 %v12493_v60, %v20466_v52 }
 0x229   :  { %20488 = vst [vmem:[#allocation41_spill] sm:$0xff] %v12543_v50  ;;  %20489 = vst [vmem:[#allocation31_spill] sm:$0xff] %v12548_v9  ;;  %v12569_v54 = vld [vmem:[%s18683_s0 + $0x700] sm:$0xfe]  ;;  %v12574_v23 = vld [vmem:[%s18683_s0 + $0x708] sm:$0xfe] }
 0x22a   :  { %20490 = vst [vmem:[#allocation55_spill] sm:$0xff] %v12560_v44  ;;  %20491 = vst [vmem:[#allocation45_spill] sm:$0xff] %v12564_v19  ;;  %v12579_v39 = vld [vmem:[%s18683_s0 + $0x710] sm:$0x1]  ;;  %v12595_v19 = vmul.f32 %v12488_v6, %v20467_v55  ;;  %v12600_v44 = vld [vmem:[%s18683_s0 + $0x718] sm:$0x1]  ;;  %v12618_v6 = vmul.f32 %v12512_v18, %v20467_v55 }
 0x22b   :  { %20492 = vst [vmem:[#allocation62_spill] sm:$0xff] %v12569_v54  ;;  %20493 = vst [vmem:[#allocation60_spill] sm:$0xff] %v12574_v23  ;;  %v12605_v29 = vld [vmem:[%s18683_s0 + $0x720] sm:$0xfe]  ;;  %v12610_v61 = vld [vmem:[%s18683_s0 + $0x728] sm:$0xfe] }
 0x22c   :  { %20494 = vst [vmem:[#allocation63_spill] sm:$0xff] %v12579_v39  ;;  %20495 = vst [vmem:[#allocation70_spill] sm:$0xff] %v12583_v16  ;;  %v2891_v60 = vrot.slane %v12271_v53, 1  ;;  %v2894_v18 = vrot.slane %v12274_v20, 1  ;;  %v2901_v16 = vrot.slane %v12316_v10, 1  ;;  %v12648_v53 = vmul.f32 %v12543_v50, %v20466_v52 }
 0x22d   :  { %20496 = vst [vmem:[#allocation72_spill] sm:$0xff] %v12587_v8  ;;  %20497 = vst [vmem:[#allocation71_spill] sm:$0xff] %v12591_v22  ;;  %v12626_v22 = vmul.f32 %v12522_v41, %v20467_v55  ;;  %v12631_v8 = vld [vmem:[%s18683_s0 + $0x730] sm:$0x1]  ;;  %v2897_v41 = vrot.slane %v12295_v11, 1  ;;  %v12652_v20 = vmul.f32 %v12548_v9, %v20467_v55  ;;  %v12664_v11 = vmul.f32 %v12579_v39, %v20466_v52 }
 0x22e   :  { %20498 = vst [vmem:[#allocation25_spill] sm:$0xff] %v12595_v19  ;;  %20499 = vst [vmem:[#allocation123_spill] sm:$0xff] %v12600_v44  ;;  %v12622_v19 = vmul.f32 %v12517_v31, %v20466_v52  ;;  %v12640_v31 = vld [vmem:[%s18683_s0 + $0x738] sm:$0x1]  ;;  %v12676_v10 = vmul.f32 %v12610_v61, %v20467_v55  ;;  %v2903_v9 = vrot.slane %v12319_v45, 1  ;;  %v2918_v45 = vrot.slane %v12368_v57, 1 }
 0x22f   :  { %20500 = vst [vmem:[#allocation122_spill] sm:$0xff] %v12605_v29  ;;  %20501 = vst [vmem:[#allocation124_spill] sm:$0xff] %v12610_v61  ;;  %v12684_v39 = vmul.f32 %v12640_v31, %v20467_v55  ;;  %v2933_v57 = vrot.slane %v12446_v30, 1  ;;  %v13010_v50 = vld [vmem:[%s18683_s0 + $0x478] sm:$0x1] }
 0x230   :  { %20502 = vst [vmem:[#allocation128_spill] sm:$0xff] %v12614_v2  ;;  %20503 = vst [vmem:[#allocation130_spill] sm:$0xff] %v12618_v6  ;;  %v2892_v2 = vrot.slane %v12289_v4, 1  ;;  %v2895_v6 = vrot.slane %v12292_v40, 1  ;;  %v12656_v4 = vmul.f32 %v12569_v54, %v20466_v52  ;;  %v12660_v40 = vmul.f32 %v12574_v23, %v20467_v55 }
 0x231   :  { %20504 = vst [vmem:[#allocation129_spill] sm:$0xff] %v12622_v19  ;;  %20505 = vst [vmem:[#allocation131_spill] sm:$0xff] %v12626_v22  ;;  %v2898_v22 = vrot.slane %v12313_v7, 1  ;;  %v2900_v19 = vrot.slane %v12298_v14, 1  ;;  %v12668_v14 = vmul.f32 %v12600_v44, %v20467_v55  ;;  %v12672_v7 = vmul.f32 %v12605_v29, %v20466_v52 }
 0x232   :  { %20506 = vst [vmem:[#allocation34_spill] sm:$0xff] %v12631_v8  ;;  %20507 = vst [vmem:[#allocation38_spill] sm:$0xff] %v12640_v31  ;;  %v12680_v23 = vmul.f32 %v12631_v8, %v20466_v52  ;;  %v12687_v54 = vsel %vm1233_vm0, %v2891_v60, %v2892_v2  ;;  %v12690_v44 = vsel %vm1233_vm0, %v2894_v18, %v2895_v6  ;;  %v2904_v52 = vrot.slane %v12338_v42, 1  ;;  %v13005_v31 = vld [vmem:[%s18683_s0 + $0x470] sm:$0x1] }
 0x233   :  { %v12693_v29 = vsel %vm1233_vm0, %v2897_v41, %v2898_v22  ;;  %v12696_v61 = vsel %vm1233_vm0, %v2900_v19, %v2901_v16  ;;  %v2906_v8 = vrot.slane %v12322_v62, 1  ;;  %v2907_v55 = vrot.slane %v12341_v32, 1  ;;  %20602 = vst [vmem:[#allocation33_spill] sm:$0xff] %v13005_v31  ;;  %20603 = vst [vmem:[#allocation39_spill] sm:$0xff] %v13010_v50 }
 0x234   :  { %v2909_v2 = vrot.slane %v12344_v37, 1  ;;  %v2910_v60 = vrot.slane %v12359_v24, 1  ;;  %v2912_v18 = vrot.slane %v12347_v17, 1  ;;  %v2913_v22 = vrot.slane %v12362_v58, 1 }
 0x235   :  { %v2915_v6 = vrot.slane %v12365_v15, 1  ;;  %v2916_v19 = vrot.slane %v12386_v63, 1  ;;  %v2919_v42 = vrot.slane %v12389_v47, 1  ;;  %v2921_v62 = vrot.slane %v12392_v51, 1 }
 0x236   :  { %v2922_v32 = vrot.slane %v12413_v48, 1  ;;  %v2924_v37 = vrot.slane %v12395_v0, 1  ;;  %v2925_v24 = vrot.slane %v12416_v43, 1  ;;  %v2927_v17 = vrot.slane %v12419_v13, 1 }
 0x237   :  { %v2928_v58 = vrot.slane %v12440_v3, 1  ;;  %v2930_v15 = vrot.slane %v12422_v26, 1  ;;  %v2931_v63 = vrot.slane %v12443_v56, 1  ;;  %v2934_v47 = vrot.slane %v12468_v59, 1 }
 0x238   :  { %v2936_v51 = vrot.slane %v12449_v34, 1  ;;  %v2937_v48 = vrot.slane %v12472_v21, 1  ;;  %v2939_v0 = vrot.slane %v12475_v25, 1  ;;  %v2940_v43 = vrot.slane %v12496_v49, 1 }
 0x239   :  { %v2905_v13 = vsel %vm1233_vm0, %v2903_v9, %v2904_v52  ;;  %v2908_v16 = vsel %vm1233_vm0, %v2906_v8, %v2907_v55  ;;  %v2942_v26 = vrot.slane %v12478_v28, 1  ;;  %v2943_v3 = vrot.slane %v12499_v12, 1 }
 0x23a   :  { %v2911_v56 = vsel %vm1233_vm0, %v2909_v2, %v2910_v60  ;;  %v2914_v30 = vsel %vm1233_vm0, %v2912_v18, %v2913_v22  ;;  %v2917_v34 = vsel %vm1233_vm0, %v2915_v6, %v2916_v19  ;;  %v2920_v59 = vsel %vm1233_vm0, %v2918_v45, %v2919_v42  ;;  %v20508_v45 = vld [vmem:[#allocation55_spill] sm:$0xff] }
 0x23b   :  { %v2923_v21 = vsel %vm1233_vm0, %v2921_v62, %v2922_v32  ;;  %v2926_v25 = vsel %vm1233_vm0, %v2924_v37, %v2925_v24  ;;  %v2929_v9 = vsel %vm1233_vm0, %v2927_v17, %v2928_v58  ;;  %v2932_v8 = vsel %vm1233_vm0, %v2930_v15, %v2931_v63  ;;  %v20510_v32 = vld [vmem:[#allocation45_spill] sm:$0xff]  ;;  %v20511_v24 = vld [vmem:[#allocation72_spill] sm:$0xff]  ;;  %v20512_v17 = vld [vmem:[#allocation71_spill] sm:$0xff] }
 0x23c   :  { %v12737_v28 = vsel %vm1233_vm0, %v2933_v57, %v2934_v47  ;;  %v12740_v49 = vsel %vm1233_vm0, %v2936_v51, %v2937_v48  ;;  %v12743_v12 = vsel %vm1233_vm0, %v2939_v0, %v2940_v43  ;;  %v2945_v41 = vrot.slane %v12503_v1, 1  ;;  %v20509_v1 = vld [vmem:[#allocation70_spill] sm:$0xff]  ;;  %v20513_v58 = vld [vmem:[#allocation128_spill] sm:$0xff]  ;;  %v20514_v15 = vld [vmem:[#allocation25_spill] sm:$0xff] }
 0x23d   :  { %v12747_v52 = vsel %vm1233_vm0, %v2942_v26, %v2943_v3  ;;  %v2946_v55 = vrot.slane %v12526_v27, 1  ;;  %v2948_v2 = vrot.slane %v12507_v35, 1  ;;  %v2949_v60 = vrot.slane %v12530_v38, 1  ;;  %v20515_v63 = vld [vmem:[#allocation130_spill] sm:$0xff]  ;;  %v20516_v57 = vld [vmem:[#allocation129_spill] sm:$0xff]  ;;  %v20517_v47 = vld [vmem:[#allocation131_spill] sm:$0xff] }
 0x23e   :  { %v2951_v18 = vrot.slane %v12534_v46, 1  ;;  %v2952_v22 = vrot.slane %v12552_v33, 1  ;;  %v2954_v6 = vrot.slane %v12538_v5, 1  ;;  %v2955_v19 = vrot.slane %v12556_v36, 1 }
 0x23f   :  { %v2957_v42 = vrot.slane %v20508_v45, 1  ;;  %v2958_v62 = vrot.slane %v20509_v1, 1  ;;  %v2960_v37 = vrot.slane %v20510_v32, 1  ;;  %v2961_v27 = vrot.slane %v20511_v24, 1 }
 0x240   :  { %v2963_v35 = vrot.slane %v20512_v17, 1  ;;  %v2964_v38 = vrot.slane %v20513_v58, 1  ;;  %v2966_v46 = vrot.slane %v20514_v15, 1  ;;  %v2967_v33 = vrot.slane %v20515_v63, 1  ;;  %v20526_v17 = vld [vmem:[#allocation107_spill] sm:$0xff]  ;;  %v20528_v58 = vld [vmem:[#allocation108_spill] sm:$0xff] }
 0x241   :  { %v2969_v5 = vrot.slane %v20516_v57, 1  ;;  %v2970_v36 = vrot.slane %v12648_v53, 1  ;;  %v2972_v51 = vrot.slane %v20517_v47, 1  ;;  %v2973_v48 = vrot.slane %v12652_v20, 1  ;;  %v20544_v47 = vld [vmem:[#allocation116_spill] sm:$0xff] }
 0x242   :  { %v2975_v0 = vrot.slane %v12656_v4, 1  ;;  %v2976_v43 = vrot.slane %v12664_v11, 1  ;;  %v2978_v26 = vrot.slane %v12660_v40, 1  ;;  %v2979_v3 = vrot.slane %v12668_v14, 1 }
 0x243   :  { %v2947_v45 = vsel %vm1233_vm0, %v2945_v41, %v2946_v55  ;;  %v2950_v1 = vsel %vm1233_vm0, %v2948_v2, %v2949_v60  ;;  %v2981_v32 = vrot.slane %v12672_v7, 1  ;;  %v2982_v53 = vrot.slane %v12680_v23, 1 }
 0x244   :  { %v2953_v24 = vsel %vm1233_vm0, %v2951_v18, %v2952_v22  ;;  %v2956_v20 = vsel %vm1233_vm0, %v2954_v6, %v2955_v19  ;;  %v2984_v4 = vrot.slane %v12676_v10, 1  ;;  %v2985_v11 = vrot.slane %v12684_v39, 1  ;;  %v20518_v18 = vld [vmem:[#allocation103_spill] sm:$0xff]  ;;  %v20520_v22 = vld [vmem:[#allocation104_spill] sm:$0xff]  ;;  %v20522_v19 = vld [vmem:[#allocation105_spill] sm:$0xff] }
 0x245   :  { %v2959_v40 = vsel %vm1233_vm0, %v2957_v42, %v2958_v62  ;;  %v2962_v14 = vsel %vm1233_vm0, %v2960_v37, %v2961_v27  ;;  %v2965_v41 = vsel %vm1233_vm0, %v2963_v35, %v2964_v38  ;;  %v2968_v55 = vsel %vm1233_vm0, %v2966_v46, %v2967_v33  ;;  %v20524_v37 = vld [vmem:[#allocation106_spill] sm:$0xff]  ;;  %v20530_v38 = vld [vmem:[#allocation109_spill] sm:$0xff]  ;;  %v20536_v33 = vld [vmem:[#allocation112_spill] sm:$0xff] }
 0x246   :  { %v2971_v7 = vsel %vm1233_vm0, %v2969_v5, %v2970_v36  ;;  %v2974_v23 = vsel %vm1233_vm0, %v2972_v51, %v2973_v48  ;;  %v2977_v2 = vsel %vm1233_vm0, %v2975_v0, %v2976_v43  ;;  %v2980_v60 = vsel %vm1233_vm0, %v2978_v26, %v2979_v3  ;;  %v20540_v5 = vld [vmem:[#allocation114_spill] sm:$0xff]  ;;  %v20542_v36 = vld [vmem:[#allocation115_spill] sm:$0xff]  ;;  %v6451_v48 = vld [vmem:[%s18683_s0 + $0x3d8] sm:$0x1] }
 0x247   :  { %v2983_v10 = vsel %vm1233_vm0, %v2981_v32, %v2982_v53  ;;  %v12791_v39 = vadd.f32 %v12687_v54, %v20518_v18  ;;  %v12795_v6 = vadd.f32 %v12690_v44, %v20520_v22  ;;  %v12799_v42 = vadd.f32 %v12693_v29, %v20522_v19  ;;  %v20532_v44 = vld [vmem:[#allocation110_spill] sm:$0xff]  ;;  %v20534_v29 = vld [vmem:[#allocation111_spill] sm:$0xff]  ;;  %v20554_v32 = vld [vmem:[#allocation120_spill] sm:$0xff] }
 0x248   :  { %v2986_v62 = vsel %vm1233_vm0, %v2984_v4, %v2985_v11  ;;  %v12804_v27 = vadd.f32 %v12696_v61, %v20524_v37  ;;  %v12807_v35 = vadd.f32 %v2905_v13, %v20526_v17  ;;  %v12810_v54 = vadd.f32 %v2908_v16, %v20528_v58  ;;  %v6448_v61 = vld [vmem:[%s18683_s0 + $0x3c0] sm:$0xfe]  ;;  %v6449_v13 = vld [vmem:[%s18683_s0 + $0x3c8] sm:$0xfe]  ;;  %v6450_v51 = vld [vmem:[%s18683_s0 + $0x3d0] sm:$0x1] }
 0x249   :  { %20519 = vst [vmem:[#allocation42_spill] sm:$0xff] %v12791_v39  ;;  %20521 = vst [vmem:[#allocation48_spill] sm:$0xff] %v12795_v6  ;;  %v12813_v15 = vadd.f32 %v2911_v56, %v20530_v38  ;;  %v12816_v46 = vadd.f32 %v2914_v30, %v20532_v44  ;;  %v12819_v63 = vadd.f32 %v2917_v34, %v20534_v29  ;;  %v20538_v16 = vld [vmem:[#allocation113_spill] sm:$0xff]  ;;  %v20550_v0 = vld [vmem:[#allocation118_spill] sm:$0xff] }
 0x24a   :  { %20523 = vst [vmem:[#allocation79_spill] sm:$0xff] %v12799_v42  ;;  %20525 = vst [vmem:[#allocation80_spill] sm:$0xff] %v12804_v27  ;;  %v12822_v57 = vadd.f32 %v2920_v59, %v20536_v33  ;;  %v12831_v56 = vadd.f32 %v2923_v21, %v20538_v16  ;;  %v12834_v30 = vadd.f32 %v2926_v25, %v20540_v5  ;;  %v12851_v21 = vld [vmem:[%s18683_s0 + $0x3e0] sm:$0xfe]  ;;  %v12856_v25 = vld [vmem:[%s18683_s0 + $0x3e8] sm:$0xfe] }
 0x24b   :  { %20527 = vst [vmem:[#allocation66_spill] sm:$0xff] %v12807_v35  ;;  %20529 = vst [vmem:[#allocation73_spill] sm:$0xff] %v12810_v54  ;;  %v12837_v34 = vadd.f32 %v2929_v9, %v20542_v36  ;;  %v12840_v59 = vadd.f32 %v2932_v8, %v20544_v47  ;;  %v20548_v9 = vld [vmem:[#allocation117_spill] sm:$0xff]  ;;  %v12864_v43 = vadd.f32 %v12740_v49, %v20550_v0  ;;  %v20552_v26 = vld [vmem:[#allocation119_spill] sm:$0xff] }
 0x24c   :  { %20531 = vst [vmem:[#allocation24_spill] sm:$0xff] %v12813_v15  ;;  %20533 = vst [vmem:[#allocation23_spill] sm:$0xff] %v12816_v46  ;;  %v12860_v8 = vadd.f32 %v12737_v28, %v20548_v9  ;;  %v12868_v3 = vadd.f32 %v12743_v12, %v20552_v26  ;;  %v12872_v53 = vadd.f32 %v12747_v52, %v20554_v32  ;;  %v12877_v4 = vld [vmem:[%s18683_s0 + $0x3f0] sm:$0x1]  ;;  %v12882_v28 = vld [vmem:[%s18683_s0 + $0x3f8] sm:$0x1] }
 0x24d   :  { %20535 = vst [vmem:[#allocation85_spill] sm:$0xff] %v12819_v63  ;;  %20537 = vst [vmem:[#allocation86_spill] sm:$0xff] %v12822_v57  ;;  %v12887_v49 = vld [vmem:[%s18683_s0 + $0x400] sm:$0xfe]  ;;  %v12892_v12 = vld [vmem:[%s18683_s0 + $0x408] sm:$0xfe] }
 0x24e   :  { %20539 = vst [vmem:[#allocation143_spill] sm:$0xff] %v12831_v56  ;;  %20541 = vst [vmem:[#allocation144_spill] sm:$0xff] %v12834_v30  ;;  %v20560_v52 = vld [vmem:[#allocation121_spill] sm:$0xff]  ;;  %v20564_v19 = vld [vmem:[#allocation126_spill] sm:$0xff] }
 0x24f   :  { %20543 = vst [vmem:[#allocation145_spill] sm:$0xff] %v12837_v34  ;;  %20545 = vst [vmem:[#allocation146_spill] sm:$0xff] %v12840_v59  ;;  %v12895_v11 = vadd.f32 %v2947_v45, %v20560_v52  ;;  %v20562_v18 = vld [vmem:[#allocation125_spill] sm:$0xff]  ;;  %v12901_v37 = vadd.f32 %v2953_v24, %v20564_v19  ;;  %v20566_v17 = vld [vmem:[#allocation127_spill] sm:$0xff] }
 0x250   :  { %20546 = vst [vmem:[#allocation147_spill] sm:$0xff] %v12851_v21  ;;  %20547 = vst [vmem:[#allocation148_spill] sm:$0xff] %v12856_v25  ;;  %v12898_v22 = vadd.f32 %v2950_v1, %v20562_v18  ;;  %v12904_v58 = vadd.f32 %v2956_v20, %v20566_v17  ;;  %v12909_v38 = vld [vmem:[%s18683_s0 + $0x410] sm:$0x1]  ;;  %v12914_v44 = vld [vmem:[%s18683_s0 + $0x418] sm:$0x1] }
 0x251   :  { %20549 = vst [vmem:[#allocation149_spill] sm:$0xff] %v12860_v8  ;;  %20551 = vst [vmem:[#allocation150_spill] sm:$0xff] %v12864_v43  ;;  %v12919_v45 = vld [vmem:[%s18683_s0 + $0x420] sm:$0xfe]  ;;  %v12924_v1 = vld [vmem:[%s18683_s0 + $0x428] sm:$0xfe] }
 0x252   :  { %20553 = vst [vmem:[#allocation151_spill] sm:$0xff] %v12868_v3  ;;  %20555 = vst [vmem:[#allocation152_spill] sm:$0xff] %v12872_v53  ;;  %v20572_v24 = vld [vmem:[#allocation132_spill] sm:$0xff]  ;;  %v20574_v29 = vld [vmem:[#allocation133_spill] sm:$0xff] }
 0x253   :  { %20556 = vst [vmem:[#allocation153_spill] sm:$0xff] %v12877_v4  ;;  %20557 = vst [vmem:[#allocation74_spill] sm:$0xff] %v12882_v28  ;;  %v12927_v20 = vadd.f32 %v2959_v40, %v20572_v24  ;;  %v12930_v33 = vadd.f32 %v2962_v14, %v20574_v29  ;;  %v20576_v16 = vld [vmem:[#allocation138_spill] sm:$0xff]  ;;  %v20578_v36 = vld [vmem:[#allocation139_spill] sm:$0xff] }
 0x254   :  { %20558 = vst [vmem:[#allocation140_spill] sm:$0xff] %v12887_v49  ;;  %20559 = vst [vmem:[#allocation141_spill] sm:$0xff] %v12892_v12  ;;  %v12933_v5 = vadd.f32 %v2965_v41, %v20576_v16  ;;  %v12936_v47 = vadd.f32 %v2968_v55, %v20578_v36  ;;  %v12941_v9 = vld [vmem:[%s18683_s0 + $0x430] sm:$0x1]  ;;  %v12946_v0 = vld [vmem:[%s18683_s0 + $0x438] sm:$0x1] }
 0x255   :  { %20561 = vst [vmem:[#allocation142_spill] sm:$0xff] %v12895_v11  ;;  %20563 = vst [vmem:[#allocation64_spill] sm:$0xff] %v12898_v22  ;;  %v12951_v40 = vld [vmem:[%s18683_s0 + $0x440] sm:$0xfe]  ;;  %v12956_v14 = vld [vmem:[%s18683_s0 + $0x448] sm:$0xfe] }
 0x256   :  { %20565 = vst [vmem:[#allocation65_spill] sm:$0xff] %v12901_v37  ;;  %20567 = vst [vmem:[#allocation76_spill] sm:$0xff] %v12904_v58  ;;  %v20584_v41 = vld [vmem:[#allocation134_spill] sm:$0xff]  ;;  %v20586_v26 = vld [vmem:[#allocation135_spill] sm:$0xff] }
 0x257   :  { %20568 = vst [vmem:[#allocation49_spill] sm:$0xff] %v12909_v38  ;;  %20569 = vst [vmem:[#allocation94_spill] sm:$0xff] %v12914_v44  ;;  %v12959_v55 = vadd.f32 %v2971_v7, %v20584_v41  ;;  %v12962_v32 = vadd.f32 %v2974_v23, %v20586_v26  ;;  %v20588_v52 = vld [vmem:[#allocation136_spill] sm:$0xff]  ;;  %v20590_v19 = vld [vmem:[#allocation137_spill] sm:$0xff] }
 0x258   :  { %20570 = vst [vmem:[#allocation95_spill] sm:$0xff] %v12919_v45  ;;  %20571 = vst [vmem:[#allocation97_spill] sm:$0xff] %v12924_v1  ;;  %v12965_v18 = vadd.f32 %v2977_v2, %v20588_v52  ;;  %v12968_v17 = vadd.f32 %v2980_v60, %v20590_v19  ;;  %v12973_v24 = vld [vmem:[%s18683_s0 + $0x450] sm:$0x1]  ;;  %v12978_v29 = vld [vmem:[%s18683_s0 + $0x458] sm:$0x1] }
 0x259   :  { %20573 = vst [vmem:[#allocation96_spill] sm:$0xff] %v12927_v20  ;;  %20575 = vst [vmem:[#allocation98_spill] sm:$0xff] %v12930_v33  ;;  %v12983_v7 = vld [vmem:[%s18683_s0 + $0x460] sm:$0xfe]  ;;  %v12988_v23 = vld [vmem:[%s18683_s0 + $0x468] sm:$0xfe] }
 0x25a   :  { %20577 = vst [vmem:[#allocation99_spill] sm:$0xff] %v12933_v5  ;;  %20579 = vst [vmem:[#allocation101_spill] sm:$0xff] %v12936_v47  ;;  %v20596_v2 = vld [vmem:[#allocation18_spill] sm:$0xff]  ;;  %v20600_v41 = vld [vmem:[#allocation92_spill] sm:$0xff] }
 0x25b   :  { %20580 = vst [vmem:[#allocation100_spill] sm:$0xff] %v12941_v9  ;;  %20581 = vst [vmem:[#allocation102_spill] sm:$0xff] %v12946_v0  ;;  %v12991_v60 = vadd.f32 %v2983_v10, %v20596_v2  ;;  %v20598_v16 = vld [vmem:[#allocation22_spill] sm:$0xff]  ;;  %v12997_v26 = vmul.f32 %v6448_v61, %v20600_v41  ;;  %v20601_v52 = vld [vmem:[#allocation93_spill] sm:$0xff]  ;;  %v13023_v61 = vmul.f32 %v6450_v51, %v20600_v41 }
 0x25c   :  { %20582 = vst [vmem:[#allocation12_spill] sm:$0xff] %v12951_v40  ;;  %20583 = vst [vmem:[#allocation28_spill] sm:$0xff] %v12956_v14  ;;  %v12994_v36 = vadd.f32 %v2986_v62, %v20598_v16  ;;  %v13000_v19 = vmul.f32 %v6449_v13, %v20601_v52  ;;  %v13015_v10 = vld [vmem:[%s18683_s0 + $0x480] sm:$0xfe]  ;;  %v13020_v62 = vld [vmem:[%s18683_s0 + $0x488] sm:$0xfe]  ;;  %v13026_v13 = vmul.f32 %v6451_v48, %v20601_v52 }
 0x25d   :  { %20585 = vst [vmem:[#allocation29_spill] sm:$0xff] %v12959_v55  ;;  %20587 = vst [vmem:[#allocation32_spill] sm:$0xff] %v12962_v32  ;;  %v13030_v2 = vmul.f32 %v12851_v21, %v20600_v41  ;;  %v13034_v16 = vmul.f32 %v12856_v25, %v20601_v52  ;;  %v13044_v51 = vld [vmem:[%s18683_s0 + $0x498] sm:$0x1]  ;;  %v13049_v48 = vld [vmem:[%s18683_s0 + $0x4a0] sm:$0xfe]  ;;  %v13058_v21 = vmul.f32 %v12877_v4, %v20600_v41 }
 0x25e   :  { %20589 = vst [vmem:[#allocation30_spill] sm:$0xff] %v12965_v18  ;;  %20591 = vst [vmem:[#allocation40_spill] sm:$0xff] %v12968_v17  ;;  %v13054_v25 = vld [vmem:[%s18683_s0 + $0x4a8] sm:$0xfe]  ;;  %v13066_v17 = vmul.f32 %v12887_v49, %v20600_v41  ;;  %v13070_v18 = vmul.f32 %v12892_v12, %v20601_v52  ;;  %v13075_v32 = vld [vmem:[%s18683_s0 + $0x4b0] sm:$0x1]  ;;  %v13087_v49 = vmul.f32 %v12909_v38, %v20600_v41 }
 0x25f   :  { %20592 = vst [vmem:[#allocation20_spill] sm:$0xff] %v12973_v24  ;;  %20593 = vst [vmem:[#allocation21_spill] sm:$0xff] %v12978_v29  ;;  %v13080_v4 = vld [vmem:[%s18683_s0 + $0x4b8] sm:$0x1]  ;;  %v13091_v12 = vmul.f32 %v12914_v44, %v20601_v52  ;;  %v13095_v55 = vmul.f32 %v12919_v45, %v20600_v41  ;;  %v13099_v47 = vmul.f32 %v12924_v1, %v20601_v52  ;;  %v6525_v5 = vld [vmem:[%s18683_s0 + $0x8c8] sm:$0xfe] }
 0x260   :  { %20594 = vst [vmem:[#allocation75_spill] sm:$0xff] %v12983_v7  ;;  %20595 = vst [vmem:[#allocation8_spill] sm:$0xff] %v12988_v23  ;;  %v6526_v38 = vld [vmem:[%s18683_s0 + $0x8d0] sm:$0x1]  ;;  %v6527_v44 = vld [vmem:[%s18683_s0 + $0x8d8] sm:$0x1]  ;;  %v13112_v45 = vmul.f32 %v12941_v9, %v20600_v41  ;;  %v13116_v1 = vmul.f32 %v12946_v0, %v20601_v52  ;;  %v13120_v33 = vmul.f32 %v12951_v40, %v20600_v41 }
 0x261   :  { %20597 = vst [vmem:[#allocation26_spill] sm:$0xff] %v12991_v60  ;;  %20599 = vst [vmem:[#allocation27_spill] sm:$0xff] %v12994_v36  ;;  %v13039_v36 = vld [vmem:[%s18683_s0 + $0x490] sm:$0x1]  ;;  %v13062_v60 = vmul.f32 %v12882_v28, %v20601_v52  ;;  %v6524_v28 = vld [vmem:[%s18683_s0 + $0x8c0] sm:$0xfe]  ;;  %v13124_v20 = vmul.f32 %v12956_v14, %v20601_v52  ;;  %v13143_v40 = vmul.f32 %v12973_v24, %v20600_v41 }
 0x262   :  { %20604 = vst [vmem:[#allocation87_spill] sm:$0xff] %v13015_v10  ;;  %20605 = vst [vmem:[#allocation9_spill] sm:$0xff] %v13020_v62  ;;  %v13129_v58 = vld [vmem:[%s18683_s0 + $0x8e0] sm:$0xfe]  ;;  %v13134_v9 = vld [vmem:[%s18683_s0 + $0x8e8] sm:$0xfe]  ;;  %v13147_v14 = vmul.f32 %v12978_v29, %v20601_v52  ;;  %v13151_v37 = vmul.f32 %v12983_v7, %v20600_v41  ;;  %v13155_v22 = vmul.f32 %v12988_v23, %v20601_v52 }
 0x263   :  { %20606 = vst [vmem:[#allocation88_spill] sm:$0xff] %v13039_v36  ;;  %20607 = vst [vmem:[#allocation36_spill] sm:$0xff] %v13044_v51  ;;  %v13139_v0 = vld [vmem:[%s18683_s0 + $0x8f0] sm:$0x1]  ;;  %v13160_v11 = vld [vmem:[%s18683_s0 + $0x8f8] sm:$0x1]  ;;  %v13174_v7 = vmul.f32 %v13005_v31, %v20600_v41  ;;  %v13178_v23 = vmul.f32 %v13010_v50, %v20601_v52  ;;  %v13182_v53 = vmul.f32 %v13015_v10, %v20600_v41 }
 0x264   :  { %20608 = vst [vmem:[#allocation37_spill] sm:$0xff] %v13049_v48  ;;  %20609 = vst [vmem:[#allocation43_spill] sm:$0xff] %v13054_v25  ;;  %v13165_v24 = vld [vmem:[%s18683_s0 + $0x900] sm:$0xfe]  ;;  %v13170_v29 = vld [vmem:[%s18683_s0 + $0x908] sm:$0xfe]  ;;  %v13186_v3 = vmul.f32 %v13020_v62, %v20601_v52  ;;  %v13205_v10 = vmul.f32 %v13039_v36, %v20600_v41  ;;  %v13209_v62 = vmul.f32 %v13044_v51, %v20601_v52 }
 0x265   :  { %20610 = vst [vmem:[#allocation44_spill] sm:$0xff] %v13075_v32  ;;  %20611 = vst [vmem:[#allocation46_spill] sm:$0xff] %v13080_v4  ;;  %v13191_v43 = vld [vmem:[%s18683_s0 + $0x910] sm:$0x1]  ;;  %v13196_v31 = vld [vmem:[%s18683_s0 + $0x918] sm:$0x1]  ;;  %v13213_v8 = vmul.f32 %v13049_v48, %v20600_v41  ;;  %v13217_v59 = vmul.f32 %v13054_v25, %v20601_v52  ;;  %v13236_v48 = vmul.f32 %v13075_v32, %v20600_v41 }
 0x266   :  { %20612 = vst [vmem:[#allocation47_spill] sm:$0xff] %v13129_v58  ;;  %20613 = vst [vmem:[#allocation67_spill] sm:$0xff] %v13134_v9  ;;  %v13201_v50 = vld [vmem:[%s18683_s0 + $0x920] sm:$0xfe]  ;;  %v13222_v34 = vld [vmem:[%s18683_s0 + $0x928] sm:$0xfe]  ;;  %v13240_v25 = vmul.f32 %v13080_v4, %v20601_v52  ;;  %v13243_v30 = vmul.f32 %v6524_v28, %v20600_v41  ;;  %v13246_v56 = vmul.f32 %v6525_v5, %v20601_v52 }
 0x267   :  { %20614 = vst [vmem:[#allocation52_spill] sm:$0xff] %v13139_v0  ;;  %20615 = vst [vmem:[#allocation68_spill] sm:$0xff] %v13160_v11  ;;  %v13227_v36 = vld [vmem:[%s18683_s0 + $0x930] sm:$0x1]  ;;  %v13232_v51 = vld [vmem:[%s18683_s0 + $0x938] sm:$0x1]  ;;  %v13264_v28 = vmul.f32 %v6526_v38, %v20600_v41  ;;  %v13267_v5 = vmul.f32 %v6527_v44, %v20601_v52  ;;  %v13271_v63 = vmul.f32 %v13129_v58, %v20600_v41 }
 0x268   :  { %20616 = vst [vmem:[#allocation69_spill] sm:$0xff] %v13165_v24  ;;  %20617 = vst [vmem:[#allocation50_spill] sm:$0xff] %v13170_v29  ;;  %v13251_v57 = vld [vmem:[%s18683_s0 + $0x940] sm:$0xfe]  ;;  %v13256_v32 = vld [vmem:[%s18683_s0 + $0x948] sm:$0xfe]  ;;  %v13275_v46 = vmul.f32 %v13134_v9, %v20601_v52  ;;  %v13294_v58 = vmul.f32 %v13139_v0, %v20600_v41  ;;  %v13298_v9 = vmul.f32 %v13160_v11, %v20601_v52 }
 0x269   :  { %20618 = vst [vmem:[#allocation81_spill] sm:$0xff] %v13191_v43  ;;  %20619 = vst [vmem:[#allocation83_spill] sm:$0xff] %v13196_v31  ;;  %v13261_v4 = vld [vmem:[%s18683_s0 + $0x950] sm:$0x1]  ;;  %v13280_v15 = vld [vmem:[%s18683_s0 + $0x958] sm:$0x1]  ;;  %v13302_v54 = vmul.f32 %v13165_v24, %v20600_v41  ;;  %v13306_v35 = vmul.f32 %v13170_v29, %v20601_v52  ;;  %v13320_v11 = vmul.f32 %v13191_v43, %v20600_v41 }
 0x26a   :  { %20620 = vst [vmem:[#allocation84_spill] sm:$0xff] %v13201_v50  ;;  %20621 = vst [vmem:[#allocation89_spill] sm:$0xff] %v13222_v34  ;;  %v13285_v38 = vld [vmem:[%s18683_s0 + $0x960] sm:$0xfe]  ;;  %v13290_v44 = vld [vmem:[%s18683_s0 + $0x968] sm:$0xfe]  ;;  %v13324_v24 = vmul.f32 %v13196_v31, %v20601_v52  ;;  %v13328_v29 = vmul.f32 %v13201_v50, %v20600_v41  ;;  %v13332_v42 = vmul.f32 %v13222_v34, %v20601_v52 }
 0x26b   :  { %20622 = vst [vmem:[#allocation90_spill] sm:$0xff] %v13227_v36  ;;  %20623 = vst [vmem:[#allocation91_spill] sm:$0xff] %v13232_v51  ;;  %v13311_v27 = vld [vmem:[%s18683_s0 + $0x970] sm:$0x1]  ;;  %v13316_v0 = vld [vmem:[%s18683_s0 + $0x978] sm:$0x1]  ;;  %v13351_v50 = vmul.f32 %v13227_v36, %v20600_v41  ;;  %v13355_v34 = vmul.f32 %v13232_v51, %v20601_v52  ;;  %v13359_v39 = vmul.f32 %v13251_v57, %v20600_v41 }
 0x26c   :  { %20624 = vst [vmem:[#allocation55_spill] sm:$0xff] %v13251_v57  ;;  %20625 = vst [vmem:[#allocation70_spill] sm:$0xff] %v13256_v32  ;;  %v13337_v6 = vld [vmem:[%s18683_s0 + $0x980] sm:$0xfe]  ;;  %v13342_v43 = vld [vmem:[%s18683_s0 + $0x988] sm:$0xfe]  ;;  %v13382_v57 = vmul.f32 %v13261_v4, %v20600_v41 }
 0x26d   :  { %20626 = vst [vmem:[#allocation45_spill] sm:$0xff] %v13261_v4  ;;  %20627 = vst [vmem:[#allocation72_spill] sm:$0xff] %v13280_v15  ;;  %v13347_v31 = vld [vmem:[%s18683_s0 + $0x990] sm:$0x1]  ;;  %v13373_v36 = vld [vmem:[%s18683_s0 + $0x9a0] sm:$0xfe] }
 0x26e   :  { %20628 = vst [vmem:[#allocation71_spill] sm:$0xff] %v13285_v38  ;;  %20629 = vst [vmem:[#allocation128_spill] sm:$0xff] %v13290_v44  ;;  %v13378_v51 = vld [vmem:[%s18683_s0 + $0x9a8] sm:$0xfe]  ;;  %v3192_v4 = vrot.slane %v12997_v26, 1  ;;  %v13416_v26 = vmul.f32 %v13311_v27, %v20600_v41 }
 0x26f   :  { %20630 = vst [vmem:[#allocation25_spill] sm:$0xff] %v13311_v27  ;;  %20631 = vst [vmem:[#allocation130_spill] sm:$0xff] %v13316_v0 }
 0x270   :  { %20632 = vst [vmem:[#allocation129_spill] sm:$0xff] %v13328_v29  ;;  %20633 = vst [vmem:[#allocation131_spill] sm:$0xff] %v13332_v42  ;;  %v13363_v42 = vmul.f32 %v13256_v32, %v20601_v52  ;;  %v13368_v29 = vld [vmem:[%s18683_s0 + $0x998] sm:$0x1]  ;;  %v13386_v32 = vmul.f32 %v13280_v15, %v20601_v52  ;;  %v3195_v15 = vrot.slane %v13000_v19, 1  ;;  %v13420_v19 = vmul.f32 %v13316_v0, %v20601_v52 }
 0x271   :  { %20634 = vst [vmem:[#allocation103_spill] sm:$0xff] %v13337_v6  ;;  %20635 = vst [vmem:[#allocation104_spill] sm:$0xff] %v13342_v43  ;;  %v3204_v0 = vrot.slane %v13066_v17, 1  ;;  %v3238_v17 = vrot.slane %v13240_v25, 1 }
 0x272   :  { %20636 = vst [vmem:[#allocation105_spill] sm:$0xff] %v13347_v31  ;;  %20637 = vst [vmem:[#allocation106_spill] sm:$0xff] %v13351_v50  ;;  %v3202_v50 = vrot.slane %v13062_v60, 1  ;;  %v13436_v60 = vmul.f32 %v13368_v29, %v20601_v52 }
 0x273   :  { %20638 = vst [vmem:[#allocation107_spill] sm:$0xff] %v13355_v34  ;;  %20639 = vst [vmem:[#allocation108_spill] sm:$0xff] %v13359_v39  ;;  %v13394_v39 = vmul.f32 %v13290_v44, %v20601_v52  ;;  %v13399_v34 = vld [vmem:[%s18683_s0 + $0x9b0] sm:$0x1]  ;;  %v3198_v44 = vrot.slane %v13030_v2, 1  ;;  %v13440_v2 = vmul.f32 %v13373_v36, %v20600_v41 }
 0x274   :  { %20640 = vst [vmem:[#allocation109_spill] sm:$0xff] %v13363_v42  ;;  %20641 = vst [vmem:[#allocation110_spill] sm:$0xff] %v13368_v29  ;;  %v13390_v42 = vmul.f32 %v13285_v38, %v20600_v41  ;;  %v13408_v38 = vld [vmem:[%s18683_s0 + $0x9b8] sm:$0x1] }
 0x275   :  { %20642 = vst [vmem:[#allocation111_spill] sm:$0xff] %v13373_v36  ;;  %20643 = vst [vmem:[#allocation112_spill] sm:$0xff] %v13378_v51 }
 0x276   :  { %20644 = vst [vmem:[#allocation113_spill] sm:$0xff] %v13382_v57  ;;  %20645 = vst [vmem:[#allocation114_spill] sm:$0xff] %v13386_v32  ;;  %v3193_v57 = vrot.slane %v13023_v61, 1  ;;  %v3196_v32 = vrot.slane %v13026_v13, 1  ;;  %v13424_v61 = vmul.f32 %v13337_v6, %v20600_v41  ;;  %v13428_v13 = vmul.f32 %v13342_v43, %v20601_v52 }
 0x277   :  { %20646 = vst [vmem:[#allocation115_spill] sm:$0xff] %v13390_v42  ;;  %20647 = vst [vmem:[#allocation116_spill] sm:$0xff] %v13394_v39  ;;  %v3199_v39 = vrot.slane %v13058_v21, 1  ;;  %v3201_v42 = vrot.slane %v13034_v16, 1  ;;  %v13432_v21 = vmul.f32 %v13347_v31, %v20600_v41  ;;  %v13444_v16 = vmul.f32 %v13378_v51, %v20601_v52 }
 0x278   :  { %20648 = vst [vmem:[#allocation117_spill] sm:$0xff] %v13399_v34  ;;  %20649 = vst [vmem:[#allocation118_spill] sm:$0xff] %v13408_v38  ;;  %v13448_v43 = vmul.f32 %v13399_v34, %v20600_v41  ;;  %v13452_v31 = vmul.f32 %v13408_v38, %v20601_v52  ;;  %v13455_v6 = vsel %vm1233_vm0, %v3192_v4, %v3193_v57  ;;  %v3205_v41 = vrot.slane %v13087_v49, 1 }
 0x279   :  { %v13458_v29 = vsel %vm1233_vm0, %v3195_v15, %v3196_v32  ;;  %v13461_v36 = vsel %vm1233_vm0, %v3198_v44, %v3199_v39  ;;  %v13464_v51 = vsel %vm1233_vm0, %v3201_v42, %v3202_v50  ;;  %v3207_v34 = vrot.slane %v13070_v18, 1 }
 0x27a   :  { %v3208_v52 = vrot.slane %v13091_v12, 1  ;;  %v3210_v57 = vrot.slane %v13095_v55, 1  ;;  %v3211_v4 = vrot.slane %v13112_v45, 1  ;;  %v3213_v15 = vrot.slane %v13099_v47, 1 }
 0x27b   :  { %v3214_v39 = vrot.slane %v13116_v1, 1  ;;  %v3216_v32 = vrot.slane %v13120_v33, 1  ;;  %v3217_v50 = vrot.slane %v13143_v40, 1  ;;  %v3219_v42 = vrot.slane %v13124_v20, 1 }
 0x27c   :  { %v3220_v49 = vrot.slane %v13147_v14, 1  ;;  %v3222_v18 = vrot.slane %v13151_v37, 1  ;;  %v3223_v12 = vrot.slane %v13174_v7, 1  ;;  %v3225_v55 = vrot.slane %v13155_v22, 1 }
 0x27d   :  { %v3226_v45 = vrot.slane %v13178_v23, 1  ;;  %v3228_v47 = vrot.slane %v13182_v53, 1  ;;  %v3229_v1 = vrot.slane %v13205_v10, 1  ;;  %v3231_v33 = vrot.slane %v13186_v3, 1 }
 0x27e   :  { %v3232_v40 = vrot.slane %v13209_v62, 1  ;;  %v3234_v20 = vrot.slane %v13213_v8, 1  ;;  %v3235_v14 = vrot.slane %v13236_v48, 1  ;;  %v3237_v37 = vrot.slane %v13217_v59, 1 }
 0x27f   :  { %v3240_v22 = vrot.slane %v13243_v30, 1  ;;  %v3241_v7 = vrot.slane %v13264_v28, 1  ;;  %v3206_v53 = vsel %vm1233_vm0, %v3204_v0, %v3205_v41  ;;  %v3209_v23 = vsel %vm1233_vm0, %v3207_v34, %v3208_v52 }
 0x280   :  { %v3243_v3 = vrot.slane %v13246_v56, 1  ;;  %v3244_v10 = vrot.slane %v13267_v5, 1  ;;  %v3212_v8 = vsel %vm1233_vm0, %v3210_v57, %v3211_v4  ;;  %v3215_v62 = vsel %vm1233_vm0, %v3213_v15, %v3214_v39 }
 0x281   :  { %v3218_v59 = vsel %vm1233_vm0, %v3216_v32, %v3217_v50  ;;  %v3221_v25 = vsel %vm1233_vm0, %v3219_v42, %v3220_v49  ;;  %v3224_v30 = vsel %vm1233_vm0, %v3222_v18, %v3223_v12  ;;  %v3227_v48 = vsel %vm1233_vm0, %v3225_v55, %v3226_v45  ;;  %v20650_v42 = vld [vmem:[#allocation129_spill] sm:$0xff]  ;;  %v20651_v18 = vld [vmem:[#allocation106_spill] sm:$0xff]  ;;  %v20652_v12 = vld [vmem:[#allocation131_spill] sm:$0xff] }
 0x282   :  { %v3230_v0 = vsel %vm1233_vm0, %v3228_v47, %v3229_v1  ;;  %v3233_v34 = vsel %vm1233_vm0, %v3231_v33, %v3232_v40  ;;  %v3236_v56 = vsel %vm1233_vm0, %v3234_v20, %v3235_v14  ;;  %v3239_v28 = vsel %vm1233_vm0, %v3237_v37, %v3238_v17  ;;  %v20653_v45 = vld [vmem:[#allocation107_spill] sm:$0xff]  ;;  %v20654_v47 = vld [vmem:[#allocation108_spill] sm:$0xff]  ;;  %v20655_v1 = vld [vmem:[#allocation113_spill] sm:$0xff] }
 0x283   :  { %v3242_v5 = vsel %vm1233_vm0, %v3240_v22, %v3241_v7  ;;  %v3246_v44 = vrot.slane %v13271_v63, 1  ;;  %v3245_v41 = vsel %vm1233_vm0, %v3243_v3, %v3244_v10  ;;  %v3247_v52 = vrot.slane %v13294_v58, 1  ;;  %v20656_v33 = vld [vmem:[#allocation109_spill] sm:$0xff]  ;;  %v20657_v40 = vld [vmem:[#allocation114_spill] sm:$0xff]  ;;  %v20658_v20 = vld [vmem:[#allocation115_spill] sm:$0xff] }
 0x284   :  { %v3249_v57 = vrot.slane %v13275_v46, 1  ;;  %v3250_v4 = vrot.slane %v13298_v9, 1  ;;  %v3252_v15 = vrot.slane %v13302_v54, 1  ;;  %v3253_v39 = vrot.slane %v13320_v11, 1  ;;  %v20659_v14 = vld [vmem:[#allocation116_spill] sm:$0xff] }
 0x285   :  { %v3255_v32 = vrot.slane %v13306_v35, 1  ;;  %v3256_v50 = vrot.slane %v13324_v24, 1  ;;  %v3258_v49 = vrot.slane %v20650_v42, 1  ;;  %v3259_v63 = vrot.slane %v20651_v18, 1 }
 0x286   :  { %v3261_v55 = vrot.slane %v20652_v12, 1  ;;  %v3262_v58 = vrot.slane %v20653_v45, 1  ;;  %v3264_v46 = vrot.slane %v20654_v47, 1  ;;  %v3265_v9 = vrot.slane %v20655_v1, 1  ;;  %v20668_v47 = vld [vmem:[#allocation66_spill] sm:$0xff]  ;;  %v20670_v1 = vld [vmem:[#allocation73_spill] sm:$0xff] }
 0x287   :  { %v3267_v54 = vrot.slane %v20656_v33, 1  ;;  %v3268_v11 = vrot.slane %v20657_v40, 1  ;;  %v3270_v35 = vrot.slane %v20658_v20, 1  ;;  %v3271_v24 = vrot.slane %v13416_v26, 1 }
 0x288   :  { %v3273_v37 = vrot.slane %v20659_v14, 1  ;;  %v3274_v17 = vrot.slane %v13420_v19, 1  ;;  %v3276_v22 = vrot.slane %v13424_v61, 1  ;;  %v3277_v7 = vrot.slane %v13432_v21, 1 }
 0x289   :  { %v3279_v3 = vrot.slane %v13428_v13, 1  ;;  %v3280_v10 = vrot.slane %v13436_v60, 1  ;;  %v3248_v42 = vsel %vm1233_vm0, %v3246_v44, %v3247_v52  ;;  %v3251_v18 = vsel %vm1233_vm0, %v3249_v57, %v3250_v4 }
 0x28a   :  { %v3282_v12 = vrot.slane %v13440_v2, 1  ;;  %v3283_v26 = vrot.slane %v13448_v43, 1  ;;  %v3254_v45 = vsel %vm1233_vm0, %v3252_v15, %v3253_v39  ;;  %v3257_v19 = vsel %vm1233_vm0, %v3255_v32, %v3256_v50  ;;  %v20660_v15 = vld [vmem:[#allocation42_spill] sm:$0xff]  ;;  %v20662_v39 = vld [vmem:[#allocation48_spill] sm:$0xff]  ;;  %v20664_v50 = vld [vmem:[#allocation79_spill] sm:$0xff] }
 0x28b   :  { %v3285_v61 = vrot.slane %v13444_v16, 1  ;;  %v3286_v21 = vrot.slane %v13452_v31, 1  ;;  %v3260_v13 = vsel %vm1233_vm0, %v3258_v49, %v3259_v63  ;;  %v3263_v60 = vsel %vm1233_vm0, %v3261_v55, %v3262_v58  ;;  %v20666_v55 = vld [vmem:[#allocation80_spill] sm:$0xff] }
 0x28c   :  { %v3266_v44 = vsel %vm1233_vm0, %v3264_v46, %v3265_v9  ;;  %v3269_v52 = vsel %vm1233_vm0, %v3267_v54, %v3268_v11  ;;  %v3272_v2 = vsel %vm1233_vm0, %v3270_v35, %v3271_v24  ;;  %v3275_v43 = vsel %vm1233_vm0, %v3273_v37, %v3274_v17  ;;  %v20672_v9 = vld [vmem:[#allocation24_spill] sm:$0xff]  ;;  %v20678_v11 = vld [vmem:[#allocation86_spill] sm:$0xff] }
 0x28d   :  { %v3278_v57 = vsel %vm1233_vm0, %v3276_v22, %v3277_v7  ;;  %v3281_v4 = vsel %vm1233_vm0, %v3279_v3, %v3280_v10  ;;  %v3284_v16 = vsel %vm1233_vm0, %v3282_v12, %v3283_v26  ;;  %v13551_v31 = vadd.f32 %v13455_v6, %v20660_v15  ;;  %v20700_v26 = vld [vmem:[#allocation65_spill] sm:$0xff] }
 0x28e   :  { %v13555_v32 = vadd.f32 %v13458_v29, %v20662_v39  ;;  %v13559_v49 = vadd.f32 %v13461_v36, %v20664_v50  ;;  %v3287_v63 = vsel %vm1233_vm0, %v3285_v61, %v3286_v21  ;;  %v13564_v58 = vadd.f32 %v13464_v51, %v20666_v55  ;;  %v20674_v29 = vld [vmem:[#allocation23_spill] sm:$0xff]  ;;  %v20676_v36 = vld [vmem:[#allocation85_spill] sm:$0xff] }
 0x28f   :  { %20661 = vst [vmem:[#allocation119_spill] sm:$0xff] %v13551_v31  ;;  %v13567_v46 = vadd.f32 %v3206_v53, %v20668_v47  ;;  %v13570_v6 = vadd.f32 %v3209_v23, %v20670_v1  ;;  %v13573_v33 = vadd.f32 %v3212_v8, %v20672_v9  ;;  %v13576_v54 = vadd.f32 %v3215_v62, %v20674_v29  ;;  %v20680_v51 = vld [vmem:[#allocation143_spill] sm:$0xff]  ;;  %v20682_v53 = vld [vmem:[#allocation144_spill] sm:$0xff]  ;;  %v20684_v23 = vld [vmem:[#allocation145_spill] sm:$0xff] }
 0x290   :  { %20663 = vst [vmem:[#allocation120_spill] sm:$0xff] %v13555_v32  ;;  %20665 = vst [vmem:[#allocation121_spill] sm:$0xff] %v13559_v49  ;;  %v13579_v40 = vadd.f32 %v3218_v59, %v20676_v36  ;;  %v13582_v20 = vadd.f32 %v3221_v25, %v20678_v11  ;;  %v13585_v35 = vadd.f32 %v3224_v30, %v20680_v51  ;;  %v20686_v8 = vld [vmem:[#allocation146_spill] sm:$0xff]  ;;  %v20688_v59 = vld [vmem:[#allocation149_spill] sm:$0xff] }
 0x291   :  { %20667 = vst [vmem:[#allocation125_spill] sm:$0xff] %v13564_v58  ;;  %20669 = vst [vmem:[#allocation126_spill] sm:$0xff] %v13567_v46  ;;  %v13588_v24 = vadd.f32 %v3227_v48, %v20682_v53  ;;  %v13591_v14 = vadd.f32 %v3230_v0, %v20684_v23  ;;  %v13594_v37 = vadd.f32 %v3233_v34, %v20686_v8  ;;  %v6562_v62 = vld [vmem:[%s18684_s1 + $0x23] ss:$8 sm:$0x3]  ;;  %v20692_v30 = vld [vmem:[#allocation151_spill] sm:$0xff] }
 0x292   :  { %20671 = vst [vmem:[#allocation127_spill] sm:$0xff] %v13570_v6  ;;  %20673 = vst [vmem:[#allocation132_spill] sm:$0xff] %v13573_v33  ;;  %v13600_v17 = vadd.f32 %v3236_v56, %v20688_v59  ;;  %v20690_v25 = vld [vmem:[#allocation150_spill] sm:$0xff]  ;;  %v13606_v7 = vadd.f32 %v3242_v5, %v20692_v30  ;;  %v20694_v48 = vld [vmem:[#allocation152_spill] sm:$0xff]  ;;  %v13618_v61 = vadd.f32 %v3254_v45, %v20700_v26 }
 0x293   :  { %20675 = vst [vmem:[#allocation133_spill] sm:$0xff] %v13576_v54  ;;  %20677 = vst [vmem:[#allocation138_spill] sm:$0xff] %v13579_v40  ;;  %v13603_v22 = vadd.f32 %v3239_v28, %v20690_v25  ;;  %v13609_v3 = vadd.f32 %v3245_v41, %v20694_v48  ;;  %v20696_v0 = vld [vmem:[#allocation142_spill] sm:$0xff]  ;;  %v20698_v34 = vld [vmem:[#allocation64_spill] sm:$0xff] }
 0x294   :  { %20679 = vst [vmem:[#allocation139_spill] sm:$0xff] %v13582_v20  ;;  %20681 = vst [vmem:[#allocation134_spill] sm:$0xff] %v13585_v35  ;;  %v13612_v10 = vadd.f32 %v3248_v42, %v20696_v0  ;;  %v13615_v12 = vadd.f32 %v3251_v18, %v20698_v34  ;;  %v20702_v56 = vld [vmem:[#allocation76_spill] sm:$0xff]  ;;  %v20706_v5 = vld [vmem:[#allocation98_spill] sm:$0xff] }
 0x295   :  { %20683 = vst [vmem:[#allocation135_spill] sm:$0xff] %v13588_v24  ;;  %20685 = vst [vmem:[#allocation136_spill] sm:$0xff] %v13591_v14  ;;  %v13621_v21 = vadd.f32 %v3257_v19, %v20702_v56  ;;  %v20704_v28 = vld [vmem:[#allocation96_spill] sm:$0xff]  ;;  %v13627_v39 = vadd.f32 %v3263_v60, %v20706_v5  ;;  %v20708_v41 = vld [vmem:[#allocation6_spill] sm:$0xff] }
 0x296   :  { %20687 = vst [vmem:[#allocation137_spill] sm:$0xff] %v13594_v37  ;;  %20689 = vst [vmem:[#allocation18_spill] sm:$0xff] %v13600_v17  ;;  %v13624_v15 = vadd.f32 %v3260_v13, %v20704_v28  ;;  %v13630_v50 = vrot.slane %v6562_v62, %v20708_v41  ;;  %v20709_v42 = vld [vmem:[#allocation7_spill] sm:$0xff]  ;;  %v6564_v45 = vld [vmem:[%s18684_s1 + $0x43] ss:$8 sm:$0x3] }
 0x297   :  { %20691 = vst [vmem:[#allocation22_spill] sm:$0xff] %v13603_v22  ;;  %20693 = vst [vmem:[#allocation92_spill] sm:$0xff] %v13606_v7  ;;  %v13633_v55 = vrot.slane %v6562_v62, %v20709_v42  ;;  %v6563_v18 = vld [vmem:[%s18684_s1 + $0x33] ss:$8 sm:$0x3]  ;;  %v20712_v47 = vld [vmem:[#allocation101_spill] sm:$0xff] }
 0x298   :  { %20695 = vst [vmem:[#allocation93_spill] sm:$0xff] %v13609_v3  ;;  %20697 = vst [vmem:[#allocation129_spill] sm:$0xff] %v13612_v10  ;;  %v20710_v19 = vld [vmem:[#allocation99_spill] sm:$0xff]  ;;  %v13645_v60 = vadd.f32 %v3269_v52, %v20712_v47  ;;  %v20714_v1 = vld [vmem:[#allocation29_spill] sm:$0xff]  ;;  %v13666_v52 = vrot.slane %v6563_v18, %v20708_v41 }
 0x299   :  { %20699 = vst [vmem:[#allocation106_spill] sm:$0xff] %v13615_v12  ;;  %20701 = vst [vmem:[#allocation131_spill] sm:$0xff] %v13618_v61  ;;  %v13642_v13 = vadd.f32 %v3266_v44, %v20710_v19  ;;  %v13648_v9 = vadd.f32 %v3272_v2, %v20714_v1  ;;  %v20716_v29 = vld [vmem:[#allocation32_spill] sm:$0xff]  ;;  %v20718_v11 = vld [vmem:[#allocation30_spill] sm:$0xff]  ;;  %v13669_v2 = vrot.slane %v6563_v18, %v20709_v42 }
 0x29a   :  { %20703 = vst [vmem:[#allocation107_spill] sm:$0xff] %v13621_v21  ;;  %20705 = vst [vmem:[#allocation108_spill] sm:$0xff] %v13624_v15  ;;  %v13651_v36 = vadd.f32 %v3275_v43, %v20716_v29  ;;  %v13654_v51 = vadd.f32 %v3278_v57, %v20718_v11  ;;  %v20720_v53 = vld [vmem:[#allocation40_spill] sm:$0xff]  ;;  %v20722_v8 = vld [vmem:[#allocation26_spill] sm:$0xff]  ;;  %v13672_v43 = vrot.slane %v6564_v45, %v20708_v41 }
 0x29b   :  { %20707 = vst [vmem:[#allocation113_spill] sm:$0xff] %v13627_v39  ;;  %20711 = vst [vmem:[#allocation109_spill] sm:$0xff] %v13642_v13  ;;  %v13657_v23 = vadd.f32 %v3281_v4, %v20720_v53  ;;  %v13660_v62 = vadd.f32 %v3284_v16, %v20722_v8  ;;  %v20724_v44 = vld [vmem:[#allocation27_spill] sm:$0xff]  ;;  %v13675_v57 = vrot.slane %v6564_v45, %v20709_v42  ;;  %v6630_v4 = vld [vmem:[%s18683_s0 + $0x160] sm:$0xfe] }
 0x29c   :  { %20713 = vst [vmem:[#allocation114_spill] sm:$0xff] %v13645_v60  ;;  %20715 = vst [vmem:[#allocation115_spill] sm:$0xff] %v13648_v9  ;;  %v13663_v59 = vadd.f32 %v3287_v63, %v20724_v44  ;;  %v13681_v16 = vmul.f32 %v6630_v4, %v13630_v50  ;;  %v6631_v63 = vld [vmem:[%s18683_s0 + $0x168] sm:$0xfe]  ;;  %v6632_v30 = vld [vmem:[%s18683_s0 + $0x170] sm:$0x1] }
 0x29d   :  { %20717 = vst [vmem:[#allocation116_spill] sm:$0xff] %v13651_v36  ;;  %20719 = vst [vmem:[#allocation42_spill] sm:$0xff] %v13654_v51  ;;  %v13687_v25 = vmul.f32 %v6631_v63, %v13633_v55  ;;  %v13693_v48 = vmul.f32 %v6632_v30, %v13630_v50  ;;  %v6633_v0 = vld [vmem:[%s18683_s0 + $0x178] sm:$0x1]  ;;  %v13704_v26 = vld [vmem:[%s18683_s0 + $0x180] sm:$0xfe] }
 0x29e   :  { %20721 = vst [vmem:[#allocation48_spill] sm:$0xff] %v13657_v23  ;;  %20723 = vst [vmem:[#allocation79_spill] sm:$0xff] %v13660_v62  ;;  %v13699_v34 = vmul.f32 %v6633_v0, %v13633_v55  ;;  %v13708_v56 = vmul.f32 %v13704_v26, %v13630_v50  ;;  %v13713_v28 = vld [vmem:[%s18683_s0 + $0x188] sm:$0xfe]  ;;  %v13722_v18 = vld [vmem:[%s18683_s0 + $0x190] sm:$0x1] }
 0x29f   :  { %20725 = vst [vmem:[#allocation80_spill] sm:$0xff] %v13663_v59  ;;  %20726 = vst [vmem:[#allocation66_spill] sm:$0xff] %v13666_v52  ;;  %v13717_v5 = vmul.f32 %v13713_v28, %v13633_v55  ;;  %v13726_v45 = vmul.f32 %v13722_v18, %v13630_v50  ;;  %v13731_v19 = vld [vmem:[%s18683_s0 + $0x198] sm:$0x1]  ;;  %v13740_v1 = vld [vmem:[%s18683_s0 + $0x1a0] sm:$0xfe] }
 0x2a0   :  { %20727 = vst [vmem:[#allocation73_spill] sm:$0xff] %v13669_v2  ;;  %20728 = vst [vmem:[#allocation24_spill] sm:$0xff] %v13672_v43  ;;  %v13735_v47 = vmul.f32 %v13731_v19, %v13633_v55  ;;  %v13744_v29 = vmul.f32 %v13740_v1, %v13630_v50  ;;  %v13749_v11 = vld [vmem:[%s18683_s0 + $0x1a8] sm:$0xfe]  ;;  %v13758_v8 = vld [vmem:[%s18683_s0 + $0x1b0] sm:$0x1] }
 0x2a1   :  { %20729 = vst [vmem:[#allocation23_spill] sm:$0xff] %v13675_v57  ;;  %20730 = vst [vmem:[#allocation85_spill] sm:$0xff] %v13704_v26  ;;  %v13753_v53 = vmul.f32 %v13749_v11, %v13633_v55  ;;  %v13762_v44 = vmul.f32 %v13758_v8, %v13630_v50  ;;  %v13767_v4 = vld [vmem:[%s18683_s0 + $0x1b8] sm:$0x1]  ;;  %v13776_v30 = vld [vmem:[%s18683_s0 + $0x240] sm:$0xfe] }
 0x2a2   :  { %20731 = vst [vmem:[#allocation86_spill] sm:$0xff] %v13713_v28  ;;  %20732 = vst [vmem:[#allocation143_spill] sm:$0xff] %v13722_v18  ;;  %v13771_v63 = vmul.f32 %v13767_v4, %v13633_v55  ;;  %v13781_v0 = vld [vmem:[%s18683_s0 + $0x1c0] sm:$0xfe]  ;;  %v13790_v41 = vld [vmem:[%s18683_s0 + $0x1c8] sm:$0xfe] }
 0x2a3   :  { %20733 = vst [vmem:[#allocation144_spill] sm:$0xff] %v13731_v19  ;;  %20734 = vst [vmem:[#allocation145_spill] sm:$0xff] %v13740_v1  ;;  %v13785_v42 = vmul.f32 %v13781_v0, %v13630_v50  ;;  %v13822_v19 = vld [vmem:[%s18683_s0 + $0x250] sm:$0x1]  ;;  %v13841_v28 = vld [vmem:[%s18683_s0 + $0x1e8] sm:$0xfe] }
 0x2a4   :  { %20735 = vst [vmem:[#allocation146_spill] sm:$0xff] %v13749_v11  ;;  %20736 = vst [vmem:[#allocation149_spill] sm:$0xff] %v13758_v8  ;;  %v13799_v8 = vld [vmem:[%s18683_s0 + $0x1d0] sm:$0x1]  ;;  %v13845_v57 = vmul.f32 %v13841_v28, %v13633_v55  ;;  %v20757_v36 = vld [vmem:[#allocation53_spill] sm:$0xff] }
 0x2a5   :  { %20737 = vst [vmem:[#allocation150_spill] sm:$0xff] %v13767_v4  ;;  %20738 = vst [vmem:[#allocation151_spill] sm:$0xff] %v13776_v30  ;;  %v13794_v4 = vmul.f32 %v13790_v41, %v13633_v55  ;;  %v13803_v11 = vmul.f32 %v13799_v8, %v13630_v50  ;;  %v13850_v26 = vld [vmem:[%s18683_s0 + $0x1f0] sm:$0x1]  ;;  %v13925_v9 = vmul.f32 %v20757_v36, %v13633_v55  ;;  %v20758_v13 = vld [vmem:[#allocation61_spill] sm:$0xff] }
 0x2a6   :  { %20739 = vst [vmem:[#allocation152_spill] sm:$0xff] %v13781_v0  ;;  %20740 = vst [vmem:[#allocation142_spill] sm:$0xff] %v13790_v41  ;;  %v13808_v0 = vld [vmem:[%s18683_s0 + $0x1d8] sm:$0x1]  ;;  %v13817_v41 = vld [vmem:[%s18683_s0 + $0x248] sm:$0xfe]  ;;  %v13854_v43 = vmul.f32 %v13850_v26, %v13630_v50  ;;  %v13945_v36 = vmul.f32 %v20758_v13, %v13630_v50 }
 0x2a7   :  { %20741 = vst [vmem:[#allocation64_spill] sm:$0xff] %v13799_v8  ;;  %20742 = vst [vmem:[#allocation65_spill] sm:$0xff] %v13808_v0  ;;  %v13812_v1 = vmul.f32 %v13808_v0, %v13633_v55  ;;  %v13827_v8 = vld [vmem:[%s18683_s0 + $0x258] sm:$0x1]  ;;  %v13832_v0 = vld [vmem:[%s18683_s0 + $0x1e0] sm:$0xfe]  ;;  %v13933_v60 = vmul.f32 %v13817_v41, %v13633_v55 }
 0x2a8   :  { %20743 = vst [vmem:[#allocation76_spill] sm:$0xff] %v13817_v41  ;;  %20744 = vst [vmem:[#allocation96_spill] sm:$0xff] %v13822_v19  ;;  %v13836_v18 = vmul.f32 %v13832_v0, %v13630_v50  ;;  %v20759_v39 = vld [vmem:[#allocation78_spill] sm:$0xff]  ;;  %v20760_v15 = vld [vmem:[#allocation11_spill] sm:$0xff] }
 0x2a9   :  { %20745 = vst [vmem:[#allocation98_spill] sm:$0xff] %v13827_v8  ;;  %20746 = vst [vmem:[#allocation99_spill] sm:$0xff] %v13832_v0  ;;  %v13859_v0 = vld [vmem:[%s18683_s0 + $0x1f8] sm:$0x1]  ;;  %v13953_v41 = vmul.f32 %v20760_v15, %v13630_v50  ;;  %v20761_v21 = vld [vmem:[#allocation13_spill] sm:$0xff] }
 0x2aa   :  { %20747 = vst [vmem:[#allocation101_spill] sm:$0xff] %v13841_v28  ;;  %20748 = vst [vmem:[#allocation29_spill] sm:$0xff] %v13850_v26  ;;  %v13863_v38 = vmul.f32 %v13859_v0, %v13633_v55  ;;  %v13868_v28 = vld [vmem:[%s18683_s0 + $0x200] sm:$0xfe]  ;;  %v13877_v26 = vld [vmem:[%s18683_s0 + $0x208] sm:$0xfe] }
 0x2ab   :  { %20749 = vst [vmem:[#allocation32_spill] sm:$0xff] %v13859_v0  ;;  %20750 = vst [vmem:[#allocation30_spill] sm:$0xff] %v13868_v28  ;;  %v13872_v27 = vmul.f32 %v13868_v28, %v13630_v50  ;;  %v13881_v2 = vmul.f32 %v13877_v26, %v13633_v55  ;;  %v13886_v0 = vld [vmem:[%s18683_s0 + $0x210] sm:$0x1]  ;;  %v13895_v28 = vld [vmem:[%s18683_s0 + $0x218] sm:$0x1] }
 0x2ac   :  { %20751 = vst [vmem:[#allocation40_spill] sm:$0xff] %v13877_v26  ;;  %20752 = vst [vmem:[#allocation26_spill] sm:$0xff] %v13886_v0  ;;  %v13890_v52 = vmul.f32 %v13886_v0, %v13630_v50  ;;  %v13899_v59 = vmul.f32 %v13895_v28, %v13633_v55  ;;  %v13904_v26 = vld [vmem:[%s18683_s0 + $0x220] sm:$0xfe]  ;;  %v13913_v0 = vld [vmem:[%s18683_s0 + $0x228] sm:$0xfe] }
 0x2ad   :  { %20753 = vst [vmem:[#allocation27_spill] sm:$0xff] %v13895_v28  ;;  %20754 = vst [vmem:[#allocation154_spill] sm:$0xff] %v13904_v26  ;;  %v13908_v62 = vmul.f32 %v13904_v26, %v13630_v50  ;;  %v13917_v23 = vmul.f32 %v13913_v0, %v13633_v55  ;;  %v20756_v28 = vld [vmem:[#allocation19_spill] sm:$0xff]  ;;  %v13929_v26 = vmul.f32 %v13776_v30, %v13630_v50  ;;  %v20763_v12 = vld [vmem:[#allocation54_spill] sm:$0xff] }
 0x2ae   :  { %20755 = vst [vmem:[#allocation155_spill] sm:$0xff] %v13913_v0  ;;  %v13921_v51 = vmul.f32 %v20756_v28, %v13630_v50  ;;  %v13937_v0 = vmul.f32 %v13822_v19, %v13630_v50  ;;  %v13941_v28 = vmul.f32 %v13827_v8, %v13633_v55  ;;  %v13949_v30 = vmul.f32 %v20759_v39, %v13633_v55  ;;  %v20762_v61 = vld [vmem:[#allocation35_spill] sm:$0xff]  ;;  %v20764_v10 = vld [vmem:[#allocation56_spill] sm:$0xff]  ;;  %v20765_v3 = vld [vmem:[#allocation57_spill] sm:$0xff] }
 0x2af   :  { %v13957_v19 = vmul.f32 %v20761_v21, %v13633_v55  ;;  %v13961_v8 = vmul.f32 %v20762_v61, %v13630_v50  ;;  %v13965_v13 = vmul.f32 %v20763_v12, %v13633_v55  ;;  %v13969_v39 = vmul.f32 %v20764_v10, %v13630_v50  ;;  %v20766_v7 = vld [vmem:[#allocation58_spill] sm:$0xff]  ;;  %v20767_v22 = vld [vmem:[#allocation59_spill] sm:$0xff]  ;;  %v20769_v37 = vld [vmem:[#allocation77_spill] sm:$0xff] }
 0x2b0   :  { %v13973_v15 = vmul.f32 %v20765_v3, %v13633_v55  ;;  %v13977_v21 = vmul.f32 %v20766_v7, %v13630_v50  ;;  %v13981_v61 = vmul.f32 %v20767_v22, %v13633_v55  ;;  %v20768_v17 = vld [vmem:[#allocation10_spill] sm:$0xff]  ;;  %v13989_v10 = vmul.f32 %v20769_v37, %v13633_v55  ;;  %v20772_v35 = vld [vmem:[#allocation51_spill] sm:$0xff]  ;;  %v20774_v40 = vld [vmem:[#allocation16_spill] sm:$0xff] }
 0x2b1   :  { %v13985_v12 = vmul.f32 %v20768_v17, %v13630_v50  ;;  %v20770_v14 = vld [vmem:[#allocation14_spill] sm:$0xff]  ;;  %v14001_v22 = vmul.f32 %v20772_v35, %v13630_v50  ;;  %v20773_v20 = vld [vmem:[#allocation15_spill] sm:$0xff]  ;;  %v14009_v37 = vmul.f32 %v20774_v40, %v13630_v50  ;;  %v20775_v54 = vld [vmem:[#allocation17_spill] sm:$0xff] }
 0x2b2   :  { %v13993_v3 = vmul.f32 %v20770_v14, %v13630_v50  ;;  %v20771_v24 = vld [vmem:[#allocation82_spill] sm:$0xff]  ;;  %v14005_v17 = vmul.f32 %v20773_v20, %v13633_v55  ;;  %v14013_v14 = vmul.f32 %v20775_v54, %v13633_v55  ;;  %v20777_v33 = vld [vmem:[#allocation41_spill] sm:$0xff]  ;;  %v20779_v6 = vld [vmem:[#allocation31_spill] sm:$0xff] }
 0x2b3   :  { %v13997_v7 = vmul.f32 %v20771_v24, %v13633_v55  ;;  %v14017_v24 = vmul.f32 %v20777_v33, %v13630_v50  ;;  %v14021_v35 = vmul.f32 %v20779_v6, %v13633_v55  ;;  %v20781_v46 = vld [vmem:[#allocation62_spill] sm:$0xff]  ;;  %v20783_v58 = vld [vmem:[#allocation60_spill] sm:$0xff]  ;;  %v20785_v49 = vld [vmem:[#allocation63_spill] sm:$0xff] }
 0x2b4   :  { %20776 = vst [vmem:[#allocation19_spill] sm:$0xff] %v14013_v14  ;;  %v14025_v20 = vmul.f32 %v20781_v46, %v13630_v50  ;;  %v14029_v40 = vmul.f32 %v20783_v58, %v13633_v55  ;;  %v14033_v54 = vmul.f32 %v20785_v49, %v13630_v50  ;;  %v20787_v32 = vld [vmem:[#allocation123_spill] sm:$0xff]  ;;  %v14042_v6 = vld [vmem:[%s18683_s0 + $0x740] sm:$0xfe]  ;;  %v14047_v46 = vld [vmem:[%s18683_s0 + $0x748] sm:$0xfe] }
 0x2b5   :  { %20778 = vst [vmem:[#allocation53_spill] sm:$0xff] %v14017_v24  ;;  %20780 = vst [vmem:[#allocation61_spill] sm:$0xff] %v14021_v35  ;;  %v14037_v33 = vmul.f32 %v20787_v32, %v13633_v55  ;;  %v20791_v58 = vld [vmem:[#allocation122_spill] sm:$0xff]  ;;  %v20793_v49 = vld [vmem:[#allocation124_spill] sm:$0xff]  ;;  %v3503_v14 = vrot.slane %v13735_v47, 1  ;;  %v14089_v24 = vmul.f32 %v14042_v6, %v13630_v50 }
 0x2b6   :  { %20782 = vst [vmem:[#allocation78_spill] sm:$0xff] %v14025_v20  ;;  %20784 = vst [vmem:[#allocation11_spill] sm:$0xff] %v14029_v40  ;;  %v14051_v31 = vmul.f32 %v20791_v58, %v13630_v50  ;;  %v14055_v40 = vmul.f32 %v20793_v49, %v13633_v55  ;;  %v20795_v32 = vld [vmem:[#allocation34_spill] sm:$0xff]  ;;  %v14068_v35 = vld [vmem:[%s18683_s0 + $0x750] sm:$0x1]  ;;  %v3493_v58 = vrot.slane %v13681_v16, 1 }
 0x2b7   :  { %20786 = vst [vmem:[#allocation13_spill] sm:$0xff] %v14033_v54  ;;  %20788 = vst [vmem:[#allocation35_spill] sm:$0xff] %v14037_v33  ;;  %v14059_v33 = vmul.f32 %v20795_v32, %v13630_v50  ;;  %v20797_v54 = vld [vmem:[#allocation38_spill] sm:$0xff]  ;;  %v3496_v49 = vrot.slane %v13687_v25, 1  ;;  %v14077_v32 = vld [vmem:[%s18683_s0 + $0x758] sm:$0x1]  ;;  %v14099_v47 = vmul.f32 %v14068_v35, %v13630_v50 }
 0x2b8   :  { %20789 = vst [vmem:[#allocation54_spill] sm:$0xff] %v14042_v6  ;;  %20790 = vst [vmem:[#allocation56_spill] sm:$0xff] %v14047_v46  ;;  %v14063_v20 = vmul.f32 %v20797_v54, %v13633_v55  ;;  %v3499_v54 = vrot.slane %v13708_v56, 1  ;;  %v3505_v16 = vrot.slane %v13744_v29, 1  ;;  %v3508_v25 = vrot.slane %v13753_v53, 1 }
 0x2b9   :  { %20792 = vst [vmem:[#allocation57_spill] sm:$0xff] %v14051_v31  ;;  %20794 = vst [vmem:[#allocation58_spill] sm:$0xff] %v14055_v40  ;;  %v3494_v31 = vrot.slane %v13693_v48, 1  ;;  %v3497_v40 = vrot.slane %v13699_v34, 1  ;;  %v3506_v48 = vrot.slane %v13762_v44, 1  ;;  %v3509_v34 = vrot.slane %v13771_v63, 1 }
 0x2ba   :  { %20796 = vst [vmem:[#allocation59_spill] sm:$0xff] %v14059_v33  ;;  %20798 = vst [vmem:[#allocation10_spill] sm:$0xff] %v14063_v20  ;;  %v3500_v20 = vrot.slane %v13726_v45, 1  ;;  %v3502_v33 = vrot.slane %v13717_v5, 1  ;;  %v14093_v56 = vmul.f32 %v14047_v46, %v13633_v55  ;;  %v3511_v5 = vrot.slane %v13785_v42, 1 }
 0x2bb   :  { %20799 = vst [vmem:[#allocation77_spill] sm:$0xff] %v14068_v35  ;;  %20800 = vst [vmem:[#allocation14_spill] sm:$0xff] %v14077_v32  ;;  %v3512_v45 = vrot.slane %v13803_v11, 1  ;;  %v14103_v29 = vmul.f32 %v14077_v32, %v13633_v55  ;;  %v3514_v53 = vrot.slane %v13794_v4, 1  ;;  %v3515_v44 = vrot.slane %v13812_v1, 1  ;;  %v20898_v35 = vld [vmem:[#allocation87_spill] sm:$0xff] }
 0x2bc   :  { %v14108_v63 = vsel %vm1233_vm0, %v3493_v58, %v3494_v31  ;;  %v14111_v46 = vsel %vm1233_vm0, %v3496_v49, %v3497_v40  ;;  %v14114_v42 = vsel %vm1233_vm0, %v3499_v54, %v3500_v20  ;;  %v14117_v50 = vsel %vm1233_vm0, %v3502_v33, %v3503_v14 }
 0x2bd   :  { %v14120_v11 = vsel %vm1233_vm0, %v3505_v16, %v3506_v48  ;;  %v14123_v55 = vsel %vm1233_vm0, %v3508_v25, %v3509_v34  ;;  %v3517_v1 = vrot.slane %v13836_v18, 1  ;;  %v3518_v31 = vrot.slane %v13854_v43, 1 }
 0x2be   :  { %v14128_v4 = vsel %vm1233_vm0, %v3511_v5, %v3512_v45  ;;  %v3520_v40 = vrot.slane %v13845_v57, 1  ;;  %v3521_v20 = vrot.slane %v13863_v38, 1  ;;  %v3523_v14 = vrot.slane %v13872_v27, 1 }
 0x2bf   :  { %v14134_v33 = vsel %vm1233_vm0, %v3514_v53, %v3515_v44  ;;  %v3524_v58 = vrot.slane %v13890_v52, 1  ;;  %v3526_v49 = vrot.slane %v13881_v2, 1  ;;  %v3527_v18 = vrot.slane %v13899_v59, 1 }
 0x2c0   :  { %v3529_v43 = vrot.slane %v13908_v62, 1  ;;  %v3530_v54 = vrot.slane %v13921_v51, 1  ;;  %v3532_v16 = vrot.slane %v13917_v23, 1  ;;  %v3533_v57 = vrot.slane %v13925_v9, 1 }
 0x2c1   :  { %v3535_v38 = vrot.slane %v13929_v26, 1  ;;  %v3536_v27 = vrot.slane %v13937_v0, 1  ;;  %v3538_v48 = vrot.slane %v13933_v60, 1  ;;  %v3539_v52 = vrot.slane %v13941_v28, 1 }
 0x2c2   :  { %v3541_v2 = vrot.slane %v13945_v36, 1  ;;  %v3542_v59 = vrot.slane %v13953_v41, 1  ;;  %v3544_v62 = vrot.slane %v13949_v30, 1  ;;  %v3545_v51 = vrot.slane %v13957_v19, 1 }
 0x2c3   :  { %v3519_v23 = vsel %vm1233_vm0, %v3517_v1, %v3518_v31  ;;  %v3522_v9 = vsel %vm1233_vm0, %v3520_v40, %v3521_v20  ;;  %v3547_v26 = vrot.slane %v13961_v8, 1  ;;  %v3548_v0 = vrot.slane %v13969_v39, 1 }
 0x2c4   :  { %v3525_v60 = vsel %vm1233_vm0, %v3523_v14, %v3524_v58  ;;  %v3528_v28 = vsel %vm1233_vm0, %v3526_v49, %v3527_v18  ;;  %v3550_v36 = vrot.slane %v13965_v13, 1  ;;  %v3551_v41 = vrot.slane %v13973_v15, 1  ;;  %v20801_v14 = vld [vmem:[#allocation53_spill] sm:$0xff]  ;;  %v20802_v58 = vld [vmem:[#allocation19_spill] sm:$0xff] }
 0x2c5   :  { %v3531_v30 = vsel %vm1233_vm0, %v3529_v43, %v3530_v54  ;;  %v3534_v19 = vsel %vm1233_vm0, %v3532_v16, %v3533_v57  ;;  %v3537_v25 = vsel %vm1233_vm0, %v3535_v38, %v3536_v27  ;;  %v3540_v34 = vsel %vm1233_vm0, %v3538_v48, %v3539_v52  ;;  %v20803_v18 = vld [vmem:[#allocation61_spill] sm:$0xff]  ;;  %v20804_v43 = vld [vmem:[#allocation78_spill] sm:$0xff]  ;;  %v20806_v16 = vld [vmem:[#allocation11_spill] sm:$0xff] }
 0x2c6   :  { %v3543_v8 = vsel %vm1233_vm0, %v3541_v2, %v3542_v59  ;;  %v3546_v39 = vsel %vm1233_vm0, %v3544_v62, %v3545_v51  ;;  %v3553_v5 = vrot.slane %v13977_v21, 1  ;;  %v3554_v45 = vrot.slane %v13985_v12, 1  ;;  %v20805_v54 = vld [vmem:[#allocation13_spill] sm:$0xff]  ;;  %v20807_v38 = vld [vmem:[#allocation35_spill] sm:$0xff]  ;;  %v20810_v52 = vld [vmem:[#allocation58_spill] sm:$0xff] }
 0x2c7   :  { %v3549_v13 = vsel %vm1233_vm0, %v3547_v26, %v3548_v0  ;;  %v3556_v15 = vrot.slane %v13981_v61, 1  ;;  %v3557_v53 = vrot.slane %v13989_v10, 1  ;;  %v3559_v44 = vrot.slane %v13993_v3, 1  ;;  %v20808_v27 = vld [vmem:[#allocation57_spill] sm:$0xff]  ;;  %v20809_v48 = vld [vmem:[#allocation59_spill] sm:$0xff]  ;;  %v20811_v2 = vld [vmem:[#allocation10_spill] sm:$0xff] }
 0x2c8   :  { %v3552_v1 = vsel %vm1233_vm0, %v3550_v36, %v3551_v41  ;;  %v3560_v31 = vrot.slane %v14001_v22, 1  ;;  %v3562_v40 = vrot.slane %v13997_v7, 1  ;;  %v3563_v20 = vrot.slane %v14005_v17, 1 }
 0x2c9   :  { %v3565_v21 = vrot.slane %v14009_v37, 1  ;;  %v3566_v12 = vrot.slane %v20801_v14, 1  ;;  %v3568_v49 = vrot.slane %v20802_v58, 1  ;;  %v3569_v61 = vrot.slane %v20803_v18, 1 }
 0x2ca   :  { %v3571_v10 = vrot.slane %v20804_v43, 1  ;;  %v3572_v3 = vrot.slane %v20805_v54, 1  ;;  %v3574_v57 = vrot.slane %v20806_v16, 1  ;;  %v3575_v22 = vrot.slane %v20807_v38, 1  ;;  %v20832_v38 = vld [vmem:[#allocation134_spill] sm:$0xff] }
 0x2cb   :  { %v3577_v7 = vrot.slane %v20808_v27, 1  ;;  %v3578_v17 = vrot.slane %v20809_v48, 1  ;;  %v3580_v37 = vrot.slane %v20810_v52, 1  ;;  %v3581_v59 = vrot.slane %v20811_v2, 1  ;;  %v20834_v27 = vld [vmem:[#allocation135_spill] sm:$0xff] }
 0x2cc   :  { %v3555_v62 = vsel %vm1233_vm0, %v3553_v5, %v3554_v45  ;;  %v3558_v51 = vsel %vm1233_vm0, %v3556_v15, %v3557_v53  ;;  %v3583_v26 = vrot.slane %v14089_v24, 1  ;;  %v3584_v0 = vrot.slane %v14099_v47, 1  ;;  %v20812_v15 = vld [vmem:[#allocation119_spill] sm:$0xff] }
 0x2cd   :  { %v3561_v36 = vsel %vm1233_vm0, %v3559_v44, %v3560_v31  ;;  %v3564_v41 = vsel %vm1233_vm0, %v3562_v40, %v3563_v20  ;;  %v3586_v14 = vrot.slane %v14093_v56, 1  ;;  %v3587_v58 = vrot.slane %v14103_v29, 1  ;;  %v20814_v44 = vld [vmem:[#allocation120_spill] sm:$0xff]  ;;  %v20816_v31 = vld [vmem:[#allocation121_spill] sm:$0xff] }
 0x2ce   :  { %v3567_v18 = vsel %vm1233_vm0, %v3565_v21, %v3566_v12  ;;  %v3570_v43 = vsel %vm1233_vm0, %v3568_v49, %v3569_v61  ;;  %v3573_v5 = vsel %vm1233_vm0, %v3571_v10, %v3572_v3  ;;  %v3576_v45 = vsel %vm1233_vm0, %v3574_v57, %v3575_v22  ;;  %v20818_v20 = vld [vmem:[#allocation125_spill] sm:$0xff]  ;;  %v20820_v12 = vld [vmem:[#allocation126_spill] sm:$0xff]  ;;  %v20822_v61 = vld [vmem:[#allocation127_spill] sm:$0xff] }
 0x2cf   :  { %v3579_v24 = vsel %vm1233_vm0, %v3577_v7, %v3578_v17  ;;  %v3582_v47 = vsel %vm1233_vm0, %v3580_v37, %v3581_v59  ;;  %v14203_v53 = vadd.f32 %v14108_v63, %v20812_v15  ;;  %v14207_v56 = vadd.f32 %v14111_v46, %v20814_v44  ;;  %v20824_v10 = vld [vmem:[#allocation132_spill] sm:$0xff]  ;;  %v20830_v57 = vld [vmem:[#allocation139_spill] sm:$0xff] }
 0x2d0   :  { %v3585_v29 = vsel %vm1233_vm0, %v3583_v26, %v3584_v0  ;;  %v14212_v40 = vadd.f32 %v14114_v42, %v20816_v31  ;;  %v14216_v21 = vadd.f32 %v14117_v50, %v20818_v20  ;;  %v14220_v49 = vadd.f32 %v14120_v11, %v20820_v12  ;;  %v20826_v42 = vld [vmem:[#allocation133_spill] sm:$0xff]  ;;  %v20828_v50 = vld [vmem:[#allocation138_spill] sm:$0xff]  ;;  %v20836_v7 = vld [vmem:[#allocation136_spill] sm:$0xff] }
 0x2d1   :  { %20813 = vst [vmem:[#allocation82_spill] sm:$0xff] %v14203_v53  ;;  %20815 = vst [vmem:[#allocation51_spill] sm:$0xff] %v14207_v56  ;;  %v3588_v63 = vsel %vm1233_vm0, %v3586_v14, %v3587_v58  ;;  %v14225_v46 = vadd.f32 %v14123_v55, %v20822_v61  ;;  %v14229_v54 = vadd.f32 %v14128_v4, %v20824_v10  ;;  %v20838_v4 = vld [vmem:[#allocation137_spill] sm:$0xff]  ;;  %v20936_v56 = vld [vmem:[#allocation110_spill] sm:$0xff] }
 0x2d2   :  { %20817 = vst [vmem:[#allocation15_spill] sm:$0xff] %v14212_v40  ;;  %20819 = vst [vmem:[#allocation16_spill] sm:$0xff] %v14216_v21  ;;  %v14233_v3 = vadd.f32 %v14134_v33, %v20826_v42  ;;  %v14236_v16 = vadd.f32 %v3519_v23, %v20828_v50  ;;  %v14239_v11 = vadd.f32 %v3522_v9, %v20830_v57  ;;  %v20840_v33 = vld [vmem:[#allocation18_spill] sm:$0xff]  ;;  %v20844_v9 = vld [vmem:[#allocation92_spill] sm:$0xff] }
 0x2d3   :  { %20821 = vst [vmem:[#allocation17_spill] sm:$0xff] %v14220_v49  ;;  %20823 = vst [vmem:[#allocation41_spill] sm:$0xff] %v14225_v46  ;;  %v14242_v22 = vadd.f32 %v3525_v60, %v20832_v38  ;;  %v14245_v55 = vadd.f32 %v3528_v28, %v20834_v27  ;;  %v14248_v48 = vadd.f32 %v3531_v30, %v20836_v7  ;;  %v20842_v23 = vld [vmem:[#allocation22_spill] sm:$0xff]  ;;  %v20846_v60 = vld [vmem:[#allocation93_spill] sm:$0xff] }
 0x2d4   :  { %20825 = vst [vmem:[#allocation31_spill] sm:$0xff] %v14229_v54  ;;  %20827 = vst [vmem:[#allocation62_spill] sm:$0xff] %v14233_v3  ;;  %v14251_v17 = vadd.f32 %v3534_v19, %v20838_v4  ;;  %v14254_v52 = vadd.f32 %v3537_v25, %v20840_v33  ;;  %v14257_v37 = vadd.f32 %v3540_v34, %v20842_v23  ;;  %v20848_v28 = vld [vmem:[#allocation129_spill] sm:$0xff]  ;;  %v20850_v30 = vld [vmem:[#allocation106_spill] sm:$0xff] }
 0x2d5   :  { %20829 = vst [vmem:[#allocation60_spill] sm:$0xff] %v14236_v16  ;;  %20831 = vst [vmem:[#allocation63_spill] sm:$0xff] %v14239_v11  ;;  %v14260_v2 = vadd.f32 %v3543_v8, %v20844_v9  ;;  %v14263_v59 = vadd.f32 %v3546_v39, %v20846_v60  ;;  %v14266_v26 = vadd.f32 %v3549_v13, %v20848_v28  ;;  %v20852_v19 = vld [vmem:[#allocation131_spill] sm:$0xff]  ;;  %v20856_v34 = vld [vmem:[#allocation108_spill] sm:$0xff] }
 0x2d6   :  { %20833 = vst [vmem:[#allocation123_spill] sm:$0xff] %v14242_v22  ;;  %20835 = vst [vmem:[#allocation122_spill] sm:$0xff] %v14245_v55  ;;  %v14269_v0 = vadd.f32 %v3552_v1, %v20850_v30  ;;  %v14272_v14 = vadd.f32 %v3555_v62, %v20852_v19  ;;  %v20854_v25 = vld [vmem:[#allocation107_spill] sm:$0xff]  ;;  %v14278_v15 = vadd.f32 %v3561_v36, %v20856_v34  ;;  %v20858_v8 = vld [vmem:[#allocation113_spill] sm:$0xff] }
 0x2d7   :  { %20837 = vst [vmem:[#allocation124_spill] sm:$0xff] %v14248_v48  ;;  %20839 = vst [vmem:[#allocation34_spill] sm:$0xff] %v14251_v17  ;;  %v14275_v58 = vadd.f32 %v3558_v51, %v20854_v25  ;;  %v14281_v44 = vadd.f32 %v3564_v41, %v20858_v8  ;;  %v20860_v39 = vld [vmem:[#allocation109_spill] sm:$0xff]  ;;  %v20862_v13 = vld [vmem:[#allocation114_spill] sm:$0xff] }
 0x2d8   :  { %20841 = vst [vmem:[#allocation38_spill] sm:$0xff] %v14254_v52  ;;  %20843 = vst [vmem:[#allocation53_spill] sm:$0xff] %v14257_v37  ;;  %v14284_v31 = vadd.f32 %v3567_v18, %v20860_v39  ;;  %v14287_v20 = vadd.f32 %v3570_v43, %v20862_v13  ;;  %v20864_v1 = vld [vmem:[#allocation115_spill] sm:$0xff]  ;;  %v20866_v62 = vld [vmem:[#allocation116_spill] sm:$0xff] }
 0x2d9   :  { %20845 = vst [vmem:[#allocation19_spill] sm:$0xff] %v14260_v2  ;;  %20847 = vst [vmem:[#allocation61_spill] sm:$0xff] %v14263_v59  ;;  %v14290_v12 = vadd.f32 %v3573_v5, %v20864_v1  ;;  %v14293_v61 = vadd.f32 %v3576_v45, %v20866_v62  ;;  %v20868_v51 = vld [vmem:[#allocation42_spill] sm:$0xff]  ;;  %v20870_v36 = vld [vmem:[#allocation48_spill] sm:$0xff] }
 0x2da   :  { %20849 = vst [vmem:[#allocation78_spill] sm:$0xff] %v14266_v26  ;;  %20851 = vst [vmem:[#allocation13_spill] sm:$0xff] %v14269_v0  ;;  %v14296_v10 = vadd.f32 %v3579_v24, %v20868_v51  ;;  %v14299_v42 = vadd.f32 %v3582_v47, %v20870_v36  ;;  %v20872_v41 = vld [vmem:[#allocation79_spill] sm:$0xff]  ;;  %v20874_v18 = vld [vmem:[#allocation80_spill] sm:$0xff] }
 0x2db   :  { %20853 = vst [vmem:[#allocation11_spill] sm:$0xff] %v14272_v14  ;;  %20855 = vst [vmem:[#allocation35_spill] sm:$0xff] %v14275_v58  ;;  %v14302_v50 = vadd.f32 %v3585_v29, %v20872_v41  ;;  %v14305_v57 = vadd.f32 %v3588_v63, %v20874_v18  ;;  %v20876_v43 = vld [vmem:[#allocation66_spill] sm:$0xff]  ;;  %v20877_v38 = vld [vmem:[#allocation147_spill] sm:$0xff] }
 0x2dc   :  { %20857 = vst [vmem:[#allocation57_spill] sm:$0xff] %v14278_v15  ;;  %20859 = vst [vmem:[#allocation59_spill] sm:$0xff] %v14281_v44  ;;  %v14309_v27 = vmul.f32 %v20877_v38, %v20876_v43  ;;  %v20878_v5 = vld [vmem:[#allocation73_spill] sm:$0xff]  ;;  %v20879_v7 = vld [vmem:[#allocation148_spill] sm:$0xff]  ;;  %v14401_v6 = vmul.f32 %v20898_v35, %v20876_v43 }
 0x2dd   :  { %20861 = vst [vmem:[#allocation58_spill] sm:$0xff] %v14284_v31  ;;  %20863 = vst [vmem:[#allocation10_spill] sm:$0xff] %v14287_v20  ;;  %v14313_v45 = vmul.f32 %v20879_v7, %v20878_v5  ;;  %v20880_v24 = vld [vmem:[#allocation153_spill] sm:$0xff]  ;;  %v20881_v47 = vld [vmem:[#allocation74_spill] sm:$0xff] }
 0x2de   :  { %20865 = vst [vmem:[#allocation119_spill] sm:$0xff] %v14290_v12  ;;  %20867 = vst [vmem:[#allocation120_spill] sm:$0xff] %v14293_v61  ;;  %v14317_v4 = vmul.f32 %v20880_v24, %v20876_v43  ;;  %v14321_v33 = vmul.f32 %v20881_v47, %v20878_v5  ;;  %v20882_v29 = vld [vmem:[#allocation140_spill] sm:$0xff]  ;;  %v20883_v23 = vld [vmem:[#allocation141_spill] sm:$0xff] }
 0x2df   :  { %20869 = vst [vmem:[#allocation121_spill] sm:$0xff] %v14296_v10  ;;  %20871 = vst [vmem:[#allocation125_spill] sm:$0xff] %v14299_v42  ;;  %v14325_v63 = vmul.f32 %v20882_v29, %v20876_v43  ;;  %v14329_v9 = vmul.f32 %v20883_v23, %v20878_v5  ;;  %v20884_v60 = vld [vmem:[#allocation49_spill] sm:$0xff]  ;;  %v20885_v30 = vld [vmem:[#allocation94_spill] sm:$0xff] }
 0x2e0   :  { %20873 = vst [vmem:[#allocation126_spill] sm:$0xff] %v14302_v50  ;;  %20875 = vst [vmem:[#allocation127_spill] sm:$0xff] %v14305_v57  ;;  %v14333_v28 = vmul.f32 %v20884_v60, %v20876_v43  ;;  %v14337_v19 = vmul.f32 %v20885_v30, %v20878_v5  ;;  %v20886_v25 = vld [vmem:[#allocation95_spill] sm:$0xff]  ;;  %v20887_v8 = vld [vmem:[#allocation97_spill] sm:$0xff] }
 0x2e1   :  { %v14341_v34 = vmul.f32 %v20886_v25, %v20876_v43  ;;  %v14345_v39 = vmul.f32 %v20887_v8, %v20878_v5  ;;  %v20888_v13 = vld [vmem:[#allocation100_spill] sm:$0xff]  ;;  %v20889_v62 = vld [vmem:[#allocation102_spill] sm:$0xff]  ;;  %v6480_v36 = vld [vmem:[%s18683_s0 + $0x4c0] sm:$0xfe] }
 0x2e2   :  { %v14349_v1 = vmul.f32 %v20888_v13, %v20876_v43  ;;  %v14353_v51 = vmul.f32 %v20889_v62, %v20878_v5  ;;  %v20890_v41 = vld [vmem:[#allocation12_spill] sm:$0xff]  ;;  %v20893_v29 = vld [vmem:[#allocation21_spill] sm:$0xff]  ;;  %v6481_v60 = vld [vmem:[%s18683_s0 + $0x4c8] sm:$0xfe]  ;;  %v14432_v31 = vmul.f32 %v6480_v36, %v20876_v43 }
 0x2e3   :  { %v14360_v18 = vmul.f32 %v20890_v41, %v20876_v43  ;;  %v20891_v38 = vld [vmem:[#allocation28_spill] sm:$0xff]  ;;  %v14372_v23 = vmul.f32 %v20893_v29, %v20878_v5  ;;  %v6482_v30 = vld [vmem:[%s18683_s0 + $0x4d0] sm:$0x1]  ;;  %v20899_v57 = vld [vmem:[#allocation9_spill] sm:$0xff] }
 0x2e4   :  { %v14364_v7 = vmul.f32 %v20891_v38, %v20878_v5  ;;  %v20892_v24 = vld [vmem:[#allocation20_spill] sm:$0xff]  ;;  %v20894_v8 = vld [vmem:[#allocation75_spill] sm:$0xff]  ;;  %v20896_v38 = vld [vmem:[#allocation33_spill] sm:$0xff] }
 0x2e5   :  { %v14368_v47 = vmul.f32 %v20892_v24, %v20876_v43  ;;  %v6483_v25 = vld [vmem:[%s18683_s0 + $0x4d8] sm:$0x1]  ;;  %v14385_v13 = vmul.f32 %v20894_v8, %v20876_v43  ;;  %v14393_v24 = vmul.f32 %v20896_v38, %v20876_v43  ;;  %v20897_v29 = vld [vmem:[#allocation39_spill] sm:$0xff]  ;;  %v14405_v8 = vmul.f32 %v20899_v57, %v20878_v5  ;;  %v20902_v10 = vld [vmem:[#allocation37_spill] sm:$0xff] }
 0x2e6   :  { %v20895_v62 = vld [vmem:[#allocation8_spill] sm:$0xff]  ;;  %v14397_v32 = vmul.f32 %v20897_v29, %v20878_v5  ;;  %v14417_v29 = vmul.f32 %v20902_v10, %v20876_v43  ;;  %v20903_v61 = vld [vmem:[#allocation43_spill] sm:$0xff]  ;;  %v20905_v20 = vld [vmem:[#allocation46_spill] sm:$0xff]  ;;  %v14438_v10 = vmul.f32 %v6482_v30, %v20876_v43 }
 0x2e7   :  { %v14389_v41 = vmul.f32 %v20895_v62, %v20878_v5  ;;  %v20900_v50 = vld [vmem:[#allocation88_spill] sm:$0xff]  ;;  %v14421_v35 = vmul.f32 %v20903_v61, %v20878_v5  ;;  %v14441_v61 = vmul.f32 %v6483_v25, %v20878_v5  ;;  %v20906_v44 = vld [vmem:[#allocation47_spill] sm:$0xff]  ;;  %v20910_v30 = vld [vmem:[#allocation69_spill] sm:$0xff] }
 0x2e8   :  { %v14409_v62 = vmul.f32 %v20900_v50, %v20876_v43  ;;  %v20901_v42 = vld [vmem:[#allocation36_spill] sm:$0xff]  ;;  %v14429_v50 = vmul.f32 %v20905_v20, %v20878_v5  ;;  %v20907_v15 = vld [vmem:[#allocation67_spill] sm:$0xff]  ;;  %v14461_v25 = vmul.f32 %v20910_v30, %v20876_v43  ;;  %v20911_v0 = vld [vmem:[#allocation50_spill] sm:$0xff] }
 0x2e9   :  { %v14413_v38 = vmul.f32 %v20901_v42, %v20878_v5  ;;  %v20904_v12 = vld [vmem:[#allocation44_spill] sm:$0xff]  ;;  %v14435_v42 = vmul.f32 %v6481_v60, %v20878_v5  ;;  %v14449_v20 = vmul.f32 %v20907_v15, %v20878_v5  ;;  %v20912_v26 = vld [vmem:[#allocation81_spill] sm:$0xff]  ;;  %v20913_v59 = vld [vmem:[#allocation83_spill] sm:$0xff] }
 0x2ea   :  { %v14425_v57 = vmul.f32 %v20904_v12, %v20876_v43  ;;  %v14445_v12 = vmul.f32 %v20906_v44, %v20876_v43  ;;  %v20908_v36 = vld [vmem:[#allocation52_spill] sm:$0xff]  ;;  %v14465_v44 = vmul.f32 %v20911_v0, %v20878_v5  ;;  %v14469_v15 = vmul.f32 %v20912_v26, %v20876_v43  ;;  %v20915_v37 = vld [vmem:[#allocation89_spill] sm:$0xff]  ;;  %v20916_v52 = vld [vmem:[#allocation90_spill] sm:$0xff] }
 0x2eb   :  { %v14453_v58 = vmul.f32 %v20908_v36, %v20876_v43  ;;  %v20909_v60 = vld [vmem:[#allocation68_spill] sm:$0xff]  ;;  %v14473_v36 = vmul.f32 %v20913_v59, %v20878_v5  ;;  %v14481_v30 = vmul.f32 %v20915_v37, %v20878_v5  ;;  %v14485_v0 = vmul.f32 %v20916_v52, %v20876_v43  ;;  %v20917_v17 = vld [vmem:[#allocation91_spill] sm:$0xff]  ;;  %v20919_v55 = vld [vmem:[#allocation70_spill] sm:$0xff] }
 0x2ec   :  { %v14457_v14 = vmul.f32 %v20909_v60, %v20878_v5  ;;  %v20914_v2 = vld [vmem:[#allocation84_spill] sm:$0xff]  ;;  %v14489_v26 = vmul.f32 %v20917_v17, %v20878_v5  ;;  %v20918_v48 = vld [vmem:[#allocation55_spill] sm:$0xff]  ;;  %v20920_v22 = vld [vmem:[#allocation45_spill] sm:$0xff] }
 0x2ed   :  { %v14477_v60 = vmul.f32 %v20914_v2, %v20876_v43  ;;  %v14493_v59 = vmul.f32 %v20918_v48, %v20876_v43  ;;  %v14497_v2 = vmul.f32 %v20919_v55, %v20878_v5  ;;  %v14501_v37 = vmul.f32 %v20920_v22, %v20876_v43  ;;  %v20921_v11 = vld [vmem:[#allocation72_spill] sm:$0xff]  ;;  %v20922_v16 = vld [vmem:[#allocation71_spill] sm:$0xff]  ;;  %v20926_v54 = vld [vmem:[#allocation25_spill] sm:$0xff] }
 0x2ee   :  { %v14505_v52 = vmul.f32 %v20921_v11, %v20878_v5  ;;  %v14509_v17 = vmul.f32 %v20922_v16, %v20876_v43  ;;  %v20924_v3 = vld [vmem:[#allocation128_spill] sm:$0xff]  ;;  %v14517_v55 = vmul.f32 %v20926_v54, %v20876_v43  ;;  %v20928_v46 = vld [vmem:[#allocation130_spill] sm:$0xff]  ;;  %v20930_v49 = vld [vmem:[#allocation103_spill] sm:$0xff]  ;;  %v14537_v54 = vmul.f32 %v20936_v56, %v20878_v5 }
 0x2ef   :  { %v14513_v48 = vmul.f32 %v20924_v3, %v20878_v5  ;;  %v14521_v22 = vmul.f32 %v20928_v46, %v20878_v5  ;;  %v14525_v11 = vmul.f32 %v20930_v49, %v20876_v43  ;;  %v20932_v21 = vld [vmem:[#allocation104_spill] sm:$0xff]  ;;  %v20934_v40 = vld [vmem:[#allocation105_spill] sm:$0xff]  ;;  %v6557_v49 = vld [vmem:[%s18683_s0 + $0x9c8] sm:$0xfe] }
 0x2f0   :  { %20923 = vst [vmem:[#allocation132_spill] sm:$0xff] %v14509_v17  ;;  %20927 = vst [vmem:[#allocation138_spill] sm:$0xff] %v14517_v55  ;;  %v14529_v16 = vmul.f32 %v20932_v21, %v20878_v5  ;;  %v14533_v3 = vmul.f32 %v20934_v40, %v20876_v43  ;;  %v6556_v46 = vld [vmem:[%s18683_s0 + $0x9c0] sm:$0xfe]  ;;  %v20938_v53 = vld [vmem:[#allocation111_spill] sm:$0xff]  ;;  %v14583_v17 = vmul.f32 %v6557_v49, %v20878_v5 }
 0x2f1   :  { %20925 = vst [vmem:[#allocation133_spill] sm:$0xff] %v14513_v48  ;;  %20929 = vst [vmem:[#allocation139_spill] sm:$0xff] %v14521_v22  ;;  %v14547_v21 = vmul.f32 %v20938_v53, %v20876_v43  ;;  %v6558_v22 = vld [vmem:[%s18683_s0 + $0x9d0] sm:$0x1]  ;;  %v3794_v48 = vrot.slane %v14309_v27, 1  ;;  %v3795_v53 = vrot.slane %v14317_v4, 1  ;;  %v14580_v55 = vmul.f32 %v6556_v46, %v20876_v43 }
 0x2f2   :  { %20931 = vst [vmem:[#allocation134_spill] sm:$0xff] %v14525_v11  ;;  %20933 = vst [vmem:[#allocation135_spill] sm:$0xff] %v14529_v16  ;;  %v20940_v16 = vld [vmem:[#allocation112_spill] sm:$0xff]  ;;  %v3806_v27 = vrot.slane %v14341_v34, 1  ;;  %v3807_v4 = vrot.slane %v14349_v1, 1  ;;  %v3815_v34 = vrot.slane %v14364_v7, 1 }
 0x2f3   :  { %20935 = vst [vmem:[#allocation136_spill] sm:$0xff] %v14533_v3  ;;  %20937 = vst [vmem:[#allocation137_spill] sm:$0xff] %v14537_v54  ;;  %v14551_v40 = vmul.f32 %v20940_v16, %v20878_v5  ;;  %v20942_v3 = vld [vmem:[#allocation117_spill] sm:$0xff]  ;;  %v20944_v54 = vld [vmem:[#allocation118_spill] sm:$0xff]  ;;  %v3798_v16 = vrot.slane %v14321_v33, 1  ;;  %v3810_v33 = vrot.slane %v14353_v51, 1  ;;  %v14596_v1 = vsel %vm1233_vm0, %v3794_v48, %v3795_v53 }
 0x2f4   :  { %20939 = vst [vmem:[#allocation18_spill] sm:$0xff] %v14547_v21  ;;  %v14555_v56 = vmul.f32 %v20942_v3, %v20876_v43  ;;  %v14559_v11 = vmul.f32 %v20944_v54, %v20878_v5  ;;  %v3797_v21 = vrot.slane %v14313_v45, 1  ;;  %v6559_v3 = vld [vmem:[%s18683_s0 + $0x9d8] sm:$0x1]  ;;  %v3801_v54 = vrot.slane %v14333_v28, 1 }
 0x2f5   :  { %20941 = vst [vmem:[#allocation22_spill] sm:$0xff] %v14551_v40  ;;  %v3800_v40 = vrot.slane %v14325_v63, 1  ;;  %v3809_v45 = vrot.slane %v14345_v39, 1  ;;  %v3812_v63 = vrot.slane %v14360_v18, 1  ;;  %v14588_v28 = vmul.f32 %v6558_v22, %v20876_v43 }
 0x2f6   :  { %20943 = vst [vmem:[#allocation92_spill] sm:$0xff] %v14555_v56  ;;  %20945 = vst [vmem:[#allocation93_spill] sm:$0xff] %v14559_v11  ;;  %v3803_v11 = vrot.slane %v14329_v9, 1  ;;  %v3804_v56 = vrot.slane %v14337_v19, 1  ;;  %v3813_v9 = vrot.slane %v14368_v47, 1  ;;  %v14591_v19 = vmul.f32 %v6559_v3, %v20878_v5 }
 0x2f7   :  { %v3816_v39 = vrot.slane %v14372_v23, 1  ;;  %v14599_v51 = vsel %vm1233_vm0, %v3797_v21, %v3798_v16  ;;  %v14602_v18 = vsel %vm1233_vm0, %v3800_v40, %v3801_v54  ;;  %v14608_v43 = vsel %vm1233_vm0, %v3806_v27, %v3807_v4 }
 0x2f8   :  { %v14605_v47 = vsel %vm1233_vm0, %v3803_v11, %v3804_v56  ;;  %v14611_v5 = vsel %vm1233_vm0, %v3809_v45, %v3810_v33  ;;  %v3818_v7 = vrot.slane %v14385_v13, 1  ;;  %v3819_v23 = vrot.slane %v14393_v24, 1 }
 0x2f9   :  { %v14616_v48 = vsel %vm1233_vm0, %v3812_v63, %v3813_v9  ;;  %v3821_v22 = vrot.slane %v14389_v41, 1  ;;  %v3822_v46 = vrot.slane %v14397_v32, 1  ;;  %v3824_v11 = vrot.slane %v14401_v6, 1 }
 0x2fa   :  { %v14622_v49 = vsel %vm1233_vm0, %v3815_v34, %v3816_v39  ;;  %v3825_v21 = vrot.slane %v14409_v62, 1  ;;  %v3827_v40 = vrot.slane %v14405_v8, 1  ;;  %v3828_v13 = vrot.slane %v14413_v38, 1 }
 0x2fb   :  { %v3830_v24 = vrot.slane %v14417_v29, 1  ;;  %v3831_v56 = vrot.slane %v14425_v57, 1  ;;  %v3833_v53 = vrot.slane %v14421_v35, 1  ;;  %v3834_v41 = vrot.slane %v14429_v50, 1 }
 0x2fc   :  { %v3836_v32 = vrot.slane %v14432_v31, 1  ;;  %v3837_v6 = vrot.slane %v14438_v10, 1  ;;  %v3839_v16 = vrot.slane %v14435_v42, 1  ;;  %v3840_v62 = vrot.slane %v14441_v61, 1 }
 0x2fd   :  { %v3842_v8 = vrot.slane %v14445_v12, 1  ;;  %v3843_v38 = vrot.slane %v14453_v58, 1  ;;  %v3845_v29 = vrot.slane %v14449_v20, 1  ;;  %v3846_v57 = vrot.slane %v14457_v14, 1 }
 0x2fe   :  { %v3820_v35 = vsel %vm1233_vm0, %v3818_v7, %v3819_v23  ;;  %v3823_v50 = vsel %vm1233_vm0, %v3821_v22, %v3822_v46  ;;  %v3848_v31 = vrot.slane %v14461_v25, 1  ;;  %v3849_v10 = vrot.slane %v14469_v15, 1  ;;  %v20946_v7 = vld [vmem:[#allocation132_spill] sm:$0xff]  ;;  %v20947_v23 = vld [vmem:[#allocation138_spill] sm:$0xff]  ;;  %v20948_v22 = vld [vmem:[#allocation133_spill] sm:$0xff] }
 0x2ff   :  { %v3826_v42 = vsel %vm1233_vm0, %v3824_v11, %v3825_v21  ;;  %v3829_v61 = vsel %vm1233_vm0, %v3827_v40, %v3828_v13  ;;  %v3851_v12 = vrot.slane %v14465_v44, 1  ;;  %v3852_v58 = vrot.slane %v14473_v36, 1  ;;  %v20949_v11 = vld [vmem:[#allocation139_spill] sm:$0xff]  ;;  %v20950_v21 = vld [vmem:[#allocation134_spill] sm:$0xff]  ;;  %v20951_v40 = vld [vmem:[#allocation136_spill] sm:$0xff] }
 0x300   :  { %v3832_v20 = vsel %vm1233_vm0, %v3830_v24, %v3831_v56  ;;  %v3835_v14 = vsel %vm1233_vm0, %v3833_v53, %v3834_v41  ;;  %v3838_v3 = vsel %vm1233_vm0, %v3836_v32, %v3837_v6  ;;  %v3841_v54 = vsel %vm1233_vm0, %v3839_v16, %v3840_v62  ;;  %v20952_v13 = vld [vmem:[#allocation135_spill] sm:$0xff]  ;;  %v20953_v56 = vld [vmem:[#allocation137_spill] sm:$0xff]  ;;  %v20954_v53 = vld [vmem:[#allocation18_spill] sm:$0xff] }
 0x301   :  { %v3844_v25 = vsel %vm1233_vm0, %v3842_v8, %v3843_v38  ;;  %v3847_v15 = vsel %vm1233_vm0, %v3845_v29, %v3846_v57  ;;  %v3854_v27 = vrot.slane %v14477_v60, 1  ;;  %v3855_v4 = vrot.slane %v14485_v0, 1  ;;  %v20955_v41 = vld [vmem:[#allocation92_spill] sm:$0xff]  ;;  %v20956_v32 = vld [vmem:[#allocation22_spill] sm:$0xff]  ;;  %v20957_v16 = vld [vmem:[#allocation93_spill] sm:$0xff] }
 0x302   :  { %v3850_v44 = vsel %vm1233_vm0, %v3848_v31, %v3849_v10  ;;  %v3857_v36 = vrot.slane %v14481_v30, 1  ;;  %v3858_v45 = vrot.slane %v14489_v26, 1  ;;  %v3860_v33 = vrot.slane %v14493_v59, 1 }
 0x303   :  { %v3853_v63 = vsel %vm1233_vm0, %v3851_v12, %v3852_v58  ;;  %v3861_v9 = vrot.slane %v14501_v37, 1  ;;  %v3863_v34 = vrot.slane %v14497_v2, 1  ;;  %v3864_v39 = vrot.slane %v14505_v52, 1 }
 0x304   :  { %v3866_v60 = vrot.slane %v20946_v7, 1  ;;  %v3867_v0 = vrot.slane %v20947_v23, 1  ;;  %v3869_v46 = vrot.slane %v20948_v22, 1  ;;  %v3870_v30 = vrot.slane %v20949_v11, 1  ;;  %v20970_v11 = vld [vmem:[#allocation31_spill] sm:$0xff] }
 0x305   :  { %v3872_v26 = vrot.slane %v20950_v21, 1  ;;  %v3873_v59 = vrot.slane %v20951_v40, 1  ;;  %v3875_v24 = vrot.slane %v20952_v13, 1  ;;  %v3876_v37 = vrot.slane %v20953_v56, 1  ;;  %v20976_v40 = vld [vmem:[#allocation63_spill] sm:$0xff]  ;;  %v20982_v56 = vld [vmem:[#allocation124_spill] sm:$0xff] }
 0x306   :  { %v3878_v2 = vrot.slane %v20954_v53, 1  ;;  %v3879_v52 = vrot.slane %v20955_v41, 1  ;;  %v3881_v6 = vrot.slane %v20956_v32, 1  ;;  %v3882_v62 = vrot.slane %v20957_v16, 1 }
 0x307   :  { %v3856_v8 = vsel %vm1233_vm0, %v3854_v27, %v3855_v4  ;;  %v3859_v38 = vsel %vm1233_vm0, %v3857_v36, %v3858_v45  ;;  %v3884_v29 = vrot.slane %v14580_v55, 1  ;;  %v3885_v57 = vrot.slane %v14588_v28, 1  ;;  %v20958_v36 = vld [vmem:[#allocation82_spill] sm:$0xff] }
 0x308   :  { %v3862_v31 = vsel %vm1233_vm0, %v3860_v33, %v3861_v9  ;;  %v3865_v10 = vsel %vm1233_vm0, %v3863_v34, %v3864_v39  ;;  %v3887_v12 = vrot.slane %v14583_v17, 1  ;;  %v3888_v58 = vrot.slane %v14591_v19, 1  ;;  %v20960_v33 = vld [vmem:[#allocation51_spill] sm:$0xff]  ;;  %v20964_v39 = vld [vmem:[#allocation16_spill] sm:$0xff] }
 0x309   :  { %v3868_v7 = vsel %vm1233_vm0, %v3866_v60, %v3867_v0  ;;  %v3871_v23 = vsel %vm1233_vm0, %v3869_v46, %v3870_v30  ;;  %v3874_v27 = vsel %vm1233_vm0, %v3872_v26, %v3873_v59  ;;  %v3877_v4 = vsel %vm1233_vm0, %v3875_v24, %v3876_v37  ;;  %v20962_v9 = vld [vmem:[#allocation15_spill] sm:$0xff]  ;;  %v20966_v0 = vld [vmem:[#allocation17_spill] sm:$0xff]  ;;  %v20980_v24 = vld [vmem:[#allocation122_spill] sm:$0xff] }
 0x30a   :  { %v3880_v55 = vsel %vm1233_vm0, %v3878_v2, %v3879_v52  ;;  %v3883_v28 = vsel %vm1233_vm0, %v3881_v6, %v3882_v62  ;;  %v14691_v45 = vadd.f32 %v14596_v1, %v20958_v36  ;;  %v14695_v17 = vadd.f32 %v14599_v51, %v20960_v33  ;;  %v20968_v46 = vld [vmem:[#allocation41_spill] sm:$0xff]  ;;  %v20978_v59 = vld [vmem:[#allocation123_spill] sm:$0xff] }
 0x30b   :  { %v3886_v19 = vsel %vm1233_vm0, %v3884_v29, %v3885_v57  ;;  %v14700_v34 = vadd.f32 %v14602_v18, %v20962_v9  ;;  %v14704_v60 = vadd.f32 %v14605_v47, %v20964_v39  ;;  %v14708_v22 = vadd.f32 %v14608_v43, %v20966_v0  ;;  %v20972_v18 = vld [vmem:[#allocation62_spill] sm:$0xff]  ;;  %v20974_v47 = vld [vmem:[#allocation60_spill] sm:$0xff] }
 0x30c   :  { %20959 = vst [vmem:[#allocation129_spill] sm:$0xff] %v14691_v45  ;;  %20961 = vst [vmem:[#allocation106_spill] sm:$0xff] %v14695_v17  ;;  %v3889_v1 = vsel %vm1233_vm0, %v3887_v12, %v3888_v58  ;;  %v14713_v51 = vadd.f32 %v14611_v5, %v20968_v46  ;;  %v14717_v30 = vadd.f32 %v14616_v48, %v20970_v11  ;;  %v20984_v48 = vld [vmem:[#allocation34_spill] sm:$0xff] }
 0x30d   :  { %20963 = vst [vmem:[#allocation131_spill] sm:$0xff] %v14700_v34  ;;  %20965 = vst [vmem:[#allocation107_spill] sm:$0xff] %v14704_v60  ;;  %v14721_v21 = vadd.f32 %v14622_v49, %v20972_v18  ;;  %v14724_v26 = vadd.f32 %v3820_v35, %v20974_v47  ;;  %v14727_v43 = vadd.f32 %v3823_v50, %v20976_v40  ;;  %v20986_v49 = vld [vmem:[#allocation38_spill] sm:$0xff]  ;;  %v20988_v35 = vld [vmem:[#allocation53_spill] sm:$0xff] }
 0x30e   :  { %20967 = vst [vmem:[#allocation108_spill] sm:$0xff] %v14708_v22  ;;  %20969 = vst [vmem:[#allocation113_spill] sm:$0xff] %v14713_v51  ;;  %v14730_v13 = vadd.f32 %v3826_v42, %v20978_v59  ;;  %v14733_v5 = vadd.f32 %v3829_v61, %v20980_v24  ;;  %v14736_v37 = vadd.f32 %v3832_v20, %v20982_v56  ;;  %v20990_v50 = vld [vmem:[#allocation19_spill] sm:$0xff]  ;;  %v20992_v42 = vld [vmem:[#allocation61_spill] sm:$0xff] }
 0x30f   :  { %20971 = vst [vmem:[#allocation109_spill] sm:$0xff] %v14717_v30  ;;  %20973 = vst [vmem:[#allocation114_spill] sm:$0xff] %v14721_v21  ;;  %v14739_v53 = vadd.f32 %v3835_v14, %v20984_v48  ;;  %v14742_v2 = vadd.f32 %v3838_v3, %v20986_v49  ;;  %v14745_v41 = vadd.f32 %v3841_v54, %v20988_v35  ;;  %v20994_v61 = vld [vmem:[#allocation78_spill] sm:$0xff]  ;;  %v20996_v20 = vld [vmem:[#allocation13_spill] sm:$0xff] }
 0x310   :  { %20975 = vst [vmem:[#allocation115_spill] sm:$0xff] %v14724_v26  ;;  %20977 = vst [vmem:[#allocation116_spill] sm:$0xff] %v14727_v43  ;;  %v14748_v52 = vadd.f32 %v3844_v25, %v20990_v50  ;;  %v14751_v32 = vadd.f32 %v3847_v15, %v20992_v42  ;;  %v14754_v6 = vadd.f32 %v3850_v44, %v20994_v61  ;;  %v20998_v14 = vld [vmem:[#allocation11_spill] sm:$0xff]  ;;  %v21002_v54 = vld [vmem:[#allocation57_spill] sm:$0xff] }
 0x311   :  { %20979 = vst [vmem:[#allocation42_spill] sm:$0xff] %v14730_v13  ;;  %20981 = vst [vmem:[#allocation48_spill] sm:$0xff] %v14733_v5  ;;  %v14757_v16 = vadd.f32 %v3853_v63, %v20996_v20  ;;  %v14760_v62 = vadd.f32 %v3856_v8, %v20998_v14  ;;  %v21000_v3 = vld [vmem:[#allocation35_spill] sm:$0xff]  ;;  %v14766_v57 = vadd.f32 %v3862_v31, %v21002_v54  ;;  %v21006_v15 = vld [vmem:[#allocation58_spill] sm:$0xff] }
 0x312   :  { %20983 = vst [vmem:[#allocation79_spill] sm:$0xff] %v14736_v37  ;;  %20985 = vst [vmem:[#allocation80_spill] sm:$0xff] %v14739_v53  ;;  %v14763_v29 = vadd.f32 %v3859_v38, %v21000_v3  ;;  %v21004_v25 = vld [vmem:[#allocation59_spill] sm:$0xff]  ;;  %v14772_v58 = vadd.f32 %v3868_v7, %v21006_v15  ;;  %v21008_v44 = vld [vmem:[#allocation10_spill] sm:$0xff] }
 0x313   :  { %20987 = vst [vmem:[#allocation66_spill] sm:$0xff] %v14742_v2  ;;  %20989 = vst [vmem:[#allocation147_spill] sm:$0xff] %v14745_v41  ;;  %v14769_v12 = vadd.f32 %v3865_v10, %v21004_v25  ;;  %v14775_v36 = vadd.f32 %v3871_v23, %v21008_v44  ;;  %v21010_v63 = vld [vmem:[#allocation119_spill] sm:$0xff]  ;;  %v21012_v8 = vld [vmem:[#allocation120_spill] sm:$0xff] }
 0x314   :  { %20991 = vst [vmem:[#allocation73_spill] sm:$0xff] %v14748_v52  ;;  %20993 = vst [vmem:[#allocation148_spill] sm:$0xff] %v14751_v32  ;;  %v14778_v33 = vadd.f32 %v3874_v27, %v21010_v63  ;;  %v14781_v9 = vadd.f32 %v3877_v4, %v21012_v8  ;;  %v21014_v38 = vld [vmem:[#allocation121_spill] sm:$0xff]  ;;  %v21018_v10 = vld [vmem:[#allocation126_spill] sm:$0xff] }
 0x315   :  { %20995 = vst [vmem:[#allocation153_spill] sm:$0xff] %v14754_v6  ;;  %20997 = vst [vmem:[#allocation74_spill] sm:$0xff] %v14757_v16  ;;  %v14784_v39 = vadd.f32 %v3880_v55, %v21014_v38  ;;  %v21016_v31 = vld [vmem:[#allocation125_spill] sm:$0xff]  ;;  %v14790_v46 = vadd.f32 %v3886_v19, %v21018_v10  ;;  %v21020_v7 = vld [vmem:[#allocation127_spill] sm:$0xff] }
 0x316   :  { %20999 = vst [vmem:[#allocation140_spill] sm:$0xff] %v14760_v62  ;;  %21001 = vst [vmem:[#allocation141_spill] sm:$0xff] %v14763_v29  ;;  %v14787_v0 = vadd.f32 %v3883_v28, %v21016_v31  ;;  %v14793_v11 = vadd.f32 %v3889_v1, %v21020_v7  ;;  %v21022_v23 = vld [vmem:[#allocation24_spill] sm:$0xff]  ;;  %v21023_v18 = vld [vmem:[#allocation85_spill] sm:$0xff] }
 0x317   :  { %21003 = vst [vmem:[#allocation49_spill] sm:$0xff] %v14766_v57  ;;  %21005 = vst [vmem:[#allocation94_spill] sm:$0xff] %v14769_v12  ;;  %v14797_v47 = vmul.f32 %v21023_v18, %v21022_v23  ;;  %v21024_v27 = vld [vmem:[#allocation23_spill] sm:$0xff]  ;;  %v21025_v40 = vld [vmem:[#allocation86_spill] sm:$0xff] }
 0x318   :  { %21007 = vst [vmem:[#allocation95_spill] sm:$0xff] %v14772_v58  ;;  %21009 = vst [vmem:[#allocation97_spill] sm:$0xff] %v14775_v36  ;;  %v14801_v4 = vmul.f32 %v21025_v40, %v21024_v27  ;;  %v21026_v55 = vld [vmem:[#allocation143_spill] sm:$0xff]  ;;  %v21027_v28 = vld [vmem:[#allocation144_spill] sm:$0xff] }
 0x319   :  { %21011 = vst [vmem:[#allocation100_spill] sm:$0xff] %v14778_v33  ;;  %21013 = vst [vmem:[#allocation102_spill] sm:$0xff] %v14781_v9  ;;  %v14805_v59 = vmul.f32 %v21026_v55, %v21022_v23  ;;  %v14809_v24 = vmul.f32 %v21027_v28, %v21024_v27  ;;  %v21028_v19 = vld [vmem:[#allocation145_spill] sm:$0xff]  ;;  %v21029_v56 = vld [vmem:[#allocation146_spill] sm:$0xff] }
 0x31a   :  { %21015 = vst [vmem:[#allocation12_spill] sm:$0xff] %v14784_v39  ;;  %21017 = vst [vmem:[#allocation28_spill] sm:$0xff] %v14787_v0  ;;  %v14813_v1 = vmul.f32 %v21028_v19, %v21022_v23  ;;  %v14817_v48 = vmul.f32 %v21029_v56, %v21024_v27  ;;  %v21030_v49 = vld [vmem:[#allocation149_spill] sm:$0xff]  ;;  %v21031_v50 = vld [vmem:[#allocation150_spill] sm:$0xff] }
 0x31b   :  { %21019 = vst [vmem:[#allocation20_spill] sm:$0xff] %v14790_v46  ;;  %21021 = vst [vmem:[#allocation21_spill] sm:$0xff] %v14793_v11  ;;  %v14821_v35 = vmul.f32 %v21030_v49, %v21022_v23  ;;  %v14825_v42 = vmul.f32 %v21031_v50, %v21024_v27  ;;  %v21032_v61 = vld [vmem:[#allocation152_spill] sm:$0xff]  ;;  %v21033_v14 = vld [vmem:[#allocation142_spill] sm:$0xff] }
 0x31c   :  { %v14829_v20 = vmul.f32 %v21032_v61, %v21022_v23  ;;  %v14833_v3 = vmul.f32 %v21033_v14, %v21024_v27  ;;  %v21034_v54 = vld [vmem:[#allocation64_spill] sm:$0xff]  ;;  %v21035_v15 = vld [vmem:[#allocation65_spill] sm:$0xff]  ;;  %v21036_v8 = vld [vmem:[#allocation99_spill] sm:$0xff] }
 0x31d   :  { %v14837_v25 = vmul.f32 %v21034_v54, %v21022_v23  ;;  %v14841_v44 = vmul.f32 %v21035_v15, %v21024_v27  ;;  %v6444_v63 = vld [vmem:[%s18683_s0 + $0x260] sm:$0xfe]  ;;  %v14848_v38 = vmul.f32 %v21036_v8, %v21022_v23  ;;  %v21039_v40 = vld [vmem:[#allocation32_spill] sm:$0xff]  ;;  %v6445_v28 = vld [vmem:[%s18683_s0 + $0x268] sm:$0xfe] }
 0x31e   :  { %v21037_v31 = vld [vmem:[#allocation101_spill] sm:$0xff]  ;;  %v14860_v55 = vmul.f32 %v21039_v40, %v21024_v27  ;;  %v6446_v19 = vld [vmem:[%s18683_s0 + $0x270] sm:$0x1]  ;;  %v6447_v56 = vld [vmem:[%s18683_s0 + $0x278] sm:$0x1]  ;;  %v14924_v58 = vmul.f32 %v6444_v63, %v21022_v23 }
 0x31f   :  { %v14852_v10 = vmul.f32 %v21037_v31, %v21024_v27  ;;  %v21038_v7 = vld [vmem:[#allocation29_spill] sm:$0xff]  ;;  %v21040_v49 = vld [vmem:[#allocation30_spill] sm:$0xff]  ;;  %v21041_v61 = vld [vmem:[#allocation40_spill] sm:$0xff] }
 0x320   :  { %v14856_v18 = vmul.f32 %v21038_v7, %v21022_v23  ;;  %v14873_v50 = vmul.f32 %v21040_v49, %v21022_v23  ;;  %v14877_v14 = vmul.f32 %v21041_v61, %v21024_v27  ;;  %v21042_v54 = vld [vmem:[#allocation26_spill] sm:$0xff]  ;;  %v21043_v8 = vld [vmem:[#allocation27_spill] sm:$0xff]  ;;  %v21048_v9 = vld [vmem:[#allocation96_spill] sm:$0xff] }
 0x321   :  { %v14881_v15 = vmul.f32 %v21042_v54, %v21022_v23  ;;  %v14885_v31 = vmul.f32 %v21043_v8, %v21024_v27  ;;  %v21044_v7 = vld [vmem:[#allocation154_spill] sm:$0xff]  ;;  %v21045_v11 = vld [vmem:[#allocation155_spill] sm:$0xff]  ;;  %v6657_v54 = vld [vmem:[%s18683_s0 + $0x238] sm:$0x1]  ;;  %v14917_v33 = vmul.f32 %v21048_v9, %v21022_v23 }
 0x322   :  { %v14889_v40 = vmul.f32 %v21044_v7, %v21022_v23  ;;  %v14893_v49 = vmul.f32 %v21045_v11, %v21024_v27  ;;  %v6656_v61 = vld [vmem:[%s18683_s0 + $0x230] sm:$0x1]  ;;  %v14905_v8 = vmul.f32 %v6657_v54, %v21024_v27  ;;  %v21047_v11 = vld [vmem:[#allocation76_spill] sm:$0xff]  ;;  %v14927_v54 = vmul.f32 %v6445_v28, %v21024_v27  ;;  %v6658_v9 = vld [vmem:[%s18683_s0 + $0x680] sm:$0xfe] }
 0x323   :  { %v14899_v46 = vmul.f32 %v6656_v61, %v21022_v23  ;;  %v21046_v7 = vld [vmem:[#allocation151_spill] sm:$0xff]  ;;  %v14913_v39 = vmul.f32 %v21047_v11, %v21024_v27  ;;  %v21049_v61 = vld [vmem:[#allocation98_spill] sm:$0xff]  ;;  %v14933_v11 = vmul.f32 %v6447_v56, %v21024_v27  ;;  %v14939_v12 = vmul.f32 %v6658_v9, %v21022_v23  ;;  %v6662_v57 = vld [vmem:[%s18683_s0 + $0x6a0] sm:$0xfe] }
 0x324   :  { %v14909_v0 = vmul.f32 %v21046_v7, %v21022_v23  ;;  %v14921_v36 = vmul.f32 %v21049_v61, %v21024_v27  ;;  %v14930_v7 = vmul.f32 %v6446_v19, %v21022_v23  ;;  %v6659_v63 = vld [vmem:[%s18683_s0 + $0x688] sm:$0xfe]  ;;  %v6660_v19 = vld [vmem:[%s18683_s0 + $0x690] sm:$0x1]  ;;  %v6661_v61 = vld [vmem:[%s18683_s0 + $0x698] sm:$0x1] }
 0x325   :  { %v14945_v28 = vmul.f32 %v6659_v63, %v21024_v27  ;;  %v14951_v56 = vmul.f32 %v6660_v19, %v21022_v23  ;;  %v14957_v9 = vmul.f32 %v6661_v61, %v21024_v27  ;;  %v14963_v63 = vmul.f32 %v6662_v57, %v21022_v23  ;;  %v6663_v29 = vld [vmem:[%s18683_s0 + $0x6a8] sm:$0xfe]  ;;  %v6664_v62 = vld [vmem:[%s18683_s0 + $0x6b0] sm:$0x1]  ;;  %v6665_v16 = vld [vmem:[%s18683_s0 + $0x6b8] sm:$0x1] }
 0x326   :  { %v14969_v19 = vmul.f32 %v6663_v29, %v21024_v27  ;;  %v14975_v61 = vmul.f32 %v6664_v62, %v21022_v23  ;;  %v14981_v57 = vmul.f32 %v6665_v16, %v21024_v27  ;;  %v6666_v6 = vld [vmem:[%s18683_s0 + $0x6c0] sm:$0xfe]  ;;  %v6667_v32 = vld [vmem:[%s18683_s0 + $0x6c8] sm:$0xfe]  ;;  %v6668_v52 = vld [vmem:[%s18683_s0 + $0x6d0] sm:$0x1] }
 0x327   :  { %v14987_v29 = vmul.f32 %v6666_v6, %v21022_v23  ;;  %v14993_v62 = vmul.f32 %v6667_v32, %v21024_v27  ;;  %v14999_v16 = vmul.f32 %v6668_v52, %v21022_v23  ;;  %v6669_v41 = vld [vmem:[%s18683_s0 + $0x6d8] sm:$0x1]  ;;  %v6670_v2 = vld [vmem:[%s18683_s0 + $0x6e0] sm:$0xfe]  ;;  %v6671_v53 = vld [vmem:[%s18683_s0 + $0x6e8] sm:$0xfe] }
 0x328   :  { %v15005_v6 = vmul.f32 %v6669_v41, %v21024_v27  ;;  %v15011_v32 = vmul.f32 %v6670_v2, %v21022_v23  ;;  %v15017_v52 = vmul.f32 %v6671_v53, %v21024_v27  ;;  %v6672_v37 = vld [vmem:[%s18683_s0 + $0x6f0] sm:$0x1]  ;;  %v6673_v5 = vld [vmem:[%s18683_s0 + $0x6f8] sm:$0x1]  ;;  %v6674_v13 = vld [vmem:[%s18683_s0 + $0x700] sm:$0xfe] }
 0x329   :  { %v15023_v41 = vmul.f32 %v6672_v37, %v21022_v23  ;;  %v15029_v2 = vmul.f32 %v6673_v5, %v21024_v27  ;;  %v15035_v53 = vmul.f32 %v6674_v13, %v21022_v23  ;;  %v6675_v43 = vld [vmem:[%s18683_s0 + $0x708] sm:$0xfe]  ;;  %v6676_v26 = vld [vmem:[%s18683_s0 + $0x710] sm:$0x1]  ;;  %v6677_v21 = vld [vmem:[%s18683_s0 + $0x718] sm:$0x1] }
 0x32a   :  { %v15041_v37 = vmul.f32 %v6675_v43, %v21024_v27  ;;  %v15047_v5 = vmul.f32 %v6676_v26, %v21022_v23  ;;  %v15053_v13 = vmul.f32 %v6677_v21, %v21024_v27  ;;  %v6678_v30 = vld [vmem:[%s18683_s0 + $0x720] sm:$0xfe]  ;;  %v6679_v51 = vld [vmem:[%s18683_s0 + $0x728] sm:$0xfe]  ;;  %v6680_v22 = vld [vmem:[%s18683_s0 + $0x730] sm:$0x1] }
 0x32b   :  { %21050 = vst [vmem:[#allocation75_spill] sm:$0xff] %v15035_v53  ;;  %v15059_v43 = vmul.f32 %v6678_v30, %v21022_v23  ;;  %v15065_v26 = vmul.f32 %v6679_v51, %v21024_v27  ;;  %v15071_v21 = vmul.f32 %v6680_v22, %v21022_v23  ;;  %v6681_v60 = vld [vmem:[%s18683_s0 + $0x738] sm:$0x1]  ;;  %v6520_v34 = vld [vmem:[%s18683_s0 + $0x760] sm:$0xfe]  ;;  %v21058_v17 = vld [vmem:[#allocation54_spill] sm:$0xff] }
 0x32c   :  { %21051 = vst [vmem:[#allocation8_spill] sm:$0xff] %v15041_v37  ;;  %21052 = vst [vmem:[#allocation33_spill] sm:$0xff] %v15047_v5  ;;  %v15077_v30 = vmul.f32 %v6681_v60, %v21024_v27  ;;  %v6521_v51 = vld [vmem:[%s18683_s0 + $0x768] sm:$0xfe]  ;;  %v15087_v45 = vmul.f32 %v21058_v17, %v21022_v23  ;;  %v21060_v22 = vld [vmem:[#allocation56_spill] sm:$0xff]  ;;  %v4095_v37 = vrot.slane %v14797_v47, 1  ;;  %v15120_v5 = vmul.f32 %v6520_v34, %v21022_v23 }
 0x32d   :  { %21053 = vst [vmem:[#allocation39_spill] sm:$0xff] %v15053_v13  ;;  %21054 = vst [vmem:[#allocation87_spill] sm:$0xff] %v15059_v43  ;;  %v6522_v13 = vld [vmem:[%s18683_s0 + $0x770] sm:$0x1]  ;;  %v4096_v17 = vrot.slane %v14805_v59, 1  ;;  %v4107_v47 = vrot.slane %v14829_v20, 1  ;;  %v15123_v53 = vmul.f32 %v6521_v51, %v21024_v27 }
 0x32e   :  { %21055 = vst [vmem:[#allocation9_spill] sm:$0xff] %v15065_v26  ;;  %21056 = vst [vmem:[#allocation88_spill] sm:$0xff] %v15071_v21  ;;  %v15091_v26 = vmul.f32 %v21060_v22, %v21024_v27  ;;  %v21062_v21 = vld [vmem:[#allocation77_spill] sm:$0xff]  ;;  %v4099_v22 = vrot.slane %v14809_v24, 1  ;;  %v4108_v59 = vrot.slane %v14837_v25, 1  ;;  %v4111_v24 = vrot.slane %v14841_v44, 1 }
 0x32f   :  { %21057 = vst [vmem:[#allocation36_spill] sm:$0xff] %v15077_v30  ;;  %21059 = vst [vmem:[#allocation37_spill] sm:$0xff] %v15087_v45  ;;  %v15095_v60 = vmul.f32 %v21062_v21, %v21022_v23  ;;  %v21064_v30 = vld [vmem:[#allocation14_spill] sm:$0xff]  ;;  %v4098_v45 = vrot.slane %v14801_v4, 1  ;;  %v6523_v21 = vld [vmem:[%s18683_s0 + $0x778] sm:$0x1]  ;;  %v15136_v34 = vsel %vm1233_vm0, %v4095_v37, %v4096_v17 }
 0x330   :  { %21061 = vst [vmem:[#allocation43_spill] sm:$0xff] %v15091_v26  ;;  %v15099_v43 = vmul.f32 %v21064_v30, %v21024_v27  ;;  %v4101_v26 = vrot.slane %v14813_v1, 1  ;;  %v4102_v30 = vrot.slane %v14821_v35, 1  ;;  %v4110_v4 = vrot.slane %v14833_v3, 1 }
 0x331   :  { %21063 = vst [vmem:[#allocation44_spill] sm:$0xff] %v15095_v60  ;;  %v4105_v60 = vrot.slane %v14825_v42, 1  ;;  %v4113_v1 = vrot.slane %v14848_v38, 1  ;;  %v15128_v35 = vmul.f32 %v6522_v13, %v21022_v23  ;;  %v15131_v42 = vmul.f32 %v6523_v21, %v21024_v27 }
 0x332   :  { %21065 = vst [vmem:[#allocation46_spill] sm:$0xff] %v15099_v43  ;;  %v4104_v43 = vrot.slane %v14817_v48, 1  ;;  %v4114_v48 = vrot.slane %v14856_v18, 1  ;;  %v4116_v20 = vrot.slane %v14852_v10, 1  ;;  %v4117_v3 = vrot.slane %v14860_v55, 1 }
 0x333   :  { %v15139_v25 = vsel %vm1233_vm0, %v4098_v45, %v4099_v22  ;;  %v15142_v44 = vsel %vm1233_vm0, %v4101_v26, %v4102_v30  ;;  %v15148_v23 = vsel %vm1233_vm0, %v4107_v47, %v4108_v59  ;;  %v15151_v27 = vsel %vm1233_vm0, %v4110_v4, %v4111_v24 }
 0x334   :  { %v15145_v38 = vsel %vm1233_vm0, %v4104_v43, %v4105_v60  ;;  %v4119_v10 = vrot.slane %v14873_v50, 1  ;;  %v4120_v18 = vrot.slane %v14881_v15, 1  ;;  %v15156_v55 = vsel %vm1233_vm0, %v4113_v1, %v4114_v48 }
 0x335   :  { %v4122_v45 = vrot.slane %v14877_v14, 1  ;;  %v4123_v37 = vrot.slane %v14885_v31, 1  ;;  %v4125_v13 = vrot.slane %v14889_v40, 1  ;;  %v15162_v43 = vsel %vm1233_vm0, %v4116_v20, %v4117_v3 }
 0x336   :  { %v4126_v26 = vrot.slane %v14899_v46, 1  ;;  %v4128_v51 = vrot.slane %v14893_v49, 1  ;;  %v4129_v50 = vrot.slane %v14905_v8, 1  ;;  %v4131_v15 = vrot.slane %v14909_v0, 1 }
 0x337   :  { %v4132_v60 = vrot.slane %v14917_v33, 1  ;;  %v4134_v17 = vrot.slane %v14913_v39, 1  ;;  %v4135_v14 = vrot.slane %v14921_v36, 1  ;;  %v4137_v31 = vrot.slane %v14924_v58, 1 }
 0x338   :  { %v4138_v40 = vrot.slane %v14930_v7, 1  ;;  %v4140_v22 = vrot.slane %v14927_v54, 1  ;;  %v4141_v46 = vrot.slane %v14933_v11, 1  ;;  %v4143_v49 = vrot.slane %v14939_v12, 1 }
 0x339   :  { %v4144_v8 = vrot.slane %v14951_v56, 1  ;;  %v4146_v0 = vrot.slane %v14945_v28, 1  ;;  %v4147_v33 = vrot.slane %v14957_v9, 1  ;;  %v4121_v39 = vsel %vm1233_vm0, %v4119_v10, %v4120_v18  ;;  %v21066_v10 = vld [vmem:[#allocation75_spill] sm:$0xff]  ;;  %v21067_v18 = vld [vmem:[#allocation33_spill] sm:$0xff] }
 0x33a   :  { %v4124_v36 = vsel %vm1233_vm0, %v4122_v45, %v4123_v37  ;;  %v4149_v58 = vrot.slane %v14963_v63, 1  ;;  %v4150_v7 = vrot.slane %v14975_v61, 1  ;;  %v4127_v54 = vsel %vm1233_vm0, %v4125_v13, %v4126_v26  ;;  %v21068_v45 = vld [vmem:[#allocation8_spill] sm:$0xff]  ;;  %v21069_v13 = vld [vmem:[#allocation39_spill] sm:$0xff] }
 0x33b   :  { %v4130_v11 = vsel %vm1233_vm0, %v4128_v51, %v4129_v50  ;;  %v4152_v12 = vrot.slane %v14969_v19, 1  ;;  %v4153_v56 = vrot.slane %v14981_v57, 1  ;;  %v4133_v28 = vsel %vm1233_vm0, %v4131_v15, %v4132_v60  ;;  %v21070_v26 = vld [vmem:[#allocation87_spill] sm:$0xff]  ;;  %v21071_v51 = vld [vmem:[#allocation88_spill] sm:$0xff]  ;;  %v21072_v50 = vld [vmem:[#allocation9_spill] sm:$0xff] }
 0x33c   :  { %v4136_v9 = vsel %vm1233_vm0, %v4134_v17, %v4135_v14  ;;  %v4139_v21 = vsel %vm1233_vm0, %v4137_v31, %v4138_v40  ;;  %v4142_v30 = vsel %vm1233_vm0, %v4140_v22, %v4141_v46  ;;  %v4145_v63 = vsel %vm1233_vm0, %v4143_v49, %v4144_v8  ;;  %v21073_v60 = vld [vmem:[#allocation36_spill] sm:$0xff]  ;;  %v21074_v17 = vld [vmem:[#allocation37_spill] sm:$0xff]  ;;  %v21076_v31 = vld [vmem:[#allocation43_spill] sm:$0xff] }
 0x33d   :  { %v4148_v61 = vsel %vm1233_vm0, %v4146_v0, %v4147_v33  ;;  %v4155_v47 = vrot.slane %v14987_v29, 1  ;;  %v4156_v59 = vrot.slane %v14999_v16, 1  ;;  %v4151_v19 = vsel %vm1233_vm0, %v4149_v58, %v4150_v7  ;;  %v21075_v14 = vld [vmem:[#allocation44_spill] sm:$0xff]  ;;  %v21077_v22 = vld [vmem:[#allocation46_spill] sm:$0xff] }
 0x33e   :  { %v4158_v57 = vrot.slane %v14993_v62, 1  ;;  %v4159_v4 = vrot.slane %v15005_v6, 1  ;;  %v4161_v24 = vrot.slane %v15011_v32, 1  ;;  %v4154_v1 = vsel %vm1233_vm0, %v4152_v12, %v4153_v56 }
 0x33f   :  { %v4162_v48 = vrot.slane %v15023_v41, 1  ;;  %v4164_v20 = vrot.slane %v15017_v52, 1  ;;  %v4165_v3 = vrot.slane %v15029_v2, 1  ;;  %v4167_v29 = vrot.slane %v21066_v10, 1 }
 0x340   :  { %v4168_v16 = vrot.slane %v21067_v18, 1  ;;  %v4170_v37 = vrot.slane %v21068_v45, 1  ;;  %v4171_v62 = vrot.slane %v21069_v13, 1  ;;  %v4173_v6 = vrot.slane %v21070_v26, 1  ;;  %v21090_v13 = vld [vmem:[#allocation109_spill] sm:$0xff] }
 0x341   :  { %v4174_v32 = vrot.slane %v21071_v51, 1  ;;  %v4176_v15 = vrot.slane %v21072_v50, 1  ;;  %v4177_v41 = vrot.slane %v21073_v60, 1  ;;  %v4179_v52 = vrot.slane %v21074_v17, 1  ;;  %v21096_v51 = vld [vmem:[#allocation116_spill] sm:$0xff]  ;;  %v21102_v60 = vld [vmem:[#allocation79_spill] sm:$0xff] }
 0x342   :  { %v4180_v2 = vrot.slane %v21075_v14, 1  ;;  %v4182_v40 = vrot.slane %v21076_v31, 1  ;;  %v4183_v46 = vrot.slane %v21077_v22, 1  ;;  %v4157_v49 = vsel %vm1233_vm0, %v4155_v47, %v4156_v59 }
 0x343   :  { %v4160_v8 = vsel %vm1233_vm0, %v4158_v57, %v4159_v4  ;;  %v4185_v0 = vrot.slane %v15120_v5, 1  ;;  %v4186_v33 = vrot.slane %v15128_v35, 1  ;;  %v4163_v58 = vsel %vm1233_vm0, %v4161_v24, %v4162_v48  ;;  %v21078_v57 = vld [vmem:[#allocation129_spill] sm:$0xff]  ;;  %v21080_v24 = vld [vmem:[#allocation106_spill] sm:$0xff]  ;;  %v21082_v48 = vld [vmem:[#allocation131_spill] sm:$0xff] }
 0x344   :  { %v4166_v7 = vsel %vm1233_vm0, %v4164_v20, %v4165_v3  ;;  %v4188_v12 = vrot.slane %v15123_v53, 1  ;;  %v4189_v56 = vrot.slane %v15131_v42, 1  ;;  %v4169_v10 = vsel %vm1233_vm0, %v4167_v29, %v4168_v16  ;;  %v21084_v3 = vld [vmem:[#allocation107_spill] sm:$0xff]  ;;  %v21086_v16 = vld [vmem:[#allocation108_spill] sm:$0xff] }
 0x345   :  { %v4172_v18 = vsel %vm1233_vm0, %v4170_v37, %v4171_v62  ;;  %v4175_v47 = vsel %vm1233_vm0, %v4173_v6, %v4174_v32  ;;  %v4178_v59 = vsel %vm1233_vm0, %v4176_v15, %v4177_v41  ;;  %v4181_v5 = vsel %vm1233_vm0, %v4179_v52, %v4180_v2  ;;  %v21088_v37 = vld [vmem:[#allocation113_spill] sm:$0xff]  ;;  %v21098_v32 = vld [vmem:[#allocation42_spill] sm:$0xff]  ;;  %v21100_v15 = vld [vmem:[#allocation48_spill] sm:$0xff] }
 0x346   :  { %v4184_v35 = vsel %vm1233_vm0, %v4182_v40, %v4183_v46  ;;  %v15231_v4 = vadd.f32 %v15136_v34, %v21078_v57  ;;  %v15235_v53 = vadd.f32 %v15139_v25, %v21080_v24  ;;  %v4187_v42 = vsel %vm1233_vm0, %v4185_v0, %v4186_v33  ;;  %v21114_v40 = vld [vmem:[#allocation153_spill] sm:$0xff]  ;;  %v6566_v24 = vld [vmem:[%s18684_s1 + $0x14] ss:$8 sm:$0x3] }
 0x347   :  { %v15240_v20 = vadd.f32 %v15142_v44, %v21082_v48  ;;  %v15244_v29 = vadd.f32 %v15145_v38, %v21084_v3  ;;  %v15248_v45 = vadd.f32 %v15148_v23, %v21086_v16  ;;  %v4190_v34 = vsel %vm1233_vm0, %v4188_v12, %v4189_v56  ;;  %v21092_v44 = vld [vmem:[#allocation114_spill] sm:$0xff]  ;;  %v21094_v38 = vld [vmem:[#allocation115_spill] sm:$0xff]  ;;  %v21120_v0 = vld [vmem:[#allocation141_spill] sm:$0xff] }
 0x348   :  { %21079 = vst [vmem:[#allocation47_spill] sm:$0xff] %v15231_v4  ;;  %21081 = vst [vmem:[#allocation67_spill] sm:$0xff] %v15235_v53  ;;  %v15253_v25 = vadd.f32 %v15151_v27, %v21088_v37  ;;  %v15257_v62 = vadd.f32 %v15156_v55, %v21090_v13  ;;  %v15261_v26 = vadd.f32 %v15162_v43, %v21092_v44  ;;  %v6565_v55 = vld [vmem:[%s18684_s1 + $0x4] ss:$8 sm:$0x3]  ;;  %v21104_v43 = vld [vmem:[#allocation80_spill] sm:$0xff] }
 0x349   :  { %21083 = vst [vmem:[#allocation52_spill] sm:$0xff] %v15240_v20  ;;  %21085 = vst [vmem:[#allocation68_spill] sm:$0xff] %v15244_v29  ;;  %v15264_v6 = vadd.f32 %v4121_v39, %v21094_v38  ;;  %v15267_v23 = vadd.f32 %v4124_v36, %v21096_v51  ;;  %v15270_v50 = vadd.f32 %v4127_v54, %v21098_v32  ;;  %v21106_v39 = vld [vmem:[#allocation66_spill] sm:$0xff]  ;;  %v21108_v36 = vld [vmem:[#allocation147_spill] sm:$0xff] }
 0x34a   :  { %21087 = vst [vmem:[#allocation69_spill] sm:$0xff] %v15248_v45  ;;  %21089 = vst [vmem:[#allocation50_spill] sm:$0xff] %v15253_v25  ;;  %v15273_v27 = vadd.f32 %v4130_v11, %v21100_v15  ;;  %v15279_v41 = vadd.f32 %v4133_v28, %v21102_v60  ;;  %v15282_v17 = vadd.f32 %v4136_v9, %v21104_v43  ;;  %v21110_v54 = vld [vmem:[#allocation73_spill] sm:$0xff]  ;;  %v21112_v11 = vld [vmem:[#allocation148_spill] sm:$0xff] }
 0x34b   :  { %21091 = vst [vmem:[#allocation81_spill] sm:$0xff] %v15257_v62  ;;  %21093 = vst [vmem:[#allocation83_spill] sm:$0xff] %v15261_v26  ;;  %v15285_v52 = vadd.f32 %v4139_v21, %v21106_v39  ;;  %v15288_v14 = vadd.f32 %v4142_v30, %v21108_v36  ;;  %v15291_v2 = vadd.f32 %v4145_v63, %v21110_v54  ;;  %v21116_v28 = vld [vmem:[#allocation74_spill] sm:$0xff]  ;;  %v4255_v9 = vld [vmem:[%s18683_s0] sm:$0xfc] }
 0x34c   :  { %21095 = vst [vmem:[#allocation84_spill] sm:$0xff] %v15264_v6  ;;  %21097 = vst [vmem:[#allocation89_spill] sm:$0xff] %v15267_v23  ;;  %v15294_v31 = vadd.f32 %v4148_v61, %v21112_v11  ;;  %v15297_v22 = vadd.f32 %v4151_v19, %v21114_v40  ;;  %v15300_v46 = vadd.f32 %v4154_v1, %v21116_v28  ;;  %v4256_v21 = vld [vmem:[%s18683_s0 + $0x8] sm:$0xfc]  ;;  %v21118_v30 = vld [vmem:[#allocation140_spill] sm:$0xff] }
 0x34d   :  { %21099 = vst [vmem:[#allocation90_spill] sm:$0xff] %v15270_v50  ;;  %21101 = vst [vmem:[#allocation91_spill] sm:$0xff] %v15273_v27  ;;  %v15309_v63 = vadd.f32 %v4157_v49, %v21118_v30  ;;  %v15312_v61 = vadd.f32 %v4160_v8, %v21120_v0  ;;  %v4257_v19 = vld [vmem:[%s18683_s0 + $0x10] sm:$0x3]  ;;  %v4258_v1 = vld [vmem:[%s18683_s0 + $0x18] sm:$0x3] }
 0x34e   :  { %21103 = vst [vmem:[#allocation55_spill] sm:$0xff] %v15279_v41  ;;  %21105 = vst [vmem:[#allocation70_spill] sm:$0xff] %v15282_v17  ;;  %v4259_v33 = vld [vmem:[%s18683_s0 + $0x20] sm:$0xfc]  ;;  %v4260_v49 = vld [vmem:[%s18683_s0 + $0x28] sm:$0xfc] }
 0x34f   :  { %21107 = vst [vmem:[#allocation45_spill] sm:$0xff] %v15285_v52  ;;  %21109 = vst [vmem:[#allocation72_spill] sm:$0xff] %v15288_v14  ;;  %v21122_v12 = vld [vmem:[#allocation6_spill] sm:$0xff]  ;;  %v21123_v8 = vld [vmem:[#allocation7_spill] sm:$0xff] }
 0x350   :  { %21111 = vst [vmem:[#allocation71_spill] sm:$0xff] %v15291_v2  ;;  %21113 = vst [vmem:[#allocation128_spill] sm:$0xff] %v15294_v31  ;;  %v15327_v56 = vrot.slane %v6565_v55, %v21122_v12  ;;  %v15330_v57 = vrot.slane %v6565_v55, %v21123_v8  ;;  %v21124_v48 = vld [vmem:[#allocation49_spill] sm:$0xff]  ;;  %v21126_v16 = vld [vmem:[#allocation94_spill] sm:$0xff] }
 0x351   :  { %21115 = vst [vmem:[#allocation25_spill] sm:$0xff] %v15297_v22  ;;  %21117 = vst [vmem:[#allocation130_spill] sm:$0xff] %v15300_v46  ;;  %v15336_v3 = vadd.f32 %v4163_v58, %v21124_v48  ;;  %v15339_v37 = vadd.f32 %v4166_v7, %v21126_v16  ;;  %v21128_v13 = vld [vmem:[#allocation95_spill] sm:$0xff]  ;;  %v21130_v38 = vld [vmem:[#allocation97_spill] sm:$0xff] }
 0x352   :  { %21119 = vst [vmem:[#allocation103_spill] sm:$0xff] %v15309_v63  ;;  %21121 = vst [vmem:[#allocation104_spill] sm:$0xff] %v15312_v61  ;;  %v15342_v44 = vadd.f32 %v4169_v10, %v21128_v13  ;;  %v15345_v51 = vadd.f32 %v4172_v18, %v21130_v38  ;;  %v4261_v32 = vld [vmem:[%s18683_s0 + $0x30] sm:$0x3]  ;;  %v4262_v15 = vld [vmem:[%s18683_s0 + $0x38] sm:$0x3]  ;;  %v15405_v38 = vrot.slane %v6566_v24, %v21122_v12 }
 0x353   :  { %21125 = vst [vmem:[#allocation105_spill] sm:$0xff] %v15336_v3  ;;  %21127 = vst [vmem:[#allocation110_spill] sm:$0xff] %v15339_v37  ;;  %v4263_v58 = vld [vmem:[%s18683_s0 + $0x40] sm:$0xfc]  ;;  %v4264_v7 = vld [vmem:[%s18683_s0 + $0x48] sm:$0xfc] }
 0x354   :  { %21129 = vst [vmem:[#allocation111_spill] sm:$0xff] %v15342_v44  ;;  %21131 = vst [vmem:[#allocation112_spill] sm:$0xff] %v15345_v51  ;;  %v6567_v10 = vld [vmem:[%s18684_s1 + $0x24] ss:$8 sm:$0x3]  ;;  %v21132_v18 = vld [vmem:[#allocation100_spill] sm:$0xff] }
 0x355   :  { %v15363_v55 = vadd.f32 %v4175_v47, %v21132_v18  ;;  %v21134_v60 = vld [vmem:[#allocation102_spill] sm:$0xff]  ;;  %v21136_v39 = vld [vmem:[#allocation12_spill] sm:$0xff]  ;;  %v4265_v40 = vld [vmem:[%s18683_s0 + $0x50] sm:$0x3]  ;;  %21144 = vst [vmem:[#allocation134_spill] sm:$0xff] %v15405_v38 }
 0x356   :  { %v15366_v43 = vadd.f32 %v4178_v59, %v21134_v60  ;;  %v15369_v36 = vadd.f32 %v4181_v5, %v21136_v39  ;;  %v21138_v54 = vld [vmem:[#allocation28_spill] sm:$0xff]  ;;  %v4267_v47 = vld [vmem:[%s18683_s0 + $0x60] sm:$0xfc]  ;;  %v4268_v59 = vld [vmem:[%s18683_s0 + $0x68] sm:$0xfc] }
 0x357   :  { %21133 = vst [vmem:[#allocation117_spill] sm:$0xff] %v15363_v55  ;;  %v15372_v11 = vadd.f32 %v4184_v35, %v21138_v54  ;;  %v4266_v28 = vld [vmem:[%s18683_s0 + $0x58] sm:$0x3]  ;;  %v21142_v35 = vld [vmem:[#allocation21_spill] sm:$0xff]  ;;  %v4269_v48 = vld [vmem:[%s18683_s0 + $0x70] sm:$0x3]  ;;  %v15521_v51 = vmul.f32 %v15330_v57, %v4268_v59 }
 0x358   :  { %21135 = vst [vmem:[#allocation118_spill] sm:$0xff] %v15366_v43  ;;  %21137 = vst [vmem:[#allocation132_spill] sm:$0xff] %v15369_v36  ;;  %v21140_v5 = vld [vmem:[#allocation20_spill] sm:$0xff]  ;;  %v15390_v0 = vadd.f32 %v4190_v34, %v21142_v35  ;;  %v4271_v13 = vld [vmem:[%s18683_s0 + $0x80] sm:$0xfc]  ;;  %v15408_v34 = vrot.slane %v6566_v24, %v21123_v8  ;;  %v15426_v24 = vmul.f32 %v15330_v57, %v4256_v21 }
 0x359   :  { %21139 = vst [vmem:[#allocation138_spill] sm:$0xff] %v15372_v11  ;;  %v15387_v30 = vadd.f32 %v4187_v42, %v21140_v5  ;;  %v4270_v16 = vld [vmem:[%s18683_s0 + $0x78] sm:$0x3]  ;;  %v4272_v42 = vld [vmem:[%s18683_s0 + $0x88] sm:$0xfc]  ;;  %v15423_v5 = vmul.f32 %v15327_v56, %v4255_v9  ;;  %v15429_v35 = vrot.slane %v6567_v10, %v21122_v12  ;;  %v15461_v12 = vmul.f32 %v15327_v56, %v4259_v33 }
 0x35a   :  { %21143 = vst [vmem:[#allocation139_spill] sm:$0xff] %v15390_v0  ;;  %21145 = vst [vmem:[#allocation136_spill] sm:$0xff] %v15408_v34  ;;  %v4273_v18 = vld [vmem:[%s18683_s0 + $0x90] sm:$0x3]  ;;  %v4274_v60 = vld [vmem:[%s18683_s0 + $0x98] sm:$0x3]  ;;  %v15432_v34 = vrot.slane %v6567_v10, %v21123_v8  ;;  %v15455_v10 = vmul.f32 %v15327_v56, %v4257_v19  ;;  %v15458_v8 = vmul.f32 %v15330_v57, %v4258_v1 }
 0x35b   :  { %21141 = vst [vmem:[#allocation133_spill] sm:$0xff] %v15387_v30  ;;  %v4275_v39 = vld [vmem:[%s18683_s0 + $0xa0] sm:$0xfc]  ;;  %v4276_v54 = vld [vmem:[%s18683_s0 + $0xa8] sm:$0xfc]  ;;  %21146 = vst [vmem:[#allocation135_spill] sm:$0xff] %v15429_v35  ;;  %v15487_v33 = vmul.f32 %v15327_v56, %v4261_v32  ;;  %v15493_v11 = vmul.f32 %v15327_v56, %v4263_v58  ;;  %v15496_v36 = vmul.f32 %v15330_v57, %v4264_v7 }
 0x35c   :  { %21147 = vst [vmem:[#allocation137_spill] sm:$0xff] %v15432_v34  ;;  %v15437_v38 = vld [vmem:[%s18683_s0 + $0xb0] sm:$0x3]  ;;  %v15442_v0 = vld [vmem:[%s18683_s0 + $0xb8] sm:$0x3]  ;;  %v15464_v34 = vmul.f32 %v15330_v57, %v4260_v49  ;;  %v15490_v49 = vmul.f32 %v15330_v57, %v4262_v15  ;;  %v15512_v15 = vmul.f32 %v15327_v56, %v4265_v40  ;;  %v15515_v58 = vmul.f32 %v15330_v57, %v4266_v28 }
 0x35d   :  { %21148 = vst [vmem:[#allocation18_spill] sm:$0xff] %v15437_v38  ;;  %21149 = vst [vmem:[#allocation92_spill] sm:$0xff] %v15442_v0  ;;  %v15447_v9 = vld [vmem:[%s18683_s0 + $0xc0] sm:$0xfc]  ;;  %v15452_v21 = vld [vmem:[%s18683_s0 + $0xc8] sm:$0xfc]  ;;  %v15518_v7 = vmul.f32 %v15327_v56, %v4267_v47  ;;  %v15533_v28 = vmul.f32 %v15327_v56, %v4269_v48  ;;  %v15536_v47 = vmul.f32 %v15330_v57, %v4270_v16 }
 0x35e   :  { %21150 = vst [vmem:[#allocation22_spill] sm:$0xff] %v15447_v9  ;;  %21151 = vst [vmem:[#allocation93_spill] sm:$0xff] %v15452_v21  ;;  %v15469_v35 = vld [vmem:[%s18683_s0 + $0xd0] sm:$0x3]  ;;  %v15474_v30 = vld [vmem:[%s18683_s0 + $0xd8] sm:$0x3]  ;;  %v15539_v59 = vmul.f32 %v15327_v56, %v4271_v13  ;;  %v15542_v3 = vmul.f32 %v15330_v57, %v4272_v42  ;;  %v15560_v16 = vmul.f32 %v15327_v56, %v4273_v18 }
 0x35f   :  { %21152 = vst [vmem:[#allocation82_spill] sm:$0xff] %v15469_v35  ;;  %21153 = vst [vmem:[#allocation51_spill] sm:$0xff] %v15474_v30  ;;  %v15479_v19 = vld [vmem:[%s18683_s0 + $0xe0] sm:$0xfc]  ;;  %v15484_v1 = vld [vmem:[%s18683_s0 + $0xe8] sm:$0xfc]  ;;  %v15563_v13 = vmul.f32 %v15330_v57, %v4274_v60  ;;  %v15566_v42 = vmul.f32 %v15327_v56, %v4275_v39  ;;  %v15569_v46 = vmul.f32 %v15330_v57, %v4276_v54 }
 0x360   :  { %21154 = vst [vmem:[#allocation15_spill] sm:$0xff] %v15479_v19  ;;  %21155 = vst [vmem:[#allocation16_spill] sm:$0xff] %v15484_v1  ;;  %v15501_v43 = vld [vmem:[%s18683_s0 + $0xf0] sm:$0x3]  ;;  %v15506_v55 = vld [vmem:[%s18683_s0 + $0xf8] sm:$0x3]  ;;  %v15588_v60 = vmul.f32 %v15327_v56, %v15437_v38  ;;  %v15592_v39 = vmul.f32 %v15330_v57, %v15442_v0  ;;  %v15596_v54 = vmul.f32 %v15327_v56, %v15447_v9 }
 0x361   :  { %21156 = vst [vmem:[#allocation17_spill] sm:$0xff] %v15501_v43  ;;  %21157 = vst [vmem:[#allocation41_spill] sm:$0xff] %v15506_v55  ;;  %v4331_v32 = vld [vmem:[%s18683_s0 + $0x500] sm:$0xfc]  ;;  %v4332_v44 = vld [vmem:[%s18683_s0 + $0x508] sm:$0xfc]  ;;  %v15600_v2 = vmul.f32 %v15330_v57, %v15452_v21  ;;  %v15619_v9 = vmul.f32 %v15327_v56, %v15469_v35  ;;  %v15623_v21 = vmul.f32 %v15330_v57, %v15474_v30 }
 0x362   :  { %v4333_v37 = vld [vmem:[%s18683_s0 + $0x510] sm:$0x3]  ;;  %v4334_v40 = vld [vmem:[%s18683_s0 + $0x518] sm:$0x3]  ;;  %v15547_v61 = vld [vmem:[%s18683_s0 + $0x520] sm:$0xfc]  ;;  %v15627_v52 = vmul.f32 %v15327_v56, %v15479_v19  ;;  %v15631_v17 = vmul.f32 %v15330_v57, %v15484_v1  ;;  %v15650_v1 = vmul.f32 %v15327_v56, %v15501_v43  ;;  %v15654_v30 = vmul.f32 %v15330_v57, %v15506_v55 }
 0x363   :  { %21158 = vst [vmem:[#allocation31_spill] sm:$0xff] %v15547_v61  ;;  %v15552_v63 = vld [vmem:[%s18683_s0 + $0x528] sm:$0xfc]  ;;  %v15557_v48 = vld [vmem:[%s18683_s0 + $0x530] sm:$0x3]  ;;  %v15657_v27 = vmul.f32 %v15327_v56, %v4331_v32  ;;  %v15660_v50 = vmul.f32 %v15330_v57, %v4332_v44  ;;  %v15678_v32 = vmul.f32 %v15327_v56, %v4333_v37  ;;  %v15681_v44 = vmul.f32 %v15330_v57, %v4334_v40 }
 0x364   :  { %21159 = vst [vmem:[#allocation62_spill] sm:$0xff] %v15552_v63  ;;  %21160 = vst [vmem:[#allocation60_spill] sm:$0xff] %v15557_v48  ;;  %v15574_v22 = vld [vmem:[%s18683_s0 + $0x538] sm:$0x3]  ;;  %v15579_v31 = vld [vmem:[%s18683_s0 + $0x540] sm:$0xfc]  ;;  %v15685_v6 = vmul.f32 %v15327_v56, %v15547_v61  ;;  %v15689_v26 = vmul.f32 %v15330_v57, %v15552_v63  ;;  %v15708_v61 = vmul.f32 %v15327_v56, %v15557_v48 }
 0x365   :  { %21161 = vst [vmem:[#allocation63_spill] sm:$0xff] %v15574_v22  ;;  %21162 = vst [vmem:[#allocation123_spill] sm:$0xff] %v15579_v31  ;;  %v15584_v18 = vld [vmem:[%s18683_s0 + $0x548] sm:$0xfc]  ;;  %v15605_v14 = vld [vmem:[%s18683_s0 + $0x550] sm:$0x3]  ;;  %v15712_v63 = vmul.f32 %v15330_v57, %v15574_v22  ;;  %v15716_v25 = vmul.f32 %v15327_v56, %v15579_v31 }
 0x366   :  { %21163 = vst [vmem:[#allocation122_spill] sm:$0xff] %v15584_v18  ;;  %21164 = vst [vmem:[#allocation124_spill] sm:$0xff] %v15605_v14  ;;  %v15610_v38 = vld [vmem:[%s18683_s0 + $0x558] sm:$0x3]  ;;  %v15615_v0 = vld [vmem:[%s18683_s0 + $0x560] sm:$0xfc]  ;;  %v15720_v45 = vmul.f32 %v15330_v57, %v15584_v18  ;;  %v15734_v22 = vmul.f32 %v15327_v56, %v15605_v14 }
 0x367   :  { %21165 = vst [vmem:[#allocation34_spill] sm:$0xff] %v15610_v38  ;;  %21166 = vst [vmem:[#allocation38_spill] sm:$0xff] %v15615_v0  ;;  %v15636_v41 = vld [vmem:[%s18683_s0 + $0x568] sm:$0xfc]  ;;  %v15641_v35 = vld [vmem:[%s18683_s0 + $0x570] sm:$0x3]  ;;  %v15738_v31 = vmul.f32 %v15330_v57, %v15610_v38  ;;  %v15742_v18 = vmul.f32 %v15327_v56, %v15615_v0 }
 0x368   :  { %21167 = vst [vmem:[#allocation53_spill] sm:$0xff] %v15636_v41  ;;  %21168 = vst [vmem:[#allocation19_spill] sm:$0xff] %v15641_v35  ;;  %v15646_v19 = vld [vmem:[%s18683_s0 + $0x578] sm:$0x3]  ;;  %v15665_v23 = vld [vmem:[%s18683_s0 + $0x580] sm:$0xfc]  ;;  %v15746_v20 = vmul.f32 %v15330_v57, %v15636_v41  ;;  %v15765_v0 = vmul.f32 %v15327_v56, %v15641_v35 }
 0x369   :  { %21169 = vst [vmem:[#allocation61_spill] sm:$0xff] %v15646_v19  ;;  %21170 = vst [vmem:[#allocation78_spill] sm:$0xff] %v15665_v23  ;;  %v15670_v43 = vld [vmem:[%s18683_s0 + $0x588] sm:$0xfc]  ;;  %v15675_v55 = vld [vmem:[%s18683_s0 + $0x590] sm:$0x3]  ;;  %v15769_v41 = vmul.f32 %v15330_v57, %v15646_v19  ;;  %v15773_v4 = vmul.f32 %v15327_v56, %v15665_v23 }
 0x36a   :  { %21171 = vst [vmem:[#allocation13_spill] sm:$0xff] %v15670_v43  ;;  %21172 = vst [vmem:[#allocation11_spill] sm:$0xff] %v15675_v55  ;;  %v15694_v62 = vld [vmem:[%s18683_s0 + $0x598] sm:$0x3]  ;;  %v15699_v37 = vld [vmem:[%s18683_s0 + $0x5a0] sm:$0xfc]  ;;  %v15796_v23 = vmul.f32 %v15327_v56, %v15675_v55 }
 0x36b   :  { %21173 = vst [vmem:[#allocation35_spill] sm:$0xff] %v15694_v62  ;;  %21174 = vst [vmem:[#allocation57_spill] sm:$0xff] %v15699_v37  ;;  %v15704_v40 = vld [vmem:[%s18683_s0 + $0x5a8] sm:$0xfc]  ;;  %v15725_v29 = vld [vmem:[%s18683_s0 + $0x5b0] sm:$0x3] }
 0x36c   :  { %21175 = vst [vmem:[#allocation59_spill] sm:$0xff] %v15704_v40  ;;  %21176 = vst [vmem:[#allocation58_spill] sm:$0xff] %v15725_v29  ;;  %v15730_v48 = vld [vmem:[%s18683_s0 + $0x5b8] sm:$0x3]  ;;  %v15751_v53 = vld [vmem:[%s18683_s0 + $0x5c0] sm:$0xfc] }
 0x36d   :  { %21177 = vst [vmem:[#allocation10_spill] sm:$0xff] %v15730_v48  ;;  %21178 = vst [vmem:[#allocation119_spill] sm:$0xff] %v15742_v18  ;;  %v15756_v14 = vld [vmem:[%s18683_s0 + $0x5c8] sm:$0xfc]  ;;  %v15761_v38 = vld [vmem:[%s18683_s0 + $0x5d0] sm:$0x3] }
 0x36e   :  { %21179 = vst [vmem:[#allocation120_spill] sm:$0xff] %v15746_v20  ;;  %21180 = vst [vmem:[#allocation121_spill] sm:$0xff] %v15751_v53  ;;  %v15777_v20 = vmul.f32 %v15330_v57, %v15670_v43  ;;  %v15782_v18 = vld [vmem:[%s18683_s0 + $0x5d8] sm:$0x3]  ;;  %v15787_v35 = vld [vmem:[%s18683_s0 + $0x5e0] sm:$0xfc]  ;;  %v15800_v43 = vmul.f32 %v15330_v57, %v15694_v62 }
 0x36f   :  { %21181 = vst [vmem:[#allocation125_spill] sm:$0xff] %v15756_v14  ;;  %21182 = vst [vmem:[#allocation126_spill] sm:$0xff] %v15761_v38  ;;  %v15792_v19 = vld [vmem:[%s18683_s0 + $0x5e8] sm:$0xfc]  ;;  %v4549_v55 = vrot.slane %v15423_v5, 2  ;;  %v4552_v62 = vrot.slane %v15426_v24, 2  ;;  %v15830_v5 = vmul.f32 %v15327_v56, %v15725_v29  ;;  %v15838_v24 = vmul.f32 %v15327_v56, %v15751_v53 }
 0x370   :  { %21183 = vst [vmem:[#allocation127_spill] sm:$0xff] %v15765_v0  ;;  %21184 = vst [vmem:[#allocation24_spill] sm:$0xff] %v15769_v41  ;;  %v15813_v41 = vld [vmem:[%s18683_s0 + $0x5f0] sm:$0x3]  ;;  %v4559_v0 = vrot.slane %v15490_v49, 2  ;;  %v15858_v49 = vmul.f32 %v15330_v57, %v15792_v19 }
 0x371   :  { %21185 = vst [vmem:[#allocation85_spill] sm:$0xff] %v15773_v4  ;;  %21186 = vst [vmem:[#allocation23_spill] sm:$0xff] %v15777_v20  ;;  %v15804_v20 = vmul.f32 %v15327_v56, %v15699_v37  ;;  %v15808_v4 = vmul.f32 %v15330_v57, %v15704_v40  ;;  %v15822_v37 = vld [vmem:[%s18683_s0 + $0x5f8] sm:$0x3]  ;;  %v4555_v40 = vrot.slane %v15461_v12, 2  ;;  %v15842_v12 = vmul.f32 %v15330_v57, %v15756_v14 }
 0x372   :  { %21187 = vst [vmem:[#allocation86_spill] sm:$0xff] %v15782_v18  ;;  %21188 = vst [vmem:[#allocation143_spill] sm:$0xff] %v15787_v35  ;;  %v15862_v14 = vmul.f32 %v15327_v56, %v15813_v41  ;;  %v16192_v29 = vld [vmem:[%s18683_s0 + $0x338] sm:$0x3] }
 0x373   :  { %21189 = vst [vmem:[#allocation144_spill] sm:$0xff] %v15792_v19  ;;  %21190 = vst [vmem:[#allocation145_spill] sm:$0xff] %v15796_v23  ;;  %v4550_v23 = vrot.slane %v15455_v10, 2  ;;  %v15850_v10 = vmul.f32 %v15330_v57, %v15782_v18 }
 0x374   :  { %21191 = vst [vmem:[#allocation146_spill] sm:$0xff] %v15800_v43  ;;  %21192 = vst [vmem:[#allocation149_spill] sm:$0xff] %v15804_v20  ;;  %v4553_v43 = vrot.slane %v15458_v8, 2  ;;  %v4558_v20 = vrot.slane %v15464_v34, 2  ;;  %v15834_v8 = vmul.f32 %v15330_v57, %v15730_v48  ;;  %v15846_v34 = vmul.f32 %v15327_v56, %v15761_v38 }
 0x375   :  { %21193 = vst [vmem:[#allocation150_spill] sm:$0xff] %v15808_v4  ;;  %21194 = vst [vmem:[#allocation152_spill] sm:$0xff] %v15813_v41  ;;  %v4556_v4 = vrot.slane %v15487_v33, 2  ;;  %v15854_v33 = vmul.f32 %v15327_v56, %v15787_v35  ;;  %v15866_v38 = vmul.f32 %v15330_v57, %v15822_v37  ;;  %v15869_v53 = vsel %vm4548_vm1, %v4549_v55, %v4550_v23 }
 0x376   :  { %21195 = vst [vmem:[#allocation142_spill] sm:$0xff] %v15822_v37  ;;  %v15872_v18 = vsel %vm4548_vm1, %v4552_v62, %v4553_v43  ;;  %v15878_v19 = vsel %vm4548_vm1, %v4558_v20, %v4559_v0  ;;  %v4561_v48 = vrot.slane %v15493_v11, 2  ;;  %v4562_v56 = vrot.slane %v15512_v15, 2  ;;  %v16187_v37 = vld [vmem:[%s18683_s0 + $0x330] sm:$0x3]  ;;  %21291 = vst [vmem:[#allocation74_spill] sm:$0xff] %v16192_v29 }
 0x377   :  { %v15875_v35 = vsel %vm4548_vm1, %v4555_v40, %v4556_v4  ;;  %v4564_v41 = vrot.slane %v15496_v36, 2  ;;  %v4565_v57 = vrot.slane %v15515_v58, 2  ;;  %v4567_v23 = vrot.slane %v15518_v7, 2  ;;  %21290 = vst [vmem:[#allocation153_spill] sm:$0xff] %v16187_v37 }
 0x378   :  { %v4568_v55 = vrot.slane %v15533_v28, 2  ;;  %v4570_v62 = vrot.slane %v15521_v51, 2  ;;  %v4571_v4 = vrot.slane %v15536_v47, 2  ;;  %v4573_v43 = vrot.slane %v15539_v59, 2 }
 0x379   :  { %v4574_v20 = vrot.slane %v15560_v16, 2  ;;  %v4576_v11 = vrot.slane %v15542_v3, 2  ;;  %v4577_v0 = vrot.slane %v15563_v13, 2  ;;  %v4579_v36 = vrot.slane %v15566_v42, 2 }
 0x37a   :  { %v4580_v15 = vrot.slane %v15588_v60, 2  ;;  %v4582_v58 = vrot.slane %v15569_v46, 2  ;;  %v4583_v7 = vrot.slane %v15592_v39, 2  ;;  %v4585_v51 = vrot.slane %v15596_v54, 2 }
 0x37b   :  { %v4586_v28 = vrot.slane %v15619_v9, 2  ;;  %v4588_v47 = vrot.slane %v15600_v2, 2  ;;  %v4589_v59 = vrot.slane %v15623_v21, 2  ;;  %v4591_v3 = vrot.slane %v15627_v52, 2 }
 0x37c   :  { %v4592_v16 = vrot.slane %v15650_v1, 2  ;;  %v4594_v13 = vrot.slane %v15631_v17, 2  ;;  %v4595_v42 = vrot.slane %v15654_v30, 2  ;;  %v4597_v46 = vrot.slane %v15657_v27, 2 }
 0x37d   :  { %v4598_v60 = vrot.slane %v15678_v32, 2  ;;  %v4563_v39 = vsel %vm4548_vm1, %v4561_v48, %v4562_v56  ;;  %v4566_v9 = vsel %vm4548_vm1, %v4564_v41, %v4565_v57  ;;  %v4600_v2 = vrot.slane %v15660_v50, 2 }
 0x37e   :  { %v4601_v21 = vrot.slane %v15681_v44, 2  ;;  %v4569_v52 = vsel %vm4548_vm1, %v4567_v23, %v4568_v55  ;;  %v4572_v1 = vsel %vm4548_vm1, %v4570_v62, %v4571_v4  ;;  %v4575_v17 = vsel %vm4548_vm1, %v4573_v43, %v4574_v20 }
 0x37f   :  { %v4578_v30 = vsel %vm4548_vm1, %v4576_v11, %v4577_v0  ;;  %v4581_v27 = vsel %vm4548_vm1, %v4579_v36, %v4580_v15  ;;  %v4584_v54 = vsel %vm4548_vm1, %v4582_v58, %v4583_v7  ;;  %v4587_v48 = vsel %vm4548_vm1, %v4585_v51, %v4586_v28  ;;  %v21196_v11 = vld [vmem:[#allocation119_spill] sm:$0xff]  ;;  %v21198_v15 = vld [vmem:[#allocation120_spill] sm:$0xff]  ;;  %v21200_v51 = vld [vmem:[#allocation85_spill] sm:$0xff] }
 0x380   :  { %v4590_v41 = vsel %vm4548_vm1, %v4588_v47, %v4589_v59  ;;  %v15919_v50 = vsel %vm4548_vm1, %v4591_v3, %v4592_v16  ;;  %v15922_v32 = vsel %vm4548_vm1, %v4594_v13, %v4595_v42  ;;  %v15925_v44 = vsel %vm4548_vm1, %v4597_v46, %v4598_v60  ;;  %v21199_v7 = vld [vmem:[#allocation24_spill] sm:$0xff]  ;;  %v21201_v28 = vld [vmem:[#allocation145_spill] sm:$0xff]  ;;  %v21202_v47 = vld [vmem:[#allocation23_spill] sm:$0xff] }
 0x381   :  { %v4603_v40 = vrot.slane %v15685_v6, 2  ;;  %v15929_v56 = vsel %vm4548_vm1, %v4600_v2, %v4601_v21  ;;  %v4604_v57 = vrot.slane %v15708_v61, 2  ;;  %v4606_v23 = vrot.slane %v15689_v26, 2  ;;  %v21197_v6 = vld [vmem:[#allocation127_spill] sm:$0xff]  ;;  %v21203_v59 = vld [vmem:[#allocation146_spill] sm:$0xff]  ;;  %v21204_v3 = vld [vmem:[#allocation149_spill] sm:$0xff] }
 0x382   :  { %v4607_v55 = vrot.slane %v15712_v63, 2  ;;  %v4609_v62 = vrot.slane %v15716_v25, 2  ;;  %v4610_v4 = vrot.slane %v15734_v22, 2  ;;  %v4612_v43 = vrot.slane %v15720_v45, 2  ;;  %v21205_v16 = vld [vmem:[#allocation150_spill] sm:$0xff] }
 0x383   :  { %v4613_v20 = vrot.slane %v15738_v31, 2  ;;  %v4615_v0 = vrot.slane %v21196_v11, 2  ;;  %v4616_v36 = vrot.slane %v21197_v6, 2  ;;  %v4618_v58 = vrot.slane %v21198_v15, 2 }
 0x384   :  { %v4619_v61 = vrot.slane %v21199_v7, 2  ;;  %v4621_v26 = vrot.slane %v21200_v51, 2  ;;  %v4622_v63 = vrot.slane %v21201_v28, 2  ;;  %v4624_v25 = vrot.slane %v21202_v47, 2  ;;  %v21214_v51 = vld [vmem:[#allocation69_spill] sm:$0xff]  ;;  %v21216_v28 = vld [vmem:[#allocation50_spill] sm:$0xff] }
 0x385   :  { %v4625_v22 = vrot.slane %v21203_v59, 2  ;;  %v4627_v45 = vrot.slane %v21204_v3, 2  ;;  %v4628_v31 = vrot.slane %v15830_v5, 2  ;;  %v4630_v13 = vrot.slane %v21205_v16, 2  ;;  %v21232_v16 = vld [vmem:[#allocation70_spill] sm:$0xff] }
 0x386   :  { %v4631_v42 = vrot.slane %v15834_v8, 2  ;;  %v4633_v46 = vrot.slane %v15838_v24, 2  ;;  %v4634_v60 = vrot.slane %v15846_v34, 2  ;;  %v4636_v2 = vrot.slane %v15842_v12, 2 }
 0x387   :  { %v4637_v21 = vrot.slane %v15850_v10, 2  ;;  %v4605_v11 = vsel %vm4548_vm1, %v4603_v40, %v4604_v57  ;;  %v4608_v6 = vsel %vm4548_vm1, %v4606_v23, %v4607_v55  ;;  %v4639_v15 = vrot.slane %v15854_v33, 2 }
 0x388   :  { %v4640_v5 = vrot.slane %v15862_v14, 2  ;;  %v4611_v7 = vsel %vm4548_vm1, %v4609_v62, %v4610_v4  ;;  %v4614_v8 = vsel %vm4548_vm1, %v4612_v43, %v4613_v20  ;;  %v4642_v24 = vrot.slane %v15858_v49, 2  ;;  %v21206_v62 = vld [vmem:[#allocation47_spill] sm:$0xff]  ;;  %v21210_v20 = vld [vmem:[#allocation52_spill] sm:$0xff] }
 0x389   :  { %v4643_v34 = vrot.slane %v15866_v38, 2  ;;  %v4617_v12 = vsel %vm4548_vm1, %v4615_v0, %v4616_v36  ;;  %v4620_v10 = vsel %vm4548_vm1, %v4618_v58, %v4619_v61  ;;  %v4623_v40 = vsel %vm4548_vm1, %v4621_v26, %v4622_v63  ;;  %v21208_v4 = vld [vmem:[#allocation67_spill] sm:$0xff]  ;;  %v21212_v58 = vld [vmem:[#allocation68_spill] sm:$0xff]  ;;  %v21218_v63 = vld [vmem:[#allocation81_spill] sm:$0xff] }
 0x38a   :  { %v4626_v57 = vsel %vm4548_vm1, %v4624_v25, %v4625_v22  ;;  %v4629_v33 = vsel %vm4548_vm1, %v4627_v45, %v4628_v31  ;;  %v4632_v14 = vsel %vm4548_vm1, %v4630_v13, %v4631_v42  ;;  %v4635_v23 = vsel %vm4548_vm1, %v4633_v46, %v4634_v60  ;;  %v21224_v22 = vld [vmem:[#allocation89_spill] sm:$0xff]  ;;  %v21228_v45 = vld [vmem:[#allocation91_spill] sm:$0xff]  ;;  %v4298_v42 = vld [vmem:[%s18683_s0 + $0x298] sm:$0x3] }
 0x38b   :  { %v4638_v55 = vsel %vm4548_vm1, %v4636_v2, %v4637_v21  ;;  %v4641_v49 = vsel %vm4548_vm1, %v4639_v15, %v4640_v5  ;;  %v15973_v38 = vadd.f32 %v15869_v53, %v21206_v62  ;;  %v15977_v43 = vadd.f32 %v15872_v18, %v21208_v4  ;;  %v21220_v18 = vld [vmem:[#allocation83_spill] sm:$0xff]  ;;  %v21238_v46 = vld [vmem:[#allocation72_spill] sm:$0xff]  ;;  %v21250_v62 = vld [vmem:[#allocation130_spill] sm:$0xff] }
 0x38c   :  { %v15981_v0 = vadd.f32 %v15875_v35, %v21210_v20  ;;  %v4644_v36 = vsel %vm4548_vm1, %v4642_v24, %v4643_v34  ;;  %v15986_v61 = vadd.f32 %v15878_v19, %v21212_v58  ;;  %v15989_v26 = vadd.f32 %v4563_v39, %v21214_v51  ;;  %v21222_v35 = vld [vmem:[#allocation84_spill] sm:$0xff]  ;;  %v4295_v19 = vld [vmem:[%s18683_s0 + $0x280] sm:$0xfc]  ;;  %v4296_v39 = vld [vmem:[%s18683_s0 + $0x288] sm:$0xfc] }
 0x38d   :  { %21207 = vst [vmem:[#allocation64_spill] sm:$0xff] %v15973_v38  ;;  %21209 = vst [vmem:[#allocation65_spill] sm:$0xff] %v15977_v43  ;;  %v15992_v53 = vadd.f32 %v4566_v9, %v21216_v28  ;;  %v15995_v47 = vadd.f32 %v4569_v52, %v21218_v63  ;;  %v15998_v25 = vadd.f32 %v4572_v1, %v21220_v18  ;;  %v21226_v9 = vld [vmem:[#allocation90_spill] sm:$0xff]  ;;  %v21230_v31 = vld [vmem:[#allocation55_spill] sm:$0xff] }
 0x38e   :  { %21211 = vst [vmem:[#allocation99_spill] sm:$0xff] %v15981_v0  ;;  %21213 = vst [vmem:[#allocation101_spill] sm:$0xff] %v15986_v61  ;;  %v16001_v59 = vadd.f32 %v4575_v17, %v21222_v35  ;;  %v16004_v3 = vadd.f32 %v4578_v30, %v21224_v22  ;;  %v16013_v52 = vadd.f32 %v4581_v27, %v21226_v9  ;;  %v4297_v13 = vld [vmem:[%s18683_s0 + $0x290] sm:$0x3]  ;;  %v16033_v27 = vld [vmem:[%s18683_s0 + $0x2a0] sm:$0xfc] }
 0x38f   :  { %21215 = vst [vmem:[#allocation29_spill] sm:$0xff] %v15989_v26  ;;  %21217 = vst [vmem:[#allocation32_spill] sm:$0xff] %v15992_v53  ;;  %v16016_v1 = vadd.f32 %v4584_v54, %v21228_v45  ;;  %v16019_v17 = vadd.f32 %v4587_v48, %v21230_v31  ;;  %v16022_v30 = vadd.f32 %v4590_v41, %v21232_v16  ;;  %v16038_v54 = vld [vmem:[%s18683_s0 + $0x2a8] sm:$0xfc]  ;;  %v21236_v48 = vld [vmem:[#allocation45_spill] sm:$0xff] }
 0x390   :  { %21219 = vst [vmem:[#allocation30_spill] sm:$0xff] %v15995_v47  ;;  %21221 = vst [vmem:[#allocation40_spill] sm:$0xff] %v15998_v25  ;;  %v16042_v41 = vadd.f32 %v15919_v50, %v21236_v48  ;;  %v16046_v60 = vadd.f32 %v15922_v32, %v21238_v46  ;;  %v21240_v2 = vld [vmem:[#allocation71_spill] sm:$0xff]  ;;  %v21242_v15 = vld [vmem:[#allocation128_spill] sm:$0xff]  ;;  %v16080_v4 = vadd.f32 %v4608_v6, %v21250_v62 }
 0x391   :  { %21223 = vst [vmem:[#allocation26_spill] sm:$0xff] %v16001_v59  ;;  %21225 = vst [vmem:[#allocation27_spill] sm:$0xff] %v16004_v3  ;;  %v16050_v21 = vadd.f32 %v15925_v44, %v21240_v2  ;;  %v16054_v5 = vadd.f32 %v15929_v56, %v21242_v15  ;;  %v16059_v24 = vld [vmem:[%s18683_s0 + $0x2b0] sm:$0x3]  ;;  %v16064_v50 = vld [vmem:[%s18683_s0 + $0x2b8] sm:$0x3] }
 0x392   :  { %21227 = vst [vmem:[#allocation154_spill] sm:$0xff] %v16013_v52  ;;  %21229 = vst [vmem:[#allocation155_spill] sm:$0xff] %v16016_v1  ;;  %v16069_v32 = vld [vmem:[%s18683_s0 + $0x2c0] sm:$0xfc]  ;;  %v16074_v44 = vld [vmem:[%s18683_s0 + $0x2c8] sm:$0xfc] }
 0x393   :  { %21231 = vst [vmem:[#allocation151_spill] sm:$0xff] %v16019_v17  ;;  %21233 = vst [vmem:[#allocation76_spill] sm:$0xff] %v16022_v30  ;;  %v21248_v56 = vld [vmem:[#allocation25_spill] sm:$0xff]  ;;  %v21252_v20 = vld [vmem:[#allocation103_spill] sm:$0xff] }
 0x394   :  { %21234 = vst [vmem:[#allocation96_spill] sm:$0xff] %v16033_v27  ;;  %21235 = vst [vmem:[#allocation98_spill] sm:$0xff] %v16038_v54  ;;  %v16077_v34 = vadd.f32 %v4605_v11, %v21248_v56  ;;  %v16083_v58 = vadd.f32 %v4611_v7, %v21252_v20  ;;  %v21254_v51 = vld [vmem:[#allocation104_spill] sm:$0xff]  ;;  %v16091_v63 = vld [vmem:[%s18683_s0 + $0x2d0] sm:$0x3] }
 0x395   :  { %21237 = vst [vmem:[#allocation54_spill] sm:$0xff] %v16042_v41  ;;  %21239 = vst [vmem:[#allocation56_spill] sm:$0xff] %v16046_v60  ;;  %v16086_v28 = vadd.f32 %v4614_v8, %v21254_v51  ;;  %v16096_v18 = vld [vmem:[%s18683_s0 + $0x2d8] sm:$0x3]  ;;  %v16101_v11 = vld [vmem:[%s18683_s0 + $0x2e0] sm:$0xfc] }
 0x396   :  { %21241 = vst [vmem:[#allocation77_spill] sm:$0xff] %v16050_v21  ;;  %21243 = vst [vmem:[#allocation14_spill] sm:$0xff] %v16054_v5  ;;  %v16106_v6 = vld [vmem:[%s18683_s0 + $0x2e8] sm:$0xfc]  ;;  %v21260_v7 = vld [vmem:[#allocation105_spill] sm:$0xff] }
 0x397   :  { %21244 = vst [vmem:[#allocation75_spill] sm:$0xff] %v16059_v24  ;;  %21245 = vst [vmem:[#allocation33_spill] sm:$0xff] %v16064_v50  ;;  %v16109_v8 = vadd.f32 %v4617_v12, %v21260_v7  ;;  %v21262_v35 = vld [vmem:[#allocation110_spill] sm:$0xff]  ;;  %v21264_v9 = vld [vmem:[#allocation111_spill] sm:$0xff] }
 0x398   :  { %21246 = vst [vmem:[#allocation8_spill] sm:$0xff] %v16069_v32  ;;  %21247 = vst [vmem:[#allocation39_spill] sm:$0xff] %v16074_v44  ;;  %v16112_v22 = vadd.f32 %v4620_v10, %v21262_v35  ;;  %v16115_v45 = vadd.f32 %v4623_v40, %v21264_v9  ;;  %v21266_v31 = vld [vmem:[#allocation112_spill] sm:$0xff]  ;;  %v16123_v48 = vld [vmem:[%s18683_s0 + $0x2f0] sm:$0x3] }
 0x399   :  { %21249 = vst [vmem:[#allocation87_spill] sm:$0xff] %v16077_v34  ;;  %21251 = vst [vmem:[#allocation88_spill] sm:$0xff] %v16080_v4  ;;  %v16118_v16 = vadd.f32 %v4626_v57, %v21266_v31  ;;  %v16128_v46 = vld [vmem:[%s18683_s0 + $0x2f8] sm:$0x3]  ;;  %v16133_v12 = vld [vmem:[%s18683_s0 + $0x300] sm:$0xfc] }
 0x39a   :  { %21253 = vst [vmem:[#allocation9_spill] sm:$0xff] %v16083_v58  ;;  %21255 = vst [vmem:[#allocation36_spill] sm:$0xff] %v16086_v28  ;;  %v16138_v10 = vld [vmem:[%s18683_s0 + $0x308] sm:$0xfc]  ;;  %v21272_v40 = vld [vmem:[#allocation117_spill] sm:$0xff] }
 0x39b   :  { %21256 = vst [vmem:[#allocation37_spill] sm:$0xff] %v16091_v63  ;;  %21257 = vst [vmem:[#allocation44_spill] sm:$0xff] %v16096_v18  ;;  %v16141_v57 = vadd.f32 %v4629_v33, %v21272_v40  ;;  %v21274_v2 = vld [vmem:[#allocation118_spill] sm:$0xff]  ;;  %v21276_v56 = vld [vmem:[#allocation132_spill] sm:$0xff] }
 0x39c   :  { %21258 = vst [vmem:[#allocation43_spill] sm:$0xff] %v16101_v11  ;;  %21259 = vst [vmem:[#allocation46_spill] sm:$0xff] %v16106_v6  ;;  %v16144_v15 = vadd.f32 %v4632_v14, %v21274_v2  ;;  %v16147_v62 = vadd.f32 %v4635_v23, %v21276_v56  ;;  %v21278_v20 = vld [vmem:[#allocation138_spill] sm:$0xff]  ;;  %v16155_v7 = vld [vmem:[%s18683_s0 + $0x310] sm:$0x3] }
 0x39d   :  { %21261 = vst [vmem:[#allocation129_spill] sm:$0xff] %v16109_v8  ;;  %21263 = vst [vmem:[#allocation106_spill] sm:$0xff] %v16112_v22  ;;  %v16150_v51 = vadd.f32 %v4638_v55, %v21278_v20  ;;  %v16160_v35 = vld [vmem:[%s18683_s0 + $0x318] sm:$0x3]  ;;  %v16165_v33 = vld [vmem:[%s18683_s0 + $0x320] sm:$0xfc] }
 0x39e   :  { %21265 = vst [vmem:[#allocation131_spill] sm:$0xff] %v16115_v45  ;;  %21267 = vst [vmem:[#allocation107_spill] sm:$0xff] %v16118_v16  ;;  %v16170_v14 = vld [vmem:[%s18683_s0 + $0x328] sm:$0xfc]  ;;  %v21284_v23 = vld [vmem:[#allocation133_spill] sm:$0xff] }
 0x39f   :  { %21268 = vst [vmem:[#allocation108_spill] sm:$0xff] %v16123_v48  ;;  %21269 = vst [vmem:[#allocation113_spill] sm:$0xff] %v16128_v46  ;;  %v16173_v55 = vadd.f32 %v4641_v49, %v21284_v23  ;;  %v21286_v9 = vld [vmem:[#allocation139_spill] sm:$0xff]  ;;  %v21288_v40 = vld [vmem:[#allocation134_spill] sm:$0xff] }
 0x3a0   :  { %21270 = vst [vmem:[#allocation109_spill] sm:$0xff] %v16133_v12  ;;  %21271 = vst [vmem:[#allocation114_spill] sm:$0xff] %v16138_v10  ;;  %v16176_v31 = vadd.f32 %v4644_v36, %v21286_v9  ;;  %v16179_v2 = vmul.f32 %v21288_v40, %v4295_v19  ;;  %v21289_v56 = vld [vmem:[#allocation136_spill] sm:$0xff]  ;;  %v16197_v49 = vld [vmem:[%s18683_s0 + $0x340] sm:$0xfc]  ;;  %v16205_v19 = vmul.f32 %v21288_v40, %v4297_v13 }
 0x3a1   :  { %21273 = vst [vmem:[#allocation115_spill] sm:$0xff] %v16141_v57  ;;  %21275 = vst [vmem:[#allocation116_spill] sm:$0xff] %v16144_v15  ;;  %v16182_v20 = vmul.f32 %v21289_v56, %v4296_v39  ;;  %v16202_v36 = vld [vmem:[%s18683_s0 + $0x348] sm:$0xfc]  ;;  %v16208_v39 = vmul.f32 %v21289_v56, %v4298_v42  ;;  %v16212_v23 = vmul.f32 %v21288_v40, %v16033_v27  ;;  %v16226_v13 = vld [vmem:[%s18683_s0 + $0x358] sm:$0x3] }
 0x3a2   :  { %21277 = vst [vmem:[#allocation42_spill] sm:$0xff] %v16147_v62  ;;  %21279 = vst [vmem:[#allocation48_spill] sm:$0xff] %v16150_v51  ;;  %v16216_v9 = vmul.f32 %v21289_v56, %v16038_v54  ;;  %v16231_v42 = vld [vmem:[%s18683_s0 + $0x360] sm:$0xfc]  ;;  %v16236_v54 = vld [vmem:[%s18683_s0 + $0x368] sm:$0xfc]  ;;  %v16240_v27 = vmul.f32 %v21288_v40, %v16059_v24  ;;  %v16248_v51 = vmul.f32 %v21288_v40, %v16069_v32 }
 0x3a3   :  { %21280 = vst [vmem:[#allocation79_spill] sm:$0xff] %v16155_v7  ;;  %21281 = vst [vmem:[#allocation80_spill] sm:$0xff] %v16160_v35  ;;  %v16252_v62 = vmul.f32 %v21289_v56, %v16074_v44  ;;  %v16257_v15 = vld [vmem:[%s18683_s0 + $0x370] sm:$0x3]  ;;  %v16262_v24 = vld [vmem:[%s18683_s0 + $0x378] sm:$0x3]  ;;  %v16269_v32 = vmul.f32 %v21288_v40, %v16091_v63  ;;  %v16273_v44 = vmul.f32 %v21289_v56, %v16096_v18 }
 0x3a4   :  { %21282 = vst [vmem:[#allocation66_spill] sm:$0xff] %v16165_v33  ;;  %21283 = vst [vmem:[#allocation147_spill] sm:$0xff] %v16170_v14  ;;  %v16277_v57 = vmul.f32 %v21288_v40, %v16101_v11  ;;  %v16281_v16 = vmul.f32 %v21289_v56, %v16106_v6  ;;  %v4372_v45 = vld [vmem:[%s18683_s0 + $0x788] sm:$0xfc]  ;;  %v4373_v63 = vld [vmem:[%s18683_s0 + $0x790] sm:$0x3]  ;;  %v16294_v11 = vmul.f32 %v21288_v40, %v16123_v48 }
 0x3a5   :  { %21285 = vst [vmem:[#allocation73_spill] sm:$0xff] %v16173_v55  ;;  %21287 = vst [vmem:[#allocation148_spill] sm:$0xff] %v16176_v31  ;;  %v16221_v31 = vld [vmem:[%s18683_s0 + $0x350] sm:$0x3]  ;;  %v16244_v55 = vmul.f32 %v21289_v56, %v16064_v50  ;;  %v4371_v50 = vld [vmem:[%s18683_s0 + $0x780] sm:$0xfc]  ;;  %v16298_v6 = vmul.f32 %v21289_v56, %v16128_v46  ;;  %v16302_v22 = vmul.f32 %v21288_v40, %v16133_v12 }
 0x3a6   :  { %21292 = vst [vmem:[#allocation140_spill] sm:$0xff] %v16197_v49  ;;  %21293 = vst [vmem:[#allocation141_spill] sm:$0xff] %v16202_v36  ;;  %v4374_v18 = vld [vmem:[%s18683_s0 + $0x798] sm:$0x3]  ;;  %v16306_v8 = vmul.f32 %v21289_v56, %v16138_v10  ;;  %v16311_v28 = vld [vmem:[%s18683_s0 + $0x7a0] sm:$0xfc]  ;;  %v16325_v12 = vmul.f32 %v21288_v40, %v16155_v7  ;;  %v16329_v10 = vmul.f32 %v21289_v56, %v16160_v35 }
 0x3a7   :  { %21294 = vst [vmem:[#allocation49_spill] sm:$0xff] %v16221_v31  ;;  %21295 = vst [vmem:[#allocation94_spill] sm:$0xff] %v16226_v13  ;;  %v16316_v48 = vld [vmem:[%s18683_s0 + $0x7a8] sm:$0xfc]  ;;  %v16321_v46 = vld [vmem:[%s18683_s0 + $0x7b0] sm:$0x3]  ;;  %v16333_v58 = vmul.f32 %v21288_v40, %v16165_v33  ;;  %v16337_v4 = vmul.f32 %v21289_v56, %v16170_v14  ;;  %v16356_v33 = vmul.f32 %v21288_v40, %v16187_v37 }
 0x3a8   :  { %21296 = vst [vmem:[#allocation95_spill] sm:$0xff] %v16231_v42  ;;  %21297 = vst [vmem:[#allocation97_spill] sm:$0xff] %v16236_v54  ;;  %v16342_v34 = vld [vmem:[%s18683_s0 + $0x7b8] sm:$0x3]  ;;  %v16347_v7 = vld [vmem:[%s18683_s0 + $0x7c0] sm:$0xfc]  ;;  %v16360_v14 = vmul.f32 %v21289_v56, %v16192_v29  ;;  %v16364_v5 = vmul.f32 %v21288_v40, %v16197_v49  ;;  %v16368_v21 = vmul.f32 %v21289_v56, %v16202_v36 }
 0x3a9   :  { %21298 = vst [vmem:[#allocation100_spill] sm:$0xff] %v16257_v15  ;;  %21299 = vst [vmem:[#allocation102_spill] sm:$0xff] %v16262_v24  ;;  %v16352_v35 = vld [vmem:[%s18683_s0 + $0x7c8] sm:$0xfc]  ;;  %v16373_v60 = vld [vmem:[%s18683_s0 + $0x7d0] sm:$0x3]  ;;  %v16387_v49 = vmul.f32 %v21288_v40, %v16221_v31  ;;  %v16391_v36 = vmul.f32 %v21289_v56, %v16226_v13  ;;  %v16395_v41 = vmul.f32 %v21288_v40, %v16231_v42 }
 0x3aa   :  { %21300 = vst [vmem:[#allocation12_spill] sm:$0xff] %v16311_v28  ;;  %21301 = vst [vmem:[#allocation28_spill] sm:$0xff] %v16316_v48  ;;  %v16378_v37 = vld [vmem:[%s18683_s0 + $0x7d8] sm:$0x3]  ;;  %v16383_v29 = vld [vmem:[%s18683_s0 + $0x7e0] sm:$0xfc]  ;;  %v16399_v30 = vmul.f32 %v21289_v56, %v16236_v54  ;;  %v16418_v42 = vmul.f32 %v21288_v40, %v16257_v15  ;;  %v16422_v54 = vmul.f32 %v21289_v56, %v16262_v24 }
 0x3ab   :  { %21302 = vst [vmem:[#allocation20_spill] sm:$0xff] %v16321_v46  ;;  %21303 = vst [vmem:[#allocation21_spill] sm:$0xff] %v16342_v34  ;;  %v16404_v17 = vld [vmem:[%s18683_s0 + $0x7e8] sm:$0xfc]  ;;  %v16409_v31 = vld [vmem:[%s18683_s0 + $0x7f0] sm:$0x3]  ;;  %v16425_v1 = vmul.f32 %v21288_v40, %v4371_v50  ;;  %v16428_v52 = vmul.f32 %v21289_v56, %v4372_v45  ;;  %v16446_v50 = vmul.f32 %v21288_v40, %v4373_v63 }
 0x3ac   :  { %21304 = vst [vmem:[#allocation119_spill] sm:$0xff] %v16347_v7  ;;  %21305 = vst [vmem:[#allocation127_spill] sm:$0xff] %v16352_v35  ;;  %v16414_v13 = vld [vmem:[%s18683_s0 + $0x7f8] sm:$0x3]  ;;  %v16433_v3 = vld [vmem:[%s18683_s0 + $0x800] sm:$0xfc]  ;;  %v16449_v45 = vmul.f32 %v21289_v56, %v4374_v18  ;;  %v16453_v59 = vmul.f32 %v21288_v40, %v16311_v28  ;;  %v16457_v25 = vmul.f32 %v21289_v56, %v16316_v48 }
 0x3ad   :  { %21306 = vst [vmem:[#allocation120_spill] sm:$0xff] %v16373_v60  ;;  %21307 = vst [vmem:[#allocation24_spill] sm:$0xff] %v16378_v37  ;;  %v16438_v15 = vld [vmem:[%s18683_s0 + $0x808] sm:$0xfc]  ;;  %v16443_v24 = vld [vmem:[%s18683_s0 + $0x810] sm:$0x3]  ;;  %v16476_v28 = vmul.f32 %v21288_v40, %v16321_v46  ;;  %v16480_v48 = vmul.f32 %v21289_v56, %v16342_v34  ;;  %v16484_v53 = vmul.f32 %v21288_v40, %v16347_v7 }
 0x3ae   :  { %21308 = vst [vmem:[#allocation85_spill] sm:$0xff] %v16383_v29  ;;  %21309 = vst [vmem:[#allocation145_spill] sm:$0xff] %v16404_v17  ;;  %v16462_v47 = vld [vmem:[%s18683_s0 + $0x818] sm:$0x3]  ;;  %v16467_v63 = vld [vmem:[%s18683_s0 + $0x820] sm:$0xfc]  ;;  %v16488_v26 = vmul.f32 %v21289_v56, %v16352_v35  ;;  %v16502_v34 = vmul.f32 %v21288_v40, %v16373_v60  ;;  %v16506_v7 = vmul.f32 %v21289_v56, %v16378_v37 }
 0x3af   :  { %21310 = vst [vmem:[#allocation23_spill] sm:$0xff] %v16409_v31  ;;  %21311 = vst [vmem:[#allocation146_spill] sm:$0xff] %v16414_v13  ;;  %v16472_v18 = vld [vmem:[%s18683_s0 + $0x828] sm:$0xfc]  ;;  %v16493_v61 = vld [vmem:[%s18683_s0 + $0x830] sm:$0x3]  ;;  %v16510_v35 = vmul.f32 %v21288_v40, %v16383_v29  ;;  %v16514_v0 = vmul.f32 %v21289_v56, %v16404_v17  ;;  %v16533_v29 = vmul.f32 %v21288_v40, %v16409_v31 }
 0x3b0   :  { %21312 = vst [vmem:[#allocation149_spill] sm:$0xff] %v16433_v3  ;;  %21313 = vst [vmem:[#allocation150_spill] sm:$0xff] %v16438_v15  ;;  %v16498_v46 = vld [vmem:[%s18683_s0 + $0x838] sm:$0x3]  ;;  %v16519_v43 = vld [vmem:[%s18683_s0 + $0x840] sm:$0xfc]  ;;  %v16537_v17 = vmul.f32 %v21289_v56, %v16414_v13  ;;  %v16541_v38 = vmul.f32 %v21288_v40, %v16433_v3  ;;  %v16564_v3 = vmul.f32 %v21288_v40, %v16443_v24 }
 0x3b1   :  { %21314 = vst [vmem:[#allocation47_spill] sm:$0xff] %v16443_v24  ;;  %21315 = vst [vmem:[#allocation67_spill] sm:$0xff] %v16462_v47  ;;  %v16524_v60 = vld [vmem:[%s18683_s0 + $0x848] sm:$0xfc]  ;;  %v16529_v37 = vld [vmem:[%s18683_s0 + $0x850] sm:$0x3] }
 0x3b2   :  { %21316 = vst [vmem:[#allocation52_spill] sm:$0xff] %v16467_v63  ;;  %21317 = vst [vmem:[#allocation68_spill] sm:$0xff] %v16472_v18  ;;  %v16555_v31 = vld [vmem:[%s18683_s0 + $0x860] sm:$0xfc]  ;;  %v16560_v13 = vld [vmem:[%s18683_s0 + $0x868] sm:$0xfc] }
 0x3b3   :  { %21318 = vst [vmem:[#allocation69_spill] sm:$0xff] %v16493_v61  ;;  %21319 = vst [vmem:[#allocation50_spill] sm:$0xff] %v16498_v46  ;;  %v4850_v24 = vrot.slane %v16179_v2, 2  ;;  %v16598_v2 = vmul.f32 %v21288_v40, %v16493_v61 }
 0x3b4   :  { %21320 = vst [vmem:[#allocation81_spill] sm:$0xff] %v16510_v35  ;;  %21321 = vst [vmem:[#allocation83_spill] sm:$0xff] %v16514_v0  ;;  %v16545_v0 = vmul.f32 %v21289_v56, %v16438_v15  ;;  %v16550_v35 = vld [vmem:[%s18683_s0 + $0x858] sm:$0x3]  ;;  %v16568_v15 = vmul.f32 %v21289_v56, %v16462_v47  ;;  %v4853_v47 = vrot.slane %v16182_v20, 2  ;;  %v16602_v20 = vmul.f32 %v21289_v56, %v16498_v46 }
 0x3b5   :  { %21322 = vst [vmem:[#allocation84_spill] sm:$0xff] %v16519_v43  ;;  %21323 = vst [vmem:[#allocation89_spill] sm:$0xff] %v16524_v60  ;;  %v4862_v46 = vrot.slane %v16248_v51, 2  ;;  %v4896_v51 = vrot.slane %v16422_v54, 2 }
 0x3b6   :  { %21324 = vst [vmem:[#allocation90_spill] sm:$0xff] %v16529_v37  ;;  %21325 = vst [vmem:[#allocation91_spill] sm:$0xff] %v16533_v29  ;;  %v4860_v29 = vrot.slane %v16244_v55, 2  ;;  %v16618_v55 = vmul.f32 %v21289_v56, %v16550_v35 }
 0x3b7   :  { %21326 = vst [vmem:[#allocation55_spill] sm:$0xff] %v16537_v17  ;;  %21327 = vst [vmem:[#allocation70_spill] sm:$0xff] %v16541_v38  ;;  %v16576_v38 = vmul.f32 %v21289_v56, %v16472_v18  ;;  %v16581_v17 = vld [vmem:[%s18683_s0 + $0x870] sm:$0x3]  ;;  %v4856_v18 = vrot.slane %v16212_v23, 2  ;;  %v16622_v23 = vmul.f32 %v21288_v40, %v16555_v31 }
 0x3b8   :  { %21328 = vst [vmem:[#allocation45_spill] sm:$0xff] %v16545_v0  ;;  %21329 = vst [vmem:[#allocation72_spill] sm:$0xff] %v16550_v35  ;;  %v16572_v0 = vmul.f32 %v21288_v40, %v16467_v63  ;;  %v16590_v63 = vld [vmem:[%s18683_s0 + $0x878] sm:$0x3] }
 0x3b9   :  { %21330 = vst [vmem:[#allocation71_spill] sm:$0xff] %v16555_v31  ;;  %21331 = vst [vmem:[#allocation128_spill] sm:$0xff] %v16560_v13 }
 0x3ba   :  { %21332 = vst [vmem:[#allocation25_spill] sm:$0xff] %v16564_v3  ;;  %21333 = vst [vmem:[#allocation130_spill] sm:$0xff] %v16568_v15  ;;  %v4851_v3 = vrot.slane %v16205_v19, 2  ;;  %v4854_v15 = vrot.slane %v16208_v39, 2  ;;  %v16606_v19 = vmul.f32 %v21288_v40, %v16519_v43  ;;  %v16610_v39 = vmul.f32 %v21289_v56, %v16524_v60 }
 0x3bb   :  { %21334 = vst [vmem:[#allocation103_spill] sm:$0xff] %v16572_v0  ;;  %21335 = vst [vmem:[#allocation104_spill] sm:$0xff] %v16576_v38  ;;  %v4857_v38 = vrot.slane %v16240_v27, 2  ;;  %v4859_v0 = vrot.slane %v16216_v9, 2  ;;  %v16614_v27 = vmul.f32 %v21288_v40, %v16529_v37  ;;  %v16626_v9 = vmul.f32 %v21289_v56, %v16560_v13 }
 0x3bc   :  { %21336 = vst [vmem:[#allocation105_spill] sm:$0xff] %v16581_v17  ;;  %21337 = vst [vmem:[#allocation110_spill] sm:$0xff] %v16590_v63  ;;  %v16630_v60 = vmul.f32 %v21288_v40, %v16581_v17  ;;  %v16634_v37 = vmul.f32 %v21289_v56, %v16590_v63  ;;  %v16637_v43 = vsel %vm4548_vm1, %v4850_v24, %v4851_v3  ;;  %v4863_v40 = vrot.slane %v16269_v32, 2  ;;  %v21435_v63 = vld [vmem:[#allocation93_spill] sm:$0xff] }
 0x3bd   :  { %v16640_v35 = vsel %vm4548_vm1, %v4853_v47, %v4854_v15  ;;  %v16643_v31 = vsel %vm4548_vm1, %v4856_v18, %v4857_v38  ;;  %v16646_v13 = vsel %vm4548_vm1, %v4859_v0, %v4860_v29  ;;  %v4865_v17 = vrot.slane %v16252_v62, 2 }
 0x3be   :  { %v4866_v56 = vrot.slane %v16273_v44, 2  ;;  %v4868_v3 = vrot.slane %v16277_v57, 2  ;;  %v4869_v24 = vrot.slane %v16294_v11, 2  ;;  %v4871_v47 = vrot.slane %v16281_v16, 2 }
 0x3bf   :  { %v4872_v38 = vrot.slane %v16298_v6, 2  ;;  %v4874_v15 = vrot.slane %v16302_v22, 2  ;;  %v4875_v29 = vrot.slane %v16325_v12, 2  ;;  %v4877_v0 = vrot.slane %v16306_v8, 2 }
 0x3c0   :  { %v4878_v32 = vrot.slane %v16329_v10, 2  ;;  %v4880_v62 = vrot.slane %v16333_v58, 2  ;;  %v4881_v44 = vrot.slane %v16356_v33, 2  ;;  %v4883_v57 = vrot.slane %v16337_v4, 2 }
 0x3c1   :  { %v4884_v11 = vrot.slane %v16360_v14, 2  ;;  %v4886_v16 = vrot.slane %v16364_v5, 2  ;;  %v4887_v6 = vrot.slane %v16387_v49, 2  ;;  %v4889_v22 = vrot.slane %v16368_v21, 2 }
 0x3c2   :  { %v4890_v12 = vrot.slane %v16391_v36, 2  ;;  %v4892_v8 = vrot.slane %v16395_v41, 2  ;;  %v4893_v10 = vrot.slane %v16418_v42, 2  ;;  %v4895_v58 = vrot.slane %v16399_v30, 2 }
 0x3c3   :  { %v4898_v4 = vrot.slane %v16425_v1, 2  ;;  %v4899_v33 = vrot.slane %v16446_v50, 2  ;;  %v4864_v5 = vsel %vm4548_vm1, %v4862_v46, %v4863_v40  ;;  %v4867_v14 = vsel %vm4548_vm1, %v4865_v17, %v4866_v56 }
 0x3c4   :  { %v4901_v21 = vrot.slane %v16428_v52, 2  ;;  %v4902_v49 = vrot.slane %v16449_v45, 2  ;;  %v4870_v41 = vsel %vm4548_vm1, %v4868_v3, %v4869_v24  ;;  %v4873_v36 = vsel %vm4548_vm1, %v4871_v47, %v4872_v38 }
 0x3c5   :  { %v4876_v30 = vsel %vm4548_vm1, %v4874_v15, %v4875_v29  ;;  %v4879_v54 = vsel %vm4548_vm1, %v4877_v0, %v4878_v32  ;;  %v4882_v1 = vsel %vm4548_vm1, %v4880_v62, %v4881_v44  ;;  %v4885_v42 = vsel %vm4548_vm1, %v4883_v57, %v4884_v11  ;;  %v21338_v0 = vld [vmem:[#allocation81_spill] sm:$0xff]  ;;  %v21339_v62 = vld [vmem:[#allocation91_spill] sm:$0xff] }
 0x3c6   :  { %v4888_v46 = vsel %vm4548_vm1, %v4886_v16, %v4887_v6  ;;  %v4891_v17 = vsel %vm4548_vm1, %v4889_v22, %v4890_v12  ;;  %v4894_v52 = vsel %vm4548_vm1, %v4892_v8, %v4893_v10  ;;  %v4897_v50 = vsel %vm4548_vm1, %v4895_v58, %v4896_v51  ;;  %v21340_v44 = vld [vmem:[#allocation83_spill] sm:$0xff]  ;;  %v21342_v16 = vld [vmem:[#allocation70_spill] sm:$0xff]  ;;  %v21343_v6 = vld [vmem:[#allocation25_spill] sm:$0xff] }
 0x3c7   :  { %v4900_v45 = vsel %vm4548_vm1, %v4898_v4, %v4899_v33  ;;  %v4904_v18 = vrot.slane %v16453_v59, 2  ;;  %v4903_v40 = vsel %vm4548_vm1, %v4901_v21, %v4902_v49  ;;  %v4905_v56 = vrot.slane %v16476_v28, 2  ;;  %v21341_v11 = vld [vmem:[#allocation55_spill] sm:$0xff]  ;;  %v21344_v22 = vld [vmem:[#allocation45_spill] sm:$0xff]  ;;  %v21345_v12 = vld [vmem:[#allocation130_spill] sm:$0xff] }
 0x3c8   :  { %v4907_v3 = vrot.slane %v16457_v25, 2  ;;  %v4908_v24 = vrot.slane %v16480_v48, 2  ;;  %v4910_v47 = vrot.slane %v16484_v53, 2  ;;  %v4911_v38 = vrot.slane %v16502_v34, 2  ;;  %v21346_v8 = vld [vmem:[#allocation103_spill] sm:$0xff]  ;;  %v21347_v10 = vld [vmem:[#allocation104_spill] sm:$0xff] }
 0x3c9   :  { %v4913_v15 = vrot.slane %v16488_v26, 2  ;;  %v4914_v29 = vrot.slane %v16506_v7, 2  ;;  %v4916_v32 = vrot.slane %v21338_v0, 2  ;;  %v4917_v59 = vrot.slane %v21339_v62, 2 }
 0x3ca   :  { %v4919_v57 = vrot.slane %v21340_v44, 2  ;;  %v4920_v28 = vrot.slane %v21341_v11, 2  ;;  %v4922_v25 = vrot.slane %v21342_v16, 2  ;;  %v4923_v48 = vrot.slane %v21343_v6, 2  ;;  %v21356_v16 = vld [vmem:[#allocation29_spill] sm:$0xff]  ;;  %v21358_v6 = vld [vmem:[#allocation32_spill] sm:$0xff] }
 0x3cb   :  { %v4925_v53 = vrot.slane %v21344_v22, 2  ;;  %v4926_v34 = vrot.slane %v21345_v12, 2  ;;  %v4928_v26 = vrot.slane %v21346_v8, 2  ;;  %v4929_v7 = vrot.slane %v16598_v2, 2 }
 0x3cc   :  { %v4931_v58 = vrot.slane %v21347_v10, 2  ;;  %v4932_v51 = vrot.slane %v16602_v20, 2  ;;  %v4934_v4 = vrot.slane %v16606_v19, 2  ;;  %v4935_v33 = vrot.slane %v16614_v27, 2 }
 0x3cd   :  { %v4937_v21 = vrot.slane %v16610_v39, 2  ;;  %v4938_v49 = vrot.slane %v16618_v55, 2  ;;  %v4906_v0 = vsel %vm4548_vm1, %v4904_v18, %v4905_v56  ;;  %v4909_v62 = vsel %vm4548_vm1, %v4907_v3, %v4908_v24 }
 0x3ce   :  { %v4940_v44 = vrot.slane %v16622_v23, 2  ;;  %v4941_v2 = vrot.slane %v16630_v60, 2  ;;  %v4912_v11 = vsel %vm4548_vm1, %v4910_v47, %v4911_v38  ;;  %v4915_v20 = vsel %vm4548_vm1, %v4913_v15, %v4914_v29  ;;  %v21348_v47 = vld [vmem:[#allocation64_spill] sm:$0xff]  ;;  %v21350_v38 = vld [vmem:[#allocation65_spill] sm:$0xff]  ;;  %v21352_v29 = vld [vmem:[#allocation99_spill] sm:$0xff] }
 0x3cf   :  { %v4943_v19 = vrot.slane %v16626_v9, 2  ;;  %v4944_v27 = vrot.slane %v16634_v37, 2  ;;  %v4918_v39 = vsel %vm4548_vm1, %v4916_v32, %v4917_v59  ;;  %v4921_v55 = vsel %vm4548_vm1, %v4919_v57, %v4920_v28  ;;  %v21354_v57 = vld [vmem:[#allocation101_spill] sm:$0xff] }
 0x3d0   :  { %v4924_v18 = vsel %vm4548_vm1, %v4922_v25, %v4923_v48  ;;  %v4927_v56 = vsel %vm4548_vm1, %v4925_v53, %v4926_v34  ;;  %v4930_v23 = vsel %vm4548_vm1, %v4928_v26, %v4929_v7  ;;  %v4933_v60 = vsel %vm4548_vm1, %v4931_v58, %v4932_v51  ;;  %v21360_v48 = vld [vmem:[#allocation30_spill] sm:$0xff]  ;;  %v21366_v34 = vld [vmem:[#allocation27_spill] sm:$0xff] }
 0x3d1   :  { %v4936_v3 = vsel %vm4548_vm1, %v4934_v4, %v4935_v33  ;;  %v4939_v24 = vsel %vm4548_vm1, %v4937_v21, %v4938_v49  ;;  %v4942_v9 = vsel %vm4548_vm1, %v4940_v44, %v4941_v2  ;;  %v16733_v37 = vadd.f32 %v16637_v43, %v21348_v47 }
 0x3d2   :  { %v16737_v15 = vadd.f32 %v16640_v35, %v21350_v38  ;;  %v16741_v32 = vadd.f32 %v16643_v31, %v21352_v29  ;;  %v4945_v59 = vsel %vm4548_vm1, %v4943_v19, %v4944_v27  ;;  %v16746_v28 = vadd.f32 %v16646_v13, %v21354_v57  ;;  %v21362_v35 = vld [vmem:[#allocation40_spill] sm:$0xff]  ;;  %v21364_v31 = vld [vmem:[#allocation26_spill] sm:$0xff] }
 0x3d3   :  { %21349 = vst [vmem:[#allocation111_spill] sm:$0xff] %v16733_v37  ;;  %v16749_v25 = vadd.f32 %v4864_v5, %v21356_v16  ;;  %v16752_v43 = vadd.f32 %v4867_v14, %v21358_v6  ;;  %v16755_v22 = vadd.f32 %v4870_v41, %v21360_v48  ;;  %v16758_v53 = vadd.f32 %v4873_v36, %v21362_v35  ;;  %v21368_v13 = vld [vmem:[#allocation154_spill] sm:$0xff]  ;;  %v21370_v5 = vld [vmem:[#allocation155_spill] sm:$0xff]  ;;  %v21374_v41 = vld [vmem:[#allocation76_spill] sm:$0xff] }
 0x3d4   :  { %21351 = vst [vmem:[#allocation112_spill] sm:$0xff] %v16737_v15  ;;  %21353 = vst [vmem:[#allocation117_spill] sm:$0xff] %v16741_v32  ;;  %v16761_v12 = vadd.f32 %v4876_v30, %v21364_v31  ;;  %v16764_v8 = vadd.f32 %v4879_v54, %v21366_v34  ;;  %v16767_v26 = vadd.f32 %v4882_v1, %v21368_v13  ;;  %v21372_v14 = vld [vmem:[#allocation151_spill] sm:$0xff]  ;;  %v21376_v36 = vld [vmem:[#allocation54_spill] sm:$0xff] }
 0x3d5   :  { %21355 = vst [vmem:[#allocation118_spill] sm:$0xff] %v16746_v28  ;;  %21357 = vst [vmem:[#allocation132_spill] sm:$0xff] %v16749_v25  ;;  %v16770_v7 = vadd.f32 %v4885_v42, %v21370_v5  ;;  %v16773_v10 = vadd.f32 %v4888_v46, %v21372_v14  ;;  %v16776_v58 = vadd.f32 %v4891_v17, %v21374_v41  ;;  %v21378_v30 = vld [vmem:[#allocation56_spill] sm:$0xff]  ;;  %v21380_v54 = vld [vmem:[#allocation77_spill] sm:$0xff] }
 0x3d6   :  { %21359 = vst [vmem:[#allocation138_spill] sm:$0xff] %v16752_v43  ;;  %21361 = vst [vmem:[#allocation133_spill] sm:$0xff] %v16755_v22  ;;  %v16779_v51 = vadd.f32 %v4894_v52, %v21376_v36  ;;  %v16782_v4 = vadd.f32 %v4897_v50, %v21378_v30  ;;  %v16785_v33 = vadd.f32 %v4900_v45, %v21380_v54  ;;  %v21382_v1 = vld [vmem:[#allocation14_spill] sm:$0xff]  ;;  %v21384_v42 = vld [vmem:[#allocation87_spill] sm:$0xff] }
 0x3d7   :  { %21363 = vst [vmem:[#allocation139_spill] sm:$0xff] %v16758_v53  ;;  %21365 = vst [vmem:[#allocation134_spill] sm:$0xff] %v16761_v12  ;;  %v16788_v21 = vadd.f32 %v4903_v40, %v21382_v1  ;;  %v16791_v49 = vadd.f32 %v4906_v0, %v21384_v42  ;;  %v21386_v46 = vld [vmem:[#allocation88_spill] sm:$0xff]  ;;  %v21388_v17 = vld [vmem:[#allocation9_spill] sm:$0xff] }
 0x3d8   :  { %21367 = vst [vmem:[#allocation136_spill] sm:$0xff] %v16764_v8  ;;  %21369 = vst [vmem:[#allocation81_spill] sm:$0xff] %v16767_v26  ;;  %v16794_v44 = vadd.f32 %v4909_v62, %v21386_v46  ;;  %v16797_v2 = vadd.f32 %v4912_v11, %v21388_v17  ;;  %v21390_v52 = vld [vmem:[#allocation36_spill] sm:$0xff]  ;;  %v21392_v50 = vld [vmem:[#allocation129_spill] sm:$0xff] }
 0x3d9   :  { %21371 = vst [vmem:[#allocation91_spill] sm:$0xff] %v16770_v7  ;;  %21373 = vst [vmem:[#allocation83_spill] sm:$0xff] %v16773_v10  ;;  %v16800_v19 = vadd.f32 %v4915_v20, %v21390_v52  ;;  %v16803_v27 = vadd.f32 %v4918_v39, %v21392_v50  ;;  %v21394_v45 = vld [vmem:[#allocation106_spill] sm:$0xff]  ;;  %v21396_v40 = vld [vmem:[#allocation131_spill] sm:$0xff] }
 0x3da   :  { %21375 = vst [vmem:[#allocation55_spill] sm:$0xff] %v16776_v58  ;;  %21377 = vst [vmem:[#allocation70_spill] sm:$0xff] %v16779_v51  ;;  %v16806_v47 = vadd.f32 %v4921_v55, %v21394_v45  ;;  %v16809_v38 = vadd.f32 %v4924_v18, %v21396_v40  ;;  %v21398_v0 = vld [vmem:[#allocation107_spill] sm:$0xff]  ;;  %v21402_v11 = vld [vmem:[#allocation116_spill] sm:$0xff] }
 0x3db   :  { %21379 = vst [vmem:[#allocation25_spill] sm:$0xff] %v16782_v4  ;;  %21381 = vst [vmem:[#allocation45_spill] sm:$0xff] %v16785_v33  ;;  %v16812_v29 = vadd.f32 %v4927_v56, %v21398_v0  ;;  %v21400_v62 = vld [vmem:[#allocation115_spill] sm:$0xff]  ;;  %v16818_v16 = vadd.f32 %v4933_v60, %v21402_v11  ;;  %v21404_v20 = vld [vmem:[#allocation42_spill] sm:$0xff] }
 0x3dc   :  { %21383 = vst [vmem:[#allocation130_spill] sm:$0xff] %v16788_v21  ;;  %21385 = vst [vmem:[#allocation103_spill] sm:$0xff] %v16791_v49  ;;  %v16815_v57 = vadd.f32 %v4930_v23, %v21400_v62  ;;  %v16821_v6 = vadd.f32 %v4936_v3, %v21404_v20  ;;  %v21406_v39 = vld [vmem:[#allocation48_spill] sm:$0xff]  ;;  %v21408_v55 = vld [vmem:[#allocation73_spill] sm:$0xff] }
 0x3dd   :  { %21387 = vst [vmem:[#allocation104_spill] sm:$0xff] %v16794_v44  ;;  %21389 = vst [vmem:[#allocation64_spill] sm:$0xff] %v16797_v2  ;;  %v16824_v48 = vadd.f32 %v4939_v24, %v21406_v39  ;;  %v16827_v35 = vadd.f32 %v4942_v9, %v21408_v55  ;;  %v21410_v18 = vld [vmem:[#allocation148_spill] sm:$0xff]  ;;  %v6682_v56 = vld [vmem:[%s18683_s0 + $0x20] sm:$0xfc] }
 0x3de   :  { %21391 = vst [vmem:[#allocation65_spill] sm:$0xff] %v16800_v19  ;;  %21393 = vst [vmem:[#allocation99_spill] sm:$0xff] %v16803_v27  ;;  %v16830_v31 = vadd.f32 %v4945_v59, %v21410_v18  ;;  %v21412_v23 = vld [vmem:[#allocation135_spill] sm:$0xff]  ;;  %v6683_v60 = vld [vmem:[%s18683_s0 + $0x28] sm:$0xfc] }
 0x3df   :  { %21395 = vst [vmem:[#allocation101_spill] sm:$0xff] %v16806_v47  ;;  %21397 = vst [vmem:[#allocation29_spill] sm:$0xff] %v16809_v38  ;;  %v16836_v34 = vmul.f32 %v6682_v56, %v21412_v23  ;;  %v21413_v3 = vld [vmem:[#allocation137_spill] sm:$0xff]  ;;  %v6684_v9 = vld [vmem:[%s18683_s0 + $0x30] sm:$0x3] }
 0x3e0   :  { %21399 = vst [vmem:[#allocation32_spill] sm:$0xff] %v16812_v29  ;;  %21401 = vst [vmem:[#allocation30_spill] sm:$0xff] %v16815_v57  ;;  %v16842_v24 = vmul.f32 %v6683_v60, %v21413_v3  ;;  %v16848_v59 = vmul.f32 %v6684_v9, %v21412_v23  ;;  %v6685_v13 = vld [vmem:[%s18683_s0 + $0x38] sm:$0x3]  ;;  %v16859_v14 = vld [vmem:[%s18683_s0 + $0x40] sm:$0xfc]  ;;  %v17016_v61 = vmul.f32 %v21413_v3, %v21435_v63 }
 0x3e1   :  { %21403 = vst [vmem:[#allocation40_spill] sm:$0xff] %v16818_v16  ;;  %21405 = vst [vmem:[#allocation26_spill] sm:$0xff] %v16821_v6  ;;  %v16854_v5 = vmul.f32 %v6685_v13, %v21413_v3  ;;  %v16863_v41 = vmul.f32 %v16859_v14, %v21412_v23  ;;  %v16868_v36 = vld [vmem:[%s18683_s0 + $0x48] sm:$0xfc]  ;;  %v16877_v54 = vld [vmem:[%s18683_s0 + $0x50] sm:$0x3] }
 0x3e2   :  { %21407 = vst [vmem:[#allocation27_spill] sm:$0xff] %v16824_v48  ;;  %21409 = vst [vmem:[#allocation154_spill] sm:$0xff] %v16827_v35  ;;  %v16872_v30 = vmul.f32 %v16868_v36, %v21413_v3  ;;  %v16881_v1 = vmul.f32 %v16877_v54, %v21412_v23  ;;  %v16886_v42 = vld [vmem:[%s18683_s0 + $0x58] sm:$0x3]  ;;  %v16895_v17 = vld [vmem:[%s18683_s0 + $0x60] sm:$0xfc] }
 0x3e3   :  { %21411 = vst [vmem:[#allocation155_spill] sm:$0xff] %v16830_v31  ;;  %21414 = vst [vmem:[#allocation151_spill] sm:$0xff] %v16859_v14  ;;  %v16890_v46 = vmul.f32 %v16886_v42, %v21413_v3  ;;  %v16899_v52 = vmul.f32 %v16895_v17, %v21412_v23  ;;  %v16904_v50 = vld [vmem:[%s18683_s0 + $0x68] sm:$0xfc]  ;;  %v16913_v40 = vld [vmem:[%s18683_s0 + $0x70] sm:$0x3] }
 0x3e4   :  { %21415 = vst [vmem:[#allocation76_spill] sm:$0xff] %v16868_v36  ;;  %21416 = vst [vmem:[#allocation54_spill] sm:$0xff] %v16877_v54  ;;  %v16908_v45 = vmul.f32 %v16904_v50, %v21413_v3  ;;  %v16917_v0 = vmul.f32 %v16913_v40, %v21412_v23  ;;  %v16922_v62 = vld [vmem:[%s18683_s0 + $0x78] sm:$0x3]  ;;  %v16931_v20 = vld [vmem:[%s18683_s0 + $0x80] sm:$0xfc] }
 0x3e5   :  { %21417 = vst [vmem:[#allocation56_spill] sm:$0xff] %v16886_v42  ;;  %21418 = vst [vmem:[#allocation77_spill] sm:$0xff] %v16895_v17  ;;  %v16926_v11 = vmul.f32 %v16922_v62, %v21413_v3  ;;  %v16935_v39 = vmul.f32 %v16931_v20, %v21412_v23  ;;  %v16940_v55 = vld [vmem:[%s18683_s0 + $0x88] sm:$0xfc]  ;;  %v16949_v56 = vld [vmem:[%s18683_s0 + $0x100] sm:$0xfc] }
 0x3e6   :  { %21419 = vst [vmem:[#allocation14_spill] sm:$0xff] %v16904_v50  ;;  %21420 = vst [vmem:[#allocation87_spill] sm:$0xff] %v16913_v40  ;;  %v16944_v18 = vmul.f32 %v16940_v55, %v21413_v3  ;;  %v16954_v60 = vld [vmem:[%s18683_s0 + $0x108] sm:$0xfc]  ;;  %v16959_v9 = vld [vmem:[%s18683_s0 + $0x90] sm:$0x3] }
 0x3e7   :  { %21421 = vst [vmem:[#allocation88_spill] sm:$0xff] %v16922_v62  ;;  %21422 = vst [vmem:[#allocation9_spill] sm:$0xff] %v16931_v20  ;;  %v16963_v13 = vmul.f32 %v16959_v9, %v21412_v23  ;;  %v16977_v62 = vld [vmem:[%s18683_s0 + $0xa0] sm:$0xfc]  ;;  %v17000_v17 = vld [vmem:[%s18683_s0 + $0x118] sm:$0x3] }
 0x3e8   :  { %21423 = vst [vmem:[#allocation36_spill] sm:$0xff] %v16940_v55  ;;  %21424 = vst [vmem:[#allocation129_spill] sm:$0xff] %v16949_v56  ;;  %v16968_v55 = vld [vmem:[%s18683_s0 + $0x98] sm:$0x3]  ;;  %v16981_v40 = vmul.f32 %v16977_v62, %v21412_v23  ;;  %v21436_v31 = vld [vmem:[#allocation82_spill] sm:$0xff]  ;;  %v5152_v37 = vrot.slane %v16848_v59, 2 }
 0x3e9   :  { %21425 = vst [vmem:[#allocation106_spill] sm:$0xff] %v16954_v60  ;;  %21426 = vst [vmem:[#allocation131_spill] sm:$0xff] %v16959_v9  ;;  %v16972_v20 = vmul.f32 %v16968_v55, %v21413_v3  ;;  %v16986_v9 = vld [vmem:[%s18683_s0 + $0xa8] sm:$0xfc]  ;;  %v21433_v54 = vld [vmem:[#allocation92_spill] sm:$0xff]  ;;  %v17020_v35 = vmul.f32 %v21412_v23, %v21436_v31 }
 0x3ea   :  { %21427 = vst [vmem:[#allocation107_spill] sm:$0xff] %v16968_v55  ;;  %21428 = vst [vmem:[#allocation115_spill] sm:$0xff] %v16977_v62  ;;  %v16990_v50 = vmul.f32 %v16986_v9, %v21413_v3  ;;  %v16995_v55 = vld [vmem:[%s18683_s0 + $0x110] sm:$0x3]  ;;  %v21432_v62 = vld [vmem:[#allocation18_spill] sm:$0xff]  ;;  %v17008_v36 = vmul.f32 %v21413_v3, %v21433_v54 }
 0x3eb   :  { %21429 = vst [vmem:[#allocation116_spill] sm:$0xff] %v16986_v9  ;;  %21430 = vst [vmem:[#allocation42_spill] sm:$0xff] %v16995_v55  ;;  %v17004_v42 = vmul.f32 %v21412_v23, %v21432_v62  ;;  %v21434_v9 = vld [vmem:[#allocation22_spill] sm:$0xff]  ;;  %v21437_v48 = vld [vmem:[#allocation51_spill] sm:$0xff] }
 0x3ec   :  { %21431 = vst [vmem:[#allocation48_spill] sm:$0xff] %v17000_v17  ;;  %v17012_v14 = vmul.f32 %v21412_v23, %v21434_v9  ;;  %v17024_v62 = vmul.f32 %v21413_v3, %v21437_v48  ;;  %v21438_v6 = vld [vmem:[#allocation15_spill] sm:$0xff]  ;;  %v21439_v16 = vld [vmem:[#allocation16_spill] sm:$0xff]  ;;  %v21440_v57 = vld [vmem:[#allocation17_spill] sm:$0xff]  ;;  %v17044_v48 = vmul.f32 %v21412_v23, %v16949_v56 }
 0x3ed   :  { %v17028_v54 = vmul.f32 %v21412_v23, %v21438_v6  ;;  %v17032_v9 = vmul.f32 %v21413_v3, %v21439_v16  ;;  %v17036_v63 = vmul.f32 %v21412_v23, %v21440_v57  ;;  %v21441_v29 = vld [vmem:[#allocation41_spill] sm:$0xff]  ;;  %v17048_v6 = vmul.f32 %v21413_v3, %v16954_v60  ;;  %v21442_v38 = vld [vmem:[#allocation31_spill] sm:$0xff]  ;;  %v21443_v47 = vld [vmem:[#allocation62_spill] sm:$0xff] }
 0x3ee   :  { %v17040_v31 = vmul.f32 %v21413_v3, %v21441_v29  ;;  %v17052_v16 = vmul.f32 %v21412_v23, %v16995_v55  ;;  %v17056_v57 = vmul.f32 %v21413_v3, %v17000_v17  ;;  %v17060_v29 = vmul.f32 %v21412_v23, %v21442_v38  ;;  %v21444_v27 = vld [vmem:[#allocation60_spill] sm:$0xff]  ;;  %v21445_v19 = vld [vmem:[#allocation63_spill] sm:$0xff]  ;;  %v21447_v44 = vld [vmem:[#allocation122_spill] sm:$0xff] }
 0x3ef   :  { %v17064_v56 = vmul.f32 %v21413_v3, %v21443_v47  ;;  %v17068_v60 = vmul.f32 %v21412_v23, %v21444_v27  ;;  %v17072_v55 = vmul.f32 %v21413_v3, %v21445_v19  ;;  %v21446_v2 = vld [vmem:[#allocation123_spill] sm:$0xff]  ;;  %v17080_v38 = vmul.f32 %v21413_v3, %v21447_v44  ;;  %v21448_v49 = vld [vmem:[#allocation124_spill] sm:$0xff]  ;;  %v21449_v21 = vld [vmem:[#allocation34_spill] sm:$0xff] }
 0x3f0   :  { %v17076_v17 = vmul.f32 %v21412_v23, %v21446_v2  ;;  %v17084_v47 = vmul.f32 %v21412_v23, %v21448_v49  ;;  %v17088_v27 = vmul.f32 %v21413_v3, %v21449_v21  ;;  %v21450_v33 = vld [vmem:[#allocation38_spill] sm:$0xff]  ;;  %v21451_v4 = vld [vmem:[#allocation53_spill] sm:$0xff]  ;;  %v21452_v51 = vld [vmem:[#allocation19_spill] sm:$0xff] }
 0x3f1   :  { %v17092_v19 = vmul.f32 %v21412_v23, %v21450_v33  ;;  %v17096_v2 = vmul.f32 %v21413_v3, %v21451_v4  ;;  %v17100_v44 = vmul.f32 %v21412_v23, %v21452_v51  ;;  %v21453_v58 = vld [vmem:[#allocation61_spill] sm:$0xff]  ;;  %v21454_v10 = vld [vmem:[#allocation78_spill] sm:$0xff]  ;;  %v21456_v26 = vld [vmem:[#allocation11_spill] sm:$0xff] }
 0x3f2   :  { %v17104_v49 = vmul.f32 %v21413_v3, %v21453_v58  ;;  %v17108_v21 = vmul.f32 %v21412_v23, %v21454_v10  ;;  %v21455_v7 = vld [vmem:[#allocation13_spill] sm:$0xff]  ;;  %v17116_v4 = vmul.f32 %v21412_v23, %v21456_v26  ;;  %v21457_v8 = vld [vmem:[#allocation35_spill] sm:$0xff]  ;;  %v17138_v26 = vld [vmem:[%s18683_s0 + $0x608] sm:$0xfc] }
 0x3f3   :  { %v17112_v33 = vmul.f32 %v21413_v3, %v21455_v7  ;;  %v17120_v51 = vmul.f32 %v21413_v3, %v21457_v8  ;;  %v21459_v12 = vld [vmem:[#allocation57_spill] sm:$0xff]  ;;  %v21461_v53 = vld [vmem:[#allocation59_spill] sm:$0xff]  ;;  %21464 = vst [vmem:[#allocation18_spill] sm:$0xff] %v17138_v26  ;;  %v21465_v8 = vld [vmem:[#allocation58_spill] sm:$0xff] }
 0x3f4   :  { %v17124_v58 = vmul.f32 %v21412_v23, %v21459_v12  ;;  %v17128_v10 = vmul.f32 %v21413_v3, %v21461_v53  ;;  %v17133_v7 = vld [vmem:[%s18683_s0 + $0x600] sm:$0xfc]  ;;  %v17142_v22 = vmul.f32 %v21412_v23, %v21465_v8  ;;  %v21467_v12 = vld [vmem:[#allocation10_spill] sm:$0xff]  ;;  %v17159_v15 = vld [vmem:[%s18683_s0 + $0x610] sm:$0x3]  ;;  %v5151_v8 = vrot.slane %v16836_v34, 2 }
 0x3f5   :  { %21458 = vst [vmem:[#allocation73_spill] sm:$0xff] %v17120_v51  ;;  %21463 = vst [vmem:[#allocation137_spill] sm:$0xff] %v17133_v7  ;;  %v17146_v43 = vmul.f32 %v21413_v3, %v21467_v12  ;;  %v21469_v53 = vld [vmem:[#allocation121_spill] sm:$0xff]  ;;  %v5154_v12 = vrot.slane %v16842_v24, 2  ;;  %v21475_v34 = vld [vmem:[#allocation126_spill] sm:$0xff] }
 0x3f6   :  { %21460 = vst [vmem:[#allocation148_spill] sm:$0xff] %v17124_v58  ;;  %21462 = vst [vmem:[#allocation135_spill] sm:$0xff] %v17128_v10  ;;  %v17150_v25 = vmul.f32 %v21412_v23, %v21469_v53  ;;  %v21471_v28 = vld [vmem:[#allocation125_spill] sm:$0xff]  ;;  %v17168_v53 = vld [vmem:[%s18683_s0 + $0x618] sm:$0x3]  ;;  %v5161_v10 = vrot.slane %v16890_v46, 2  ;;  %v17176_v59 = vmul.f32 %v21412_v23, %v21475_v34 }
 0x3f7   :  { %21466 = vst [vmem:[#allocation92_spill] sm:$0xff] %v17142_v22  ;;  %21468 = vst [vmem:[#allocation22_spill] sm:$0xff] %v17146_v43  ;;  %v17154_v32 = vmul.f32 %v21413_v3, %v21471_v28  ;;  %v5155_v43 = vrot.slane %v16854_v5, 2  ;;  %v5157_v28 = vrot.slane %v16863_v41, 2  ;;  %v21476_v24 = vld [vmem:[#allocation86_spill] sm:$0xff]  ;;  %v21477_v22 = vld [vmem:[#allocation143_spill] sm:$0xff] }
 0x3f8   :  { %21470 = vst [vmem:[#allocation93_spill] sm:$0xff] %v17150_v25  ;;  %21473 = vst [vmem:[#allocation51_spill] sm:$0xff] %v17159_v15  ;;  %v5160_v25 = vrot.slane %v16872_v30, 2  ;;  %v17180_v5 = vmul.f32 %v21413_v3, %v21476_v24  ;;  %v17184_v58 = vmul.f32 %v21412_v23, %v21477_v22  ;;  %v21478_v51 = vld [vmem:[#allocation144_spill] sm:$0xff]  ;;  %v21481_v46 = vld [vmem:[#allocation142_spill] sm:$0xff]  ;;  %v17200_v24 = vmul.f32 %v21412_v23, %v17133_v7 }
 0x3f9   :  { %21472 = vst [vmem:[#allocation82_spill] sm:$0xff] %v17154_v32  ;;  %21474 = vst [vmem:[#allocation15_spill] sm:$0xff] %v17168_v53  ;;  %v5158_v32 = vrot.slane %v16881_v1, 2  ;;  %v17188_v41 = vmul.f32 %v21413_v3, %v21478_v51  ;;  %v21480_v1 = vld [vmem:[#allocation152_spill] sm:$0xff]  ;;  %v17196_v34 = vmul.f32 %v21413_v3, %v21481_v46  ;;  %v17204_v22 = vmul.f32 %v21413_v3, %v17138_v26 }
 0x3fa   :  { %v17192_v30 = vmul.f32 %v21412_v23, %v21480_v1  ;;  %v17208_v51 = vmul.f32 %v21412_v23, %v17159_v15  ;;  %v17212_v1 = vmul.f32 %v21413_v3, %v17168_v53  ;;  %v17218_v46 = vsel %vm4548_vm1, %v5154_v12, %v5155_v43  ;;  %v21581_v53 = vld [vmem:[#allocation141_spill] sm:$0xff] }
 0x3fb   :  { %21479 = vst [vmem:[#allocation16_spill] sm:$0xff] %v17188_v41  ;;  %21482 = vst [vmem:[#allocation17_spill] sm:$0xff] %v17204_v22  ;;  %v17215_v41 = vsel %vm4548_vm1, %v5151_v8, %v5152_v37  ;;  %v17221_v7 = vsel %vm4548_vm1, %v5157_v28, %v5158_v32  ;;  %v17224_v26 = vsel %vm4548_vm1, %v5160_v25, %v5161_v10  ;;  %v5163_v22 = vrot.slane %v16899_v52, 2 }
 0x3fc   :  { %v5164_v23 = vrot.slane %v16917_v0, 2  ;;  %v5166_v15 = vrot.slane %v16908_v45, 2  ;;  %v5167_v3 = vrot.slane %v16926_v11, 2  ;;  %v5169_v37 = vrot.slane %v16935_v39, 2 }
 0x3fd   :  { %v5170_v8 = vrot.slane %v16963_v13, 2  ;;  %v5172_v43 = vrot.slane %v16944_v18, 2  ;;  %v5173_v32 = vrot.slane %v16972_v20, 2  ;;  %v5175_v12 = vrot.slane %v16981_v40, 2 }
 0x3fe   :  { %v5176_v25 = vrot.slane %v17004_v42, 2  ;;  %v5178_v52 = vrot.slane %v16990_v50, 2  ;;  %v5179_v0 = vrot.slane %v17008_v36, 2  ;;  %v5181_v45 = vrot.slane %v17012_v14, 2 }
 0x3ff   :  { %v5182_v11 = vrot.slane %v17020_v35, 2  ;;  %v5184_v39 = vrot.slane %v17016_v61, 2  ;;  %v5185_v13 = vrot.slane %v17024_v62, 2  ;;  %v5187_v18 = vrot.slane %v17028_v54, 2 }
 0x400   :  { %v5188_v20 = vrot.slane %v17036_v63, 2  ;;  %v5190_v40 = vrot.slane %v17032_v9, 2  ;;  %v5191_v42 = vrot.slane %v17040_v31, 2  ;;  %v5193_v50 = vrot.slane %v17044_v48, 2 }
 0x401   :  { %v5194_v36 = vrot.slane %v17052_v16, 2  ;;  %v5196_v14 = vrot.slane %v17048_v6, 2  ;;  %v5197_v35 = vrot.slane %v17056_v57, 2  ;;  %v5199_v61 = vrot.slane %v17060_v29, 2 }
 0x402   :  { %v5200_v62 = vrot.slane %v17068_v60, 2  ;;  %v5165_v54 = vsel %vm4548_vm1, %v5163_v22, %v5164_v23  ;;  %v5168_v63 = vsel %vm4548_vm1, %v5166_v15, %v5167_v3  ;;  %v5202_v9 = vrot.slane %v17064_v56, 2 }
 0x403   :  { %v5203_v31 = vrot.slane %v17072_v55, 2  ;;  %v5171_v48 = vsel %vm4548_vm1, %v5169_v37, %v5170_v8  ;;  %v5174_v16 = vsel %vm4548_vm1, %v5172_v43, %v5173_v32  ;;  %v5177_v6 = vsel %vm4548_vm1, %v5175_v12, %v5176_v25 }
 0x404   :  { %v5180_v57 = vsel %vm4548_vm1, %v5178_v52, %v5179_v0  ;;  %v5183_v29 = vsel %vm4548_vm1, %v5181_v45, %v5182_v11  ;;  %v5186_v60 = vsel %vm4548_vm1, %v5184_v39, %v5185_v13  ;;  %v5189_v10 = vsel %vm4548_vm1, %v5187_v18, %v5188_v20  ;;  %v21483_v45 = vld [vmem:[#allocation73_spill] sm:$0xff]  ;;  %v21484_v11 = vld [vmem:[#allocation148_spill] sm:$0xff]  ;;  %v21486_v13 = vld [vmem:[#allocation135_spill] sm:$0xff] }
 0x405   :  { %v5192_v15 = vsel %vm4548_vm1, %v5190_v40, %v5191_v42  ;;  %v5195_v56 = vsel %vm4548_vm1, %v5193_v50, %v5194_v36  ;;  %v5198_v55 = vsel %vm4548_vm1, %v5196_v14, %v5197_v35  ;;  %v5201_v28 = vsel %vm4548_vm1, %v5199_v61, %v5200_v62  ;;  %v21485_v39 = vld [vmem:[#allocation92_spill] sm:$0xff]  ;;  %v21487_v18 = vld [vmem:[#allocation22_spill] sm:$0xff]  ;;  %v21488_v20 = vld [vmem:[#allocation93_spill] sm:$0xff] }
 0x406   :  { %v5205_v22 = vrot.slane %v17076_v17, 2  ;;  %v5204_v23 = vsel %vm4548_vm1, %v5202_v9, %v5203_v31  ;;  %v5206_v3 = vrot.slane %v17084_v47, 2  ;;  %v5208_v37 = vrot.slane %v17080_v38, 2  ;;  %v21489_v40 = vld [vmem:[#allocation82_spill] sm:$0xff]  ;;  %v21490_v50 = vld [vmem:[#allocation16_spill] sm:$0xff]  ;;  %v21491_v31 = vld [vmem:[#allocation17_spill] sm:$0xff] }
 0x407   :  { %v5209_v8 = vrot.slane %v17088_v27, 2  ;;  %v5211_v43 = vrot.slane %v17092_v19, 2  ;;  %v5212_v32 = vrot.slane %v17100_v44, 2  ;;  %v5214_v12 = vrot.slane %v17096_v2, 2 }
 0x408   :  { %v5215_v25 = vrot.slane %v17104_v49, 2  ;;  %v5217_v52 = vrot.slane %v17108_v21, 2  ;;  %v5218_v17 = vrot.slane %v17116_v4, 2  ;;  %v5220_v0 = vrot.slane %v17112_v33, 2 }
 0x409   :  { %v5221_v47 = vrot.slane %v21483_v45, 2  ;;  %v5223_v38 = vrot.slane %v21484_v11, 2  ;;  %v5224_v27 = vrot.slane %v21485_v39, 2  ;;  %v5226_v19 = vrot.slane %v21486_v13, 2  ;;  %v21504_v13 = vld [vmem:[#allocation133_spill] sm:$0xff] }
 0x40a   :  { %v5227_v44 = vrot.slane %v21487_v18, 2  ;;  %v5229_v2 = vrot.slane %v21488_v20, 2  ;;  %v5230_v49 = vrot.slane %v17176_v59, 2  ;;  %v5232_v21 = vrot.slane %v21489_v40, 2  ;;  %v21510_v20 = vld [vmem:[#allocation136_spill] sm:$0xff] }
 0x40b   :  { %v5233_v4 = vrot.slane %v17180_v5, 2  ;;  %v5235_v33 = vrot.slane %v17184_v58, 2  ;;  %v5236_v42 = vrot.slane %v17192_v30, 2  ;;  %v5238_v36 = vrot.slane %v21490_v50, 2  ;;  %v21524_v50 = vld [vmem:[#allocation45_spill] sm:$0xff] }
 0x40c   :  { %v5239_v14 = vrot.slane %v17196_v34, 2  ;;  %v5207_v35 = vsel %vm4548_vm1, %v5205_v22, %v5206_v3  ;;  %v5210_v61 = vsel %vm4548_vm1, %v5208_v37, %v5209_v8  ;;  %v5241_v62 = vrot.slane %v17200_v24, 2 }
 0x40d   :  { %v5242_v59 = vrot.slane %v17208_v51, 2  ;;  %v5213_v9 = vsel %vm4548_vm1, %v5211_v43, %v5212_v32  ;;  %v5216_v5 = vsel %vm4548_vm1, %v5214_v12, %v5215_v25  ;;  %v5244_v58 = vrot.slane %v21491_v31, 2  ;;  %v21492_v32 = vld [vmem:[#allocation111_spill] sm:$0xff]  ;;  %v21494_v12 = vld [vmem:[#allocation112_spill] sm:$0xff] }
 0x40e   :  { %v5245_v30 = vrot.slane %v17212_v1, 2  ;;  %v5219_v45 = vsel %vm4548_vm1, %v5217_v52, %v5218_v17  ;;  %v5222_v34 = vsel %vm4548_vm1, %v5220_v0, %v5221_v47  ;;  %v5225_v22 = vsel %vm4548_vm1, %v5223_v38, %v5224_v27  ;;  %v21496_v52 = vld [vmem:[#allocation117_spill] sm:$0xff]  ;;  %v21498_v47 = vld [vmem:[#allocation118_spill] sm:$0xff]  ;;  %v21500_v38 = vld [vmem:[#allocation132_spill] sm:$0xff] }
 0x40f   :  { %v5228_v3 = vsel %vm4548_vm1, %v5226_v19, %v5227_v44  ;;  %v5231_v24 = vsel %vm4548_vm1, %v5229_v2, %v5230_v49  ;;  %v5234_v51 = vsel %vm4548_vm1, %v5232_v21, %v5233_v4  ;;  %v5237_v37 = vsel %vm4548_vm1, %v5235_v33, %v5236_v42  ;;  %v21502_v27 = vld [vmem:[#allocation138_spill] sm:$0xff] }
 0x410   :  { %v5240_v8 = vsel %vm4548_vm1, %v5238_v36, %v5239_v14  ;;  %v5243_v43 = vsel %vm4548_vm1, %v5241_v62, %v5242_v59  ;;  %v17311_v1 = vadd.f32 %v17215_v41, %v21492_v32  ;;  %v17315_v25 = vadd.f32 %v17218_v46, %v21494_v12  ;;  %v21506_v46 = vld [vmem:[#allocation139_spill] sm:$0xff] }
 0x411   :  { %v17319_v17 = vadd.f32 %v17221_v7, %v21496_v52  ;;  %v5246_v0 = vsel %vm4548_vm1, %v5244_v58, %v5245_v30  ;;  %v17324_v11 = vadd.f32 %v17224_v26, %v21498_v47  ;;  %v17327_v39 = vadd.f32 %v5165_v54, %v21500_v38  ;;  %v21508_v7 = vld [vmem:[#allocation134_spill] sm:$0xff]  ;;  %v6568_v26 = vld [vmem:[%s18684_s1 + $0x34] ss:$8 sm:$0x3]  ;;  %v21512_v54 = vld [vmem:[#allocation81_spill] sm:$0xff] }
 0x412   :  { %21493 = vst [vmem:[#allocation41_spill] sm:$0xff] %v17311_v1  ;;  %21495 = vst [vmem:[#allocation31_spill] sm:$0xff] %v17315_v25  ;;  %v17330_v41 = vadd.f32 %v5168_v63, %v21502_v27  ;;  %v17333_v19 = vadd.f32 %v5171_v48, %v21504_v13  ;;  %v17336_v18 = vadd.f32 %v5174_v16, %v21506_v46  ;;  %v21514_v63 = vld [vmem:[#allocation91_spill] sm:$0xff]  ;;  %v21542_v47 = vld [vmem:[#allocation29_spill] sm:$0xff] }
 0x413   :  { %21497 = vst [vmem:[#allocation62_spill] sm:$0xff] %v17319_v17  ;;  %21499 = vst [vmem:[#allocation60_spill] sm:$0xff] %v17324_v11  ;;  %v17339_v44 = vadd.f32 %v5177_v6, %v21508_v7  ;;  %v17342_v2 = vadd.f32 %v5180_v57, %v21510_v20  ;;  %v17348_v49 = vadd.f32 %v5183_v29, %v21512_v54  ;;  %v21516_v48 = vld [vmem:[#allocation83_spill] sm:$0xff]  ;;  %v21520_v6 = vld [vmem:[#allocation70_spill] sm:$0xff] }
 0x414   :  { %21501 = vst [vmem:[#allocation63_spill] sm:$0xff] %v17327_v39  ;;  %21503 = vst [vmem:[#allocation123_spill] sm:$0xff] %v17330_v41  ;;  %v17351_v40 = vadd.f32 %v5186_v60, %v21514_v63  ;;  %v17354_v21 = vadd.f32 %v5189_v10, %v21516_v48  ;;  %v21518_v16 = vld [vmem:[#allocation55_spill] sm:$0xff]  ;;  %v17360_v33 = vadd.f32 %v5195_v56, %v21520_v6  ;;  %v21522_v57 = vld [vmem:[#allocation25_spill] sm:$0xff] }
 0x415   :  { %21505 = vst [vmem:[#allocation122_spill] sm:$0xff] %v17333_v19  ;;  %21507 = vst [vmem:[#allocation124_spill] sm:$0xff] %v17336_v18  ;;  %v17357_v4 = vadd.f32 %v5192_v15, %v21518_v16  ;;  %v17363_v42 = vadd.f32 %v5198_v55, %v21522_v57  ;;  %v17366_v36 = vadd.f32 %v5201_v28, %v21524_v50  ;;  %v21526_v29 = vld [vmem:[#allocation130_spill] sm:$0xff]  ;;  %v21528_v60 = vld [vmem:[#allocation103_spill] sm:$0xff] }
 0x416   :  { %21509 = vst [vmem:[#allocation34_spill] sm:$0xff] %v17339_v44  ;;  %21511 = vst [vmem:[#allocation38_spill] sm:$0xff] %v17342_v2  ;;  %v17369_v14 = vadd.f32 %v5204_v23, %v21526_v29  ;;  %v17372_v62 = vadd.f32 %v5207_v35, %v21528_v60  ;;  %v21530_v10 = vld [vmem:[#allocation104_spill] sm:$0xff]  ;;  %v21532_v15 = vld [vmem:[#allocation6_spill] sm:$0xff]  ;;  %v17399_v38 = vadd.f32 %v5225_v22, %v21542_v47 }
 0x417   :  { %21513 = vst [vmem:[#allocation53_spill] sm:$0xff] %v17348_v49  ;;  %21515 = vst [vmem:[#allocation19_spill] sm:$0xff] %v17351_v40  ;;  %v17375_v59 = vadd.f32 %v5210_v61, %v21530_v10  ;;  %v17378_v31 = vrot.slane %v6568_v26, %v21532_v15  ;;  %v21533_v56 = vld [vmem:[#allocation7_spill] sm:$0xff]  ;;  %v21534_v55 = vld [vmem:[#allocation64_spill] sm:$0xff] }
 0x418   :  { %21517 = vst [vmem:[#allocation61_spill] sm:$0xff] %v17354_v21  ;;  %21519 = vst [vmem:[#allocation78_spill] sm:$0xff] %v17357_v4  ;;  %v17381_v58 = vrot.slane %v6568_v26, %v21533_v56  ;;  %v17384_v30 = vadd.f32 %v5213_v9, %v21534_v55  ;;  %v21536_v28 = vld [vmem:[#allocation65_spill] sm:$0xff]  ;;  %v21538_v23 = vld [vmem:[#allocation99_spill] sm:$0xff] }
 0x419   :  { %21521 = vst [vmem:[#allocation13_spill] sm:$0xff] %v17360_v33  ;;  %21523 = vst [vmem:[#allocation11_spill] sm:$0xff] %v17363_v42  ;;  %v17387_v32 = vadd.f32 %v5216_v5, %v21536_v28  ;;  %v17390_v12 = vadd.f32 %v5219_v45, %v21538_v23  ;;  %v21540_v35 = vld [vmem:[#allocation101_spill] sm:$0xff]  ;;  %v21544_v27 = vld [vmem:[#allocation32_spill] sm:$0xff] }
 0x41a   :  { %21525 = vst [vmem:[#allocation35_spill] sm:$0xff] %v17366_v36  ;;  %21527 = vst [vmem:[#allocation57_spill] sm:$0xff] %v17369_v14  ;;  %v17393_v52 = vadd.f32 %v5222_v34, %v21540_v35  ;;  %v6569_v61 = vld [vmem:[%s18684_s1 + $0x44] ss:$8 sm:$0x3]  ;;  %v17402_v13 = vadd.f32 %v5228_v3, %v21544_v27  ;;  %v21548_v5 = vld [vmem:[#allocation40_spill] sm:$0xff] }
 0x41b   :  { %21529 = vst [vmem:[#allocation59_spill] sm:$0xff] %v17372_v62  ;;  %21531 = vst [vmem:[#allocation58_spill] sm:$0xff] %v17375_v59  ;;  %v21546_v9 = vld [vmem:[#allocation30_spill] sm:$0xff]  ;;  %v17408_v7 = vadd.f32 %v5234_v51, %v21548_v5  ;;  %v21552_v34 = vld [vmem:[#allocation27_spill] sm:$0xff] }
 0x41c   :  { %21535 = vst [vmem:[#allocation10_spill] sm:$0xff] %v17384_v30  ;;  %21537 = vst [vmem:[#allocation121_spill] sm:$0xff] %v17387_v32  ;;  %v17405_v46 = vadd.f32 %v5231_v24, %v21546_v9  ;;  %v21550_v45 = vld [vmem:[#allocation26_spill] sm:$0xff]  ;;  %v17414_v26 = vadd.f32 %v5240_v8, %v21552_v34  ;;  %v21556_v22 = vld [vmem:[#allocation155_spill] sm:$0xff]  ;;  %v17434_v8 = vrot.slane %v6569_v61, %v21533_v56 }
 0x41d   :  { %21539 = vst [vmem:[#allocation125_spill] sm:$0xff] %v17390_v12  ;;  %21541 = vst [vmem:[#allocation126_spill] sm:$0xff] %v17393_v52  ;;  %v17411_v20 = vadd.f32 %v5237_v37, %v21550_v45  ;;  %v21554_v54 = vld [vmem:[#allocation154_spill] sm:$0xff]  ;;  %v17420_v48 = vadd.f32 %v5246_v0, %v21556_v22  ;;  %v21558_v3 = vld [vmem:[#allocation96_spill] sm:$0xff]  ;;  %v17431_v37 = vrot.slane %v6569_v61, %v21532_v15 }
 0x41e   :  { %21543 = vst [vmem:[#allocation86_spill] sm:$0xff] %v17399_v38  ;;  %21545 = vst [vmem:[#allocation143_spill] sm:$0xff] %v17402_v13  ;;  %v17417_v63 = vadd.f32 %v5243_v43, %v21554_v54  ;;  %v17424_v16 = vmul.f32 %v17378_v31, %v21558_v3  ;;  %v21559_v24 = vld [vmem:[#allocation98_spill] sm:$0xff]  ;;  %v21562_v6 = vld [vmem:[#allocation75_spill] sm:$0xff] }
 0x41f   :  { %21547 = vst [vmem:[#allocation144_spill] sm:$0xff] %v17405_v46  ;;  %21549 = vst [vmem:[#allocation152_spill] sm:$0xff] %v17408_v7  ;;  %v17428_v51 = vmul.f32 %v17381_v58, %v21559_v24  ;;  %v17438_v43 = vmul.f32 %v17378_v31, %v21562_v6  ;;  %v21563_v0 = vld [vmem:[#allocation33_spill] sm:$0xff]  ;;  %v21564_v50 = vld [vmem:[#allocation8_spill] sm:$0xff] }
 0x420   :  { %21551 = vst [vmem:[#allocation142_spill] sm:$0xff] %v17411_v20  ;;  %21553 = vst [vmem:[#allocation73_spill] sm:$0xff] %v17414_v26  ;;  %v17442_v57 = vmul.f32 %v17381_v58, %v21563_v0  ;;  %v17446_v29 = vmul.f32 %v17378_v31, %v21564_v50  ;;  %v21565_v60 = vld [vmem:[#allocation39_spill] sm:$0xff]  ;;  %v21566_v55 = vld [vmem:[#allocation37_spill] sm:$0xff]  ;;  %v5452_v1 = vrot.slane %v17424_v16, 2 }
 0x421   :  { %21555 = vst [vmem:[#allocation148_spill] sm:$0xff] %v17417_v63  ;;  %21557 = vst [vmem:[#allocation92_spill] sm:$0xff] %v17420_v48  ;;  %v17450_v10 = vmul.f32 %v17381_v58, %v21565_v60  ;;  %v17454_v28 = vmul.f32 %v17378_v31, %v21566_v55  ;;  %v21567_v23 = vld [vmem:[#allocation44_spill] sm:$0xff]  ;;  %v21568_v61 = vld [vmem:[#allocation43_spill] sm:$0xff] }
 0x422   :  { %21560 = vst [vmem:[#allocation135_spill] sm:$0xff] %v17431_v37  ;;  %21561 = vst [vmem:[#allocation22_spill] sm:$0xff] %v17434_v8  ;;  %v17458_v35 = vmul.f32 %v17381_v58, %v21567_v23  ;;  %v17462_v47 = vmul.f32 %v17378_v31, %v21568_v61  ;;  %v21569_v27 = vld [vmem:[#allocation46_spill] sm:$0xff]  ;;  %v21570_v5 = vld [vmem:[#allocation108_spill] sm:$0xff]  ;;  %v17526_v8 = vmul.f32 %v17381_v58, %v21581_v53 }
 0x423   :  { %v17466_v9 = vmul.f32 %v17381_v58, %v21569_v27  ;;  %v17470_v45 = vmul.f32 %v17378_v31, %v21570_v5  ;;  %v21571_v34 = vld [vmem:[#allocation113_spill] sm:$0xff]  ;;  %v21573_v24 = vld [vmem:[#allocation114_spill] sm:$0xff]  ;;  %v21574_v60 = vld [vmem:[#allocation79_spill] sm:$0xff] }
 0x424   :  { %v17474_v54 = vmul.f32 %v17381_v58, %v21571_v34  ;;  %v21572_v22 = vld [vmem:[#allocation109_spill] sm:$0xff]  ;;  %v17482_v6 = vmul.f32 %v17381_v58, %v21573_v24  ;;  %v4328_v50 = vld [vmem:[%s18683_s0 + $0x388] sm:$0xfc]  ;;  %v17492_v55 = vmul.f32 %v17378_v31, %v21574_v60  ;;  %v21575_v23 = vld [vmem:[#allocation80_spill] sm:$0xff] }
 0x425   :  { %v17478_v3 = vmul.f32 %v17378_v31, %v21572_v22  ;;  %v4327_v0 = vld [vmem:[%s18683_s0 + $0x380] sm:$0xfc]  ;;  %v17496_v61 = vmul.f32 %v17381_v58, %v21575_v23  ;;  %v21576_v27 = vld [vmem:[#allocation66_spill] sm:$0xff]  ;;  %v21577_v34 = vld [vmem:[#allocation147_spill] sm:$0xff] }
 0x426   :  { %v17500_v5 = vmul.f32 %v17378_v31, %v21576_v27  ;;  %v17504_v22 = vmul.f32 %v17381_v58, %v21577_v34  ;;  %v4329_v24 = vld [vmem:[%s18683_s0 + $0x390] sm:$0x3]  ;;  %v4330_v60 = vld [vmem:[%s18683_s0 + $0x398] sm:$0x3]  ;;  %v21578_v56 = vld [vmem:[#allocation153_spill] sm:$0xff]  ;;  %v17553_v38 = vmul.f32 %v17378_v31, %v4327_v0 }
 0x427   :  { %v17514_v23 = vmul.f32 %v17378_v31, %v21578_v56  ;;  %v21579_v15 = vld [vmem:[#allocation74_spill] sm:$0xff]  ;;  %v21580_v63 = vld [vmem:[#allocation140_spill] sm:$0xff]  ;;  %v21582_v37 = vld [vmem:[#allocation49_spill] sm:$0xff] }
 0x428   :  { %v17518_v27 = vmul.f32 %v17381_v58, %v21579_v15  ;;  %v17522_v34 = vmul.f32 %v17378_v31, %v21580_v63  ;;  %v17530_v48 = vmul.f32 %v17378_v31, %v21582_v37  ;;  %v21583_v26 = vld [vmem:[#allocation94_spill] sm:$0xff]  ;;  %v21584_v20 = vld [vmem:[#allocation95_spill] sm:$0xff]  ;;  %v21585_v7 = vld [vmem:[#allocation97_spill] sm:$0xff] }
 0x429   :  { %v17534_v56 = vmul.f32 %v17381_v58, %v21583_v26  ;;  %v17538_v15 = vmul.f32 %v17378_v31, %v21584_v20  ;;  %v17542_v63 = vmul.f32 %v17381_v58, %v21585_v7  ;;  %v21586_v46 = vld [vmem:[#allocation100_spill] sm:$0xff]  ;;  %v21587_v13 = vld [vmem:[#allocation102_spill] sm:$0xff]  ;;  %v17556_v26 = vmul.f32 %v17381_v58, %v4328_v50  ;;  %v21591_v50 = vld [vmem:[#allocation21_spill] sm:$0xff] }
 0x42a   :  { %v17546_v53 = vmul.f32 %v17378_v31, %v21586_v46  ;;  %v17550_v37 = vmul.f32 %v17381_v58, %v21587_v13  ;;  %v17559_v20 = vmul.f32 %v17378_v31, %v4329_v24  ;;  %v17562_v7 = vmul.f32 %v17381_v58, %v4330_v60  ;;  %v21588_v52 = vld [vmem:[#allocation12_spill] sm:$0xff]  ;;  %v21592_v24 = vld [vmem:[#allocation119_spill] sm:$0xff]  ;;  %v21596_v36 = vld [vmem:[#allocation85_spill] sm:$0xff] }
 0x42b   :  { %v17566_v46 = vmul.f32 %v17378_v31, %v21588_v52  ;;  %v21589_v12 = vld [vmem:[#allocation28_spill] sm:$0xff]  ;;  %v17578_v30 = vmul.f32 %v17381_v58, %v21591_v50  ;;  %v17582_v60 = vmul.f32 %v17378_v31, %v21592_v24  ;;  %v21593_v59 = vld [vmem:[#allocation127_spill] sm:$0xff]  ;;  %v17598_v50 = vmul.f32 %v17378_v31, %v21596_v36  ;;  %v21597_v42 = vld [vmem:[#allocation145_spill] sm:$0xff] }
 0x42c   :  { %v17570_v13 = vmul.f32 %v17381_v58, %v21589_v12  ;;  %v21590_v32 = vld [vmem:[#allocation20_spill] sm:$0xff]  ;;  %v17586_v52 = vmul.f32 %v17381_v58, %v21593_v59  ;;  %v17602_v24 = vmul.f32 %v17381_v58, %v21597_v42  ;;  %v21598_v33 = vld [vmem:[#allocation23_spill] sm:$0xff]  ;;  %v21599_v4 = vld [vmem:[#allocation146_spill] sm:$0xff] }
 0x42d   :  { %v17574_v0 = vmul.f32 %v17378_v31, %v21590_v32  ;;  %v21594_v62 = vld [vmem:[#allocation120_spill] sm:$0xff]  ;;  %v17606_v59 = vmul.f32 %v17378_v31, %v21598_v33  ;;  %v21600_v21 = vld [vmem:[#allocation149_spill] sm:$0xff]  ;;  %v21601_v40 = vld [vmem:[#allocation150_spill] sm:$0xff] }
 0x42e   :  { %v17590_v12 = vmul.f32 %v17378_v31, %v21594_v62  ;;  %v21595_v14 = vld [vmem:[#allocation24_spill] sm:$0xff]  ;;  %v17610_v62 = vmul.f32 %v17381_v58, %v21599_v4  ;;  %v17618_v36 = vmul.f32 %v17381_v58, %v21601_v40  ;;  %v21602_v49 = vld [vmem:[#allocation47_spill] sm:$0xff]  ;;  %v4403_v40 = vld [vmem:[%s18683_s0 + $0x880] sm:$0xfc] }
 0x42f   :  { %v17594_v32 = vmul.f32 %v17381_v58, %v21595_v14  ;;  %v17614_v14 = vmul.f32 %v17378_v31, %v21600_v21  ;;  %v17622_v42 = vmul.f32 %v17378_v31, %v21602_v49  ;;  %v21603_v2 = vld [vmem:[#allocation67_spill] sm:$0xff]  ;;  %v21605_v44 = vld [vmem:[#allocation52_spill] sm:$0xff]  ;;  %v4404_v49 = vld [vmem:[%s18683_s0 + $0x888] sm:$0xfc] }
 0x430   :  { %v17626_v33 = vmul.f32 %v17381_v58, %v21603_v2  ;;  %v17630_v4 = vmul.f32 %v17378_v31, %v21605_v44  ;;  %v21607_v18 = vld [vmem:[#allocation68_spill] sm:$0xff]  ;;  %v21609_v19 = vld [vmem:[#allocation69_spill] sm:$0xff]  ;;  %v21611_v41 = vld [vmem:[#allocation50_spill] sm:$0xff] }
 0x431   :  { %v17634_v21 = vmul.f32 %v17381_v58, %v21607_v18  ;;  %v17644_v2 = vmul.f32 %v17378_v31, %v21609_v19  ;;  %v17648_v44 = vmul.f32 %v17381_v58, %v21611_v41  ;;  %v21613_v39 = vld [vmem:[#allocation84_spill] sm:$0xff]  ;;  %v21615_v11 = vld [vmem:[#allocation89_spill] sm:$0xff]  ;;  %v4405_v25 = vld [vmem:[%s18683_s0 + $0x890] sm:$0x3]  ;;  %v5453_v19 = vrot.slane %v17438_v43, 2 }
 0x432   :  { %21604 = vst [vmem:[#allocation93_spill] sm:$0xff] %v17626_v33  ;;  %21606 = vst [vmem:[#allocation82_spill] sm:$0xff] %v17630_v4  ;;  %v17652_v18 = vmul.f32 %v17378_v31, %v21613_v39  ;;  %v17656_v17 = vmul.f32 %v17381_v58, %v21615_v11  ;;  %v5456_v41 = vrot.slane %v17442_v57, 2  ;;  %v4406_v39 = vld [vmem:[%s18683_s0 + $0x898] sm:$0x3]  ;;  %v5459_v11 = vrot.slane %v17454_v28, 2 }
 0x433   :  { %21608 = vst [vmem:[#allocation16_spill] sm:$0xff] %v17634_v21  ;;  %21610 = vst [vmem:[#allocation17_spill] sm:$0xff] %v17644_v2  ;;  %v5455_v21 = vrot.slane %v17428_v51, 2  ;;  %v21617_v2 = vld [vmem:[#allocation90_spill] sm:$0xff]  ;;  %v21619_v43 = vld [vmem:[#allocation72_spill] sm:$0xff] }
 0x434   :  { %21612 = vst [vmem:[#allocation111_spill] sm:$0xff] %v17648_v44  ;;  %21614 = vst [vmem:[#allocation112_spill] sm:$0xff] %v17652_v18  ;;  %v5458_v18 = vrot.slane %v17446_v29, 2  ;;  %v5462_v44 = vrot.slane %v17458_v35, 2  ;;  %v17674_v16 = vmul.f32 %v17378_v31, %v21617_v2  ;;  %v17678_v51 = vmul.f32 %v17381_v58, %v21619_v43  ;;  %v21620_v57 = vld [vmem:[#allocation71_spill] sm:$0xff]  ;;  %v21621_v33 = vld [vmem:[#allocation128_spill] sm:$0xff] }
 0x435   :  { %21616 = vst [vmem:[#allocation117_spill] sm:$0xff] %v17656_v17  ;;  %v5461_v17 = vrot.slane %v17450_v10, 2  ;;  %v17682_v4 = vmul.f32 %v17378_v31, %v21620_v57  ;;  %v17686_v29 = vmul.f32 %v17381_v58, %v21621_v33  ;;  %v21623_v28 = vld [vmem:[#allocation105_spill] sm:$0xff]  ;;  %v21624_v35 = vld [vmem:[#allocation110_spill] sm:$0xff]  ;;  %v17700_v43 = vmul.f32 %v17381_v58, %v4404_v49 }
 0x436   :  { %21618 = vst [vmem:[#allocation118_spill] sm:$0xff] %v17674_v16  ;;  %v17690_v10 = vmul.f32 %v17378_v31, %v21623_v28  ;;  %v17694_v2 = vmul.f32 %v17381_v58, %v21624_v35  ;;  %v17697_v16 = vmul.f32 %v17378_v31, %v4403_v40  ;;  %v17703_v57 = vmul.f32 %v17378_v31, %v4405_v25 }
 0x437   :  { %21622 = vst [vmem:[#allocation132_spill] sm:$0xff] %v17686_v29  ;;  %v17706_v33 = vmul.f32 %v17381_v58, %v4406_v39  ;;  %v17709_v29 = vsel %vm4548_vm1, %v5452_v1, %v5453_v19  ;;  %v17712_v28 = vsel %vm4548_vm1, %v5455_v21, %v5456_v41  ;;  %v17715_v35 = vsel %vm4548_vm1, %v5458_v18, %v5459_v11 }
 0x438   :  { %v17718_v40 = vsel %vm4548_vm1, %v5461_v17, %v5462_v44  ;;  %v5464_v49 = vrot.slane %v17462_v47, 2  ;;  %v5465_v25 = vrot.slane %v17470_v45, 2  ;;  %v5467_v31 = vrot.slane %v17466_v9, 2 }
 0x439   :  { %v5468_v58 = vrot.slane %v17474_v54, 2  ;;  %v5470_v1 = vrot.slane %v17478_v3, 2  ;;  %v5471_v19 = vrot.slane %v17492_v55, 2  ;;  %v5473_v21 = vrot.slane %v17482_v6, 2 }
 0x43a   :  { %v5474_v18 = vrot.slane %v17496_v61, 2  ;;  %v5476_v41 = vrot.slane %v17500_v5, 2  ;;  %v5477_v17 = vrot.slane %v17514_v23, 2  ;;  %v5479_v47 = vrot.slane %v17504_v22, 2 }
 0x43b   :  { %v5480_v45 = vrot.slane %v17518_v27, 2  ;;  %v5482_v9 = vrot.slane %v17522_v34, 2  ;;  %v5483_v54 = vrot.slane %v17530_v48, 2  ;;  %v5485_v3 = vrot.slane %v17526_v8, 2 }
 0x43c   :  { %v5486_v55 = vrot.slane %v17534_v56, 2  ;;  %v5488_v6 = vrot.slane %v17538_v15, 2  ;;  %v5489_v61 = vrot.slane %v17546_v53, 2  ;;  %v5491_v5 = vrot.slane %v17542_v63, 2 }
 0x43d   :  { %v5492_v23 = vrot.slane %v17550_v37, 2  ;;  %v5494_v22 = vrot.slane %v17553_v38, 2  ;;  %v5495_v27 = vrot.slane %v17559_v20, 2  ;;  %v5497_v34 = vrot.slane %v17556_v26, 2 }
 0x43e   :  { %v5498_v48 = vrot.slane %v17562_v7, 2  ;;  %v5500_v8 = vrot.slane %v17566_v46, 2  ;;  %v5501_v56 = vrot.slane %v17574_v0, 2  ;;  %v5466_v15 = vsel %vm4548_vm1, %v5464_v49, %v5465_v25 }
 0x43f   :  { %v5469_v53 = vsel %vm4548_vm1, %v5467_v31, %v5468_v58  ;;  %v5503_v63 = vrot.slane %v17570_v13, 2  ;;  %v5504_v37 = vrot.slane %v17578_v30, 2  ;;  %v5472_v38 = vsel %vm4548_vm1, %v5470_v1, %v5471_v19 }
 0x440   :  { %v5475_v20 = vsel %vm4548_vm1, %v5473_v21, %v5474_v18  ;;  %v5478_v26 = vsel %vm4548_vm1, %v5476_v41, %v5477_v17  ;;  %v5481_v7 = vsel %vm4548_vm1, %v5479_v47, %v5480_v45  ;;  %v5484_v46 = vsel %vm4548_vm1, %v5482_v9, %v5483_v54  ;;  %v21625_v45 = vld [vmem:[#allocation93_spill] sm:$0xff]  ;;  %v21626_v9 = vld [vmem:[#allocation82_spill] sm:$0xff] }
 0x441   :  { %v5487_v0 = vsel %vm4548_vm1, %v5485_v3, %v5486_v55  ;;  %v5490_v44 = vsel %vm4548_vm1, %v5488_v6, %v5489_v61  ;;  %v5493_v39 = vsel %vm4548_vm1, %v5491_v5, %v5492_v23  ;;  %v5496_v13 = vsel %vm4548_vm1, %v5494_v22, %v5495_v27  ;;  %v21627_v54 = vld [vmem:[#allocation17_spill] sm:$0xff]  ;;  %v21628_v3 = vld [vmem:[#allocation16_spill] sm:$0xff]  ;;  %v21629_v55 = vld [vmem:[#allocation111_spill] sm:$0xff] }
 0x442   :  { %v5499_v30 = vsel %vm4548_vm1, %v5497_v34, %v5498_v48  ;;  %v5502_v11 = vsel %vm4548_vm1, %v5500_v8, %v5501_v56  ;;  %v5506_v49 = vrot.slane %v17582_v60, 2  ;;  %v5505_v25 = vsel %vm4548_vm1, %v5503_v63, %v5504_v37  ;;  %v21630_v6 = vld [vmem:[#allocation112_spill] sm:$0xff]  ;;  %v21631_v61 = vld [vmem:[#allocation118_spill] sm:$0xff]  ;;  %v21632_v5 = vld [vmem:[#allocation117_spill] sm:$0xff] }
 0x443   :  { %v5507_v31 = vrot.slane %v17590_v12, 2  ;;  %v5509_v58 = vrot.slane %v17586_v52, 2  ;;  %v5510_v1 = vrot.slane %v17594_v32, 2  ;;  %v5512_v19 = vrot.slane %v17598_v50, 2  ;;  %v21633_v22 = vld [vmem:[#allocation132_spill] sm:$0xff] }
 0x444   :  { %v5513_v21 = vrot.slane %v17606_v59, 2  ;;  %v5515_v18 = vrot.slane %v17602_v24, 2  ;;  %v5516_v41 = vrot.slane %v17610_v62, 2  ;;  %v5518_v17 = vrot.slane %v17614_v14, 2 }
 0x445   :  { %v5519_v60 = vrot.slane %v17622_v42, 2  ;;  %v5521_v47 = vrot.slane %v17618_v36, 2  ;;  %v5522_v12 = vrot.slane %v21625_v45, 2  ;;  %v5524_v52 = vrot.slane %v21626_v9, 2  ;;  %v21639_v9 = vld [vmem:[#allocation63_spill] sm:$0xff] }
 0x446   :  { %v5525_v32 = vrot.slane %v21627_v54, 2  ;;  %v5527_v50 = vrot.slane %v21628_v3, 2  ;;  %v5528_v59 = vrot.slane %v21629_v55, 2  ;;  %v5530_v24 = vrot.slane %v21630_v6, 2  ;;  %v21641_v54 = vld [vmem:[#allocation123_spill] sm:$0xff] }
 0x447   :  { %v5531_v62 = vrot.slane %v21631_v61, 2  ;;  %v5533_v14 = vrot.slane %v21632_v5, 2  ;;  %v5534_v42 = vrot.slane %v17678_v51, 2  ;;  %v5536_v36 = vrot.slane %v17682_v4, 2 }
 0x448   :  { %v5537_v23 = vrot.slane %v17690_v10, 2  ;;  %v5539_v27 = vrot.slane %v21633_v22, 2  ;;  %v5540_v34 = vrot.slane %v17694_v2, 2  ;;  %v5508_v48 = vsel %vm4548_vm1, %v5506_v49, %v5507_v31 }
 0x449   :  { %v5511_v8 = vsel %vm4548_vm1, %v5509_v58, %v5510_v1  ;;  %v5542_v56 = vrot.slane %v17697_v16, 2  ;;  %v5543_v63 = vrot.slane %v17703_v57, 2  ;;  %v5514_v37 = vsel %vm4548_vm1, %v5512_v19, %v5513_v21  ;;  %v21636_v21 = vld [vmem:[#allocation31_spill] sm:$0xff] }
 0x44a   :  { %v5517_v51 = vsel %vm4548_vm1, %v5515_v18, %v5516_v41  ;;  %v5545_v4 = vrot.slane %v17700_v43, 2  ;;  %v5546_v10 = vrot.slane %v17706_v33, 2  ;;  %v5520_v45 = vsel %vm4548_vm1, %v5518_v17, %v5519_v60  ;;  %v21635_v33 = vld [vmem:[#allocation41_spill] sm:$0xff]  ;;  %v21637_v41 = vld [vmem:[#allocation62_spill] sm:$0xff] }
 0x44b   :  { %v5523_v2 = vsel %vm4548_vm1, %v5521_v47, %v5522_v12  ;;  %v5526_v49 = vsel %vm4548_vm1, %v5524_v52, %v5525_v32  ;;  %v5529_v31 = vsel %vm4548_vm1, %v5527_v50, %v5528_v59  ;;  %v5532_v16 = vsel %vm4548_vm1, %v5530_v24, %v5531_v62  ;;  %v21638_v47 = vld [vmem:[#allocation60_spill] sm:$0xff]  ;;  %v21642_v32 = vld [vmem:[#allocation122_spill] sm:$0xff] }
 0x44c   :  { %v5535_v57 = vsel %vm4548_vm1, %v5533_v14, %v5534_v42  ;;  %v5538_v58 = vsel %vm4548_vm1, %v5536_v36, %v5537_v23  ;;  %v5541_v1 = vsel %vm4548_vm1, %v5539_v27, %v5540_v34  ;;  %v17803_v43 = vsel %vm4548_vm1, %v5542_v56, %v5543_v63  ;;  %v21648_v59 = vld [vmem:[#allocation38_spill] sm:$0xff] }
 0x44d   :  { %21634 = vst [vmem:[#allocation138_spill] sm:$0xff] %v17803_v43  ;;  %v17807_v19 = vadd.f32 %v17709_v29, %v21635_v33  ;;  %v17811_v18 = vadd.f32 %v17712_v28, %v21636_v21  ;;  %v17815_v17 = vadd.f32 %v17715_v35, %v21637_v41  ;;  %v5547_v60 = vsel %vm4548_vm1, %v5545_v4, %v5546_v10  ;;  %v21644_v28 = vld [vmem:[#allocation124_spill] sm:$0xff]  ;;  %v21646_v35 = vld [vmem:[#allocation34_spill] sm:$0xff] }
 0x44e   :  { %v17820_v12 = vadd.f32 %v17718_v40, %v21638_v47  ;;  %v17823_v52 = vadd.f32 %v5466_v15, %v21639_v9  ;;  %v17826_v29 = vadd.f32 %v5469_v53, %v21641_v54  ;;  %v17829_v3 = vadd.f32 %v5472_v38, %v21642_v32  ;;  %v21650_v40 = vld [vmem:[#allocation53_spill] sm:$0xff]  ;;  %v21652_v15 = vld [vmem:[#allocation19_spill] sm:$0xff]  ;;  %v21656_v38 = vld [vmem:[#allocation78_spill] sm:$0xff] }
 0x44f   :  { %v17832_v50 = vadd.f32 %v5475_v20, %v21644_v28  ;;  %v17835_v55 = vadd.f32 %v5478_v26, %v21646_v35  ;;  %v17838_v6 = vadd.f32 %v5481_v7, %v21648_v59  ;;  %v17841_v24 = vadd.f32 %v5484_v46, %v21650_v40  ;;  %v21654_v53 = vld [vmem:[#allocation61_spill] sm:$0xff]  ;;  %v21660_v26 = vld [vmem:[#allocation11_spill] sm:$0xff]  ;;  %v21695_v35 = vld [vmem:[#allocation76_spill] sm:$0xff] }
 0x450   :  { %21640 = vst [vmem:[#allocation133_spill] sm:$0xff] %v17823_v52  ;;  %21643 = vst [vmem:[#allocation139_spill] sm:$0xff] %v17829_v3  ;;  %v17844_v61 = vadd.f32 %v5487_v0, %v21652_v15  ;;  %v17847_v62 = vadd.f32 %v5490_v44, %v21654_v53  ;;  %v17850_v5 = vadd.f32 %v5493_v39, %v21656_v38  ;;  %v21658_v20 = vld [vmem:[#allocation13_spill] sm:$0xff]  ;;  %v21662_v7 = vld [vmem:[#allocation35_spill] sm:$0xff] }
 0x451   :  { %21645 = vst [vmem:[#allocation134_spill] sm:$0xff] %v17832_v50  ;;  %21647 = vst [vmem:[#allocation136_spill] sm:$0xff] %v17835_v55  ;;  %v17853_v14 = vadd.f32 %v5496_v13, %v21658_v20  ;;  %v17856_v42 = vadd.f32 %v5499_v30, %v21660_v26  ;;  %v17859_v36 = vadd.f32 %v5502_v11, %v21662_v7  ;;  %v21664_v46 = vld [vmem:[#allocation57_spill] sm:$0xff]  ;;  %v21666_v0 = vld [vmem:[#allocation59_spill] sm:$0xff] }
 0x452   :  { %21649 = vst [vmem:[#allocation81_spill] sm:$0xff] %v17838_v6  ;;  %21651 = vst [vmem:[#allocation91_spill] sm:$0xff] %v17841_v24  ;;  %v17862_v23 = vadd.f32 %v5505_v25, %v21664_v46  ;;  %v17865_v22 = vadd.f32 %v5508_v48, %v21666_v0  ;;  %v21668_v44 = vld [vmem:[#allocation58_spill] sm:$0xff]  ;;  %v21672_v13 = vld [vmem:[#allocation121_spill] sm:$0xff] }
 0x453   :  { %21653 = vst [vmem:[#allocation83_spill] sm:$0xff] %v17844_v61  ;;  %21655 = vst [vmem:[#allocation55_spill] sm:$0xff] %v17847_v62  ;;  %v17868_v27 = vadd.f32 %v5511_v8, %v21668_v44  ;;  %v21670_v39 = vld [vmem:[#allocation10_spill] sm:$0xff]  ;;  %v17874_v56 = vadd.f32 %v5517_v51, %v21672_v13  ;;  %v21674_v30 = vld [vmem:[#allocation125_spill] sm:$0xff] }
 0x454   :  { %21657 = vst [vmem:[#allocation70_spill] sm:$0xff] %v17850_v5  ;;  %21659 = vst [vmem:[#allocation25_spill] sm:$0xff] %v17853_v14  ;;  %v17871_v34 = vadd.f32 %v5514_v37, %v21670_v39  ;;  %v17877_v63 = vadd.f32 %v5520_v45, %v21674_v30  ;;  %v21676_v11 = vld [vmem:[#allocation126_spill] sm:$0xff]  ;;  %v21680_v48 = vld [vmem:[#allocation143_spill] sm:$0xff] }
 0x455   :  { %21661 = vst [vmem:[#allocation45_spill] sm:$0xff] %v17856_v42  ;;  %21663 = vst [vmem:[#allocation130_spill] sm:$0xff] %v17859_v36  ;;  %v17880_v4 = vadd.f32 %v5523_v2, %v21676_v11  ;;  %v21678_v25 = vld [vmem:[#allocation86_spill] sm:$0xff]  ;;  %v17886_v33 = vadd.f32 %v5529_v31, %v21680_v48  ;;  %v21682_v8 = vld [vmem:[#allocation144_spill] sm:$0xff] }
 0x456   :  { %21665 = vst [vmem:[#allocation103_spill] sm:$0xff] %v17862_v23  ;;  %21667 = vst [vmem:[#allocation104_spill] sm:$0xff] %v17865_v22  ;;  %v17883_v10 = vadd.f32 %v5526_v49, %v21678_v25  ;;  %v17889_v21 = vadd.f32 %v5532_v16, %v21682_v8  ;;  %v21684_v37 = vld [vmem:[#allocation152_spill] sm:$0xff]  ;;  %v21686_v51 = vld [vmem:[#allocation142_spill] sm:$0xff] }
 0x457   :  { %21669 = vst [vmem:[#allocation64_spill] sm:$0xff] %v17868_v27  ;;  %21671 = vst [vmem:[#allocation65_spill] sm:$0xff] %v17871_v34  ;;  %v17892_v41 = vadd.f32 %v5535_v57, %v21684_v37  ;;  %v17895_v47 = vadd.f32 %v5538_v58, %v21686_v51  ;;  %v21688_v45 = vld [vmem:[#allocation73_spill] sm:$0xff]  ;;  %v21690_v2 = vld [vmem:[#allocation92_spill] sm:$0xff] }
 0x458   :  { %21673 = vst [vmem:[#allocation99_spill] sm:$0xff] %v17874_v56  ;;  %21675 = vst [vmem:[#allocation101_spill] sm:$0xff] %v17877_v63  ;;  %v17898_v9 = vadd.f32 %v5541_v1, %v21688_v45  ;;  %v17901_v54 = vadd.f32 %v5547_v60, %v21690_v2  ;;  %v21692_v49 = vld [vmem:[#allocation135_spill] sm:$0xff]  ;;  %v21694_v31 = vld [vmem:[#allocation22_spill] sm:$0xff] }
 0x459   :  { %21677 = vst [vmem:[#allocation29_spill] sm:$0xff] %v17880_v4  ;;  %21679 = vst [vmem:[#allocation32_spill] sm:$0xff] %v17883_v10  ;;  %v21693_v32 = vld [vmem:[#allocation151_spill] sm:$0xff]  ;;  %v17909_v16 = vmul.f32 %v21695_v35, %v21694_v31  ;;  %v21696_v57 = vld [vmem:[#allocation54_spill] sm:$0xff] }
 0x45a   :  { %21681 = vst [vmem:[#allocation30_spill] sm:$0xff] %v17886_v33  ;;  %21683 = vst [vmem:[#allocation40_spill] sm:$0xff] %v17889_v21  ;;  %v17905_v28 = vmul.f32 %v21693_v32, %v21692_v49  ;;  %v17913_v59 = vmul.f32 %v21696_v57, %v21692_v49  ;;  %v21697_v58 = vld [vmem:[#allocation56_spill] sm:$0xff]  ;;  %v21698_v1 = vld [vmem:[#allocation77_spill] sm:$0xff] }
 0x45b   :  { %21685 = vst [vmem:[#allocation26_spill] sm:$0xff] %v17892_v41  ;;  %21687 = vst [vmem:[#allocation27_spill] sm:$0xff] %v17895_v47  ;;  %v17917_v40 = vmul.f32 %v21697_v58, %v21694_v31  ;;  %v17921_v60 = vmul.f32 %v21698_v1, %v21692_v49  ;;  %v21699_v15 = vld [vmem:[#allocation14_spill] sm:$0xff]  ;;  %v21700_v38 = vld [vmem:[#allocation87_spill] sm:$0xff]  ;;  %v5756_v50 = vrot.slane %v17909_v16, 2 }
 0x45c   :  { %21689 = vst [vmem:[#allocation154_spill] sm:$0xff] %v17898_v9  ;;  %21691 = vst [vmem:[#allocation155_spill] sm:$0xff] %v17901_v54  ;;  %v17925_v53 = vmul.f32 %v21699_v15, %v21694_v31  ;;  %v17929_v20 = vmul.f32 %v21700_v38, %v21692_v49  ;;  %v21701_v26 = vld [vmem:[#allocation88_spill] sm:$0xff]  ;;  %v21702_v46 = vld [vmem:[#allocation9_spill] sm:$0xff] }
 0x45d   :  { %v17933_v7 = vmul.f32 %v21701_v26, %v21694_v31  ;;  %v17937_v0 = vmul.f32 %v21702_v46, %v21692_v49  ;;  %v21703_v44 = vld [vmem:[#allocation36_spill] sm:$0xff]  ;;  %v21704_v13 = vld [vmem:[#allocation131_spill] sm:$0xff]  ;;  %v4291_v32 = vld [vmem:[%s18683_s0 + $0x120] sm:$0xfc] }
 0x45e   :  { %v17941_v39 = vmul.f32 %v21703_v44, %v21694_v31  ;;  %v17945_v30 = vmul.f32 %v21704_v13, %v21692_v49  ;;  %v21705_v11 = vld [vmem:[#allocation107_spill] sm:$0xff]  ;;  %v21707_v37 = vld [vmem:[#allocation116_spill] sm:$0xff]  ;;  %v4292_v35 = vld [vmem:[%s18683_s0 + $0x128] sm:$0xfc]  ;;  %v18048_v33 = vmul.f32 %v21692_v49, %v4291_v32 }
 0x45f   :  { %v17949_v25 = vmul.f32 %v21705_v11, %v21694_v31  ;;  %v21706_v48 = vld [vmem:[#allocation115_spill] sm:$0xff]  ;;  %v17957_v51 = vmul.f32 %v21707_v37, %v21694_v31  ;;  %v6701_v58 = vld [vmem:[%s18683_s0 + $0xb8] sm:$0x3]  ;;  %v6702_v15 = vld [vmem:[%s18683_s0 + $0xc0] sm:$0xfc] }
 0x460   :  { %v17953_v8 = vmul.f32 %v21706_v48, %v21692_v49  ;;  %v6700_v45 = vld [vmem:[%s18683_s0 + $0xb0] sm:$0x3]  ;;  %v17978_v1 = vmul.f32 %v6701_v58, %v21694_v31  ;;  %v17984_v38 = vmul.f32 %v6702_v15, %v21692_v49  ;;  %v6703_v26 = vld [vmem:[%s18683_s0 + $0xc8] sm:$0xfc]  ;;  %v4294_v11 = vld [vmem:[%s18683_s0 + $0x138] sm:$0x3] }
 0x461   :  { %v17963_v2 = vmul.f32 %v6700_v45, %v21692_v49  ;;  %v4293_v57 = vld [vmem:[%s18683_s0 + $0x130] sm:$0x3]  ;;  %v17990_v46 = vmul.f32 %v6703_v26, %v21694_v31  ;;  %v6705_v48 = vld [vmem:[%s18683_s0 + $0xd8] sm:$0x3]  ;;  %v6706_v45 = vld [vmem:[%s18683_s0 + $0xe0] sm:$0xfc] }
 0x462   :  { %v6704_v44 = vld [vmem:[%s18683_s0 + $0xd0] sm:$0x3]  ;;  %v18005_v37 = vmul.f32 %v6705_v48, %v21694_v31  ;;  %v18011_v58 = vmul.f32 %v6706_v45, %v21692_v49  ;;  %v6707_v15 = vld [vmem:[%s18683_s0 + $0xe8] sm:$0xfc]  ;;  %v6709_v54 = vld [vmem:[%s18683_s0 + $0xf8] sm:$0x3] }
 0x463   :  { %v17996_v13 = vmul.f32 %v6704_v44, %v21692_v49  ;;  %v18017_v26 = vmul.f32 %v6707_v15, %v21694_v31  ;;  %v6708_v44 = vld [vmem:[%s18683_s0 + $0xf0] sm:$0x3]  ;;  %v18029_v45 = vmul.f32 %v6709_v54, %v21694_v31  ;;  %v21708_v47 = vld [vmem:[#allocation129_spill] sm:$0xff]  ;;  %v21709_v15 = vld [vmem:[#allocation106_spill] sm:$0xff]  ;;  %v18051_v54 = vmul.f32 %v21694_v31, %v4292_v35 }
 0x464   :  { %v18023_v48 = vmul.f32 %v6708_v44, %v21692_v49  ;;  %v18033_v9 = vmul.f32 %v21692_v49, %v21708_v47  ;;  %v18037_v21 = vmul.f32 %v21694_v31, %v21709_v15  ;;  %v21710_v43 = vld [vmem:[#allocation42_spill] sm:$0xff]  ;;  %v21711_v44 = vld [vmem:[#allocation48_spill] sm:$0xff]  ;;  %v18054_v47 = vmul.f32 %v21692_v49, %v4293_v57  ;;  %v6712_v57 = vld [vmem:[%s18683_s0 + $0x550] sm:$0x3] }
 0x465   :  { %v18041_v41 = vmul.f32 %v21692_v49, %v21710_v43  ;;  %v18045_v10 = vmul.f32 %v21694_v31, %v21711_v44  ;;  %v18057_v15 = vmul.f32 %v21694_v31, %v4294_v11  ;;  %v6710_v43 = vld [vmem:[%s18683_s0 + $0x540] sm:$0xfc]  ;;  %v6711_v32 = vld [vmem:[%s18683_s0 + $0x548] sm:$0xfc]  ;;  %v18075_v11 = vmul.f32 %v6712_v57, %v21692_v49  ;;  %v6713_v44 = vld [vmem:[%s18683_s0 + $0x558] sm:$0x3] }
 0x466   :  { %v18063_v63 = vmul.f32 %v6710_v43, %v21692_v49  ;;  %v18069_v35 = vmul.f32 %v6711_v32, %v21694_v31  ;;  %v18081_v43 = vmul.f32 %v6713_v44, %v21694_v31  ;;  %v6714_v4 = vld [vmem:[%s18683_s0 + $0x560] sm:$0xfc]  ;;  %v6715_v34 = vld [vmem:[%s18683_s0 + $0x568] sm:$0xfc]  ;;  %v6716_v56 = vld [vmem:[%s18683_s0 + $0x570] sm:$0x3] }
 0x467   :  { %v18087_v32 = vmul.f32 %v6714_v4, %v21692_v49  ;;  %v18093_v57 = vmul.f32 %v6715_v34, %v21694_v31  ;;  %v18099_v44 = vmul.f32 %v6716_v56, %v21692_v49  ;;  %v6717_v22 = vld [vmem:[%s18683_s0 + $0x578] sm:$0x3]  ;;  %v6718_v27 = vld [vmem:[%s18683_s0 + $0x580] sm:$0xfc]  ;;  %v6719_v36 = vld [vmem:[%s18683_s0 + $0x588] sm:$0xfc] }
 0x468   :  { %v18105_v4 = vmul.f32 %v6717_v22, %v21694_v31  ;;  %v18111_v34 = vmul.f32 %v6718_v27, %v21692_v49  ;;  %v18117_v56 = vmul.f32 %v6719_v36, %v21694_v31  ;;  %v6720_v23 = vld [vmem:[%s18683_s0 + $0x590] sm:$0x3]  ;;  %v6721_v14 = vld [vmem:[%s18683_s0 + $0x598] sm:$0x3]  ;;  %v6722_v42 = vld [vmem:[%s18683_s0 + $0x5a0] sm:$0xfc] }
 0x469   :  { %v18123_v22 = vmul.f32 %v6720_v23, %v21692_v49  ;;  %v18129_v27 = vmul.f32 %v6721_v14, %v21694_v31  ;;  %v18135_v36 = vmul.f32 %v6722_v42, %v21692_v49  ;;  %v6723_v62 = vld [vmem:[%s18683_s0 + $0x5a8] sm:$0xfc]  ;;  %v6724_v5 = vld [vmem:[%s18683_s0 + $0x5b0] sm:$0x3]  ;;  %v6725_v24 = vld [vmem:[%s18683_s0 + $0x5b8] sm:$0x3] }
 0x46a   :  { %21712 = vst [vmem:[#allocation96_spill] sm:$0xff] %v18117_v56  ;;  %v18141_v23 = vmul.f32 %v6723_v62, %v21694_v31  ;;  %v18147_v14 = vmul.f32 %v6724_v5, %v21692_v49  ;;  %v18153_v42 = vmul.f32 %v6725_v24, %v21694_v31  ;;  %v6726_v61 = vld [vmem:[%s18683_s0 + $0x5c0] sm:$0xfc]  ;;  %v6727_v55 = vld [vmem:[%s18683_s0 + $0x5c8] sm:$0xfc]  ;;  %v21730_v56 = vld [vmem:[#allocation15_spill] sm:$0xff] }
 0x46b   :  { %21713 = vst [vmem:[#allocation98_spill] sm:$0xff] %v18129_v27  ;;  %21714 = vst [vmem:[#allocation75_spill] sm:$0xff] %v18135_v36  ;;  %v18159_v62 = vmul.f32 %v6726_v61, %v21692_v49  ;;  %v18165_v5 = vmul.f32 %v6727_v55, %v21694_v31  ;;  %v4368_v61 = vld [vmem:[%s18683_s0 + $0x628] sm:$0xfc]  ;;  %v4369_v55 = vld [vmem:[%s18683_s0 + $0x630] sm:$0x3] }
 0x46c   :  { %21715 = vst [vmem:[#allocation33_spill] sm:$0xff] %v18141_v23  ;;  %21716 = vst [vmem:[#allocation8_spill] sm:$0xff] %v18147_v14  ;;  %v6728_v23 = vld [vmem:[%s18683_s0 + $0x5d0] sm:$0x3]  ;;  %v6731_v14 = vld [vmem:[%s18683_s0 + $0x5e8] sm:$0xfc] }
 0x46d   :  { %21717 = vst [vmem:[#allocation39_spill] sm:$0xff] %v18153_v42  ;;  %21718 = vst [vmem:[#allocation37_spill] sm:$0xff] %v18159_v62  ;;  %v18171_v24 = vmul.f32 %v6728_v23, %v21692_v49  ;;  %v4367_v42 = vld [vmem:[%s18683_s0 + $0x620] sm:$0xfc]  ;;  %v18198_v6 = vmul.f32 %v6731_v14, %v21694_v31  ;;  %v6732_v3 = vld [vmem:[%s18683_s0 + $0x5f0] sm:$0x3] }
 0x46e   :  { %21719 = vst [vmem:[#allocation44_spill] sm:$0xff] %v18165_v5  ;;  %v6729_v5 = vld [vmem:[%s18683_s0 + $0x5d8] sm:$0x3]  ;;  %v6730_v23 = vld [vmem:[%s18683_s0 + $0x5e0] sm:$0xfc]  ;;  %v5757_v14 = vrot.slane %v17917_v40, 2 }
 0x46f   :  { %21720 = vst [vmem:[#allocation43_spill] sm:$0xff] %v18171_v24  ;;  %v18186_v62 = vmul.f32 %v6729_v5, %v21694_v31  ;;  %v18192_v24 = vmul.f32 %v6730_v23, %v21692_v49  ;;  %21723 = vst [vmem:[#allocation113_spill] sm:$0xff] %v18198_v6  ;;  %v18204_v5 = vmul.f32 %v6732_v3, %v21692_v49  ;;  %v5753_v23 = vrot.slane %v17905_v28, 2  ;;  %v6733_v6 = vld [vmem:[%s18683_s0 + $0x5f8] sm:$0x3]  ;;  %v21726_v3 = vld [vmem:[#allocation137_spill] sm:$0xff] }
 0x470   :  { %v18217_v52 = vmul.f32 %v6733_v6, %v21694_v31  ;;  %v5759_v36 = vrot.slane %v17921_v60, 2  ;;  %v5760_v28 = vrot.slane %v17929_v20, 2  ;;  %v21729_v40 = vld [vmem:[#allocation51_spill] sm:$0xff]  ;;  %v18235_v6 = vmul.f32 %v21694_v31, %v21730_v56 }
 0x471   :  { %21721 = vst [vmem:[#allocation46_spill] sm:$0xff] %v18186_v62  ;;  %21722 = vst [vmem:[#allocation108_spill] sm:$0xff] %v18192_v24  ;;  %v4370_v62 = vld [vmem:[%s18683_s0 + $0x638] sm:$0x3]  ;;  %v5754_v24 = vrot.slane %v17913_v59, 2  ;;  %v21727_v59 = vld [vmem:[#allocation18_spill] sm:$0xff]  ;;  %v18231_v27 = vmul.f32 %v21692_v49, %v21729_v40  ;;  %v18244_v60 = vmul.f32 %v21692_v49, %v4369_v55 }
 0x472   :  { %21724 = vst [vmem:[#allocation109_spill] sm:$0xff] %v18204_v5  ;;  %21725 = vst [vmem:[#allocation114_spill] sm:$0xff] %v18217_v52  ;;  %v18221_v5 = vmul.f32 %v21692_v49, %v21726_v3  ;;  %v18227_v16 = vmul.f32 %v21694_v31, %v21727_v59  ;;  %v18238_v52 = vmul.f32 %v21692_v49, %v4367_v42  ;;  %v5762_v59 = vrot.slane %v17925_v53, 2 }
 0x473   :  { %v18241_v3 = vmul.f32 %v21694_v31, %v4368_v61  ;;  %v18247_v20 = vmul.f32 %v21694_v31, %v4370_v62  ;;  %v5755_v40 = vsel %vm4548_vm1, %v5753_v23, %v5754_v24  ;;  %v5763_v56 = vrot.slane %v17933_v7, 2 }
 0x474   :  { %21728 = vst [vmem:[#allocation79_spill] sm:$0xff] %v18227_v16  ;;  %21731 = vst [vmem:[#allocation80_spill] sm:$0xff] %v18238_v52  ;;  %v5758_v16 = vsel %vm4548_vm1, %v5756_v50, %v5757_v14  ;;  %v5765_v42 = vrot.slane %v17937_v0, 2  ;;  %v5761_v52 = vsel %vm4548_vm1, %v5759_v36, %v5760_v28  ;;  %v5766_v61 = vrot.slane %v17945_v30, 2 }
 0x475   :  { %v5768_v49 = vrot.slane %v17941_v39, 2  ;;  %v5769_v55 = vrot.slane %v17949_v25, 2  ;;  %v5771_v31 = vrot.slane %v17953_v8, 2  ;;  %v5772_v53 = vrot.slane %v17963_v2, 2 }
 0x476   :  { %v5774_v62 = vrot.slane %v17957_v51, 2  ;;  %v5775_v50 = vrot.slane %v17978_v1, 2  ;;  %v5777_v7 = vrot.slane %v17984_v38, 2  ;;  %v5778_v0 = vrot.slane %v17996_v13, 2 }
 0x477   :  { %v5780_v36 = vrot.slane %v17990_v46, 2  ;;  %v5781_v30 = vrot.slane %v18005_v37, 2  ;;  %v5783_v39 = vrot.slane %v18011_v58, 2  ;;  %v5784_v25 = vrot.slane %v18023_v48, 2 }
 0x478   :  { %v5786_v8 = vrot.slane %v18017_v26, 2  ;;  %v5787_v2 = vrot.slane %v18029_v45, 2  ;;  %v5789_v51 = vrot.slane %v18033_v9, 2  ;;  %v5790_v1 = vrot.slane %v18041_v41, 2 }
 0x479   :  { %v5792_v38 = vrot.slane %v18037_v21, 2  ;;  %v5793_v13 = vrot.slane %v18045_v10, 2  ;;  %v5764_v46 = vsel %vm4548_vm1, %v5762_v59, %v5763_v56  ;;  %v5767_v37 = vsel %vm4548_vm1, %v5765_v42, %v5766_v61 }
 0x47a   :  { %v5795_v58 = vrot.slane %v18048_v33, 2  ;;  %v5796_v48 = vrot.slane %v18054_v47, 2  ;;  %v5770_v26 = vsel %vm4548_vm1, %v5768_v49, %v5769_v55  ;;  %v5773_v45 = vsel %vm4548_vm1, %v5771_v31, %v5772_v53 }
 0x47b   :  { %v5798_v9 = vrot.slane %v18051_v54, 2  ;;  %v5799_v41 = vrot.slane %v18057_v15, 2  ;;  %v5776_v21 = vsel %vm4548_vm1, %v5774_v62, %v5775_v50  ;;  %v5779_v10 = vsel %vm4548_vm1, %v5777_v7, %v5778_v0  ;;  %v21737_v0 = vld [vmem:[#allocation139_spill] sm:$0xff] }
 0x47c   :  { %v5782_v24 = vsel %vm4548_vm1, %v5780_v36, %v5781_v30  ;;  %v5785_v23 = vsel %vm4548_vm1, %v5783_v39, %v5784_v25  ;;  %v5788_v33 = vsel %vm4548_vm1, %v5786_v8, %v5787_v2  ;;  %v5791_v47 = vsel %vm4548_vm1, %v5789_v51, %v5790_v1  ;;  %v21738_v30 = vld [vmem:[#allocation81_spill] sm:$0xff] }
 0x47d   :  { %v5794_v14 = vsel %vm4548_vm1, %v5792_v38, %v5793_v13  ;;  %v5801_v28 = vrot.slane %v18063_v63, 2  ;;  %v5797_v54 = vsel %vm4548_vm1, %v5795_v58, %v5796_v48  ;;  %v5802_v15 = vrot.slane %v18075_v11, 2  ;;  %v21739_v38 = vld [vmem:[#allocation8_spill] sm:$0xff] }
 0x47e   :  { %v5804_v59 = vrot.slane %v18069_v35, 2  ;;  %v5805_v56 = vrot.slane %v18081_v43, 2  ;;  %v5800_v42 = vsel %vm4548_vm1, %v5798_v9, %v5799_v41  ;;  %v5807_v61 = vrot.slane %v18087_v32, 2  ;;  %v21741_v48 = vld [vmem:[#allocation136_spill] sm:$0xff] }
 0x47f   :  { %v5808_v49 = vrot.slane %v18099_v44, 2  ;;  %v5810_v55 = vrot.slane %v18093_v57, 2  ;;  %v5811_v31 = vrot.slane %v18105_v4, 2  ;;  %v5813_v63 = vrot.slane %v18111_v34, 2  ;;  %v21732_v34 = vld [vmem:[#allocation96_spill] sm:$0xff] }
 0x480   :  { %v5814_v53 = vrot.slane %v18123_v22, 2  ;;  %v18302_v11 = vadd.f32 %v5755_v40, %v17807_v19  ;;  %v18305_v35 = vadd.f32 %v5758_v16, %v17811_v18  ;;  %v18308_v43 = vadd.f32 %v5761_v52, %v17815_v17  ;;  %v21733_v19 = vld [vmem:[#allocation98_spill] sm:$0xff]  ;;  %v21734_v16 = vld [vmem:[#allocation75_spill] sm:$0xff]  ;;  %v21735_v17 = vld [vmem:[#allocation133_spill] sm:$0xff] }
 0x481   :  { %v18311_v32 = vadd.f32 %v5764_v46, %v17820_v12  ;;  %v18314_v57 = vadd.f32 %v5770_v26, %v17826_v29  ;;  %v5803_v44 = vsel %vm4548_vm1, %v5801_v28, %v5802_v15  ;;  %v5806_v4 = vsel %vm4548_vm1, %v5804_v59, %v5805_v56  ;;  %v21736_v12 = vld [vmem:[#allocation134_spill] sm:$0xff]  ;;  %v21740_v46 = vld [vmem:[#allocation33_spill] sm:$0xff]  ;;  %v21745_v56 = vld [vmem:[#allocation43_spill] sm:$0xff] }
 0x482   :  { %v5816_v22 = vrot.slane %v21732_v34, 2  ;;  %v5817_v40 = vrot.slane %v21733_v19, 2  ;;  %v5809_v18 = vsel %vm4548_vm1, %v5807_v61, %v5808_v49  ;;  %v5819_v62 = vrot.slane %v21734_v16, 2  ;;  %v21744_v15 = vld [vmem:[#allocation37_spill] sm:$0xff] }
 0x483   :  { %v18323_v52 = vadd.f32 %v5767_v37, %v21735_v17  ;;  %v18326_v50 = vadd.f32 %v5776_v21, %v21736_v12  ;;  %v5812_v29 = vsel %vm4548_vm1, %v5810_v55, %v5811_v31  ;;  %v5815_v7 = vsel %vm4548_vm1, %v5813_v63, %v5814_v53  ;;  %v21746_v55 = vld [vmem:[#allocation91_spill] sm:$0xff] }
 0x484   :  { %v18331_v36 = vadd.f32 %v5773_v45, %v21737_v0  ;;  %v18334_v39 = vadd.f32 %v5782_v24, %v21738_v30  ;;  %v5913_v25 = vadd.f32 %v18308_v43, %v18302_v11  ;;  %v5935_v8 = vsel %vm5934_vm2, %v18305_v35, 0.0  ;;  %v21742_v45 = vld [vmem:[#allocation83_spill] sm:$0xff] }
 0x485   :  { %v5936_v2 = vsel %vm5934_vm2, %v18311_v32, 0.0  ;;  %v5938_v51 = vsel %vm5934_vm2, %v18314_v57, 0.0  ;;  %v5818_v1 = vsel %vm4548_vm1, %v5816_v22, %v5817_v40  ;;  %v5820_v13 = vrot.slane %v21739_v38, 2  ;;  %v21743_v24 = vld [vmem:[#allocation39_spill] sm:$0xff]  ;;  %v21748_v22 = vld [vmem:[#allocation44_spill] sm:$0xff]  ;;  %v21749_v40 = vld [vmem:[#allocation46_spill] sm:$0xff] }
 0x486   :  { %v5822_v37 = vrot.slane %v21740_v46, 2  ;;  %v5937_v58 = vadd.f32 %v5936_v2, %v5935_v8  ;;  %v18348_v26 = vadd.f32 %v5779_v10, %v21741_v48  ;;  %v18351_v9 = vadd.f32 %v5788_v33, %v21742_v45  ;;  %v21747_v10 = vld [vmem:[#allocation70_spill] sm:$0xff]  ;;  %v21750_v12 = vld [vmem:[#allocation55_spill] sm:$0xff]  ;;  %v21752_v2 = vld [vmem:[#allocation108_spill] sm:$0xff] }
 0x487   :  { %v5914_v41 = vadd.f32 %v5913_v25, %v18323_v52  ;;  %v5940_v21 = vsel %vm5934_vm2, %v18326_v50, 0.0  ;;  %v5823_v28 = vrot.slane %v21743_v24, 2  ;;  %v5825_v59 = vrot.slane %v21744_v15, 2  ;;  %v21757_v15 = vld [vmem:[#allocation130_spill] sm:$0xff] }
 0x488   :  { %v5826_v61 = vrot.slane %v21745_v56, 2  ;;  %v5939_v49 = vadd.f32 %v5938_v51, %v5937_v58  ;;  %v18360_v31 = vadd.f32 %v5785_v23, %v21746_v55  ;;  %v18363_v63 = vadd.f32 %v5794_v14, %v21747_v10  ;;  %v21751_v23 = vld [vmem:[#allocation45_spill] sm:$0xff] }
 0x489   :  { %v5915_v33 = vadd.f32 %v5914_v41, %v18331_v36  ;;  %v5942_v53 = vsel %vm5934_vm2, %v18334_v39, 0.0  ;;  %v5821_v34 = vsel %vm4548_vm1, %v5819_v62, %v5820_v13  ;;  %v5828_v19 = vrot.slane %v21748_v22, 2  ;;  %v21753_v13 = vld [vmem:[#allocation25_spill] sm:$0xff]  ;;  %v21760_v22 = vld [vmem:[#allocation104_spill] sm:$0xff] }
 0x48a   :  { %v5829_v16 = vrot.slane %v21749_v40, 2  ;;  %v5941_v17 = vadd.f32 %v5940_v21, %v5939_v49  ;;  %v18372_v0 = vadd.f32 %v5791_v47, %v21750_v12  ;;  %v18375_v30 = vadd.f32 %v5800_v42, %v21751_v23  ;;  %v21754_v47 = vld [vmem:[#allocation103_spill] sm:$0xff]  ;;  %v21755_v41 = vld [vmem:[#allocation109_spill] sm:$0xff]  ;;  %v21759_v49 = vld [vmem:[#allocation114_spill] sm:$0xff] }
 0x48b   :  { %v5916_v14 = vadd.f32 %v5915_v33, %v18348_v26  ;;  %v5944_v25 = vsel %vm5934_vm2, %v18351_v9, 0.0  ;;  %v5824_v8 = vsel %vm4548_vm1, %v5822_v37, %v5823_v28  ;;  %v5827_v62 = vsel %vm4548_vm1, %v5825_v59, %v5826_v61  ;;  %v21756_v21 = vld [vmem:[#allocation113_spill] sm:$0xff]  ;;  %v21762_v12 = vld [vmem:[#allocation79_spill] sm:$0xff] }
 0x48c   :  { %v5831_v51 = vrot.slane %v21752_v2, 2  ;;  %v5943_v38 = vadd.f32 %v5942_v53, %v5941_v17  ;;  %v18384_v46 = vadd.f32 %v5797_v54, %v21753_v13  ;;  %v18387_v58 = vadd.f32 %v5806_v4, %v21754_v47  ;;  %v21758_v54 = vld [vmem:[#allocation64_spill] sm:$0xff] }
 0x48d   :  { %v5917_v42 = vadd.f32 %v5916_v14, %v18360_v31  ;;  %v5946_v48 = vsel %vm5934_vm2, %v18363_v63, 0.0  ;;  %v5830_v45 = vsel %vm4548_vm1, %v5828_v19, %v5829_v16  ;;  %v5832_v37 = vrot.slane %v21755_v41, 2 }
 0x48e   :  { %v5834_v24 = vrot.slane %v21756_v21, 2  ;;  %v5945_v28 = vadd.f32 %v5944_v25, %v5943_v38  ;;  %v18396_v59 = vadd.f32 %v5803_v44, %v21757_v15  ;;  %v18399_v56 = vadd.f32 %v5812_v29, %v21758_v54  ;;  %v21761_v44 = vld [vmem:[#allocation99_spill] sm:$0xff] }
 0x48f   :  { %v5918_v4 = vadd.f32 %v5917_v42, %v18372_v0  ;;  %v5948_v61 = vsel %vm5934_vm2, %v18375_v30, 0.0  ;;  %v5835_v55 = vrot.slane %v21759_v49, 2  ;;  %v5837_v10 = vrot.slane %v18221_v5, 2  ;;  %v21770_v49 = vld [vmem:[#allocation148_spill] sm:$0xff] }
 0x490   :  { %v5838_v33 = vrot.slane %v18231_v27, 2  ;;  %v5947_v53 = vadd.f32 %v5946_v48, %v5945_v28  ;;  %v18408_v19 = vadd.f32 %v5809_v18, %v21760_v22  ;;  %v18411_v40 = vadd.f32 %v5818_v1, %v21761_v44  ;;  %v21763_v27 = vld [vmem:[#allocation65_spill] sm:$0xff]  ;;  %v21767_v28 = vld [vmem:[#allocation80_spill] sm:$0xff] }
 0x491   :  { %v5919_v29 = vadd.f32 %v5918_v4, %v18384_v46  ;;  %v5950_v16 = vsel %vm5934_vm2, %v18387_v58, 0.0  ;;  %v5833_v17 = vsel %vm4548_vm1, %v5831_v51, %v5832_v37  ;;  %v5840_v23 = vrot.slane %v21762_v12, 2  ;;  %v21764_v18 = vld [vmem:[#allocation29_spill] sm:$0xff] }
 0x492   :  { %v5841_v5 = vrot.slane %v18235_v6, 2  ;;  %v5949_v14 = vadd.f32 %v5948_v61, %v5947_v53  ;;  %v18420_v25 = vadd.f32 %v5815_v7, %v21763_v27  ;;  %v18423_v2 = vadd.f32 %v5824_v8, %v21764_v18  ;;  %v21765_v6 = vld [vmem:[#allocation101_spill] sm:$0xff]  ;;  %v21766_v7 = vld [vmem:[#allocation30_spill] sm:$0xff]  ;;  %v21774_v18 = vld [vmem:[#allocation27_spill] sm:$0xff] }
 0x493   :  { %v5920_v1 = vadd.f32 %v5919_v29, %v18396_v59  ;;  %v5952_v38 = vsel %vm5934_vm2, %v18399_v56, 0.0  ;;  %v5836_v13 = vsel %vm4548_vm1, %v5834_v24, %v5835_v55  ;;  %v5846_v51 = vrot.slane %v18241_v3, 2  ;;  %v21771_v55 = vld [vmem:[#allocation138_spill] sm:$0xff]  ;;  %v21772_v29 = vld [vmem:[#allocation40_spill] sm:$0xff] }
 0x494   :  { %v5847_v47 = vrot.slane %v18247_v20, 2  ;;  %v5951_v42 = vadd.f32 %v5950_v16, %v5949_v14  ;;  %v18432_v48 = vadd.f32 %v5821_v34, %v21765_v6  ;;  %v18435_v41 = vadd.f32 %v5830_v45, %v21766_v7  ;;  %v21768_v20 = vld [vmem:[#allocation32_spill] sm:$0xff]  ;;  %v21769_v34 = vld [vmem:[#allocation26_spill] sm:$0xff] }
 0x495   :  { %v5921_v8 = vadd.f32 %v5920_v1, %v18408_v19  ;;  %v5954_v37 = vsel %vm5934_vm2, %v18411_v40, 0.0  ;;  %v5842_v21 = vsel %vm4548_vm1, %v5840_v23, %v5841_v5  ;;  %v5843_v24 = vrot.slane %v21767_v28, 2 }
 0x496   :  { %v5844_v3 = vrot.slane %v18244_v60, 2  ;;  %v5953_v15 = vadd.f32 %v5952_v38, %v5951_v42  ;;  %v18444_v54 = vadd.f32 %v5827_v62, %v21768_v20  ;;  %v18447_v4 = vadd.f32 %v5836_v13, %v21769_v34  ;;  %v21773_v62 = vld [vmem:[#allocation154_spill] sm:$0xff] }
 0x497   :  { %v5922_v45 = vadd.f32 %v5921_v8, %v18420_v25  ;;  %v5956_v61 = vsel %vm5934_vm2, %v18423_v2, 0.0  ;;  %v5610_v53 = vadd.f32 %v21771_v55, %v21770_v49  ;;  %v5839_v22 = vsel %vm4548_vm1, %v5837_v10, %v5838_v33  ;;  %v21775_v10 = vld [vmem:[#allocation155_spill] sm:$0xff] }
 0x498   :  { %v5848_v44 = vsel %vm4548_vm1, %v5846_v51, %v5847_v47  ;;  %v5955_v60 = vadd.f32 %v5954_v37, %v5953_v15  ;;  %v18457_v16 = vadd.f32 %v5833_v17, %v21772_v29  ;;  %v18460_v12 = vadd.f32 %v5842_v21, %v21773_v62 }
 0x499   :  { %v5923_v23 = vadd.f32 %v5922_v45, %v18432_v48  ;;  %v5958_v5 = vsel %vm5934_vm2, %v18435_v41, 0.0  ;;  %v5845_v14 = vsel %vm4548_vm1, %v5843_v24, %v5844_v3  ;;  %v18467_v1 = vadd.f32 %v5839_v22, %v21774_v18 }
 0x49a   :  { %v5957_v27 = vadd.f32 %v5956_v61, %v5955_v60  ;;  %v18470_v33 = vadd.f32 %v5848_v44, %v21775_v10  ;;  %v5960_v38 = vsel %vm5934_vm2, %v18447_v4, 0.0  ;;  %v18475_v51 = vadd.f32 %v5845_v14, %v5610_v53 }
 0x49b   :  { %v5924_v17 = vadd.f32 %v5923_v23, %v18444_v54  ;;  %v5962_v42 = vsel %vm5934_vm2, %v18460_v12, 0.0 }
 0x49c   :  { %v5959_v13 = vadd.f32 %v5958_v5, %v5957_v27  ;;  %v5964_v8 = vsel %vm5934_vm2, %v18470_v33, 0.0 }
 0x49d   :  { %v5925_v47 = vadd.f32 %v5924_v17, %v18457_v16 }
 0x49e   :  { %v5961_v6 = vadd.f32 %v5960_v38, %v5959_v13 }
 0x49f   :  { %v5926_v7 = vadd.f32 %v5925_v47, %v18467_v1 }
 0x4a0   :  { %v5963_v37 = vadd.f32 %v5962_v42, %v5961_v6 }
 0x4a1   :  { %v5927_v21 = vadd.f32 %v5926_v7, %v18475_v51 }
 0x4a2   :  { %v5965_v28 = vadd.f32 %v5964_v8, %v5963_v37 }
 0x4a3   :  { %v5928_v24 = vrot.slane %v5927_v21, 4 }
 0x4a4   :  { %v5966_v3 = vrot.slane %v5965_v28, 4 }
 0x4a5   :  { %v5929_v15 = vadd.f32 %v5928_v24, %v5927_v21 }
 0x4a6   :  { %v5967_v20 = vadd.f32 %v5966_v3, %v5965_v28 }
 0x4a7   :  { %v5930_v34 = vrot.slane %v5929_v15, 2 }
 0x4a8   :  { %v5968_v45 = vrot.slane %v5967_v20, 2 }
 0x4a9   :  { %v5931_v61 = vadd.f32 %v5930_v34, %v5929_v15 }
 0x4aa   :  { %v5969_v49 = vadd.f32 %v5968_v45, %v5967_v20 }
 0x4ab   :  { %v5932_v55 = vrot.slane %v5931_v61, 1 }
 0x4ac   :  { %v5970_v53 = vrot.slane %v5969_v49, 1 }
 0x4ad   :  { %v5933_v22 = vadd.f32 %v5932_v55, %v5931_v61 }
 0x4ae   :  { %v5971_v44 = vadd.f32 %v5970_v53, %v5969_v49 }
 0x4af   :  { %v18484_v60 = vmul.f32 0.0078125, %v5933_v22 }
 0x4b0   :  { %v18486_v29 = vmul.f32 0.0078125, %v5971_v44 }
 0x4b1   :  { %v5975_v62 = vsub.f32 %v18302_v11, %v18484_v60  ;;  %v5977_v5 = vsub.f32 %v18308_v43, %v18484_v60  ;;  %v5979_v18 = vsub.f32 %v18323_v52, %v18484_v60  ;;  %v5981_v17 = vsub.f32 %v18331_v36, %v18484_v60 }
 0x4b2   :  { %v5976_v23 = vsub.f32 %v18305_v35, %v18486_v29  ;;  %v5978_v14 = vsub.f32 %v18311_v32, %v18486_v29  ;;  %v5980_v27 = vsub.f32 %v18314_v57, %v18486_v29  ;;  %v5982_v10 = vsub.f32 %v18326_v50, %v18486_v29 }
 0x4b3   :  { %v5984_v38 = vsub.f32 %v18334_v39, %v18486_v29  ;;  %v6007_v13 = vmul.f32 %v5975_v62, %v5975_v62  ;;  %v6009_v42 = vmul.f32 %v5977_v5, %v5977_v5  ;;  %v5983_v8 = vsub.f32 %v18348_v26, %v18484_v60 }
 0x4b4   :  { %v6008_v47 = vmul.f32 %v5976_v23, %v5976_v23  ;;  %v6010_v6 = vmul.f32 %v5978_v14, %v5978_v14  ;;  %v6012_v7 = vmul.f32 %v5980_v27, %v5980_v27  ;;  %v5986_v37 = vsub.f32 %v18351_v9, %v18486_v29 }
 0x4b5   :  { %v6011_v21 = vmul.f32 %v5979_v18, %v5979_v18  ;;  %v6014_v28 = vmul.f32 %v5982_v10, %v5982_v10  ;;  %v5985_v24 = vsub.f32 %v18360_v31, %v18484_v60  ;;  %v5988_v3 = vsub.f32 %v18363_v63, %v18486_v29 }
 0x4b6   :  { %v6013_v15 = vmul.f32 %v5981_v17, %v5981_v17  ;;  %v6016_v20 = vmul.f32 %v5984_v38, %v5984_v38  ;;  %v6039_v34 = vadd.f32 %v6009_v42, %v6007_v13  ;;  %v6060_v45 = vsel %vm5934_vm2, %v6008_v47, 0.0 }
 0x4b7   :  { %v6061_v61 = vsel %vm5934_vm2, %v6010_v6, 0.0  ;;  %v6063_v49 = vsel %vm5934_vm2, %v6012_v7, 0.0  ;;  %v5987_v55 = vsub.f32 %v18372_v0, %v18484_v60  ;;  %v5990_v53 = vsub.f32 %v18375_v30, %v18486_v29 }
 0x4b8   :  { %v6062_v22 = vadd.f32 %v6061_v61, %v6060_v45  ;;  %v6015_v44 = vmul.f32 %v5983_v8, %v5983_v8  ;;  %v6018_v62 = vmul.f32 %v5986_v37, %v5986_v37  ;;  %v6040_v23 = vadd.f32 %v6039_v34, %v6011_v21 }
 0x4b9   :  { %v6065_v5 = vsel %vm5934_vm2, %v6014_v28, 0.0  ;;  %v5989_v14 = vsub.f32 %v18384_v46, %v18484_v60  ;;  %v5992_v27 = vsub.f32 %v18387_v58, %v18486_v29  ;;  %v6017_v10 = vmul.f32 %v5985_v24, %v5985_v24 }
 0x4ba   :  { %v6064_v18 = vadd.f32 %v6063_v49, %v6062_v22  ;;  %v6020_v17 = vmul.f32 %v5988_v3, %v5988_v3  ;;  %v6041_v38 = vadd.f32 %v6040_v23, %v6013_v15  ;;  %v6067_v13 = vsel %vm5934_vm2, %v6016_v20, 0.0 }
 0x4bb   :  { %v5991_v47 = vsub.f32 %v18396_v59, %v18484_v60  ;;  %v5994_v42 = vsub.f32 %v18399_v56, %v18486_v29  ;;  %v6019_v7 = vmul.f32 %v5987_v55, %v5987_v55  ;;  %v6022_v8 = vmul.f32 %v5990_v53, %v5990_v53 }
 0x4bc   :  { %v6066_v6 = vadd.f32 %v6065_v5, %v6064_v18  ;;  %v6042_v37 = vadd.f32 %v6041_v38, %v6015_v44  ;;  %v6069_v21 = vsel %vm5934_vm2, %v6018_v62, 0.0  ;;  %v5993_v28 = vsub.f32 %v18408_v19, %v18484_v60 }
 0x4bd   :  { %v5996_v24 = vsub.f32 %v18411_v40, %v18486_v29  ;;  %v6021_v15 = vmul.f32 %v5989_v14, %v5989_v14  ;;  %v6024_v20 = vmul.f32 %v5992_v27, %v5992_v27  ;;  %v6071_v45 = vsel %vm5934_vm2, %v6020_v17, 0.0 }
 0x4be   :  { %v6068_v3 = vadd.f32 %v6067_v13, %v6066_v6  ;;  %v6043_v34 = vadd.f32 %v6042_v37, %v6017_v10  ;;  %v5995_v61 = vsub.f32 %v18420_v25, %v18484_v60  ;;  %v5998_v49 = vsub.f32 %v18423_v2, %v18486_v29 }
 0x4bf   :  { %v6023_v53 = vmul.f32 %v5991_v47, %v5991_v47  ;;  %v6026_v22 = vmul.f32 %v5994_v42, %v5994_v42  ;;  %v6073_v62 = vsel %vm5934_vm2, %v6022_v8, 0.0  ;;  %v5997_v23 = vsub.f32 %v18432_v48, %v18484_v60 }
 0x4c0   :  { %v6070_v55 = vadd.f32 %v6069_v21, %v6068_v3  ;;  %v6044_v44 = vadd.f32 %v6043_v34, %v6019_v7  ;;  %v6000_v5 = vsub.f32 %v18435_v41, %v18486_v29  ;;  %v6025_v27 = vmul.f32 %v5993_v28, %v5993_v28 }
 0x4c1   :  { %v6028_v18 = vmul.f32 %v5996_v24, %v5996_v24  ;;  %v6075_v17 = vsel %vm5934_vm2, %v6024_v20, 0.0  ;;  %v5999_v38 = vsub.f32 %v18444_v54, %v18484_v60  ;;  %v6002_v13 = vsub.f32 %v18447_v4, %v18486_v29 }
 0x4c2   :  { %v6072_v14 = vadd.f32 %v6071_v45, %v6070_v55  ;;  %v6045_v10 = vadd.f32 %v6044_v44, %v6021_v15  ;;  %v6027_v42 = vmul.f32 %v5995_v61, %v5995_v61  ;;  %v6030_v6 = vmul.f32 %v5998_v49, %v5998_v49 }
 0x4c3   :  { %v6077_v8 = vsel %vm5934_vm2, %v6026_v22, 0.0  ;;  %v6001_v37 = vsub.f32 %v18457_v16, %v18484_v60  ;;  %v6004_v21 = vsub.f32 %v18460_v12, %v18486_v29  ;;  %v6029_v24 = vmul.f32 %v5997_v23, %v5997_v23 }
 0x4c4   :  { %v6074_v47 = vadd.f32 %v6073_v62, %v6072_v14  ;;  %v6046_v7 = vadd.f32 %v6045_v10, %v6023_v53  ;;  %v6032_v3 = vmul.f32 %v6000_v5, %v6000_v5  ;;  %v6079_v20 = vsel %vm5934_vm2, %v6028_v18, 0.0 }
 0x4c5   :  { %v6003_v34 = vsub.f32 %v18467_v1, %v18484_v60  ;;  %v6006_v45 = vsub.f32 %v18470_v33, %v18486_v29  ;;  %v6031_v49 = vmul.f32 %v5999_v38, %v5999_v38  ;;  %v6034_v55 = vmul.f32 %v6002_v13, %v6002_v13 }
 0x4c6   :  { %v6076_v28 = vadd.f32 %v6075_v17, %v6074_v47  ;;  %v6047_v15 = vadd.f32 %v6046_v7, %v6025_v27  ;;  %v6081_v22 = vsel %vm5934_vm2, %v6030_v6, 0.0  ;;  %v6005_v44 = vsub.f32 %v18475_v51, %v18484_v60 }
 0x4c7   :  { %v6033_v23 = vmul.f32 %v6001_v37, %v6001_v37  ;;  %v6036_v5 = vmul.f32 %v6004_v21, %v6004_v21  ;;  %v6083_v27 = vsel %vm5934_vm2, %v6032_v3, 0.0  ;;  %v6035_v10 = vmul.f32 %v6003_v34, %v6003_v34 }
 0x4c8   :  { %v6078_v61 = vadd.f32 %v6077_v8, %v6076_v28  ;;  %v6048_v53 = vadd.f32 %v6047_v15, %v6027_v42  ;;  %v6038_v17 = vmul.f32 %v6006_v45, %v6006_v45  ;;  %v6085_v7 = vsel %vm5934_vm2, %v6034_v55, 0.0 }
 0x4c9   :  { %v6037_v13 = vmul.f32 %v6005_v44, %v6005_v44  ;;  %v6087_v6 = vsel %vm5934_vm2, %v6036_v5, 0.0 }
 0x4ca   :  { %v6080_v62 = vadd.f32 %v6079_v20, %v6078_v61  ;;  %v6049_v14 = vadd.f32 %v6048_v53, %v6029_v24  ;;  %v6089_v15 = vsel %vm5934_vm2, %v6038_v17, 0.0  ;;  %v6756_v17 = vmov 1966171168  }
 0x4cc   :  { %v6082_v18 = vadd.f32 %v6081_v22, %v6080_v62  ;;  %v6050_v47 = vadd.f32 %v6049_v14, %v6031_v49 }
 0x4ce   :  { %v6084_v38 = vadd.f32 %v6083_v27, %v6082_v18  ;;  %v6051_v42 = vadd.f32 %v6050_v47, %v6033_v23  ;;  %v6124_v47 = vunpack.c.l.s4 %v6756_v17 }
 0x4d0   :  { %v6086_v8 = vadd.f32 %v6085_v7, %v6084_v38  ;;  %v6052_v28 = vadd.f32 %v6051_v42, %v6035_v10  ;;  %v6103_v10 = vld [vmem:[%s18685_s2] sm:$0x3]  ;;  %v21776_v7 = vld [vmem:[#allocation6_spill] sm:$0xff] }
 0x4d1   :  { %v6108_v38 = vrot.slane %v6103_v10, %v21776_v7 }
 0x4d2   :  { %v6088_v37 = vadd.f32 %v6087_v6, %v6086_v8  ;;  %v6053_v21 = vadd.f32 %v6052_v28, %v6037_v13  ;;  %v21777_v13 = vld [vmem:[#allocation7_spill] sm:$0xff]  ;;  %v6125_v8 = vunpack.c.0.s8 %v6124_v47 }
 0x4d3   :  { %v6112_v42 = vrot.slane %v6103_v10, %v21777_v13 }
 0x4d4   :  { %v6090_v24 = vadd.f32 %v6089_v15, %v6088_v37  ;;  %v6054_v20 = vrot.slane %v6053_v21, 4 }
 0x4d6   :  { %v6091_v3 = vrot.slane %v6090_v24, 4  ;;  %v6055_v61 = vadd.f32 %v6054_v20, %v6053_v21 }
 0x4d8   :  { %v6092_v34 = vadd.f32 %v6091_v3, %v6090_v24  ;;  %v6056_v45 = vrot.slane %v6055_v61, 2  ;;  %v21778_v3 = vld [vmem:[#allocation5_spill] sm:$0xff] }
 0x4da   :  { %v6093_v49 = vrot.slane %v6092_v34, 2  ;;  %v6057_v53 = vadd.f32 %v6056_v45, %v6055_v61  ;;  %v6128_v61 = vsub.s32 %v6125_v8, %v21778_v3 }
 0x4dc   :  { %v6094_v55 = vadd.f32 %v6093_v49, %v6092_v34  ;;  %v6058_v22 = vrot.slane %v6057_v53, 1 }
 0x4de   :  { %v6095_v44 = vrot.slane %v6094_v55, 1  ;;  %v6059_v62 = vadd.f32 %v6058_v22, %v6057_v53 }
 0x4e0   :  { %v6096_v23 = vadd.f32 %v6095_v44, %v6094_v55  ;;  %v6097_v5 = vmul.f32 0.0078125, %v6059_v62 }
 0x4e2   :  { %v6098_v14 = vmul.f32 0.0078125, %v6096_v23  ;;  %v6099_v27 = vadd.f32 1e-05, %v6097_v5  ;;  %v6117_v5 = vld [vmem:[%s18686_s3] sm:$0x3]  ;;  %s6757_s3 = smov [#allocation2]  }
 0x4e3   :  { %s6291_s5 = sshll.u32 %s6757_s3, 4  ;;  %s18663_s5 = int_to_ptr.vmem [resolvable:$true] %s6291_s5 }
 0x4e4   :  { %v6100_v18 = vadd.f32 1e-05, %v6098_v14  ;;  %6574 = vrsqrt.f32 %v6099_v27  ;;  %s6734_s6 = scalar_lea.vmem %s18663_s5, 4096  ;;  %p6739_p1 = scmp.lt.s32.totalorder %s18663_s5, %s18663_s5 }
 0x4e5   :  { %p6735_p0 = scmp.ne.s32.totalorder %s18663_s5, %s6734_s6  ;;  %p6740_p2 = scmp.lt.s32.totalorder %s6734_s6, %s6734_s6 }
 0x4e6   :  { %6576 = vrsqrt.f32 %v6100_v18 }
 0x4e7   :  { %p6741_p3 = por %p6740_p2, %p6739_p1 }
 0x4e9   :  { %p6742_p4 = pnand %p6741_p3, %p6735_p0 }
 0x4f1   :  { %v6575_v6 = vpop.eup %6574 }
 0x4f2   :  { %v6115_v15 = vmul.f32 %v6575_v6, %v6108_v38 }
 0x4f3   :  { %v6577_v28 = vpop.eup %6576 }
 0x4f4   :  { %v6116_v37 = vmul.f32 %v6577_v28, %v6112_v42  ;;  %v6118_v21 = vmul.f32 %v6115_v15, %v18484_v60  ;;  %v6142_v24 = vrot.slane %v6115_v15, %v21776_v7 }
 0x4f6   :  { %v6119_v20 = vmul.f32 %v6116_v37, %v18486_v29  ;;  %v6146_v34 = vrot.slane %v6116_v37, %v21776_v7  ;;  %v6147_v49 = vmul.f32 %v6142_v24, %v18302_v11  ;;  %v6149_v55 = vmul.f32 %v6142_v24, %v18308_v43 }
 0x4f7   :  { %v6151_v22 = vmul.f32 %v6142_v24, %v18323_v52  ;;  %v6153_v44 = vmul.f32 %v6142_v24, %v18331_v36  ;;  %v6155_v11 = vmul.f32 %v6142_v24, %v18348_v26  ;;  %v6157_v43 = vmul.f32 %v6142_v24, %v18360_v31 }
 0x4f8   :  { %v6122_v45 = vcombine.low %v6118_v21, %v6119_v20  ;;  %v6148_v53 = vmul.f32 %v6146_v34, %v18305_v35  ;;  %v6150_v62 = vmul.f32 %v6146_v34, %v18311_v32  ;;  %v6152_v29 = vmul.f32 %v6146_v34, %v18314_v57 }
 0x4f9   :  { %v6154_v23 = vmul.f32 %v6146_v34, %v18326_v50  ;;  %v6156_v35 = vmul.f32 %v6146_v34, %v18334_v39  ;;  %v6158_v52 = vmul.f32 %v6146_v34, %v18351_v9  ;;  %v6159_v14 = vmul.f32 %v6142_v24, %v18372_v0 }
 0x4fa   :  { %v6129_v60 = vrot.slane %v6122_v45, %v6128_v61  ;;  %v6160_v32 = vmul.f32 %v6146_v34, %v18363_v63  ;;  %v6161_v57 = vmul.f32 %v6142_v24, %v18384_v46  ;;  %v6162_v50 = vmul.f32 %v6146_v34, %v18375_v30 }
 0x4fb   :  { %v6163_v27 = vmul.f32 %v6142_v24, %v18396_v59  ;;  %v6164_v18 = vmul.f32 %v6146_v34, %v18387_v58  ;;  %v6165_v26 = vmul.f32 %v6142_v24, %v18408_v19  ;;  %v6166_v31 = vmul.f32 %v6146_v34, %v18399_v56 }
 0x4fc   :  { %v6136_v36 = vrot.slane %v6129_v60, %v6128_v61  ;;  %v6167_v9 = vmul.f32 %v6142_v24, %v18420_v25  ;;  %v6168_v10 = vmul.f32 %v6146_v34, %v18411_v40  ;;  %v6169_v0 = vmul.f32 %v6142_v24, %v18432_v48 }
 0x4fd   :  { %v6170_v63 = vmul.f32 %v6146_v34, %v18423_v2  ;;  %v6171_v46 = vmul.f32 %v6142_v24, %v18444_v54  ;;  %v6172_v30 = vmul.f32 %v6146_v34, %v18435_v41  ;;  %v6173_v59 = vmul.f32 %v6142_v24, %v18457_v16 }
 0x4fe   :  { %v6138_v39 = vsub.f32 %v6117_v5, %v6136_v36  ;;  %v6174_v58 = vmul.f32 %v6146_v34, %v18447_v4  ;;  %v6175_v25 = vmul.f32 %v6142_v24, %v18467_v1  ;;  %v6176_v40 = vmul.f32 %v6146_v34, %v18460_v12 }
 0x4ff   :  { %v6177_v48 = vmul.f32 %v6142_v24, %v18475_v51  ;;  %v6178_v2 = vmul.f32 %v6146_v34, %v18470_v33 }
 0x500   :  { %v6183_v19 = vrot.slane %v6138_v39, %v21776_v7  ;;  %v6187_v56 = vrot.slane %v6138_v39, %v21777_v13 }
 0x502   :  { %v6190_v17 = vadd.f32 %v6183_v19, %v6147_v49  ;;  %v6191_v54 = vadd.f32 %v6187_v56, %v6148_v53  ;;  %v6192_v47 = vadd.f32 %v6183_v19, %v6149_v55  ;;  %v6193_v41 = vadd.f32 %v6187_v56, %v6150_v62 }
 0x503   :  { %v6194_v38 = vadd.f32 %v6183_v19, %v6151_v22  ;;  %v6195_v16 = vadd.f32 %v6187_v56, %v6152_v29  ;;  %v6196_v42 = vadd.f32 %v6183_v19, %v6153_v44  ;;  %v6197_v4 = vadd.f32 %v6187_v56, %v6154_v23 }
 0x504   :  { %v6198_v6 = vadd.f32 %v6183_v19, %v6155_v11  ;;  %v6199_v7 = vadd.f32 %v6187_v56, %v6156_v35  ;;  %v6200_v8 = vadd.f32 %v6183_v19, %v6157_v43  ;;  %v6201_v13 = vadd.f32 %v6187_v56, %v6158_v52 }
 0x505   :  { %v6202_v28 = vadd.f32 %v6183_v19, %v6159_v14  ;;  %v6203_v1 = vadd.f32 %v6187_v56, %v6160_v32  ;;  %v6204_v15 = vadd.f32 %v6183_v19, %v6161_v57  ;;  %v6205_v12 = vadd.f32 %v6187_v56, %v6162_v50 }
 0x506   :  { %v6206_v37 = vadd.f32 %v6183_v19, %v6163_v27  ;;  %v18615_v51 = vadd.f32 %v6187_v56, %v6164_v18  ;;  %v6208_v33 = vadd.f32 %v6183_v19, %v6165_v26  ;;  %v18617_v21 = vadd.f32 %v6187_v56, %v6166_v31 }
 0x507   :  { %v18619_v24 = vadd.f32 %v6183_v19, %v6167_v9  ;;  %v18621_v20 = vadd.f32 %v6187_v56, %v6168_v10  ;;  %v18623_v3 = vadd.f32 %v6183_v19, %v6169_v0  ;;  %v18625_v61 = vadd.f32 %v6187_v56, %v6170_v63 }
 0x508   :  { %v18627_v34 = vadd.f32 %v6183_v19, %v6171_v46  ;;  %v18629_v45 = vadd.f32 %v6187_v56, %v6172_v30  ;;  %v18631_v49 = vadd.f32 %v6183_v19, %v6173_v59  ;;  %v18633_v53 = vadd.f32 %v6187_v56, %v6174_v58 }
 0x509   :  { %v18635_v55 = vadd.f32 %v6183_v19, %v6175_v25  ;;  %v18637_v22 = vadd.f32 %v6187_v56, %v6176_v40  ;;  %v18639_v44 = vadd.f32 %v6183_v19, %v6177_v48  ;;  %v18641_v60 = vadd.f32 %v6187_v56, %v6178_v2 }
 0x50a   :  { %v6222_v62 = vmax.f32 %v6190_v17, 0.0  ;;  %v6223_v29 = vmax.f32 %v6191_v54, 0.0  ;;  %v6224_v23 = vmax.f32 %v6192_v47, 0.0  ;;  %v6225_v5 = vmax.f32 %v6193_v41, 0.0 }
 0x50b   :  { %v6226_v11 = vmax.f32 %v6194_v38, 0.0  ;;  %v6227_v35 = vmax.f32 %v6195_v16, 0.0  ;;  %v6228_v43 = vmax.f32 %v6196_v42, 0.0  ;;  %v6229_v52 = vmax.f32 %v6197_v4, 0.0 }
 0x50c   :  { %v6230_v36 = vmax.f32 %v6198_v6, 0.0  ;;  %v6231_v14 = vmax.f32 %v6199_v7, 0.0  ;;  %v6232_v32 = vmax.f32 %v6200_v8, 0.0  ;;  %v6233_v57 = vmax.f32 %v6201_v13, 0.0  ;;  %6254 = vst [vmem:[#allocation2] sm:$0xff] %v6222_v62  ;;  %6255 = vst.msk [vmem:[#allocation2 + $0x8] sm:$0xff] %vm5934_vm2, %v6223_v29 }
 0x50d   :  { %6256 = vst [vmem:[#allocation2 + $0x10] sm:$0xff] %v6224_v23  ;;  %6257 = vst.msk [vmem:[#allocation2 + $0x18] sm:$0xff] %vm5934_vm2, %v6225_v5  ;;  %v6234_v50 = vmax.f32 %v6202_v28, 0.0  ;;  %v6235_v27 = vmax.f32 %v6203_v1, 0.0  ;;  %v6236_v18 = vmax.f32 %v6204_v15, 0.0  ;;  %v6237_v26 = vmax.f32 %v6205_v12, 0.0 }
 0x50e   :  { %6258 = vst [vmem:[#allocation2 + $0x20] sm:$0xff] %v6226_v11  ;;  %6259 = vst.msk [vmem:[#allocation2 + $0x28] sm:$0xff] %vm5934_vm2, %v6227_v35  ;;  %v6238_v39 = vmax.f32 %v6206_v37, 0.0  ;;  %v6239_v31 = vmax.f32 %v18615_v51, 0.0  ;;  %v6240_v9 = vmax.f32 %v6208_v33, 0.0  ;;  %v6241_v10 = vmax.f32 %v18617_v21, 0.0 }
 0x50f   :  { %6260 = vst [vmem:[#allocation2 + $0x30] sm:$0xff] %v6228_v43  ;;  %6261 = vst.msk [vmem:[#allocation2 + $0x38] sm:$0xff] %vm5934_vm2, %v6229_v52  ;;  %v6242_v0 = vmax.f32 %v18619_v24, 0.0  ;;  %v6243_v63 = vmax.f32 %v18621_v20, 0.0  ;;  %v6244_v46 = vmax.f32 %v18623_v3, 0.0  ;;  %v6245_v30 = vmax.f32 %v18625_v61, 0.0 }
 0x510   :  { %6262 = vst [vmem:[#allocation2 + $0x40] sm:$0xff] %v6230_v36  ;;  %6263 = vst.msk [vmem:[#allocation2 + $0x48] sm:$0xff] %vm5934_vm2, %v6231_v14  ;;  %v6246_v59 = vmax.f32 %v18627_v34, 0.0  ;;  %v6247_v58 = vmax.f32 %v18629_v45, 0.0  ;;  %v6248_v19 = vmax.f32 %v18631_v49, 0.0  ;;  %v6249_v56 = vmax.f32 %v18633_v53, 0.0 }
 0x511   :  { %6264 = vst [vmem:[#allocation2 + $0x50] sm:$0xff] %v6232_v32  ;;  %6265 = vst.msk [vmem:[#allocation2 + $0x58] sm:$0xff] %vm5934_vm2, %v6233_v57  ;;  %v6250_v25 = vmax.f32 %v18635_v55, 0.0  ;;  %v6251_v40 = vmax.f32 %v18637_v22, 0.0  ;;  %v6252_v48 = vmax.f32 %v18639_v44, 0.0  ;;  %v6253_v2 = vmax.f32 %v18641_v60, 0.0 }
 0x512   :  { %6266 = vst [vmem:[#allocation2 + $0x60] sm:$0xff] %v6234_v50  ;;  %6267 = vst.msk [vmem:[#allocation2 + $0x68] sm:$0xff] %vm5934_vm2, %v6235_v27 }
 0x513   :  { %6268 = vst [vmem:[#allocation2 + $0x70] sm:$0xff] %v6236_v18  ;;  %6269 = vst.msk [vmem:[#allocation2 + $0x78] sm:$0xff] %vm5934_vm2, %v6237_v26 }
 0x514   :  { %6270 = vst [vmem:[#allocation2 + $0x80] sm:$0xff] %v6238_v39  ;;  %6271 = vst.msk [vmem:[#allocation2 + $0x88] sm:$0xff] %vm5934_vm2, %v6239_v31 }
 0x515   :  { %6272 = vst [vmem:[#allocation2 + $0x90] sm:$0xff] %v6240_v9  ;;  %6273 = vst.msk [vmem:[#allocation2 + $0x98] sm:$0xff] %vm5934_vm2, %v6241_v10 }
 0x516   :  { %6274 = vst [vmem:[#allocation2 + $0xa0] sm:$0xff] %v6242_v0  ;;  %6275 = vst.msk [vmem:[#allocation2 + $0xa8] sm:$0xff] %vm5934_vm2, %v6243_v63 }
 0x517   :  { %6276 = vst [vmem:[#allocation2 + $0xb0] sm:$0xff] %v6244_v46  ;;  %6277 = vst.msk [vmem:[#allocation2 + $0xb8] sm:$0xff] %vm5934_vm2, %v6245_v30 }
 0x518   :  { %6278 = vst [vmem:[#allocation2 + $0xc0] sm:$0xff] %v6246_v59  ;;  %6279 = vst.msk [vmem:[#allocation2 + $0xc8] sm:$0xff] %vm5934_vm2, %v6247_v58 }
 0x519   :  { %6280 = vst [vmem:[#allocation2 + $0xd0] sm:$0xff] %v6248_v19  ;;  %6281 = vst.msk [vmem:[#allocation2 + $0xd8] sm:$0xff] %vm5934_vm2, %v6249_v56 }
 0x51a   :  { %6282 = vst [vmem:[#allocation2 + $0xe0] sm:$0xff] %v6250_v25  ;;  %6283 = vst.msk [vmem:[#allocation2 + $0xe8] sm:$0xff] %vm5934_vm2, %v6251_v40 }
 0x51b   :  { %6284 = vst [vmem:[#allocation2 + $0xf0] sm:$0xff] %v6252_v48  ;;  %6285 = vst.msk [vmem:[#allocation2 + $0xf8] sm:$0xff] %vm5934_vm2, %v6253_v2 }
 0x51c   :  { %6745 = shalt.err (!%p6742_p4)
}
 0x51d   :  { %s6758_s7 = smov 256   ;;  %s6759_s8 = smov 16  }
 0x51e   :  { %6297 = dma.vmem_to_hbm [thread:$0]  %s18663_s5, 4096, %s18687_s4, [#allocation3], %s6758_s7, %s6758_s7, %s6759_s8  }
 0x51f   :  { %6754 = dma.done.wait [#allocation3], 4096  }
 0x520   :  { %6755 = vsyncadd [#allocation3], 4294963200 }
 0x521   :  { %6301 = vsyncpa [#allocation3], 1 }

</bundles_post_ra>
